<compile_context>
chip_gen: v7x
topology: tpu7x:2x2x1
jax: 0.10.0
libtpu: 0.0.40
codegen_flags: <defaults>
</compile_context>

<pallas_src>
import functools

import jax
import jax.numpy as jnp
from jax.experimental import pallas as pl
from jax.experimental.pallas import tpu as pltpu


# ----------------------------- tiling helpers ------------------------------

def _sublane_tile(m, cap=512):
    """Largest tile <= cap that divides m and is a multiple of 8 (or m itself)."""
    if m <= cap:
        return m
    t = (cap // 8) * 8
    while t >= 8:
        if m % t == 0:
            return t
        t -= 8
    return m


def _lane_tile(k, cap=1024):
    """Largest multiple of 128 <= cap dividing k, else k (single K block)."""
    if k <= cap:
        return k
    t = (cap // 128) * 128
    while t >= 128:
        if k % t == 0:
            return t
        t -= 128
    return k


# ----------------------------- Pallas kernels ------------------------------

def _conv_mm_kernel(a_ref, w_ref, b_ref, o_ref, acc_ref, *, pre_act, post_act):
    """Fused conv-as-matmul: pre-activation on the patch tile, bf16 MXU dot into
    an f32 accumulator over the K grid axis, bias + post-activation on last K."""
    k = pl.program_id(1)

    @pl.when(k == 0)
    def _():
        acc_ref[...] = jnp.zeros_like(acc_ref)

    a = a_ref[...]
    if pre_act == "leaky":            # LeakyReLU(0.2) fused into the prologue
        a = jnp.where(a >= 0, a, 0.2 * a)
    elif pre_act == "relu":
        a = jnp.maximum(a, 0.0)
    acc_ref[...] += jnp.dot(a, w_ref[...], preferred_element_type=jnp.float32)

    @pl.when(k == pl.num_programs(1) - 1)
    def _():
        y = acc_ref[...] + b_ref[...]          # bias only once, in finalize
        if post_act == "tanh":
            y = jnp.tanh(y)
        elif post_act == "relu":
            y = jnp.maximum(y, 0.0)
        o_ref[...] = y.astype(o_ref.dtype)


def _bn_stats_kernel(x_ref, sum_ref, ssq_ref):
    """Tiled reduction: per-lane sum and sum-of-squares accumulated across the
    ("arbitrary") row-tile grid axis into resident output blocks."""
    @pl.when(pl.program_id(0) == 0)
    def _():
        sum_ref[...] = jnp.zeros_like(sum_ref)
        ssq_ref[...] = jnp.zeros_like(ssq_ref)
    x = x_ref[...]
    sum_ref[...] += jnp.sum(x, axis=0, keepdims=True)
    ssq_ref[...] += jnp.sum(x * x, axis=0, keepdims=True)


def _bn_apply_kernel(x_ref, s_ref, t_ref, o_ref):
    o_ref[...] = x_ref[...] * s_ref[...] + t_ref[...]


# ----------------------------- kernel wrappers ------------------------------

def _fused_conv_matmul(patches, wmat, bias, pre_act, post_act):
    """(M,K) @ (K,N) + b with fused activations; N padded to a 128 multiple."""
    M, K = patches.shape
    N = wmat.shape[1]
    Npad = ((N + 127) // 128) * 128
    if Npad != N:
        wmat = jnp.pad(wmat, ((0, 0), (0, Npad - N)))
        bias = jnp.pad(bias, ((0, Npad - N),))
    TM = _sublane_tile(M, 512)
    TK = _lane_tile(K, 1024)
    nm, nk = M // TM, K // TK

    out = pl.pallas_call(
        functools.partial(_conv_mm_kernel, pre_act=pre_act, post_act=post_act),
        out_shape=jax.ShapeDtypeStruct((M, Npad), jnp.float32),
        grid=(nm, nk),
        in_specs=[pl.BlockSpec((TM, TK), lambda i, k: (i, k)),
                  pl.BlockSpec((TK, Npad), lambda i, k: (k, 0)),
                  pl.BlockSpec((1, Npad), lambda i, k: (0, 0))],
        out_specs=pl.BlockSpec((TM, Npad), lambda i, k: (i, 0)),
        scratch_shapes=[pltpu.VMEM((TM, Npad), jnp.float32)],
        compiler_params=pltpu.CompilerParams(
            dimension_semantics=("parallel", "arbitrary"),
            vmem_limit_bytes=64 * 1024 * 1024),
    )(patches.astype(jnp.bfloat16), wmat.astype(jnp.bfloat16),
      bias.reshape(1, Npad).astype(jnp.float32))
    return out[:, :N] if Npad != N else out


def batchnorm(x, gamma, beta, eps=1e-5):
    """BatchNorm2d, training-mode batch statistics (biased variance)."""
    B, H, W, C = x.shape
    M = B * H * W
    xf = x.reshape(M, C).astype(jnp.float32)
    # Fold channels into full 128-wide lane rows when possible (lane-dense).
    if C < 128 and 128 % C == 0 and (M * C) % 128 == 0:
        fold = 128 // C
        xl = xf.reshape((M * C) // 128, 128)
    else:
        fold = 1
        xl = xf
    Mp, L = xl.shape
    TM = _sublane_tile(Mp, 512)
    grid = (Mp // TM,)

    ssum, ssq = pl.pallas_call(
        _bn_stats_kernel,
        out_shape=(jax.ShapeDtypeStruct((1, L), jnp.float32),
                   jax.ShapeDtypeStruct((1, L), jnp.float32)),
        grid=grid,
        in_specs=[pl.BlockSpec((TM, L), lambda i: (i, 0))],
        out_specs=(pl.BlockSpec((1, L), lambda i: (0, 0)),
                   pl.BlockSpec((1, L), lambda i: (0, 0))),
        compiler_params=pltpu.CompilerParams(
            dimension_semantics=("arbitrary",)),
    )(xl)

    if fold > 1:
        ssum = ssum.reshape(fold, C).sum(axis=0, keepdims=True)
        ssq = ssq.reshape(fold, C).sum(axis=0, keepdims=True)
    mean = ssum / M
    var = ssq / M - mean * mean
    scale = gamma.reshape(1, C) * jax.lax.rsqrt(var + eps)
    shift = beta.reshape(1, C) - mean * scale
    if fold > 1:
        scale = jnp.tile(scale, (1, fold))
        shift = jnp.tile(shift, (1, fold))

    out = pl.pallas_call(
        _bn_apply_kernel,
        out_shape=jax.ShapeDtypeStruct((Mp, L), jnp.float32),
        grid=grid,
        in_specs=[pl.BlockSpec((TM, L), lambda i: (i, 0)),
                  pl.BlockSpec((1, L), lambda i: (0, 0)),
                  pl.BlockSpec((1, L), lambda i: (0, 0))],
        out_specs=pl.BlockSpec((TM, L), lambda i: (i, 0)),
        compiler_params=pltpu.CompilerParams(
            dimension_semantics=("parallel",)),
    )(xl, scale, shift)
    return out.reshape(B, H, W, C)


# ------------------------- conv lowering (glue) ----------------------------

def _im2col(x, k, stride, pad):
    """NHWC -> bf16 patches (B*Ho*Wo, k*k*C), taps ordered (i, j) row-major.
    Under jit, XLA fuses pad + slice + stack + cast into a single producer."""
    xp = jnp.pad(x.astype(jnp.bfloat16),
                 ((0, 0), (pad, pad), (pad, pad), (0, 0)))
    B, Hp, Wp, C = xp.shape
    Ho = (Hp - k) // stride + 1
    Wo = (Wp - k) // stride + 1
    cols = []
    for i in range(k):
        for j in range(k):
            cols.append(xp[:, i:i + stride * (Ho - 1) + 1:stride,
                            j:j + stride * (Wo - 1) + 1:stride, :])
    p = jnp.stack(cols, axis=3)                           # (B,Ho,Wo,k*k,C)
    return p.reshape(B * Ho * Wo, k * k * C), (B, Ho, Wo)


def conv4x4_s2(x, w, b, pre_act="none", post_act="none"):
    """Conv2d(Cin,Cout,4,stride=2,pad=1); w in torch layout (Cout,Cin,4,4)."""
    Cout, Cin = w.shape[0], w.shape[1]
    patches, (B, Ho, Wo) = _im2col(x, k=4, stride=2, pad=1)
    wmat = jnp.transpose(w, (2, 3, 1, 0)).reshape(16 * Cin, Cout)
    out = _fused_conv_matmul(patches, wmat, b, pre_act, post_act)
    return out.reshape(B, Ho, Wo, Cout)


# output phase r (row) / c (col) -> ((input offset, kernel index), ...)
_PHASE_TAPS = {0: ((-1, 3), (0, 1)),
               1: ((0, 2), (1, 0))}


def _convT_phase_weight(w):
    """torch ConvTranspose2d weight (Cin,Cout,4,4) -> (9*Cin, 4*Cout) matrix
    mapping a 3x3 stride-1 neighborhood of x to the 4 subpixel output phases."""
    Cin, Cout = w.shape[0], w.shape[1]
    wp = jnp.zeros((3, 3, Cin, 2, 2, Cout), w.dtype)
    for r in range(2):
        for dy, kh in _PHASE_TAPS[r]:
            for c in range(2):
                for dx, kw in _PHASE_TAPS[c]:
                    wp = wp.at[dy + 1, dx + 1, :, r, c, :].set(w[:, :, kh, kw])
    return wp.reshape(9 * Cin, 4 * Cout)


def convT4x4_s2(x, w, b, pre_act="none", post_act="none"):
    """ConvTranspose2d(Cin,Cout,4,stride=2,pad=1) via subpixel decomposition:
    one matmul over 3x3 stride-1 patches produces all 4 output phases."""
    Cin, Cout = w.shape[0], w.shape[1]
    B, H, W, _ = x.shape
    patches, _ = _im2col(x, k=3, stride=1, pad=1)          # (B*H*W, 9*Cin)
    wmat = _convT_phase_weight(w)                          # (9*Cin, 4*Cout)
    out = _fused_conv_matmul(patches, wmat, jnp.tile(b, 4), pre_act, post_act)
    out = out.reshape(B, H, W, 2, 2, Cout)
    out = jnp.transpose(out, (0, 1, 3, 2, 4, 5)).reshape(B, 2 * H, 2 * W, Cout)
    return out


# ----------------------------- U-Net structure -----------------------------

def build_unet_params(key, input_nc, output_nc, num_downs, ngf):
    keys = iter(jax.random.split(key, 256))

    def conv_w(cout, cin):
        return jax.random.normal(next(keys), (cout, cin, 4, 4), jnp.float32) * 0.02

    def convT_w(cin, cout):
        return jax.random.normal(next(keys), (cin, cout, 4, 4), jnp.float32) * 0.02

    def bn(c):
        return {"gamma": jnp.ones((c,), jnp.float32),
                "beta": jnp.zeros((c,), jnp.float32)}

    def block(outer_nc, inner_nc, input_nc_=None, submodule=None,
              outermost=False, innermost=False):
        if input_nc_ is None:
            input_nc_ = outer_nc
        p = {"outermost": outermost, "innermost": innermost, "submodule": submodule}
        # BatchNorm norm layer => downconv / inner upconv have bias=False (zeros)
        p["down_w"] = conv_w(inner_nc, input_nc_)
        p["down_b"] = jnp.zeros((inner_nc,), jnp.float32)
        if outermost:
            p["up_w"] = convT_w(inner_nc * 2, outer_nc)
            p["up_b"] = jnp.zeros((outer_nc,), jnp.float32)   # bias=True, det init
        elif innermost:
            p["up_w"] = convT_w(inner_nc, outer_nc)
            p["up_b"] = jnp.zeros((outer_nc,), jnp.float32)
            p["upnorm"] = bn(outer_nc)
        else:
            p["downnorm"] = bn(inner_nc)
            p["up_w"] = convT_w(inner_nc * 2, outer_nc)
            p["up_b"] = jnp.zeros((outer_nc,), jnp.float32)
            p["upnorm"] = bn(outer_nc)
        return p

    blk = block(ngf * 8, ngf * 8, innermost=True)
    for _ in range(num_downs - 5):
        blk = block(ngf * 8, ngf * 8, submodule=blk)
    blk = block(ngf * 4, ngf * 8, submodule=blk)
    blk = block(ngf * 2, ngf * 4, submodule=blk)
    blk = block(ngf, ngf * 2, submodule=blk)
    blk = block(output_nc, ngf, input_nc_=input_nc, submodule=blk, outermost=True)
    return blk


def apply_block(p, x):
    """x: NHWC. Mirrors UnetSkipConnectionBlock.forward with fused activations:
    the leaky/relu preceding a conv rides in that conv's matmul prologue and
    the final Tanh in the outermost up-conv's epilogue."""
    if p["outermost"]:
        h = conv4x4_s2(x, p["down_w"], p["down_b"], pre_act="none")
        h = apply_block(p["submodule"], h)
        h = convT4x4_s2(h, p["up_w"], p["up_b"], pre_act="relu", post_act="tanh")
        return h
    elif p["innermost"]:
        h = conv4x4_s2(x, p["down_w"], p["down_b"], pre_act="leaky")
        h = convT4x4_s2(h, p["up_w"], p["up_b"], pre_act="relu")
        h = batchnorm(h, p["upnorm"]["gamma"], p["upnorm"]["beta"])
        return jnp.concatenate([x, h], axis=-1)            # torch.cat([x, .], dim=1)
    else:
        h = conv4x4_s2(x, p["down_w"], p["down_b"], pre_act="leaky")
        h = batchnorm(h, p["downnorm"]["gamma"], p["downnorm"]["beta"])
        h = apply_block(p["submodule"], h)
        h = convT4x4_s2(h, p["up_w"], p["up_b"], pre_act="relu")
        h = batchnorm(h, p["upnorm"]["gamma"], p["upnorm"]["beta"])
        return jnp.concatenate([x, h], axis=-1)


def unet_generator_forward(params, x_nchw):
    x = jnp.transpose(x_nchw, (0, 2, 3, 1))   # NCHW -> NHWC
    y = apply_block(params, x)
    return jnp.transpose(y, (0, 3, 1, 2))     # NHWC -> NCHW


# --------------------------------- main -------------------------------------

if __name__ == "__main__":
    key = jax.random.PRNGKey(0)
    pkey, xkey = jax.random.split(key)

    input_nc, output_nc, num_downs, ngf = 3, 3, 5, 8
    B, S = 2, 64                      # spatial must be divisible by 2**num_downs

    params = build_unet_params(pkey, input_nc, output_nc, num_downs, ngf)
    x = jax.random.normal(xkey, (B, input_nc, S, S), jnp.float32)

    forward = jax.jit(lambda inp: unet_generator_forward(params, inp))
    y = forward(x)
    y = jax.block_until_ready(y)
    assert y.shape == (B, output_nc, S, S), y.shape
    assert bool(jnp.all(jnp.isfinite(y)))
    print("KERNEL_OK")
</pallas_src>

<mosaic_0001>
module attributes {stable_mosaic.version = 11 : i64} {
  func.func @_conv_mm_kernel(%arg0: i32, %arg1: i32, %arg2: memref<512x48xbf16, #tpu.memory_space<vmem>>, %arg3: memref<48x128xbf16, #tpu.memory_space<vmem>>, %arg4: memref<1x128xf32, #tpu.memory_space<vmem>>, %arg5: memref<512x128xf32, #tpu.memory_space<vmem>>, %arg6: memref<512x128xf32, #tpu.memory_space<vmem>>) attributes {dimension_semantics = [#tpu.dimension_semantics<parallel>, #tpu.dimension_semantics<arbitrary>], iteration_bounds = array<i64: 4, 1>, scalar_prefetch = 0 : i64, scratch_operands = 1 : i64, tpu.core_type = #tpu.core_type<tc>, window_params = [{transform_indices = @transform_0, window_bounds = array<i64: 512, 48>}, {transform_indices = @transform_1, window_bounds = array<i64: 48, 128>}, {pipeline_mode = #tpu.pipeline_mode<synchronous>, transform_indices = @transform_2, window_bounds = array<i64: 1, 128>}, {transform_indices = @transform_3, window_bounds = array<i64: 512, 128>}]} {
    %c0_i32 = arith.constant 0 : i32
    %0 = arith.cmpi eq, %arg1, %c0_i32 : i32
    %1 = arith.extui %0 : i1 to i32
    %c0_i32_0 = arith.constant 0 : i32
    %2 = arith.cmpi ne, %1, %c0_i32_0 : i32
    scf.if %2 {
      %cst_10 = arith.constant 0.000000e+00 : f32
      %12 = vector.broadcast %cst_10 : f32 to vector<512x128xf32>
      %c0_11 = arith.constant 0 : index
      %c0_12 = arith.constant 0 : index
      %13 = vector.load %arg6[%c0_11, %c0_12] : memref<512x128xf32, #tpu.memory_space<vmem>>, vector<512x128xf32>
      tpu.vector_store %arg6[%c0_11, %c0_12], %12 {strides = array<i32>} : memref<512x128xf32, #tpu.memory_space<vmem>>, vector<512x128xf32>,
    } else {
    }
    %c0 = arith.constant 0 : index
    %c0_1 = arith.constant 0 : index
    %3 = vector.load %arg2[%c0, %c0_1] : memref<512x48xbf16, #tpu.memory_space<vmem>>, vector<512x48xbf16>
    %c0_2 = arith.constant 0 : index
    %c0_3 = arith.constant 0 : index
    %4 = vector.load %arg6[%c0_2, %c0_3] : memref<512x128xf32, #tpu.memory_space<vmem>>, vector<512x128xf32>
    %c0_4 = arith.constant 0 : index
    %c0_5 = arith.constant 0 : index
    %5 = vector.load %arg3[%c0_4, %c0_5] : memref<48x128xbf16, #tpu.memory_space<vmem>>, vector<48x128xbf16>
    %cst = arith.constant dense<0.000000e+00> : vector<512x128xf32>
    %6 = tpu.matmul %3, %5, %cst {dimension_numbers = #tpu.dot_dimension_numbers<[1], [0], [0], [1], [0, 0, 1, 1], [], []>} : vector<512x48xbf16>, vector<48x128xbf16>, vector<512x128xf32> -> vector<512x128xf32>
    %7 = arith.addf %4, %6 : vector<512x128xf32>
    %c0_6 = arith.constant 0 : index
    %c0_7 = arith.constant 0 : index
    %8 = vector.load %arg6[%c0_6, %c0_7] : memref<512x128xf32, #tpu.memory_space<vmem>>, vector<512x128xf32>
    tpu.vector_store %arg6[%c0_6, %c0_7], %7 {strides = array<i32>} : memref<512x128xf32, #tpu.memory_space<vmem>>, vector<512x128xf32>,
    %c0_i32_8 = arith.constant 0 : i32
    %9 = arith.cmpi eq, %arg1, %c0_i32_8 : i32
    %10 = arith.extui %9 : i1 to i32
    %c0_i32_9 = arith.constant 0 : i32
    %11 = arith.cmpi ne, %10, %c0_i32_9 : i32
    scf.if %11 {
      %c0_10 = arith.constant 0 : index
      %c0_11 = arith.constant 0 : index
      %12 = vector.load %arg6[%c0_10, %c0_11] : memref<512x128xf32, #tpu.memory_space<vmem>>, vector<512x128xf32>
      %c0_12 = arith.constant 0 : index
      %c0_13 = arith.constant 0 : index
      %13 = vector.load %arg4[%c0_12, %c0_13] : memref<1x128xf32, #tpu.memory_space<vmem>>, vector<1x128xf32>
      %14 = vector.broadcast %13 : vector<1x128xf32> to vector<512x128xf32>
      %15 = arith.addf %12, %14 : vector<512x128xf32>
      %c0_14 = arith.constant 0 : index
      %c0_15 = arith.constant 0 : index
      %16 = vector.load %arg5[%c0_14, %c0_15] : memref<512x128xf32, #tpu.memory_space<vmem>>, vector<512x128xf32>
      tpu.vector_store %arg5[%c0_14, %c0_15], %15 {strides = array<i32>} : memref<512x128xf32, #tpu.memory_space<vmem>>, vector<512x128xf32>,
    } else {
    }
    return
  }
  func.func @transform_0(%arg0: i32, %arg1: i32) -> (i32, i32) {
    %c0_i32 = arith.constant 0 : i32
    return %arg0, %arg1 : i32, i32
  }
  func.func @transform_1(%arg0: i32, %arg1: i32) -> (i32, i32) {
    %c0_i32 = arith.constant 0 : i32
    %c0_i32_0 = arith.constant 0 : i32
    return %arg1, %c0_i32 : i32, i32
  }
  func.func @transform_2(%arg0: i32, %arg1: i32) -> (i32, i32) {
    %c0_i32 = arith.constant 0 : i32
    %c0_i32_0 = arith.constant 0 : i32
    %c0_i32_1 = arith.constant 0 : i32
    return %c0_i32, %c0_i32_0 : i32, i32
  }
  func.func @transform_3(%arg0: i32, %arg1: i32) -> (i32, i32) {
    %c0_i32 = arith.constant 0 : i32
    %c0_i32_0 = arith.constant 0 : i32
    return %arg0, %c0_i32 : i32, i32
  }
}

module attributes {stable_mosaic.version = 11 : i64} {
  func.func @_conv_mm_kernel(%arg0: i32, %arg1: i32, %arg2: memref<512x128xbf16, #tpu.memory_space<vmem>>, %arg3: memref<128x128xbf16, #tpu.memory_space<vmem>>, %arg4: memref<1x128xf32, #tpu.memory_space<vmem>>, %arg5: memref<512x128xf32, #tpu.memory_space<vmem>>, %arg6: memref<512x128xf32, #tpu.memory_space<vmem>>) attributes {dimension_semantics = [#tpu.dimension_semantics<parallel>, #tpu.dimension_semantics<arbitrary>], iteration_bounds = array<i64: 1, 1>, scalar_prefetch = 0 : i64, scratch_operands = 1 : i64, tpu.core_type = #tpu.core_type<tc>, window_params = [{transform_indices = @transform_0, window_bounds = array<i64: 512, 128>}, {transform_indices = @transform_1, window_bounds = array<i64: 128, 128>}, {pipeline_mode = #tpu.pipeline_mode<synchronous>, transform_indices = @transform_2, window_bounds = array<i64: 1, 128>}, {transform_indices = @transform_3, window_bounds = array<i64: 512, 128>}]} {
    %c0_i32 = arith.constant 0 : i32
    %0 = arith.cmpi eq, %arg1, %c0_i32 : i32
    %1 = arith.extui %0 : i1 to i32
    %c0_i32_0 = arith.constant 0 : i32
    %2 = arith.cmpi ne, %1, %c0_i32_0 : i32
    scf.if %2 {
      %cst_12 = arith.constant 0.000000e+00 : f32
      %17 = vector.broadcast %cst_12 : f32 to vector<512x128xf32>
      %c0_13 = arith.constant 0 : index
      %c0_14 = arith.constant 0 : index
      %18 = vector.load %arg6[%c0_13, %c0_14] : memref<512x128xf32, #tpu.memory_space<vmem>>, vector<512x128xf32>
      tpu.vector_store %arg6[%c0_13, %c0_14], %17 {strides = array<i32>} : memref<512x128xf32, #tpu.memory_space<vmem>>, vector<512x128xf32>,
    } else {
    }
    %c0 = arith.constant 0 : index
    %c0_1 = arith.constant 0 : index
    %3 = vector.load %arg2[%c0, %c0_1] : memref<512x128xbf16, #tpu.memory_space<vmem>>, vector<512x128xbf16>
    %cst = arith.constant 0.000000e+00 : bf16
    %4 = vector.broadcast %cst : bf16 to vector<512x128xbf16>
    %5 = arith.cmpf oge, %3, %4 : vector<512x128xbf16>
    %cst_2 = arith.constant 2.001950e-01 : bf16
    %6 = vector.broadcast %cst_2 : bf16 to vector<512x128xbf16>
    %7 = arith.mulf %6, %3 : vector<512x128xbf16>
    %8 = arith.select %5, %3, %7 : vector<512x128xi1>, vector<512x128xbf16>
    %c0_3 = arith.constant 0 : index
    %c0_4 = arith.constant 0 : index
    %9 = vector.load %arg6[%c0_3, %c0_4] : memref<512x128xf32, #tpu.memory_space<vmem>>, vector<512x128xf32>
    %c0_5 = arith.constant 0 : index
    %c0_6 = arith.constant 0 : index
    %10 = vector.load %arg3[%c0_5, %c0_6] : memref<128x128xbf16, #tpu.memory_space<vmem>>, vector<128x128xbf16>
    %cst_7 = arith.constant dense<0.000000e+00> : vector<512x128xf32>
    %11 = tpu.matmul %8, %10, %cst_7 {dimension_numbers = #tpu.dot_dimension_numbers<[1], [0], [0], [1], [0, 0, 1, 1], [], []>} : vector<512x128xbf16>, vector<128x128xbf16>, vector<512x128xf32> -> vector<512x128xf32>
    %12 = arith.addf %9, %11 : vector<512x128xf32>
    %c0_8 = arith.constant 0 : index
    %c0_9 = arith.constant 0 : index
    %13 = vector.load %arg6[%c0_8, %c0_9] : memref<512x128xf32, #tpu.memory_space<vmem>>, vector<512x128xf32>
    tpu.vector_store %arg6[%c0_8, %c0_9], %12 {strides = array<i32>} : memref<512x128xf32, #tpu.memory_space<vmem>>, vector<512x128xf32>,
    %c0_i32_10 = arith.constant 0 : i32
    %14 = arith.cmpi eq, %arg1, %c0_i32_10 : i32
    %15 = arith.extui %14 : i1 to i32
    %c0_i32_11 = arith.constant 0 : i32
    %16 = arith.cmpi ne, %15, %c0_i32_11 : i32
    scf.if %16 {
      %c0_12 = arith.constant 0 : index
      %c0_13 = arith.constant 0 : index
      %17 = vector.load %arg6[%c0_12, %c0_13] : memref<512x128xf32, #tpu.memory_space<vmem>>, vector<512x128xf32>
      %c0_14 = arith.constant 0 : index
      %c0_15 = arith.constant 0 : index
      %18 = vector.load %arg4[%c0_14, %c0_15] : memref<1x128xf32, #tpu.memory_space<vmem>>, vector<1x128xf32>
      %19 = vector.broadcast %18 : vector<1x128xf32> to vector<512x128xf32>
      %20 = arith.addf %17, %19 : vector<512x128xf32>
      %c0_16 = arith.constant 0 : index
      %c0_17 = arith.constant 0 : index
      %21 = vector.load %arg5[%c0_16, %c0_17] : memref<512x128xf32, #tpu.memory_space<vmem>>, vector<512x128xf32>
      tpu.vector_store %arg5[%c0_16, %c0_17], %20 {strides = array<i32>} : memref<512x128xf32, #tpu.memory_space<vmem>>, vector<512x128xf32>,
    } else {
    }
    return
  }
  func.func @transform_0(%arg0: i32, %arg1: i32) -> (i32, i32) {
    %c0_i32 = arith.constant 0 : i32
    return %arg0, %arg1 : i32, i32
  }
  func.func @transform_1(%arg0: i32, %arg1: i32) -> (i32, i32) {
    %c0_i32 = arith.constant 0 : i32
    %c0_i32_0 = arith.constant 0 : i32
    return %arg1, %c0_i32 : i32, i32
  }
  func.func @transform_2(%arg0: i32, %arg1: i32) -> (i32, i32) {
    %c0_i32 = arith.constant 0 : i32
    %c0_i32_0 = arith.constant 0 : i32
    %c0_i32_1 = arith.constant 0 : i32
    return %c0_i32, %c0_i32_0 : i32, i32
  }
  func.func @transform_3(%arg0: i32, %arg1: i32) -> (i32, i32) {
    %c0_i32 = arith.constant 0 : i32
    %c0_i32_0 = arith.constant 0 : i32
    return %arg0, %c0_i32 : i32, i32
  }
}

module attributes {stable_mosaic.version = 11 : i64} {
  func.func @_bn_stats_kernel(%arg0: i32, %arg1: memref<64x128xf32, #tpu.memory_space<vmem>>, %arg2: memref<1x128xf32, #tpu.memory_space<vmem>>, %arg3: memref<1x128xf32, #tpu.memory_space<vmem>>) attributes {dimension_semantics = [#tpu.dimension_semantics<arbitrary>], iteration_bounds = array<i64: 1>, scalar_prefetch = 0 : i64, scratch_operands = 0 : i64, tpu.core_type = #tpu.core_type<tc>, window_params = [{transform_indices = @transform_0, window_bounds = array<i64: 64, 128>}, {pipeline_mode = #tpu.pipeline_mode<synchronous>, transform_indices = @transform_1, window_bounds = array<i64: 1, 128>}, {pipeline_mode = #tpu.pipeline_mode<synchronous>, transform_indices = @transform_2, window_bounds = array<i64: 1, 128>}]} {
    %c0_i32 = arith.constant 0 : i32
    %0 = arith.cmpi eq, %arg0, %c0_i32 : i32
    %1 = arith.extui %0 : i1 to i32
    %c0_i32_0 = arith.constant 0 : i32
    %2 = arith.cmpi ne, %1, %c0_i32_0 : i32
    scf.if %2 {
      %cst_11 = arith.constant 0.000000e+00 : f32
      %15 = vector.broadcast %cst_11 : f32 to vector<1x128xf32>
      %c0_12 = arith.constant 0 : index
      %c0_13 = arith.constant 0 : index
      %16 = vector.load %arg2[%c0_12, %c0_13] : memref<1x128xf32, #tpu.memory_space<vmem>>, vector<1x128xf32>
      tpu.vector_store %arg2[%c0_12, %c0_13], %15 {strides = array<i32>} : memref<1x128xf32, #tpu.memory_space<vmem>>, vector<1x128xf32>,
      %cst_14 = arith.constant 0.000000e+00 : f32
      %17 = vector.broadcast %cst_14 : f32 to vector<1x128xf32>
      %c0_15 = arith.constant 0 : index
      %c0_16 = arith.constant 0 : index
      %18 = vector.load %arg3[%c0_15, %c0_16] : memref<1x128xf32, #tpu.memory_space<vmem>>, vector<1x128xf32>
      tpu.vector_store %arg3[%c0_15, %c0_16], %17 {strides = array<i32>} : memref<1x128xf32, #tpu.memory_space<vmem>>, vector<1x128xf32>,
    } else {
    }
    %c0 = arith.constant 0 : index
    %c0_1 = arith.constant 0 : index
    %3 = vector.load %arg1[%c0, %c0_1] : memref<64x128xf32, #tpu.memory_space<vmem>>, vector<64x128xf32>
    %c0_2 = arith.constant 0 : index
    %c0_3 = arith.constant 0 : index
    %4 = vector.load %arg2[%c0_2, %c0_3] : memref<1x128xf32, #tpu.memory_space<vmem>>, vector<1x128xf32>
    %cst = arith.constant dense<0.000000e+00> : vector<128xf32>
    %5 = vector.multi_reduction <add>, %3, %cst [0] : vector<64x128xf32> to vector<128xf32>
    %6 = vector.shape_cast %5 : vector<128xf32> to vector<1x128xf32>
    %7 = arith.addf %4, %6 : vector<1x128xf32>
    %c0_4 = arith.constant 0 : index
    %c0_5 = arith.constant 0 : index
    %8 = vector.load %arg2[%c0_4, %c0_5] : memref<1x128xf32, #tpu.memory_space<vmem>>, vector<1x128xf32>
    tpu.vector_store %arg2[%c0_4, %c0_5], %7 {strides = array<i32>} : memref<1x128xf32, #tpu.memory_space<vmem>>, vector<1x128xf32>,
    %c0_6 = arith.constant 0 : index
    %c0_7 = arith.constant 0 : index
    %9 = vector.load %arg3[%c0_6, %c0_7] : memref<1x128xf32, #tpu.memory_space<vmem>>, vector<1x128xf32>
    %10 = arith.mulf %3, %3 : vector<64x128xf32>
    %cst_8 = arith.constant dense<0.000000e+00> : vector<128xf32>
    %11 = vector.multi_reduction <add>, %10, %cst_8 [0] : vector<64x128xf32> to vector<128xf32>
    %12 = vector.shape_cast %11 : vector<128xf32> to vector<1x128xf32>
    %13 = arith.addf %9, %12 : vector<1x128xf32>
    %c0_9 = arith.constant 0 : index
    %c0_10 = arith.constant 0 : index
    %14 = vector.load %arg3[%c0_9, %c0_10] : memref<1x128xf32, #tpu.memory_space<vmem>>, vector<1x128xf32>
    tpu.vector_store %arg3[%c0_9, %c0_10], %13 {strides = array<i32>} : memref<1x128xf32, #tpu.memory_space<vmem>>, vector<1x128xf32>,
    return
  }
  func.func @transform_0(%arg0: i32) -> (i32, i32) {
    %c0_i32 = arith.constant 0 : i32
    %c0_i32_0 = arith.constant 0 : i32
    return %arg0, %c0_i32 : i32, i32
  }
  func.func @transform_1(%arg0: i32) -> (i32, i32) {
    %c0_i32 = arith.constant 0 : i32
    %c0_i32_0 = arith.constant 0 : i32
    %c0_i32_1 = arith.constant 0 : i32
    return %c0_i32, %c0_i32_0 : i32, i32
  }
  func.func @transform_2(%arg0: i32) -> (i32, i32) {
    %c0_i32 = arith.constant 0 : i32
    %c0_i32_0 = arith.constant 0 : i32
    %c0_i32_1 = arith.constant 0 : i32
    return %c0_i32, %c0_i32_0 : i32, i32
  }
}

module attributes {stable_mosaic.version = 11 : i64} {
  func.func @_bn_apply_kernel(%arg0: i32, %arg1: memref<64x128xf32, #tpu.memory_space<vmem>>, %arg2: memref<1x128xf32, #tpu.memory_space<vmem>>, %arg3: memref<1x128xf32, #tpu.memory_space<vmem>>, %arg4: memref<64x128xf32, #tpu.memory_space<vmem>>) attributes {dimension_semantics = [#tpu.dimension_semantics<parallel>], iteration_bounds = array<i64: 1>, scalar_prefetch = 0 : i64, scratch_operands = 0 : i64, tpu.core_type = #tpu.core_type<tc>, window_params = [{transform_indices = @transform_0, window_bounds = array<i64: 64, 128>}, {pipeline_mode = #tpu.pipeline_mode<synchronous>, transform_indices = @transform_1, window_bounds = array<i64: 1, 128>}, {pipeline_mode = #tpu.pipeline_mode<synchronous>, transform_indices = @transform_2, window_bounds = array<i64: 1, 128>}, {transform_indices = @transform_3, window_bounds = array<i64: 64, 128>}]} {
    %c0 = arith.constant 0 : index
    %c0_0 = arith.constant 0 : index
    %0 = vector.load %arg1[%c0, %c0_0] : memref<64x128xf32, #tpu.memory_space<vmem>>, vector<64x128xf32>
    %c0_1 = arith.constant 0 : index
    %c0_2 = arith.constant 0 : index
    %1 = vector.load %arg2[%c0_1, %c0_2] : memref<1x128xf32, #tpu.memory_space<vmem>>, vector<1x128xf32>
    %2 = vector.broadcast %1 : vector<1x128xf32> to vector<64x128xf32>
    %3 = arith.mulf %0, %2 : vector<64x128xf32>
    %c0_3 = arith.constant 0 : index
    %c0_4 = arith.constant 0 : index
    %4 = vector.load %arg3[%c0_3, %c0_4] : memref<1x128xf32, #tpu.memory_space<vmem>>, vector<1x128xf32>
    %5 = vector.broadcast %4 : vector<1x128xf32> to vector<64x128xf32>
    %6 = arith.addf %3, %5 : vector<64x128xf32>
    %c0_5 = arith.constant 0 : index
    %c0_6 = arith.constant 0 : index
    %7 = vector.load %arg4[%c0_5, %c0_6] : memref<64x128xf32, #tpu.memory_space<vmem>>, vector<64x128xf32>
    tpu.vector_store %arg4[%c0_5, %c0_6], %6 {strides = array<i32>} : memref<64x128xf32, #tpu.memory_space<vmem>>, vector<64x128xf32>,
    return
  }
  func.func @transform_0(%arg0: i32) -> (i32, i32) {
    %c0_i32 = arith.constant 0 : i32
    %c0_i32_0 = arith.constant 0 : i32
    return %arg0, %c0_i32 : i32, i32
  }
  func.func @transform_1(%arg0: i32) -> (i32, i32) {
    %c0_i32 = arith.constant 0 : i32
    %c0_i32_0 = arith.constant 0 : i32
    %c0_i32_1 = arith.constant 0 : i32
    return %c0_i32, %c0_i32_0 : i32, i32
  }
  func.func @transform_2(%arg0: i32) -> (i32, i32) {
    %c0_i32 = arith.constant 0 : i32
    %c0_i32_0 = arith.constant 0 : i32
    %c0_i32_1 = arith.constant 0 : i32
    return %c0_i32, %c0_i32_0 : i32, i32
  }
  func.func @transform_3(%arg0: i32) -> (i32, i32) {
    %c0_i32 = arith.constant 0 : i32
    %c0_i32_0 = arith.constant 0 : i32
    return %arg0, %c0_i32 : i32, i32
  }
}

module attributes {stable_mosaic.version = 11 : i64} {
  func.func @_conv_mm_kernel(%arg0: i32, %arg1: i32, %arg2: memref<128x256xbf16, #tpu.memory_space<vmem>>, %arg3: memref<256x128xbf16, #tpu.memory_space<vmem>>, %arg4: memref<1x128xf32, #tpu.memory_space<vmem>>, %arg5: memref<128x128xf32, #tpu.memory_space<vmem>>, %arg6: memref<128x128xf32, #tpu.memory_space<vmem>>) attributes {dimension_semantics = [#tpu.dimension_semantics<parallel>, #tpu.dimension_semantics<arbitrary>], iteration_bounds = array<i64: 1, 1>, scalar_prefetch = 0 : i64, scratch_operands = 1 : i64, tpu.core_type = #tpu.core_type<tc>, window_params = [{transform_indices = @transform_0, window_bounds = array<i64: 128, 256>}, {transform_indices = @transform_1, window_bounds = array<i64: 256, 128>}, {pipeline_mode = #tpu.pipeline_mode<synchronous>, transform_indices = @transform_2, window_bounds = array<i64: 1, 128>}, {transform_indices = @transform_3, window_bounds = array<i64: 128, 128>}]} {
    %c0_i32 = arith.constant 0 : i32
    %0 = arith.cmpi eq, %arg1, %c0_i32 : i32
    %1 = arith.extui %0 : i1 to i32
    %c0_i32_0 = arith.constant 0 : i32
    %2 = arith.cmpi ne, %1, %c0_i32_0 : i32
    scf.if %2 {
      %cst_12 = arith.constant 0.000000e+00 : f32
      %17 = vector.broadcast %cst_12 : f32 to vector<128x128xf32>
      %c0_13 = arith.constant 0 : index
      %c0_14 = arith.constant 0 : index
      %18 = vector.load %arg6[%c0_13, %c0_14] : memref<128x128xf32, #tpu.memory_space<vmem>>, vector<128x128xf32>
      tpu.vector_store %arg6[%c0_13, %c0_14], %17 {strides = array<i32>} : memref<128x128xf32, #tpu.memory_space<vmem>>, vector<128x128xf32>,
    } else {
    }
    %c0 = arith.constant 0 : index
    %c0_1 = arith.constant 0 : index
    %3 = vector.load %arg2[%c0, %c0_1] : memref<128x256xbf16, #tpu.memory_space<vmem>>, vector<128x256xbf16>
    %cst = arith.constant 0.000000e+00 : bf16
    %4 = vector.broadcast %cst : bf16 to vector<128x256xbf16>
    %5 = arith.cmpf oge, %3, %4 : vector<128x256xbf16>
    %cst_2 = arith.constant 2.001950e-01 : bf16
    %6 = vector.broadcast %cst_2 : bf16 to vector<128x256xbf16>
    %7 = arith.mulf %6, %3 : vector<128x256xbf16>
    %8 = arith.select %5, %3, %7 : vector<128x256xi1>, vector<128x256xbf16>
    %c0_3 = arith.constant 0 : index
    %c0_4 = arith.constant 0 : index
    %9 = vector.load %arg6[%c0_3, %c0_4] : memref<128x128xf32, #tpu.memory_space<vmem>>, vector<128x128xf32>
    %c0_5 = arith.constant 0 : index
    %c0_6 = arith.constant 0 : index
    %10 = vector.load %arg3[%c0_5, %c0_6] : memref<256x128xbf16, #tpu.memory_space<vmem>>, vector<256x128xbf16>
    %cst_7 = arith.constant dense<0.000000e+00> : vector<128x128xf32>
    %11 = tpu.matmul %8, %10, %cst_7 {dimension_numbers = #tpu.dot_dimension_numbers<[1], [0], [0], [1], [0, 0, 1, 1], [], []>} : vector<128x256xbf16>, vector<256x128xbf16>, vector<128x128xf32> -> vector<128x128xf32>
    %12 = arith.addf %9, %11 : vector<128x128xf32>
    %c0_8 = arith.constant 0 : index
    %c0_9 = arith.constant 0 : index
    %13 = vector.load %arg6[%c0_8, %c0_9] : memref<128x128xf32, #tpu.memory_space<vmem>>, vector<128x128xf32>
    tpu.vector_store %arg6[%c0_8, %c0_9], %12 {strides = array<i32>} : memref<128x128xf32, #tpu.memory_space<vmem>>, vector<128x128xf32>,
    %c0_i32_10 = arith.constant 0 : i32
    %14 = arith.cmpi eq, %arg1, %c0_i32_10 : i32
    %15 = arith.extui %14 : i1 to i32
    %c0_i32_11 = arith.constant 0 : i32
    %16 = arith.cmpi ne, %15, %c0_i32_11 : i32
    scf.if %16 {
      %c0_12 = arith.constant 0 : index
      %c0_13 = arith.constant 0 : index
      %17 = vector.load %arg6[%c0_12, %c0_13] : memref<128x128xf32, #tpu.memory_space<vmem>>, vector<128x128xf32>
      %c0_14 = arith.constant 0 : index
      %c0_15 = arith.constant 0 : index
      %18 = vector.load %arg4[%c0_14, %c0_15] : memref<1x128xf32, #tpu.memory_space<vmem>>, vector<1x128xf32>
      %19 = vector.broadcast %18 : vector<1x128xf32> to vector<128x128xf32>
      %20 = arith.addf %17, %19 : vector<128x128xf32>
      %c0_16 = arith.constant 0 : index
      %c0_17 = arith.constant 0 : index
      %21 = vector.load %arg5[%c0_16, %c0_17] : memref<128x128xf32, #tpu.memory_space<vmem>>, vector<128x128xf32>
      tpu.vector_store %arg5[%c0_16, %c0_17], %20 {strides = array<i32>} : memref<128x128xf32, #tpu.memory_space<vmem>>, vector<128x128xf32>,
    } else {
    }
    return
  }
  func.func @transform_0(%arg0: i32, %arg1: i32) -> (i32, i32) {
    %c0_i32 = arith.constant 0 : i32
    return %arg0, %arg1 : i32, i32
  }
  func.func @transform_1(%arg0: i32, %arg1: i32) -> (i32, i32) {
    %c0_i32 = arith.constant 0 : i32
    %c0_i32_0 = arith.constant 0 : i32
    return %arg1, %c0_i32 : i32, i32
  }
  func.func @transform_2(%arg0: i32, %arg1: i32) -> (i32, i32) {
    %c0_i32 = arith.constant 0 : i32
    %c0_i32_0 = arith.constant 0 : i32
    %c0_i32_1 = arith.constant 0 : i32
    return %c0_i32, %c0_i32_0 : i32, i32
  }
  func.func @transform_3(%arg0: i32, %arg1: i32) -> (i32, i32) {
    %c0_i32 = arith.constant 0 : i32
    %c0_i32_0 = arith.constant 0 : i32
    return %arg0, %c0_i32 : i32, i32
  }
}

module attributes {stable_mosaic.version = 11 : i64} {
  func.func @_bn_stats_kernel(%arg0: i32, %arg1: memref<32x128xf32, #tpu.memory_space<vmem>>, %arg2: memref<1x128xf32, #tpu.memory_space<vmem>>, %arg3: memref<1x128xf32, #tpu.memory_space<vmem>>) attributes {dimension_semantics = [#tpu.dimension_semantics<arbitrary>], iteration_bounds = array<i64: 1>, scalar_prefetch = 0 : i64, scratch_operands = 0 : i64, tpu.core_type = #tpu.core_type<tc>, window_params = [{transform_indices = @transform_0, window_bounds = array<i64: 32, 128>}, {pipeline_mode = #tpu.pipeline_mode<synchronous>, transform_indices = @transform_1, window_bounds = array<i64: 1, 128>}, {pipeline_mode = #tpu.pipeline_mode<synchronous>, transform_indices = @transform_2, window_bounds = array<i64: 1, 128>}]} {
    %c0_i32 = arith.constant 0 : i32
    %0 = arith.cmpi eq, %arg0, %c0_i32 : i32
    %1 = arith.extui %0 : i1 to i32
    %c0_i32_0 = arith.constant 0 : i32
    %2 = arith.cmpi ne, %1, %c0_i32_0 : i32
    scf.if %2 {
      %cst_11 = arith.constant 0.000000e+00 : f32
      %15 = vector.broadcast %cst_11 : f32 to vector<1x128xf32>
      %c0_12 = arith.constant 0 : index
      %c0_13 = arith.constant 0 : index
      %16 = vector.load %arg2[%c0_12, %c0_13] : memref<1x128xf32, #tpu.memory_space<vmem>>, vector<1x128xf32>
      tpu.vector_store %arg2[%c0_12, %c0_13], %15 {strides = array<i32>} : memref<1x128xf32, #tpu.memory_space<vmem>>, vector<1x128xf32>,
      %cst_14 = arith.constant 0.000000e+00 : f32
      %17 = vector.broadcast %cst_14 : f32 to vector<1x128xf32>
      %c0_15 = arith.constant 0 : index
      %c0_16 = arith.constant 0 : index
      %18 = vector.load %arg3[%c0_15, %c0_16] : memref<1x128xf32, #tpu.memory_space<vmem>>, vector<1x128xf32>
      tpu.vector_store %arg3[%c0_15, %c0_16], %17 {strides = array<i32>} : memref<1x128xf32, #tpu.memory_space<vmem>>, vector<1x128xf32>,
    } else {
    }
    %c0 = arith.constant 0 : index
    %c0_1 = arith.constant 0 : index
    %3 = vector.load %arg1[%c0, %c0_1] : memref<32x128xf32, #tpu.memory_space<vmem>>, vector<32x128xf32>
    %c0_2 = arith.constant 0 : index
    %c0_3 = arith.constant 0 : index
    %4 = vector.load %arg2[%c0_2, %c0_3] : memref<1x128xf32, #tpu.memory_space<vmem>>, vector<1x128xf32>
    %cst = arith.constant dense<0.000000e+00> : vector<128xf32>
    %5 = vector.multi_reduction <add>, %3, %cst [0] : vector<32x128xf32> to vector<128xf32>
    %6 = vector.shape_cast %5 : vector<128xf32> to vector<1x128xf32>
    %7 = arith.addf %4, %6 : vector<1x128xf32>
    %c0_4 = arith.constant 0 : index
    %c0_5 = arith.constant 0 : index
    %8 = vector.load %arg2[%c0_4, %c0_5] : memref<1x128xf32, #tpu.memory_space<vmem>>, vector<1x128xf32>
    tpu.vector_store %arg2[%c0_4, %c0_5], %7 {strides = array<i32>} : memref<1x128xf32, #tpu.memory_space<vmem>>, vector<1x128xf32>,
    %c0_6 = arith.constant 0 : index
    %c0_7 = arith.constant 0 : index
    %9 = vector.load %arg3[%c0_6, %c0_7] : memref<1x128xf32, #tpu.memory_space<vmem>>, vector<1x128xf32>
    %10 = arith.mulf %3, %3 : vector<32x128xf32>
    %cst_8 = arith.constant dense<0.000000e+00> : vector<128xf32>
    %11 = vector.multi_reduction <add>, %10, %cst_8 [0] : vector<32x128xf32> to vector<128xf32>
    %12 = vector.shape_cast %11 : vector<128xf32> to vector<1x128xf32>
    %13 = arith.addf %9, %12 : vector<1x128xf32>
    %c0_9 = arith.constant 0 : index
    %c0_10 = arith.constant 0 : index
    %14 = vector.load %arg3[%c0_9, %c0_10] : memref<1x128xf32, #tpu.memory_space<vmem>>, vector<1x128xf32>
    tpu.vector_store %arg3[%c0_9, %c0_10], %13 {strides = array<i32>} : memref<1x128xf32, #tpu.memory_space<vmem>>, vector<1x128xf32>,
    return
  }
  func.func @transform_0(%arg0: i32) -> (i32, i32) {
    %c0_i32 = arith.constant 0 : i32
    %c0_i32_0 = arith.constant 0 : i32
    return %arg0, %c0_i32 : i32, i32
  }
  func.func @transform_1(%arg0: i32) -> (i32, i32) {
    %c0_i32 = arith.constant 0 : i32
    %c0_i32_0 = arith.constant 0 : i32
    %c0_i32_1 = arith.constant 0 : i32
    return %c0_i32, %c0_i32_0 : i32, i32
  }
  func.func @transform_2(%arg0: i32) -> (i32, i32) {
    %c0_i32 = arith.constant 0 : i32
    %c0_i32_0 = arith.constant 0 : i32
    %c0_i32_1 = arith.constant 0 : i32
    return %c0_i32, %c0_i32_0 : i32, i32
  }
}

module attributes {stable_mosaic.version = 11 : i64} {
  func.func @_bn_apply_kernel(%arg0: i32, %arg1: memref<32x128xf32, #tpu.memory_space<vmem>>, %arg2: memref<1x128xf32, #tpu.memory_space<vmem>>, %arg3: memref<1x128xf32, #tpu.memory_space<vmem>>, %arg4: memref<32x128xf32, #tpu.memory_space<vmem>>) attributes {dimension_semantics = [#tpu.dimension_semantics<parallel>], iteration_bounds = array<i64: 1>, scalar_prefetch = 0 : i64, scratch_operands = 0 : i64, tpu.core_type = #tpu.core_type<tc>, window_params = [{transform_indices = @transform_0, window_bounds = array<i64: 32, 128>}, {pipeline_mode = #tpu.pipeline_mode<synchronous>, transform_indices = @transform_1, window_bounds = array<i64: 1, 128>}, {pipeline_mode = #tpu.pipeline_mode<synchronous>, transform_indices = @transform_2, window_bounds = array<i64: 1, 128>}, {transform_indices = @transform_3, window_bounds = array<i64: 32, 128>}]} {
    %c0 = arith.constant 0 : index
    %c0_0 = arith.constant 0 : index
    %0 = vector.load %arg1[%c0, %c0_0] : memref<32x128xf32, #tpu.memory_space<vmem>>, vector<32x128xf32>
    %c0_1 = arith.constant 0 : index
    %c0_2 = arith.constant 0 : index
    %1 = vector.load %arg2[%c0_1, %c0_2] : memref<1x128xf32, #tpu.memory_space<vmem>>, vector<1x128xf32>
    %2 = vector.broadcast %1 : vector<1x128xf32> to vector<32x128xf32>
    %3 = arith.mulf %0, %2 : vector<32x128xf32>
    %c0_3 = arith.constant 0 : index
    %c0_4 = arith.constant 0 : index
    %4 = vector.load %arg3[%c0_3, %c0_4] : memref<1x128xf32, #tpu.memory_space<vmem>>, vector<1x128xf32>
    %5 = vector.broadcast %4 : vector<1x128xf32> to vector<32x128xf32>
    %6 = arith.addf %3, %5 : vector<32x128xf32>
    %c0_5 = arith.constant 0 : index
    %c0_6 = arith.constant 0 : index
    %7 = vector.load %arg4[%c0_5, %c0_6] : memref<32x128xf32, #tpu.memory_space<vmem>>, vector<32x128xf32>
    tpu.vector_store %arg4[%c0_5, %c0_6], %6 {strides = array<i32>} : memref<32x128xf32, #tpu.memory_space<vmem>>, vector<32x128xf32>,
    return
  }
  func.func @transform_0(%arg0: i32) -> (i32, i32) {
    %c0_i32 = arith.constant 0 : i32
    %c0_i32_0 = arith.constant 0 : i32
    return %arg0, %c0_i32 : i32, i32
  }
  func.func @transform_1(%arg0: i32) -> (i32, i32) {
    %c0_i32 = arith.constant 0 : i32
    %c0_i32_0 = arith.constant 0 : i32
    %c0_i32_1 = arith.constant 0 : i32
    return %c0_i32, %c0_i32_0 : i32, i32
  }
  func.func @transform_2(%arg0: i32) -> (i32, i32) {
    %c0_i32 = arith.constant 0 : i32
    %c0_i32_0 = arith.constant 0 : i32
    %c0_i32_1 = arith.constant 0 : i32
    return %c0_i32, %c0_i32_0 : i32, i32
  }
  func.func @transform_3(%arg0: i32) -> (i32, i32) {
    %c0_i32 = arith.constant 0 : i32
    %c0_i32_0 = arith.constant 0 : i32
    return %arg0, %c0_i32 : i32, i32
  }
}

module attributes {stable_mosaic.version = 11 : i64} {
  func.func @_conv_mm_kernel(%arg0: i32, %arg1: i32, %arg2: memref<32x512xbf16, #tpu.memory_space<vmem>>, %arg3: memref<512x128xbf16, #tpu.memory_space<vmem>>, %arg4: memref<1x128xf32, #tpu.memory_space<vmem>>, %arg5: memref<32x128xf32, #tpu.memory_space<vmem>>, %arg6: memref<32x128xf32, #tpu.memory_space<vmem>>) attributes {dimension_semantics = [#tpu.dimension_semantics<parallel>, #tpu.dimension_semantics<arbitrary>], iteration_bounds = array<i64: 1, 1>, scalar_prefetch = 0 : i64, scratch_operands = 1 : i64, tpu.core_type = #tpu.core_type<tc>, window_params = [{transform_indices = @transform_0, window_bounds = array<i64: 32, 512>}, {transform_indices = @transform_1, window_bounds = array<i64: 512, 128>}, {pipeline_mode = #tpu.pipeline_mode<synchronous>, transform_indices = @transform_2, window_bounds = array<i64: 1, 128>}, {transform_indices = @transform_3, window_bounds = array<i64: 32, 128>}]} {
    %c0_i32 = arith.constant 0 : i32
    %0 = arith.cmpi eq, %arg1, %c0_i32 : i32
    %1 = arith.extui %0 : i1 to i32
    %c0_i32_0 = arith.constant 0 : i32
    %2 = arith.cmpi ne, %1, %c0_i32_0 : i32
    scf.if %2 {
      %cst_12 = arith.constant 0.000000e+00 : f32
      %17 = vector.broadcast %cst_12 : f32 to vector<32x128xf32>
      %c0_13 = arith.constant 0 : index
      %c0_14 = arith.constant 0 : index
      %18 = vector.load %arg6[%c0_13, %c0_14] : memref<32x128xf32, #tpu.memory_space<vmem>>, vector<32x128xf32>
      tpu.vector_store %arg6[%c0_13, %c0_14], %17 {strides = array<i32>} : memref<32x128xf32, #tpu.memory_space<vmem>>, vector<32x128xf32>,
    } else {
    }
    %c0 = arith.constant 0 : index
    %c0_1 = arith.constant 0 : index
    %3 = vector.load %arg2[%c0, %c0_1] : memref<32x512xbf16, #tpu.memory_space<vmem>>, vector<32x512xbf16>
    %cst = arith.constant 0.000000e+00 : bf16
    %4 = vector.broadcast %cst : bf16 to vector<32x512xbf16>
    %5 = arith.cmpf oge, %3, %4 : vector<32x512xbf16>
    %cst_2 = arith.constant 2.001950e-01 : bf16
    %6 = vector.broadcast %cst_2 : bf16 to vector<32x512xbf16>
    %7 = arith.mulf %6, %3 : vector<32x512xbf16>
    %8 = arith.select %5, %3, %7 : vector<32x512xi1>, vector<32x512xbf16>
    %c0_3 = arith.constant 0 : index
    %c0_4 = arith.constant 0 : index
    %9 = vector.load %arg6[%c0_3, %c0_4] : memref<32x128xf32, #tpu.memory_space<vmem>>, vector<32x128xf32>
    %c0_5 = arith.constant 0 : index
    %c0_6 = arith.constant 0 : index
    %10 = vector.load %arg3[%c0_5, %c0_6] : memref<512x128xbf16, #tpu.memory_space<vmem>>, vector<512x128xbf16>
    %cst_7 = arith.constant dense<0.000000e+00> : vector<32x128xf32>
    %11 = tpu.matmul %8, %10, %cst_7 {dimension_numbers = #tpu.dot_dimension_numbers<[1], [0], [0], [1], [0, 0, 1, 1], [], []>} : vector<32x512xbf16>, vector<512x128xbf16>, vector<32x128xf32> -> vector<32x128xf32>
    %12 = arith.addf %9, %11 : vector<32x128xf32>
    %c0_8 = arith.constant 0 : index
    %c0_9 = arith.constant 0 : index
    %13 = vector.load %arg6[%c0_8, %c0_9] : memref<32x128xf32, #tpu.memory_space<vmem>>, vector<32x128xf32>
    tpu.vector_store %arg6[%c0_8, %c0_9], %12 {strides = array<i32>} : memref<32x128xf32, #tpu.memory_space<vmem>>, vector<32x128xf32>,
    %c0_i32_10 = arith.constant 0 : i32
    %14 = arith.cmpi eq, %arg1, %c0_i32_10 : i32
    %15 = arith.extui %14 : i1 to i32
    %c0_i32_11 = arith.constant 0 : i32
    %16 = arith.cmpi ne, %15, %c0_i32_11 : i32
    scf.if %16 {
      %c0_12 = arith.constant 0 : index
      %c0_13 = arith.constant 0 : index
      %17 = vector.load %arg6[%c0_12, %c0_13] : memref<32x128xf32, #tpu.memory_space<vmem>>, vector<32x128xf32>
      %c0_14 = arith.constant 0 : index
      %c0_15 = arith.constant 0 : index
      %18 = vector.load %arg4[%c0_14, %c0_15] : memref<1x128xf32, #tpu.memory_space<vmem>>, vector<1x128xf32>
      %19 = vector.broadcast %18 : vector<1x128xf32> to vector<32x128xf32>
      %20 = arith.addf %17, %19 : vector<32x128xf32>
      %c0_16 = arith.constant 0 : index
      %c0_17 = arith.constant 0 : index
      %21 = vector.load %arg5[%c0_16, %c0_17] : memref<32x128xf32, #tpu.memory_space<vmem>>, vector<32x128xf32>
      tpu.vector_store %arg5[%c0_16, %c0_17], %20 {strides = array<i32>} : memref<32x128xf32, #tpu.memory_space<vmem>>, vector<32x128xf32>,
    } else {
    }
    return
  }
  func.func @transform_0(%arg0: i32, %arg1: i32) -> (i32, i32) {
    %c0_i32 = arith.constant 0 : i32
    return %arg0, %arg1 : i32, i32
  }
  func.func @transform_1(%arg0: i32, %arg1: i32) -> (i32, i32) {
    %c0_i32 = arith.constant 0 : i32
    %c0_i32_0 = arith.constant 0 : i32
    return %arg1, %c0_i32 : i32, i32
  }
  func.func @transform_2(%arg0: i32, %arg1: i32) -> (i32, i32) {
    %c0_i32 = arith.constant 0 : i32
    %c0_i32_0 = arith.constant 0 : i32
    %c0_i32_1 = arith.constant 0 : i32
    return %c0_i32, %c0_i32_0 : i32, i32
  }
  func.func @transform_3(%arg0: i32, %arg1: i32) -> (i32, i32) {
    %c0_i32 = arith.constant 0 : i32
    %c0_i32_0 = arith.constant 0 : i32
    return %arg0, %c0_i32 : i32, i32
  }
}

module attributes {stable_mosaic.version = 11 : i64} {
  func.func @_bn_apply_kernel(%arg0: i32, %arg1: memref<16x128xf32, #tpu.memory_space<vmem>>, %arg2: memref<1x128xf32, #tpu.memory_space<vmem>>, %arg3: memref<1x128xf32, #tpu.memory_space<vmem>>, %arg4: memref<16x128xf32, #tpu.memory_space<vmem>>) attributes {dimension_semantics = [#tpu.dimension_semantics<parallel>], iteration_bounds = array<i64: 1>, scalar_prefetch = 0 : i64, scratch_operands = 0 : i64, tpu.core_type = #tpu.core_type<tc>, window_params = [{transform_indices = @transform_0, window_bounds = array<i64: 16, 128>}, {pipeline_mode = #tpu.pipeline_mode<synchronous>, transform_indices = @transform_1, window_bounds = array<i64: 1, 128>}, {pipeline_mode = #tpu.pipeline_mode<synchronous>, transform_indices = @transform_2, window_bounds = array<i64: 1, 128>}, {transform_indices = @transform_3, window_bounds = array<i64: 16, 128>}]} {
    %c0 = arith.constant 0 : index
    %c0_0 = arith.constant 0 : index
    %0 = vector.load %arg1[%c0, %c0_0] : memref<16x128xf32, #tpu.memory_space<vmem>>, vector<16x128xf32>
    %c0_1 = arith.constant 0 : index
    %c0_2 = arith.constant 0 : index
    %1 = vector.load %arg2[%c0_1, %c0_2] : memref<1x128xf32, #tpu.memory_space<vmem>>, vector<1x128xf32>
    %2 = vector.broadcast %1 : vector<1x128xf32> to vector<16x128xf32>
    %3 = arith.mulf %0, %2 : vector<16x128xf32>
    %c0_3 = arith.constant 0 : index
    %c0_4 = arith.constant 0 : index
    %4 = vector.load %arg3[%c0_3, %c0_4] : memref<1x128xf32, #tpu.memory_space<vmem>>, vector<1x128xf32>
    %5 = vector.broadcast %4 : vector<1x128xf32> to vector<16x128xf32>
    %6 = arith.addf %3, %5 : vector<16x128xf32>
    %c0_5 = arith.constant 0 : index
    %c0_6 = arith.constant 0 : index
    %7 = vector.load %arg4[%c0_5, %c0_6] : memref<16x128xf32, #tpu.memory_space<vmem>>, vector<16x128xf32>
    tpu.vector_store %arg4[%c0_5, %c0_6], %6 {strides = array<i32>} : memref<16x128xf32, #tpu.memory_space<vmem>>, vector<16x128xf32>,
    return
  }
  func.func @transform_0(%arg0: i32) -> (i32, i32) {
    %c0_i32 = arith.constant 0 : i32
    %c0_i32_0 = arith.constant 0 : i32
    return %arg0, %c0_i32 : i32, i32
  }
  func.func @transform_1(%arg0: i32) -> (i32, i32) {
    %c0_i32 = arith.constant 0 : i32
    %c0_i32_0 = arith.constant 0 : i32
    %c0_i32_1 = arith.constant 0 : i32
    return %c0_i32, %c0_i32_0 : i32, i32
  }
  func.func @transform_2(%arg0: i32) -> (i32, i32) {
    %c0_i32 = arith.constant 0 : i32
    %c0_i32_0 = arith.constant 0 : i32
    %c0_i32_1 = arith.constant 0 : i32
    return %c0_i32, %c0_i32_0 : i32, i32
  }
  func.func @transform_3(%arg0: i32) -> (i32, i32) {
    %c0_i32 = arith.constant 0 : i32
    %c0_i32_0 = arith.constant 0 : i32
    return %arg0, %c0_i32 : i32, i32
  }
}

module attributes {stable_mosaic.version = 11 : i64} {
  func.func @_bn_stats_kernel(%arg0: i32, %arg1: memref<16x128xf32, #tpu.memory_space<vmem>>, %arg2: memref<1x128xf32, #tpu.memory_space<vmem>>, %arg3: memref<1x128xf32, #tpu.memory_space<vmem>>) attributes {dimension_semantics = [#tpu.dimension_semantics<arbitrary>], iteration_bounds = array<i64: 1>, scalar_prefetch = 0 : i64, scratch_operands = 0 : i64, tpu.core_type = #tpu.core_type<tc>, window_params = [{transform_indices = @transform_0, window_bounds = array<i64: 16, 128>}, {pipeline_mode = #tpu.pipeline_mode<synchronous>, transform_indices = @transform_1, window_bounds = array<i64: 1, 128>}, {pipeline_mode = #tpu.pipeline_mode<synchronous>, transform_indices = @transform_2, window_bounds = array<i64: 1, 128>}]} {
    %c0_i32 = arith.constant 0 : i32
    %0 = arith.cmpi eq, %arg0, %c0_i32 : i32
    %1 = arith.extui %0 : i1 to i32
    %c0_i32_0 = arith.constant 0 : i32
    %2 = arith.cmpi ne, %1, %c0_i32_0 : i32
    scf.if %2 {
      %cst_11 = arith.constant 0.000000e+00 : f32
      %15 = vector.broadcast %cst_11 : f32 to vector<1x128xf32>
      %c0_12 = arith.constant 0 : index
      %c0_13 = arith.constant 0 : index
      %16 = vector.load %arg2[%c0_12, %c0_13] : memref<1x128xf32, #tpu.memory_space<vmem>>, vector<1x128xf32>
      tpu.vector_store %arg2[%c0_12, %c0_13], %15 {strides = array<i32>} : memref<1x128xf32, #tpu.memory_space<vmem>>, vector<1x128xf32>,
      %cst_14 = arith.constant 0.000000e+00 : f32
      %17 = vector.broadcast %cst_14 : f32 to vector<1x128xf32>
      %c0_15 = arith.constant 0 : index
      %c0_16 = arith.constant 0 : index
      %18 = vector.load %arg3[%c0_15, %c0_16] : memref<1x128xf32, #tpu.memory_space<vmem>>, vector<1x128xf32>
      tpu.vector_store %arg3[%c0_15, %c0_16], %17 {strides = array<i32>} : memref<1x128xf32, #tpu.memory_space<vmem>>, vector<1x128xf32>,
    } else {
    }
    %c0 = arith.constant 0 : index
    %c0_1 = arith.constant 0 : index
    %3 = vector.load %arg1[%c0, %c0_1] : memref<16x128xf32, #tpu.memory_space<vmem>>, vector<16x128xf32>
    %c0_2 = arith.constant 0 : index
    %c0_3 = arith.constant 0 : index
    %4 = vector.load %arg2[%c0_2, %c0_3] : memref<1x128xf32, #tpu.memory_space<vmem>>, vector<1x128xf32>
    %cst = arith.constant dense<0.000000e+00> : vector<128xf32>
    %5 = vector.multi_reduction <add>, %3, %cst [0] : vector<16x128xf32> to vector<128xf32>
    %6 = vector.shape_cast %5 : vector<128xf32> to vector<1x128xf32>
    %7 = arith.addf %4, %6 : vector<1x128xf32>
    %c0_4 = arith.constant 0 : index
    %c0_5 = arith.constant 0 : index
    %8 = vector.load %arg2[%c0_4, %c0_5] : memref<1x128xf32, #tpu.memory_space<vmem>>, vector<1x128xf32>
    tpu.vector_store %arg2[%c0_4, %c0_5], %7 {strides = array<i32>} : memref<1x128xf32, #tpu.memory_space<vmem>>, vector<1x128xf32>,
    %c0_6 = arith.constant 0 : index
    %c0_7 = arith.constant 0 : index
    %9 = vector.load %arg3[%c0_6, %c0_7] : memref<1x128xf32, #tpu.memory_space<vmem>>, vector<1x128xf32>
    %10 = arith.mulf %3, %3 : vector<16x128xf32>
    %cst_8 = arith.constant dense<0.000000e+00> : vector<128xf32>
    %11 = vector.multi_reduction <add>, %10, %cst_8 [0] : vector<16x128xf32> to vector<128xf32>
    %12 = vector.shape_cast %11 : vector<128xf32> to vector<1x128xf32>
    %13 = arith.addf %9, %12 : vector<1x128xf32>
    %c0_9 = arith.constant 0 : index
    %c0_10 = arith.constant 0 : index
    %14 = vector.load %arg3[%c0_9, %c0_10] : memref<1x128xf32, #tpu.memory_space<vmem>>, vector<1x128xf32>
    tpu.vector_store %arg3[%c0_9, %c0_10], %13 {strides = array<i32>} : memref<1x128xf32, #tpu.memory_space<vmem>>, vector<1x128xf32>,
    return
  }
  func.func @transform_0(%arg0: i32) -> (i32, i32) {
    %c0_i32 = arith.constant 0 : i32
    %c0_i32_0 = arith.constant 0 : i32
    return %arg0, %c0_i32 : i32, i32
  }
  func.func @transform_1(%arg0: i32) -> (i32, i32) {
    %c0_i32 = arith.constant 0 : i32
    %c0_i32_0 = arith.constant 0 : i32
    %c0_i32_1 = arith.constant 0 : i32
    return %c0_i32, %c0_i32_0 : i32, i32
  }
  func.func @transform_2(%arg0: i32) -> (i32, i32) {
    %c0_i32 = arith.constant 0 : i32
    %c0_i32_0 = arith.constant 0 : i32
    %c0_i32_1 = arith.constant 0 : i32
    return %c0_i32, %c0_i32_0 : i32, i32
  }
}

module attributes {stable_mosaic.version = 11 : i64} {
  func.func @_conv_mm_kernel(%arg0: i32, %arg1: i32, %arg2: memref<8x1024xbf16, #tpu.memory_space<vmem>>, %arg3: memref<1024x128xbf16, #tpu.memory_space<vmem>>, %arg4: memref<1x128xf32, #tpu.memory_space<vmem>>, %arg5: memref<8x128xf32, #tpu.memory_space<vmem>>, %arg6: memref<8x128xf32, #tpu.memory_space<vmem>>) attributes {dimension_semantics = [#tpu.dimension_semantics<parallel>, #tpu.dimension_semantics<arbitrary>], iteration_bounds = array<i64: 1, 1>, scalar_prefetch = 0 : i64, scratch_operands = 1 : i64, tpu.core_type = #tpu.core_type<tc>, window_params = [{transform_indices = @transform_0, window_bounds = array<i64: 8, 1024>}, {transform_indices = @transform_1, window_bounds = array<i64: 1024, 128>}, {pipeline_mode = #tpu.pipeline_mode<synchronous>, transform_indices = @transform_2, window_bounds = array<i64: 1, 128>}, {transform_indices = @transform_3, window_bounds = array<i64: 8, 128>}]} {
    %c0_i32 = arith.constant 0 : i32
    %0 = arith.cmpi eq, %arg1, %c0_i32 : i32
    %1 = arith.extui %0 : i1 to i32
    %c0_i32_0 = arith.constant 0 : i32
    %2 = arith.cmpi ne, %1, %c0_i32_0 : i32
    scf.if %2 {
      %cst_12 = arith.constant 0.000000e+00 : f32
      %17 = vector.broadcast %cst_12 : f32 to vector<8x128xf32>
      %c0_13 = arith.constant 0 : index
      %c0_14 = arith.constant 0 : index
      %18 = vector.load %arg6[%c0_13, %c0_14] : memref<8x128xf32, #tpu.memory_space<vmem>>, vector<8x128xf32>
      tpu.vector_store %arg6[%c0_13, %c0_14], %17 {strides = array<i32>} : memref<8x128xf32, #tpu.memory_space<vmem>>, vector<8x128xf32>,
    } else {
    }
    %c0 = arith.constant 0 : index
    %c0_1 = arith.constant 0 : index
    %3 = vector.load %arg2[%c0, %c0_1] : memref<8x1024xbf16, #tpu.memory_space<vmem>>, vector<8x1024xbf16>
    %cst = arith.constant 0.000000e+00 : bf16
    %4 = vector.broadcast %cst : bf16 to vector<8x1024xbf16>
    %5 = arith.cmpf oge, %3, %4 : vector<8x1024xbf16>
    %cst_2 = arith.constant 2.001950e-01 : bf16
    %6 = vector.broadcast %cst_2 : bf16 to vector<8x1024xbf16>
    %7 = arith.mulf %6, %3 : vector<8x1024xbf16>
    %8 = arith.select %5, %3, %7 : vector<8x1024xi1>, vector<8x1024xbf16>
    %c0_3 = arith.constant 0 : index
    %c0_4 = arith.constant 0 : index
    %9 = vector.load %arg6[%c0_3, %c0_4] : memref<8x128xf32, #tpu.memory_space<vmem>>, vector<8x128xf32>
    %c0_5 = arith.constant 0 : index
    %c0_6 = arith.constant 0 : index
    %10 = vector.load %arg3[%c0_5, %c0_6] : memref<1024x128xbf16, #tpu.memory_space<vmem>>, vector<1024x128xbf16>
    %cst_7 = arith.constant dense<0.000000e+00> : vector<8x128xf32>
    %11 = tpu.matmul %8, %10, %cst_7 {dimension_numbers = #tpu.dot_dimension_numbers<[1], [0], [0], [1], [0, 0, 1, 1], [], []>} : vector<8x1024xbf16>, vector<1024x128xbf16>, vector<8x128xf32> -> vector<8x128xf32>
    %12 = arith.addf %9, %11 : vector<8x128xf32>
    %c0_8 = arith.constant 0 : index
    %c0_9 = arith.constant 0 : index
    %13 = vector.load %arg6[%c0_8, %c0_9] : memref<8x128xf32, #tpu.memory_space<vmem>>, vector<8x128xf32>
    tpu.vector_store %arg6[%c0_8, %c0_9], %12 {strides = array<i32>} : memref<8x128xf32, #tpu.memory_space<vmem>>, vector<8x128xf32>,
    %c0_i32_10 = arith.constant 0 : i32
    %14 = arith.cmpi eq, %arg1, %c0_i32_10 : i32
    %15 = arith.extui %14 : i1 to i32
    %c0_i32_11 = arith.constant 0 : i32
    %16 = arith.cmpi ne, %15, %c0_i32_11 : i32
    scf.if %16 {
      %c0_12 = arith.constant 0 : index
      %c0_13 = arith.constant 0 : index
      %17 = vector.load %arg6[%c0_12, %c0_13] : memref<8x128xf32, #tpu.memory_space<vmem>>, vector<8x128xf32>
      %c0_14 = arith.constant 0 : index
      %c0_15 = arith.constant 0 : index
      %18 = vector.load %arg4[%c0_14, %c0_15] : memref<1x128xf32, #tpu.memory_space<vmem>>, vector<1x128xf32>
      %19 = vector.broadcast %18 : vector<1x128xf32> to vector<8x128xf32>
      %20 = arith.addf %17, %19 : vector<8x128xf32>
      %c0_16 = arith.constant 0 : index
      %c0_17 = arith.constant 0 : index
      %21 = vector.load %arg5[%c0_16, %c0_17] : memref<8x128xf32, #tpu.memory_space<vmem>>, vector<8x128xf32>
      tpu.vector_store %arg5[%c0_16, %c0_17], %20 {strides = array<i32>} : memref<8x128xf32, #tpu.memory_space<vmem>>, vector<8x128xf32>,
    } else {
    }
    return
  }
  func.func @transform_0(%arg0: i32, %arg1: i32) -> (i32, i32) {
    %c0_i32 = arith.constant 0 : i32
    return %arg0, %arg1 : i32, i32
  }
  func.func @transform_1(%arg0: i32, %arg1: i32) -> (i32, i32) {
    %c0_i32 = arith.constant 0 : i32
    %c0_i32_0 = arith.constant 0 : i32
    return %arg1, %c0_i32 : i32, i32
  }
  func.func @transform_2(%arg0: i32, %arg1: i32) -> (i32, i32) {
    %c0_i32 = arith.constant 0 : i32
    %c0_i32_0 = arith.constant 0 : i32
    %c0_i32_1 = arith.constant 0 : i32
    return %c0_i32, %c0_i32_0 : i32, i32
  }
  func.func @transform_3(%arg0: i32, %arg1: i32) -> (i32, i32) {
    %c0_i32 = arith.constant 0 : i32
    %c0_i32_0 = arith.constant 0 : i32
    return %arg0, %c0_i32 : i32, i32
  }
}

module attributes {stable_mosaic.version = 11 : i64} {
  func.func @_conv_mm_kernel(%arg0: i32, %arg1: i32, %arg2: memref<8x576xbf16, #tpu.memory_space<vmem>>, %arg3: memref<576x256xbf16, #tpu.memory_space<vmem>>, %arg4: memref<1x256xf32, #tpu.memory_space<vmem>>, %arg5: memref<8x256xf32, #tpu.memory_space<vmem>>, %arg6: memref<8x256xf32, #tpu.memory_space<vmem>>) attributes {dimension_semantics = [#tpu.dimension_semantics<parallel>, #tpu.dimension_semantics<arbitrary>], iteration_bounds = array<i64: 1, 1>, scalar_prefetch = 0 : i64, scratch_operands = 1 : i64, tpu.core_type = #tpu.core_type<tc>, window_params = [{transform_indices = @transform_0, window_bounds = array<i64: 8, 576>}, {transform_indices = @transform_1, window_bounds = array<i64: 576, 256>}, {pipeline_mode = #tpu.pipeline_mode<synchronous>, transform_indices = @transform_2, window_bounds = array<i64: 1, 256>}, {transform_indices = @transform_3, window_bounds = array<i64: 8, 256>}]} {
    %c0_i32 = arith.constant 0 : i32
    %0 = arith.cmpi eq, %arg1, %c0_i32 : i32
    %1 = arith.extui %0 : i1 to i32
    %c0_i32_0 = arith.constant 0 : i32
    %2 = arith.cmpi ne, %1, %c0_i32_0 : i32
    scf.if %2 {
      %cst_11 = arith.constant 0.000000e+00 : f32
      %14 = vector.broadcast %cst_11 : f32 to vector<8x256xf32>
      %c0_12 = arith.constant 0 : index
      %c0_13 = arith.constant 0 : index
      %15 = vector.load %arg6[%c0_12, %c0_13] : memref<8x256xf32, #tpu.memory_space<vmem>>, vector<8x256xf32>
      tpu.vector_store %arg6[%c0_12, %c0_13], %14 {strides = array<i32>} : memref<8x256xf32, #tpu.memory_space<vmem>>, vector<8x256xf32>,
    } else {
    }
    %c0 = arith.constant 0 : index
    %c0_1 = arith.constant 0 : index
    %3 = vector.load %arg2[%c0, %c0_1] : memref<8x576xbf16, #tpu.memory_space<vmem>>, vector<8x576xbf16>
    %cst = arith.constant 0.000000e+00 : bf16
    %4 = vector.broadcast %cst : bf16 to vector<8x576xbf16>
    %5 = arith.maximumf %3, %4 : vector<8x576xbf16>
    %c0_2 = arith.constant 0 : index
    %c0_3 = arith.constant 0 : index
    %6 = vector.load %arg6[%c0_2, %c0_3] : memref<8x256xf32, #tpu.memory_space<vmem>>, vector<8x256xf32>
    %c0_4 = arith.constant 0 : index
    %c0_5 = arith.constant 0 : index
    %7 = vector.load %arg3[%c0_4, %c0_5] : memref<576x256xbf16, #tpu.memory_space<vmem>>, vector<576x256xbf16>
    %cst_6 = arith.constant dense<0.000000e+00> : vector<8x256xf32>
    %8 = tpu.matmul %5, %7, %cst_6 {dimension_numbers = #tpu.dot_dimension_numbers<[1], [0], [0], [1], [0, 0, 1, 1], [], []>} : vector<8x576xbf16>, vector<576x256xbf16>, vector<8x256xf32> -> vector<8x256xf32>
    %9 = arith.addf %6, %8 : vector<8x256xf32>
    %c0_7 = arith.constant 0 : index
    %c0_8 = arith.constant 0 : index
    %10 = vector.load %arg6[%c0_7, %c0_8] : memref<8x256xf32, #tpu.memory_space<vmem>>, vector<8x256xf32>
    tpu.vector_store %arg6[%c0_7, %c0_8], %9 {strides = array<i32>} : memref<8x256xf32, #tpu.memory_space<vmem>>, vector<8x256xf32>,
    %c0_i32_9 = arith.constant 0 : i32
    %11 = arith.cmpi eq, %arg1, %c0_i32_9 : i32
    %12 = arith.extui %11 : i1 to i32
    %c0_i32_10 = arith.constant 0 : i32
    %13 = arith.cmpi ne, %12, %c0_i32_10 : i32
    scf.if %13 {
      %c0_11 = arith.constant 0 : index
      %c0_12 = arith.constant 0 : index
      %14 = vector.load %arg6[%c0_11, %c0_12] : memref<8x256xf32, #tpu.memory_space<vmem>>, vector<8x256xf32>
      %c0_13 = arith.constant 0 : index
      %c0_14 = arith.constant 0 : index
      %15 = vector.load %arg4[%c0_13, %c0_14] : memref<1x256xf32, #tpu.memory_space<vmem>>, vector<1x256xf32>
      %16 = vector.broadcast %15 : vector<1x256xf32> to vector<8x256xf32>
      %17 = arith.addf %14, %16 : vector<8x256xf32>
      %c0_15 = arith.constant 0 : index
      %c0_16 = arith.constant 0 : index
      %18 = vector.load %arg5[%c0_15, %c0_16] : memref<8x256xf32, #tpu.memory_space<vmem>>, vector<8x256xf32>
      tpu.vector_store %arg5[%c0_15, %c0_16], %17 {strides = array<i32>} : memref<8x256xf32, #tpu.memory_space<vmem>>, vector<8x256xf32>,
    } else {
    }
    return
  }
  func.func @transform_0(%arg0: i32, %arg1: i32) -> (i32, i32) {
    %c0_i32 = arith.constant 0 : i32
    return %arg0, %arg1 : i32, i32
  }
  func.func @transform_1(%arg0: i32, %arg1: i32) -> (i32, i32) {
    %c0_i32 = arith.constant 0 : i32
    %c0_i32_0 = arith.constant 0 : i32
    return %arg1, %c0_i32 : i32, i32
  }
  func.func @transform_2(%arg0: i32, %arg1: i32) -> (i32, i32) {
    %c0_i32 = arith.constant 0 : i32
    %c0_i32_0 = arith.constant 0 : i32
    %c0_i32_1 = arith.constant 0 : i32
    return %c0_i32, %c0_i32_0 : i32, i32
  }
  func.func @transform_3(%arg0: i32, %arg1: i32) -> (i32, i32) {
    %c0_i32 = arith.constant 0 : i32
    %c0_i32_0 = arith.constant 0 : i32
    return %arg0, %c0_i32 : i32, i32
  }
}

module attributes {stable_mosaic.version = 11 : i64} {
  func.func @_conv_mm_kernel(%arg0: i32, %arg1: i32, %arg2: memref<32x384xbf16, #tpu.memory_space<vmem>>, %arg3: memref<384x128xbf16, #tpu.memory_space<vmem>>, %arg4: memref<1x128xf32, #tpu.memory_space<vmem>>, %arg5: memref<32x128xf32, #tpu.memory_space<vmem>>, %arg6: memref<32x128xf32, #tpu.memory_space<vmem>>) attributes {dimension_semantics = [#tpu.dimension_semantics<parallel>, #tpu.dimension_semantics<arbitrary>], iteration_bounds = array<i64: 1, 3>, scalar_prefetch = 0 : i64, scratch_operands = 1 : i64, tpu.core_type = #tpu.core_type<tc>, window_params = [{transform_indices = @transform_0, window_bounds = array<i64: 32, 384>}, {transform_indices = @transform_1, window_bounds = array<i64: 384, 128>}, {pipeline_mode = #tpu.pipeline_mode<synchronous>, transform_indices = @transform_2, window_bounds = array<i64: 1, 128>}, {transform_indices = @transform_3, window_bounds = array<i64: 32, 128>}]} {
    %c0_i32 = arith.constant 0 : i32
    %0 = arith.cmpi eq, %arg1, %c0_i32 : i32
    %1 = arith.extui %0 : i1 to i32
    %c0_i32_0 = arith.constant 0 : i32
    %2 = arith.cmpi ne, %1, %c0_i32_0 : i32
    scf.if %2 {
      %cst_10 = arith.constant 0.000000e+00 : f32
      %14 = vector.broadcast %cst_10 : f32 to vector<32x128xf32>
      %c0_11 = arith.constant 0 : index
      %c0_12 = arith.constant 0 : index
      %15 = vector.load %arg6[%c0_11, %c0_12] : memref<32x128xf32, #tpu.memory_space<vmem>>, vector<32x128xf32>
      tpu.vector_store %arg6[%c0_11, %c0_12], %14 {strides = array<i32>} : memref<32x128xf32, #tpu.memory_space<vmem>>, vector<32x128xf32>,
    } else {
    }
    %c0 = arith.constant 0 : index
    %c0_1 = arith.constant 0 : index
    %3 = vector.load %arg2[%c0, %c0_1] : memref<32x384xbf16, #tpu.memory_space<vmem>>, vector<32x384xbf16>
    %cst = arith.constant 0.000000e+00 : bf16
    %4 = vector.broadcast %cst : bf16 to vector<32x384xbf16>
    %5 = arith.maximumf %3, %4 : vector<32x384xbf16>
    %c0_2 = arith.constant 0 : index
    %c0_3 = arith.constant 0 : index
    %6 = vector.load %arg6[%c0_2, %c0_3] : memref<32x128xf32, #tpu.memory_space<vmem>>, vector<32x128xf32>
    %c0_4 = arith.constant 0 : index
    %c0_5 = arith.constant 0 : index
    %7 = vector.load %arg3[%c0_4, %c0_5] : memref<384x128xbf16, #tpu.memory_space<vmem>>, vector<384x128xbf16>
    %cst_6 = arith.constant dense<0.000000e+00> : vector<32x128xf32>
    %8 = tpu.matmul %5, %7, %cst_6 {dimension_numbers = #tpu.dot_dimension_numbers<[1], [0], [0], [1], [0, 0, 1, 1], [], []>} : vector<32x384xbf16>, vector<384x128xbf16>, vector<32x128xf32> -> vector<32x128xf32>
    %9 = arith.addf %6, %8 : vector<32x128xf32>
    %c0_7 = arith.constant 0 : index
    %c0_8 = arith.constant 0 : index
    %10 = vector.load %arg6[%c0_7, %c0_8] : memref<32x128xf32, #tpu.memory_space<vmem>>, vector<32x128xf32>
    tpu.vector_store %arg6[%c0_7, %c0_8], %9 {strides = array<i32>} : memref<32x128xf32, #tpu.memory_space<vmem>>, vector<32x128xf32>,
    %c2_i32 = arith.constant 2 : i32
    %11 = arith.cmpi eq, %arg1, %c2_i32 : i32
    %12 = arith.extui %11 : i1 to i32
    %c0_i32_9 = arith.constant 0 : i32
    %13 = arith.cmpi ne, %12, %c0_i32_9 : i32
    scf.if %13 {
      %c0_10 = arith.constant 0 : index
      %c0_11 = arith.constant 0 : index
      %14 = vector.load %arg6[%c0_10, %c0_11] : memref<32x128xf32, #tpu.memory_space<vmem>>, vector<32x128xf32>
      %c0_12 = arith.constant 0 : index
      %c0_13 = arith.constant 0 : index
      %15 = vector.load %arg4[%c0_12, %c0_13] : memref<1x128xf32, #tpu.memory_space<vmem>>, vector<1x128xf32>
      %16 = vector.broadcast %15 : vector<1x128xf32> to vector<32x128xf32>
      %17 = arith.addf %14, %16 : vector<32x128xf32>
      %c0_14 = arith.constant 0 : index
      %c0_15 = arith.constant 0 : index
      %18 = vector.load %arg5[%c0_14, %c0_15] : memref<32x128xf32, #tpu.memory_space<vmem>>, vector<32x128xf32>
      tpu.vector_store %arg5[%c0_14, %c0_15], %17 {strides = array<i32>} : memref<32x128xf32, #tpu.memory_space<vmem>>, vector<32x128xf32>,
    } else {
    }
    return
  }
  func.func @transform_0(%arg0: i32, %arg1: i32) -> (i32, i32) {
    %c0_i32 = arith.constant 0 : i32
    return %arg0, %arg1 : i32, i32
  }
  func.func @transform_1(%arg0: i32, %arg1: i32) -> (i32, i32) {
    %c0_i32 = arith.constant 0 : i32
    %c0_i32_0 = arith.constant 0 : i32
    return %arg1, %c0_i32 : i32, i32
  }
  func.func @transform_2(%arg0: i32, %arg1: i32) -> (i32, i32) {
    %c0_i32 = arith.constant 0 : i32
    %c0_i32_0 = arith.constant 0 : i32
    %c0_i32_1 = arith.constant 0 : i32
    return %c0_i32, %c0_i32_0 : i32, i32
  }
  func.func @transform_3(%arg0: i32, %arg1: i32) -> (i32, i32) {
    %c0_i32 = arith.constant 0 : i32
    %c0_i32_0 = arith.constant 0 : i32
    return %arg0, %c0_i32 : i32, i32
  }
}

module attributes {stable_mosaic.version = 11 : i64} {
  func.func @_conv_mm_kernel(%arg0: i32, %arg1: i32, %arg2: memref<128x576xbf16, #tpu.memory_space<vmem>>, %arg3: memref<576x128xbf16, #tpu.memory_space<vmem>>, %arg4: memref<1x128xf32, #tpu.memory_space<vmem>>, %arg5: memref<128x128xf32, #tpu.memory_space<vmem>>, %arg6: memref<128x128xf32, #tpu.memory_space<vmem>>) attributes {dimension_semantics = [#tpu.dimension_semantics<parallel>, #tpu.dimension_semantics<arbitrary>], iteration_bounds = array<i64: 1, 1>, scalar_prefetch = 0 : i64, scratch_operands = 1 : i64, tpu.core_type = #tpu.core_type<tc>, window_params = [{transform_indices = @transform_0, window_bounds = array<i64: 128, 576>}, {transform_indices = @transform_1, window_bounds = array<i64: 576, 128>}, {pipeline_mode = #tpu.pipeline_mode<synchronous>, transform_indices = @transform_2, window_bounds = array<i64: 1, 128>}, {transform_indices = @transform_3, window_bounds = array<i64: 128, 128>}]} {
    %c0_i32 = arith.constant 0 : i32
    %0 = arith.cmpi eq, %arg1, %c0_i32 : i32
    %1 = arith.extui %0 : i1 to i32
    %c0_i32_0 = arith.constant 0 : i32
    %2 = arith.cmpi ne, %1, %c0_i32_0 : i32
    scf.if %2 {
      %cst_11 = arith.constant 0.000000e+00 : f32
      %14 = vector.broadcast %cst_11 : f32 to vector<128x128xf32>
      %c0_12 = arith.constant 0 : index
      %c0_13 = arith.constant 0 : index
      %15 = vector.load %arg6[%c0_12, %c0_13] : memref<128x128xf32, #tpu.memory_space<vmem>>, vector<128x128xf32>
      tpu.vector_store %arg6[%c0_12, %c0_13], %14 {strides = array<i32>} : memref<128x128xf32, #tpu.memory_space<vmem>>, vector<128x128xf32>,
    } else {
    }
    %c0 = arith.constant 0 : index
    %c0_1 = arith.constant 0 : index
    %3 = vector.load %arg2[%c0, %c0_1] : memref<128x576xbf16, #tpu.memory_space<vmem>>, vector<128x576xbf16>
    %cst = arith.constant 0.000000e+00 : bf16
    %4 = vector.broadcast %cst : bf16 to vector<128x576xbf16>
    %5 = arith.maximumf %3, %4 : vector<128x576xbf16>
    %c0_2 = arith.constant 0 : index
    %c0_3 = arith.constant 0 : index
    %6 = vector.load %arg6[%c0_2, %c0_3] : memref<128x128xf32, #tpu.memory_space<vmem>>, vector<128x128xf32>
    %c0_4 = arith.constant 0 : index
    %c0_5 = arith.constant 0 : index
    %7 = vector.load %arg3[%c0_4, %c0_5] : memref<576x128xbf16, #tpu.memory_space<vmem>>, vector<576x128xbf16>
    %cst_6 = arith.constant dense<0.000000e+00> : vector<128x128xf32>
    %8 = tpu.matmul %5, %7, %cst_6 {dimension_numbers = #tpu.dot_dimension_numbers<[1], [0], [0], [1], [0, 0, 1, 1], [], []>} : vector<128x576xbf16>, vector<576x128xbf16>, vector<128x128xf32> -> vector<128x128xf32>
    %9 = arith.addf %6, %8 : vector<128x128xf32>
    %c0_7 = arith.constant 0 : index
    %c0_8 = arith.constant 0 : index
    %10 = vector.load %arg6[%c0_7, %c0_8] : memref<128x128xf32, #tpu.memory_space<vmem>>, vector<128x128xf32>
    tpu.vector_store %arg6[%c0_7, %c0_8], %9 {strides = array<i32>} : memref<128x128xf32, #tpu.memory_space<vmem>>, vector<128x128xf32>,
    %c0_i32_9 = arith.constant 0 : i32
    %11 = arith.cmpi eq, %arg1, %c0_i32_9 : i32
    %12 = arith.extui %11 : i1 to i32
    %c0_i32_10 = arith.constant 0 : i32
    %13 = arith.cmpi ne, %12, %c0_i32_10 : i32
    scf.if %13 {
      %c0_11 = arith.constant 0 : index
      %c0_12 = arith.constant 0 : index
      %14 = vector.load %arg6[%c0_11, %c0_12] : memref<128x128xf32, #tpu.memory_space<vmem>>, vector<128x128xf32>
      %c0_13 = arith.constant 0 : index
      %c0_14 = arith.constant 0 : index
      %15 = vector.load %arg4[%c0_13, %c0_14] : memref<1x128xf32, #tpu.memory_space<vmem>>, vector<1x128xf32>
      %16 = vector.broadcast %15 : vector<1x128xf32> to vector<128x128xf32>
      %17 = arith.addf %14, %16 : vector<128x128xf32>
      %c0_15 = arith.constant 0 : index
      %c0_16 = arith.constant 0 : index
      %18 = vector.load %arg5[%c0_15, %c0_16] : memref<128x128xf32, #tpu.memory_space<vmem>>, vector<128x128xf32>
      tpu.vector_store %arg5[%c0_15, %c0_16], %17 {strides = array<i32>} : memref<128x128xf32, #tpu.memory_space<vmem>>, vector<128x128xf32>,
    } else {
    }
    return
  }
  func.func @transform_0(%arg0: i32, %arg1: i32) -> (i32, i32) {
    %c0_i32 = arith.constant 0 : i32
    return %arg0, %arg1 : i32, i32
  }
  func.func @transform_1(%arg0: i32, %arg1: i32) -> (i32, i32) {
    %c0_i32 = arith.constant 0 : i32
    %c0_i32_0 = arith.constant 0 : i32
    return %arg1, %c0_i32 : i32, i32
  }
  func.func @transform_2(%arg0: i32, %arg1: i32) -> (i32, i32) {
    %c0_i32 = arith.constant 0 : i32
    %c0_i32_0 = arith.constant 0 : i32
    %c0_i32_1 = arith.constant 0 : i32
    return %c0_i32, %c0_i32_0 : i32, i32
  }
  func.func @transform_3(%arg0: i32, %arg1: i32) -> (i32, i32) {
    %c0_i32 = arith.constant 0 : i32
    %c0_i32_0 = arith.constant 0 : i32
    return %arg0, %c0_i32 : i32, i32
  }
}

module attributes {stable_mosaic.version = 11 : i64} {
  func.func @_conv_mm_kernel(%arg0: i32, %arg1: i32, %arg2: memref<512x288xbf16, #tpu.memory_space<vmem>>, %arg3: memref<288x128xbf16, #tpu.memory_space<vmem>>, %arg4: memref<1x128xf32, #tpu.memory_space<vmem>>, %arg5: memref<512x128xf32, #tpu.memory_space<vmem>>, %arg6: memref<512x128xf32, #tpu.memory_space<vmem>>) attributes {dimension_semantics = [#tpu.dimension_semantics<parallel>, #tpu.dimension_semantics<arbitrary>], iteration_bounds = array<i64: 1, 1>, scalar_prefetch = 0 : i64, scratch_operands = 1 : i64, tpu.core_type = #tpu.core_type<tc>, window_params = [{transform_indices = @transform_0, window_bounds = array<i64: 512, 288>}, {transform_indices = @transform_1, window_bounds = array<i64: 288, 128>}, {pipeline_mode = #tpu.pipeline_mode<synchronous>, transform_indices = @transform_2, window_bounds = array<i64: 1, 128>}, {transform_indices = @transform_3, window_bounds = array<i64: 512, 128>}]} {
    %c0_i32 = arith.constant 0 : i32
    %0 = arith.cmpi eq, %arg1, %c0_i32 : i32
    %1 = arith.extui %0 : i1 to i32
    %c0_i32_0 = arith.constant 0 : i32
    %2 = arith.cmpi ne, %1, %c0_i32_0 : i32
    scf.if %2 {
      %cst_11 = arith.constant 0.000000e+00 : f32
      %14 = vector.broadcast %cst_11 : f32 to vector<512x128xf32>
      %c0_12 = arith.constant 0 : index
      %c0_13 = arith.constant 0 : index
      %15 = vector.load %arg6[%c0_12, %c0_13] : memref<512x128xf32, #tpu.memory_space<vmem>>, vector<512x128xf32>
      tpu.vector_store %arg6[%c0_12, %c0_13], %14 {strides = array<i32>} : memref<512x128xf32, #tpu.memory_space<vmem>>, vector<512x128xf32>,
    } else {
    }
    %c0 = arith.constant 0 : index
    %c0_1 = arith.constant 0 : index
    %3 = vector.load %arg2[%c0, %c0_1] : memref<512x288xbf16, #tpu.memory_space<vmem>>, vector<512x288xbf16>
    %cst = arith.constant 0.000000e+00 : bf16
    %4 = vector.broadcast %cst : bf16 to vector<512x288xbf16>
    %5 = arith.maximumf %3, %4 : vector<512x288xbf16>
    %c0_2 = arith.constant 0 : index
    %c0_3 = arith.constant 0 : index
    %6 = vector.load %arg6[%c0_2, %c0_3] : memref<512x128xf32, #tpu.memory_space<vmem>>, vector<512x128xf32>
    %c0_4 = arith.constant 0 : index
    %c0_5 = arith.constant 0 : index
    %7 = vector.load %arg3[%c0_4, %c0_5] : memref<288x128xbf16, #tpu.memory_space<vmem>>, vector<288x128xbf16>
    %cst_6 = arith.constant dense<0.000000e+00> : vector<512x128xf32>
    %8 = tpu.matmul %5, %7, %cst_6 {dimension_numbers = #tpu.dot_dimension_numbers<[1], [0], [0], [1], [0, 0, 1, 1], [], []>} : vector<512x288xbf16>, vector<288x128xbf16>, vector<512x128xf32> -> vector<512x128xf32>
    %9 = arith.addf %6, %8 : vector<512x128xf32>
    %c0_7 = arith.constant 0 : index
    %c0_8 = arith.constant 0 : index
    %10 = vector.load %arg6[%c0_7, %c0_8] : memref<512x128xf32, #tpu.memory_space<vmem>>, vector<512x128xf32>
    tpu.vector_store %arg6[%c0_7, %c0_8], %9 {strides = array<i32>} : memref<512x128xf32, #tpu.memory_space<vmem>>, vector<512x128xf32>,
    %c0_i32_9 = arith.constant 0 : i32
    %11 = arith.cmpi eq, %arg1, %c0_i32_9 : i32
    %12 = arith.extui %11 : i1 to i32
    %c0_i32_10 = arith.constant 0 : i32
    %13 = arith.cmpi ne, %12, %c0_i32_10 : i32
    scf.if %13 {
      %c0_11 = arith.constant 0 : index
      %c0_12 = arith.constant 0 : index
      %14 = vector.load %arg6[%c0_11, %c0_12] : memref<512x128xf32, #tpu.memory_space<vmem>>, vector<512x128xf32>
      %c0_13 = arith.constant 0 : index
      %c0_14 = arith.constant 0 : index
      %15 = vector.load %arg4[%c0_13, %c0_14] : memref<1x128xf32, #tpu.memory_space<vmem>>, vector<1x128xf32>
      %16 = vector.broadcast %15 : vector<1x128xf32> to vector<512x128xf32>
      %17 = arith.addf %14, %16 : vector<512x128xf32>
      %c0_15 = arith.constant 0 : index
      %c0_16 = arith.constant 0 : index
      %18 = vector.load %arg5[%c0_15, %c0_16] : memref<512x128xf32, #tpu.memory_space<vmem>>, vector<512x128xf32>
      tpu.vector_store %arg5[%c0_15, %c0_16], %17 {strides = array<i32>} : memref<512x128xf32, #tpu.memory_space<vmem>>, vector<512x128xf32>,
    } else {
    }
    return
  }
  func.func @transform_0(%arg0: i32, %arg1: i32) -> (i32, i32) {
    %c0_i32 = arith.constant 0 : i32
    return %arg0, %arg1 : i32, i32
  }
  func.func @transform_1(%arg0: i32, %arg1: i32) -> (i32, i32) {
    %c0_i32 = arith.constant 0 : i32
    %c0_i32_0 = arith.constant 0 : i32
    return %arg1, %c0_i32 : i32, i32
  }
  func.func @transform_2(%arg0: i32, %arg1: i32) -> (i32, i32) {
    %c0_i32 = arith.constant 0 : i32
    %c0_i32_0 = arith.constant 0 : i32
    %c0_i32_1 = arith.constant 0 : i32
    return %c0_i32, %c0_i32_0 : i32, i32
  }
  func.func @transform_3(%arg0: i32, %arg1: i32) -> (i32, i32) {
    %c0_i32 = arith.constant 0 : i32
    %c0_i32_0 = arith.constant 0 : i32
    return %arg0, %c0_i32 : i32, i32
  }
}

module attributes {stable_mosaic.version = 11 : i64} {
  func.func @_bn_stats_kernel(%arg0: i32, %arg1: memref<128x128xf32, #tpu.memory_space<vmem>>, %arg2: memref<1x128xf32, #tpu.memory_space<vmem>>, %arg3: memref<1x128xf32, #tpu.memory_space<vmem>>) attributes {dimension_semantics = [#tpu.dimension_semantics<arbitrary>], iteration_bounds = array<i64: 1>, scalar_prefetch = 0 : i64, scratch_operands = 0 : i64, tpu.core_type = #tpu.core_type<tc>, window_params = [{transform_indices = @transform_0, window_bounds = array<i64: 128, 128>}, {pipeline_mode = #tpu.pipeline_mode<synchronous>, transform_indices = @transform_1, window_bounds = array<i64: 1, 128>}, {pipeline_mode = #tpu.pipeline_mode<synchronous>, transform_indices = @transform_2, window_bounds = array<i64: 1, 128>}]} {
    %c0_i32 = arith.constant 0 : i32
    %0 = arith.cmpi eq, %arg0, %c0_i32 : i32
    %1 = arith.extui %0 : i1 to i32
    %c0_i32_0 = arith.constant 0 : i32
    %2 = arith.cmpi ne, %1, %c0_i32_0 : i32
    scf.if %2 {
      %cst_11 = arith.constant 0.000000e+00 : f32
      %15 = vector.broadcast %cst_11 : f32 to vector<1x128xf32>
      %c0_12 = arith.constant 0 : index
      %c0_13 = arith.constant 0 : index
      %16 = vector.load %arg2[%c0_12, %c0_13] : memref<1x128xf32, #tpu.memory_space<vmem>>, vector<1x128xf32>
      tpu.vector_store %arg2[%c0_12, %c0_13], %15 {strides = array<i32>} : memref<1x128xf32, #tpu.memory_space<vmem>>, vector<1x128xf32>,
      %cst_14 = arith.constant 0.000000e+00 : f32
      %17 = vector.broadcast %cst_14 : f32 to vector<1x128xf32>
      %c0_15 = arith.constant 0 : index
      %c0_16 = arith.constant 0 : index
      %18 = vector.load %arg3[%c0_15, %c0_16] : memref<1x128xf32, #tpu.memory_space<vmem>>, vector<1x128xf32>
      tpu.vector_store %arg3[%c0_15, %c0_16], %17 {strides = array<i32>} : memref<1x128xf32, #tpu.memory_space<vmem>>, vector<1x128xf32>,
    } else {
    }
    %c0 = arith.constant 0 : index
    %c0_1 = arith.constant 0 : index
    %3 = vector.load %arg1[%c0, %c0_1] : memref<128x128xf32, #tpu.memory_space<vmem>>, vector<128x128xf32>
    %c0_2 = arith.constant 0 : index
    %c0_3 = arith.constant 0 : index
    %4 = vector.load %arg2[%c0_2, %c0_3] : memref<1x128xf32, #tpu.memory_space<vmem>>, vector<1x128xf32>
    %cst = arith.constant dense<0.000000e+00> : vector<128xf32>
    %5 = vector.multi_reduction <add>, %3, %cst [0] : vector<128x128xf32> to vector<128xf32>
    %6 = vector.shape_cast %5 : vector<128xf32> to vector<1x128xf32>
    %7 = arith.addf %4, %6 : vector<1x128xf32>
    %c0_4 = arith.constant 0 : index
    %c0_5 = arith.constant 0 : index
    %8 = vector.load %arg2[%c0_4, %c0_5] : memref<1x128xf32, #tpu.memory_space<vmem>>, vector<1x128xf32>
    tpu.vector_store %arg2[%c0_4, %c0_5], %7 {strides = array<i32>} : memref<1x128xf32, #tpu.memory_space<vmem>>, vector<1x128xf32>,
    %c0_6 = arith.constant 0 : index
    %c0_7 = arith.constant 0 : index
    %9 = vector.load %arg3[%c0_6, %c0_7] : memref<1x128xf32, #tpu.memory_space<vmem>>, vector<1x128xf32>
    %10 = arith.mulf %3, %3 : vector<128x128xf32>
    %cst_8 = arith.constant dense<0.000000e+00> : vector<128xf32>
    %11 = vector.multi_reduction <add>, %10, %cst_8 [0] : vector<128x128xf32> to vector<128xf32>
    %12 = vector.shape_cast %11 : vector<128xf32> to vector<1x128xf32>
    %13 = arith.addf %9, %12 : vector<1x128xf32>
    %c0_9 = arith.constant 0 : index
    %c0_10 = arith.constant 0 : index
    %14 = vector.load %arg3[%c0_9, %c0_10] : memref<1x128xf32, #tpu.memory_space<vmem>>, vector<1x128xf32>
    tpu.vector_store %arg3[%c0_9, %c0_10], %13 {strides = array<i32>} : memref<1x128xf32, #tpu.memory_space<vmem>>, vector<1x128xf32>,
    return
  }
  func.func @transform_0(%arg0: i32) -> (i32, i32) {
    %c0_i32 = arith.constant 0 : i32
    %c0_i32_0 = arith.constant 0 : i32
    return %arg0, %c0_i32 : i32, i32
  }
  func.func @transform_1(%arg0: i32) -> (i32, i32) {
    %c0_i32 = arith.constant 0 : i32
    %c0_i32_0 = arith.constant 0 : i32
    %c0_i32_1 = arith.constant 0 : i32
    return %c0_i32, %c0_i32_0 : i32, i32
  }
  func.func @transform_2(%arg0: i32) -> (i32, i32) {
    %c0_i32 = arith.constant 0 : i32
    %c0_i32_0 = arith.constant 0 : i32
    %c0_i32_1 = arith.constant 0 : i32
    return %c0_i32, %c0_i32_0 : i32, i32
  }
}

module attributes {stable_mosaic.version = 11 : i64} {
  func.func @_bn_apply_kernel(%arg0: i32, %arg1: memref<128x128xf32, #tpu.memory_space<vmem>>, %arg2: memref<1x128xf32, #tpu.memory_space<vmem>>, %arg3: memref<1x128xf32, #tpu.memory_space<vmem>>, %arg4: memref<128x128xf32, #tpu.memory_space<vmem>>) attributes {dimension_semantics = [#tpu.dimension_semantics<parallel>], iteration_bounds = array<i64: 1>, scalar_prefetch = 0 : i64, scratch_operands = 0 : i64, tpu.core_type = #tpu.core_type<tc>, window_params = [{transform_indices = @transform_0, window_bounds = array<i64: 128, 128>}, {pipeline_mode = #tpu.pipeline_mode<synchronous>, transform_indices = @transform_1, window_bounds = array<i64: 1, 128>}, {pipeline_mode = #tpu.pipeline_mode<synchronous>, transform_indices = @transform_2, window_bounds = array<i64: 1, 128>}, {transform_indices = @transform_3, window_bounds = array<i64: 128, 128>}]} {
    %c0 = arith.constant 0 : index
    %c0_0 = arith.constant 0 : index
    %0 = vector.load %arg1[%c0, %c0_0] : memref<128x128xf32, #tpu.memory_space<vmem>>, vector<128x128xf32>
    %c0_1 = arith.constant 0 : index
    %c0_2 = arith.constant 0 : index
    %1 = vector.load %arg2[%c0_1, %c0_2] : memref<1x128xf32, #tpu.memory_space<vmem>>, vector<1x128xf32>
    %2 = vector.broadcast %1 : vector<1x128xf32> to vector<128x128xf32>
    %3 = arith.mulf %0, %2 : vector<128x128xf32>
    %c0_3 = arith.constant 0 : index
    %c0_4 = arith.constant 0 : index
    %4 = vector.load %arg3[%c0_3, %c0_4] : memref<1x128xf32, #tpu.memory_space<vmem>>, vector<1x128xf32>
    %5 = vector.broadcast %4 : vector<1x128xf32> to vector<128x128xf32>
    %6 = arith.addf %3, %5 : vector<128x128xf32>
    %c0_5 = arith.constant 0 : index
    %c0_6 = arith.constant 0 : index
    %7 = vector.load %arg4[%c0_5, %c0_6] : memref<128x128xf32, #tpu.memory_space<vmem>>, vector<128x128xf32>
    tpu.vector_store %arg4[%c0_5, %c0_6], %6 {strides = array<i32>} : memref<128x128xf32, #tpu.memory_space<vmem>>, vector<128x128xf32>,
    return
  }
  func.func @transform_0(%arg0: i32) -> (i32, i32) {
    %c0_i32 = arith.constant 0 : i32
    %c0_i32_0 = arith.constant 0 : i32
    return %arg0, %c0_i32 : i32, i32
  }
  func.func @transform_1(%arg0: i32) -> (i32, i32) {
    %c0_i32 = arith.constant 0 : i32
    %c0_i32_0 = arith.constant 0 : i32
    %c0_i32_1 = arith.constant 0 : i32
    return %c0_i32, %c0_i32_0 : i32, i32
  }
  func.func @transform_2(%arg0: i32) -> (i32, i32) {
    %c0_i32 = arith.constant 0 : i32
    %c0_i32_0 = arith.constant 0 : i32
    %c0_i32_1 = arith.constant 0 : i32
    return %c0_i32, %c0_i32_0 : i32, i32
  }
  func.func @transform_3(%arg0: i32) -> (i32, i32) {
    %c0_i32 = arith.constant 0 : i32
    %c0_i32_0 = arith.constant 0 : i32
    return %arg0, %c0_i32 : i32, i32
  }
}

module attributes {stable_mosaic.version = 11 : i64} {
  func.func @_conv_mm_kernel(%arg0: i32, %arg1: i32, %arg2: memref<512x144xbf16, #tpu.memory_space<vmem>>, %arg3: memref<144x128xbf16, #tpu.memory_space<vmem>>, %arg4: memref<1x128xf32, #tpu.memory_space<vmem>>, %arg5: memref<512x128xf32, #tpu.memory_space<vmem>>, %arg6: memref<512x128xf32, #tpu.memory_space<vmem>>) attributes {dimension_semantics = [#tpu.dimension_semantics<parallel>, #tpu.dimension_semantics<arbitrary>], iteration_bounds = array<i64: 4, 1>, scalar_prefetch = 0 : i64, scratch_operands = 1 : i64, tpu.core_type = #tpu.core_type<tc>, window_params = [{transform_indices = @transform_0, window_bounds = array<i64: 512, 144>}, {transform_indices = @transform_1, window_bounds = array<i64: 144, 128>}, {pipeline_mode = #tpu.pipeline_mode<synchronous>, transform_indices = @transform_2, window_bounds = array<i64: 1, 128>}, {transform_indices = @transform_3, window_bounds = array<i64: 512, 128>}]} {
    %c0_i32 = arith.constant 0 : i32
    %0 = arith.cmpi eq, %arg1, %c0_i32 : i32
    %1 = arith.extui %0 : i1 to i32
    %c0_i32_0 = arith.constant 0 : i32
    %2 = arith.cmpi ne, %1, %c0_i32_0 : i32
    scf.if %2 {
      %cst_11 = arith.constant 0.000000e+00 : f32
      %14 = vector.broadcast %cst_11 : f32 to vector<512x128xf32>
      %c0_12 = arith.constant 0 : index
      %c0_13 = arith.constant 0 : index
      %15 = vector.load %arg6[%c0_12, %c0_13] : memref<512x128xf32, #tpu.memory_space<vmem>>, vector<512x128xf32>
      tpu.vector_store %arg6[%c0_12, %c0_13], %14 {strides = array<i32>} : memref<512x128xf32, #tpu.memory_space<vmem>>, vector<512x128xf32>,
    } else {
    }
    %c0 = arith.constant 0 : index
    %c0_1 = arith.constant 0 : index
    %3 = vector.load %arg2[%c0, %c0_1] : memref<512x144xbf16, #tpu.memory_space<vmem>>, vector<512x144xbf16>
    %cst = arith.constant 0.000000e+00 : bf16
    %4 = vector.broadcast %cst : bf16 to vector<512x144xbf16>
    %5 = arith.maximumf %3, %4 : vector<512x144xbf16>
    %c0_2 = arith.constant 0 : index
    %c0_3 = arith.constant 0 : index
    %6 = vector.load %arg6[%c0_2, %c0_3] : memref<512x128xf32, #tpu.memory_space<vmem>>, vector<512x128xf32>
    %c0_4 = arith.constant 0 : index
    %c0_5 = arith.constant 0 : index
    %7 = vector.load %arg3[%c0_4, %c0_5] : memref<144x128xbf16, #tpu.memory_space<vmem>>, vector<144x128xbf16>
    %cst_6 = arith.constant dense<0.000000e+00> : vector<512x128xf32>
    %8 = tpu.matmul %5, %7, %cst_6 {dimension_numbers = #tpu.dot_dimension_numbers<[1], [0], [0], [1], [0, 0, 1, 1], [], []>} : vector<512x144xbf16>, vector<144x128xbf16>, vector<512x128xf32> -> vector<512x128xf32>
    %9 = arith.addf %6, %8 : vector<512x128xf32>
    %c0_7 = arith.constant 0 : index
    %c0_8 = arith.constant 0 : index
    %10 = vector.load %arg6[%c0_7, %c0_8] : memref<512x128xf32, #tpu.memory_space<vmem>>, vector<512x128xf32>
    tpu.vector_store %arg6[%c0_7, %c0_8], %9 {strides = array<i32>} : memref<512x128xf32, #tpu.memory_space<vmem>>, vector<512x128xf32>,
    %c0_i32_9 = arith.constant 0 : i32
    %11 = arith.cmpi eq, %arg1, %c0_i32_9 : i32
    %12 = arith.extui %11 : i1 to i32
    %c0_i32_10 = arith.constant 0 : i32
    %13 = arith.cmpi ne, %12, %c0_i32_10 : i32
    scf.if %13 {
      %c0_11 = arith.constant 0 : index
      %c0_12 = arith.constant 0 : index
      %14 = vector.load %arg6[%c0_11, %c0_12] : memref<512x128xf32, #tpu.memory_space<vmem>>, vector<512x128xf32>
      %c0_13 = arith.constant 0 : index
      %c0_14 = arith.constant 0 : index
      %15 = vector.load %arg4[%c0_13, %c0_14] : memref<1x128xf32, #tpu.memory_space<vmem>>, vector<1x128xf32>
      %16 = vector.broadcast %15 : vector<1x128xf32> to vector<512x128xf32>
      %17 = arith.addf %14, %16 : vector<512x128xf32>
      %18 = math.tanh %17 : vector<512x128xf32>
      %c0_15 = arith.constant 0 : index
      %c0_16 = arith.constant 0 : index
      %19 = vector.load %arg5[%c0_15, %c0_16] : memref<512x128xf32, #tpu.memory_space<vmem>>, vector<512x128xf32>
      tpu.vector_store %arg5[%c0_15, %c0_16], %18 {strides = array<i32>} : memref<512x128xf32, #tpu.memory_space<vmem>>, vector<512x128xf32>,
    } else {
    }
    return
  }
  func.func @transform_0(%arg0: i32, %arg1: i32) -> (i32, i32) {
    %c0_i32 = arith.constant 0 : i32
    return %arg0, %arg1 : i32, i32
  }
  func.func @transform_1(%arg0: i32, %arg1: i32) -> (i32, i32) {
    %c0_i32 = arith.constant 0 : i32
    %c0_i32_0 = arith.constant 0 : i32
    return %arg1, %c0_i32 : i32, i32
  }
  func.func @transform_2(%arg0: i32, %arg1: i32) -> (i32, i32) {
    %c0_i32 = arith.constant 0 : i32
    %c0_i32_0 = arith.constant 0 : i32
    %c0_i32_1 = arith.constant 0 : i32
    return %c0_i32, %c0_i32_0 : i32, i32
  }
  func.func @transform_3(%arg0: i32, %arg1: i32) -> (i32, i32) {
    %c0_i32 = arith.constant 0 : i32
    %c0_i32_0 = arith.constant 0 : i32
    return %arg0, %c0_i32 : i32, i32
  }
}

</mosaic_0001>

<bundles_post_ra>
// kernel: _lambda_.24
= control target key start
LH: loop header
LB: loop body
LE: loop exit
PB: predicated region body
PF: predicated region fallthrough
CT: control target
= control target key end

     0   :  { %8 = vsyncpa [#allocation4], 0  ;;  %s2434_s0 = inlined_call_operand.hbm [shape: bf16[2048,48], index: 0, kind: input, shape index: {}]   ;;  %s2435_s1 = inlined_call_operand.hbm [shape: bf16[48,128], index: 1, kind: input, shape index: {}]   ;;  %s2436_s2 = inlined_call_operand.hbm [shape: f32[1,128], index: 2, kind: input, shape index: {}]   ;;  %s2437_s3 = inlined_call_operand.hbm [shape: f32[2048,128], index: 3, kind: output, shape index: {}]  }
   0x1   :  { %10 = vsyncpa [#allocation4 + $0x1], 0 }
   0x2   :  { %11 = vsyncpa [#allocation7], 0 }
   0x3   :  { %12 = vsyncpa [#allocation5], 0 }
   0x4   :  { %14 = vsyncpa [#allocation5 + $0x1], 0  ;;  %s1981_s12 = smov 0   ;;  %s1983_s13 = smov 0  }
   0x5   :  { %s1985_s14 = smov 0   ;;  %s1987_s15 = smov 0  }
   0x6   :  { %s1989_s16 = smov 0   ;;  %s1991_s17 = smov 0  }
   0x7 LB: > { %s1457_s18 = sadd.s32 4294967295, %s1951_s17   ;;  %s1458_s19 = sadd.s32 4294967294, %s1951_s17   ;;  %s1951_s17 = sphi %s1991_s17, %s20_s17   ;;  %s1947_s16 = sphi %s1989_s16, %s2459_s16   ;;  %s1943_s15 = sphi %s1987_s15, %s2458_s15   ;;  %s1939_s14 = sphi %s1985_s14, %s2457_s14   ;;  %s1935_s13 = sphi %s1983_s13, %s2456_s13   ;;  %s1931_s12 = sphi %s1981_s12, %s2455_s12  }
   0x8   : > { %p54_p0 = scmp.ne.s32.totalorder %s1935_s13, %s1931_s12  ;;  %p2015_p1 = scmp.eq.s32.totalorder %s1457_s18, 0 }
   0x9   : > { %p2019_p2 = scmp.eq.s32.totalorder %s1457_s18, 3  ;;  %p131_p3 = scmp.eq.s32.totalorder %s1458_s19, 3 }
   0xa   : > { %s2442_s20 = scalar_select %p2015_p1, 1, 0 }
   0xb   : > { %s2443_s21 = scalar_select %p2019_p2, 1, 0 }
   0xc   : > { %p2025_p4 = por %p2015_p1, %p54_p0  ;;  %p1459_p5 = scmp.ge.s32.totalorder %s1951_s17, 1 }
   0xd   : > { %p2030_p6 = por %p131_p3, %p54_p0  ;;  %p138_p7 = scmp.lt.s32.totalorder %s1951_s17, 5 }
   0xe   : > { %s2444_s22 = scalar_select %p2025_p4, 1, 0 }
   0xf   : > { %s2445_s23 = scalar_select %p2030_p6, 1, 0 }
  0x10   : > { %p2035_p8 = pnand %p1459_p5, %p138_p7  ;;  %s1953_s25 = smov [#allocation6]  }
  0x11   : > { %s153_s26 = sshll.u32 %s1953_s25, 4  ;;  %s1954_s28 = smov [#allocation8]   ;;  %s154_s26 = int_to_ptr.vmem [resolvable:$true] %s153_s26 }
  0x12   : > { %s2446_s24 = scalar_select %p2035_p8, 1, 0 }
  0x13   : > { %p1669_p9 = pneg %p2035_p8  ;;  %s167_s29 = sshll.u32 %s1954_s28, 4  ;;  %s2047_s29 = int_to_ptr.vmem [resolvable:$true] %s167_s29 }
  0x14   : > { %s1779_s5 = scalar_lea.hbm %s2435_s1, 384 }
  0x15   : > { %p2043_p10 = pnand %p1669_p9, %p2015_p1  ;;  %p1780_p11 = scmp.ne.s32.totalorder %s2435_s1, %s1779_s5 }
  0x16   : > { %p1786_p3 = scmp.lt.u32.totalorder %s1779_s5, %s2435_s1 }
  0x17   : > { %p1781_p12 = pneg %p2043_p10 }
  0x19   : > { %p1782_p13 = pnand %p1781_p12, %p1780_p11 }
  0x1b   : > { %p1783_p0 = pneg %p1782_p13 }
  0x1d   : > { %p1788_p5 = pnand %p1786_p3, %p1783_p0 }
  0x1f   : > { %1791 = shalt.err (!%p1788_p5)
}
  0x20   : > { %s1792_s10 = scalar_lea.vmem %s154_s26, 384  ;;  %p1800_p1 = scmp.lt.s32.totalorder %s154_s26, %s154_s26 }
  0x21   : > { %p1793_p7 = scmp.ne.s32.totalorder %s154_s26, %s1792_s10  ;;  %p1801_p4 = scmp.lt.s32.totalorder %s1792_s10, %s1792_s10 }
  0x23   : > { %p1795_p9 = pnand %p1793_p7, %p1781_p12  ;;  %p1802_p8 = por %p1801_p4, %p1800_p1 }
  0x25   : > { %p1796_p6 = pneg %p1795_p9 }
  0x27   : > { %p1803_p2 = pnand %p1802_p8, %p1796_p6 }
  0x29   : > { %1806 = shalt.err (!%p1803_p2)
}
  0x2a   : > { %s1955_s11 = smov 64   ;;  %s1956_s18 = smov 4  }
  0x2b   : > { %1672 = dma.hbm_to_vmem [thread:$0]  (!%p2043_p10), %s2435_s1, 384, %s154_s26, [#allocation7], %s1955_s11, %s1955_s11, %s1956_s18  }
  0x2c   : > { %s1807_s4 = scalar_lea.hbm %s2436_s2, 16 }
  0x2d   : > { %p1808_p1 = scmp.ne.s32.totalorder %s2436_s2, %s1807_s4  ;;  %p1814_p6 = scmp.lt.u32.totalorder %s1807_s4, %s2436_s2 }
  0x2f   : > { %p1810_p2 = pnand %p1808_p1, %p1781_p12 }
  0x31   : > { %p1811_p4 = pneg %p1810_p2 }
  0x33   : > { %p1816_p8 = pnand %p1814_p6, %p1811_p4 }
  0x35   : > { %1819 = shalt.err (!%p1816_p8)
}
  0x36   : > { %s1820_s26 = scalar_lea.vmem %s2047_s29, 16  ;;  %s1827_s9 = scalar_lea.vmem %s2047_s29, 32 }
  0x37   : > { %p1821_p11 = scmp.ne.s32.totalorder %s2047_s29, %s1820_s26  ;;  %p1828_p3 = scmp.lt.s32.totalorder %s2047_s29, %s2047_s29 }
  0x38   : > { %p1829_p5 = scmp.lt.s32.totalorder %s1827_s9, %s1820_s26 }
  0x39   : > { %p1823_p13 = pnand %p1821_p11, %p1781_p12 }
  0x3a   : > { %p1830_p7 = por %p1829_p5, %p1828_p3 }
  0x3b   : > { %p1824_p0 = pneg %p1823_p13 }
  0x3d   : > { %p1831_p9 = pnand %p1830_p7, %p1824_p0 }
  0x3f   : > { %1834 = shalt.err (!%p1831_p9)
}
  0x40   : > { %1675 = dma.hbm_to_vmem [thread:$0]  (!%p2043_p10), %s2436_s2, 16, %s2047_s29, [#allocation7]  }
  0x41   : > { %s32_s25 = sadd.s32 1, %s1947_s16  ;;  %s41_s28 = sadd.s32 1, %s1939_s14 }
  0x42   : > { %p34_p12 = scmp.ge.s32.totalorder %s32_s25, 4  ;;  %p48_p1 = scmp.ne.s32.totalorder %s1939_s14, %s1935_s13 }
  0x43   : > { %p49_p2 = scmp.eq.s32.totalorder %s1951_s17, 0  ;;  %p1686_p4 = scmp.lt.s32.totalorder %s1951_s17, 4 }
  0x44   : > { %s2461_s25 = smov (%p34_p12, %s32_s25), 0  ;;  %p2448_p8 = scmp.ne.s32.totalorder %s2443_s21, 0 }
  0x45   : > { %p50_p6 = por %p49_p2, %p48_p1  ;;  %s36_s30 = ssub.s32 %s1947_s16, %s2461_s25 }
  0x46   : > { %p2110_p11 = por %p2448_p8, %p48_p1  ;;  %s178_s4 = sand.u32 1, %s1939_s14  }
  0x47   : > { %p39_p13 = scmp.eq.s32.totalorder %s36_s30, 0  ;;  %s1463_s29 = sshll.u32 %s178_s4, 8 }
  0x48   : > { %s1544_s5 = sshll.u32 %s1947_s16, 12  ;;  %s182_s21 = scalar_lea.vmem [#allocation3], %s1463_s29 }
  0x49   : > { %s2119_s6 = scalar_select %p39_p13, %s1939_s14, %s41_s28  }
  0x4a   : > { %s2124_s26 = scalar_lea.hbm %s2434_s0, %s1544_s5  ;;  %s190_s9 = sshll.u32 %s182_s21, 4  ;;  %s2132_s9 = int_to_ptr.vmem [resolvable:$true] %s190_s9 }
  0x4b   : > { %p2128_p10 = pnand %p1686_p4, %p50_p6  ;;  %s2134_s19 = scalar_lea.sflag [#allocation4], %s178_s4 }
  0x4c   : > { %s1835_s28 = scalar_lea.hbm %s2124_s26, 4096  ;;  %s1840_s5 = scalar_lea.hbm %s2434_s0, 16384 }
  0x4d   : > { %p1836_p0 = scmp.ne.s32.totalorder %s2124_s26, %s1835_s28  ;;  %p1837_p3 = pneg %p2128_p10 }
  0x4e   : > { %p1841_p9 = scmp.lt.u32.totalorder %s2124_s26, %s2434_s0  ;;  %p1842_p12 = scmp.lt.u32.totalorder %s1840_s5, %s1835_s28 }
  0x4f   : > { %p1838_p5 = pnand %p1837_p3, %p1836_p0  ;;  %p1844_p2 = scmp.lt.u32.totalorder %s1835_s28, %s2124_s26 }
  0x50   : > { %p1843_p1 = por %p1842_p12, %p1841_p9 }
  0x51   : > { %p1839_p7 = pneg %p1838_p5 }
  0x52   : > { %p1845_p4 = por %p1844_p2, %p1843_p1 }
  0x54   : > { %p1846_p6 = pnand %p1845_p4, %p1839_p7 }
  0x56   : > { %1849 = shalt.err (!%p1846_p6)
}
  0x57   : > { %s1850_s4 = scalar_lea.vmem %s2132_s9, 4096  ;;  %s1957_s21 = smov [#allocation3]  }
  0x58   : > { %p1851_p8 = scmp.ne.s32.totalorder %s2132_s9, %s1850_s4  ;;  %s1855_s30 = sshll.u32 %s1957_s21, 4  ;;  %s1856_s30 = int_to_ptr.vmem [resolvable:$false] %s1855_s30 }
  0x59   : > { %s1857_s29 = scalar_lea.vmem %s1856_s30, 8192  ;;  %p1858_p5 = scmp.lt.s32.totalorder %s2132_s9, %s1856_s30 }
  0x5a   : > { %p1853_p13 = pnand %p1851_p8, %p1837_p3  ;;  %p1859_p9 = scmp.lt.s32.totalorder %s1857_s29, %s1850_s4 }
  0x5c   : > { %p1854_p0 = pneg %p1853_p13  ;;  %p1860_p12 = por %p1859_p9, %p1858_p5 }
  0x5e   : > { %p1861_p1 = pnand %p1860_p12, %p1854_p0 }
  0x60   : > { %1864 = shalt.err (!%p1861_p1)
}
  0x61   : > { %1679 = dma.hbm_to_vmem [thread:$0]  (!%p2128_p10), %s2124_s26, 4096, %s2132_s9, %s2134_s19, %s1955_s11, %s1955_s11, %s1956_s18  }
  0x62   : > { %p2451_p3 = scmp.ne.s32.totalorder %s2446_s24, 0 }
  0x63   : > { %s2168_s28 = sand.u32 (!%p2451_p3), 1, %s1935_s13   ;;  %p2452_p7 = scmp.ne.s32.totalorder (!%p2451_p3), %s2444_s22, 0 }
  0x64   : > { %202 = sbr.rel (%p2451_p3) target bundleno = 412 (0x19c), region = 32  ;;  %s1467_s5 = sshll.u32 (!%p2451_p3), %s2168_s28, 8 }
  0x65   : > { %s205_s7 = scalar_lea.sflag (!%p2451_p3), [#allocation4], %s2168_s28  ;;  %s2172_s8 = scalar_lea.vmem (!%p2451_p3), [#allocation3], %s1467_s5 }
  0x6b   : > { %1918 = dma.done.wait (%p2452_p7), %s205_s7, 4096  }
  0x6c   : > { %1920 = vsyncadd (%p2452_p7), %s205_s7, 4294963200  ;;  %p2453_p10 = scmp.ne.s32.totalorder %s2442_s20, 0 }
  0x6e   : > { %1922 = dma.done.wait (%p2453_p10), [#allocation7], 400  }
  0x6f   : > { %1924 = vsyncadd (%p2453_p10), [#allocation7], 4294966896  ;;  %v1744_v0 = vld [vmem:[#allocation6] sm:$0xff]   ;;  %v1745_v1 = vld [vmem:[#allocation6 + $0x8] sm:$0xff]   ;;  %vm623_vm0 = vcmask 392192   ;;  %s1470_s20 = sshll.u32 %s2168_s28, 9 }
  0x70   : > { %1581 = vmatprep.subr.bf16.mxu0 %v1744_v0  ;;  %1651 = vmatprep.subr.bf16.mxu1 %v1744_v0  ;;  %v1746_v2 = vld [vmem:[#allocation6 + $0x10] sm:$0xff]   ;;  %v1747_v3 = vld [vmem:[%s2172_s8] sm:$0xff]   ;;  %v1749_v5 = vld [vmem:[%s2172_s8 + $0x8] sm:$0xff]   ;;  %s2253_s22 = scalar_lea.vmem [#allocation9], %s1470_s20  ;;  %s1545_s24 = sshll.u32 %s1943_s15, 13 }
  0x71   : > { %1582 = vmatpush3.bf16.msra.mxu0 %v1744_v0  ;;  %1654 = vmatpush3.bf16.msra.mxu1 %v1744_v0  ;;  %v1748_v4 = vld [vmem:[%s2172_s8 + $0x80] sm:$0xff]   ;;  %v1750_v6 = vld [vmem:[%s2172_s8 + $0x88] sm:$0xff]   ;;  %v1751_v7 = vld [vmem:[%s2172_s8 + $0x10] sm:$0xff]   ;;  %s1353_s11 = sshll.u32 %s2253_s22, 4  ;;  %s2376_s26 = scalar_lea.hbm %s2437_s3, %s1545_s24  ;;  %s2378_s11 = int_to_ptr.vmem [resolvable:$true] %s1353_s11 }
  0x72   : > { %1583 = vmatprep.subr.bf16.mxu0 %v1745_v1  ;;  %1652 = vmatprep.subr.bf16.mxu1 %v1745_v1  ;;  %v1752_v8 = vld [vmem:[%s2172_s8 + $0x90] sm:$0xff]   ;;  %v1753_v9 = vld [vmem:[%s2172_s8 + $0x18] sm:$0xff]   ;;  %v1755_v11 = vld [vmem:[%s2172_s8 + $0x20] sm:$0xff]   ;;  %s1340_s9 = scalar_lea.sflag [#allocation5], %s2168_s28  ;;  %s1865_s10 = scalar_lea.vmem %s2378_s11, 8192 }
  0x73   : > { %1587 = vmatprep.mubr.msk.bf16.mxu0 %vm623_vm0, %v1747_v3  ;;  %1619 = vmatprep.mubr.msk.bf16.mxu1 %vm623_vm0, %v1748_v4  ;;  %v1754_v10 = vld [vmem:[%s2172_s8 + $0x98] sm:$0xff]   ;;  %v1756_v12 = vld [vmem:[%s2172_s8 + $0xa0] sm:$0xff]   ;;  %v1757_v13 = vld [vmem:[%s2172_s8 + $0x28] sm:$0xff]   ;;  %p1866_p2 = scmp.ne.s32.totalorder %s2378_s11, %s1865_s10  ;;  %s1958_s19 = smov [#allocation9]  }
  0x74   : > { %v1758_v14 = vld [vmem:[%s2172_s8 + $0xa8] sm:$0xff]   ;;  %v1759_v15 = vld [vmem:[%s2172_s8 + $0x30] sm:$0xff]   ;;  %v1761_v17 = vld [vmem:[%s2172_s8 + $0x38] sm:$0xff]   ;;  %s1869_s4 = sshll.u32 %s1958_s19, 4  ;;  %s1870_s4 = int_to_ptr.vmem [resolvable:$false] %s1869_s4 }
  0x75   : > { %1584 = vmatpush3.bf16.msra.mxu0 %v1745_v1  ;;  %1655 = vmatpush3.bf16.msra.mxu1 %v1745_v1  ;;  %v1760_v16 = vld [vmem:[%s2172_s8 + $0xb0] sm:$0xff]   ;;  %v1762_v18 = vld [vmem:[%s2172_s8 + $0xb8] sm:$0xff]   ;;  %v1763_v19 = vld [vmem:[%s2172_s8 + $0x40] sm:$0xff]   ;;  %p1867_p4 = pnand %p1866_p2, %p2110_p11  ;;  %s1871_s21 = scalar_lea.vmem %s1870_s4, 16384 }
  0x76   : > { %1585 = vmatprep.subr.bf16.mxu0 %v1746_v2  ;;  %1653 = vmatprep.subr.bf16.mxu1 %v1746_v2  ;;  %v1764_v20 = vld [vmem:[%s2172_s8 + $0xc0] sm:$0xff]   ;;  %v1765_v21 = vld [vmem:[%s2172_s8 + $0x48] sm:$0xff]   ;;  %v1767_v23 = vld [vmem:[%s2172_s8 + $0x50] sm:$0xff]   ;;  %p1872_p8 = scmp.lt.s32.totalorder %s2378_s11, %s1870_s4  ;;  %p1873_p13 = scmp.lt.s32.totalorder %s1871_s21, %s1865_s10 }
  0x77   : > { %v1766_v22 = vld [vmem:[%s2172_s8 + $0xc8] sm:$0xff]   ;;  %v1768_v24 = vld [vmem:[%s2172_s8 + $0xd0] sm:$0xff]   ;;  %v1769_v25 = vld [vmem:[%s2172_s8 + $0x58] sm:$0xff]   ;;  %p1868_p6 = pneg %p1867_p4 }
  0x78   : > { %v1770_v26 = vld [vmem:[%s2172_s8 + $0xd8] sm:$0xff]   ;;  %v1771_v27 = vld [vmem:[%s2172_s8 + $0x60] sm:$0xff]   ;;  %v1773_v29 = vld [vmem:[%s2172_s8 + $0x68] sm:$0xff]   ;;  %p1874_p0 = por %p1873_p13, %p1872_p8 }
  0x79   : > { %1586 = vmatpush3.bf16.msra.mxu0 %v1746_v2  ;;  %1656 = vmatpush3.bf16.msra.mxu1 %v1746_v2  ;;  %v1772_v28 = vld [vmem:[%s2172_s8 + $0xe0] sm:$0xff]   ;;  %v1774_v30 = vld [vmem:[%s2172_s8 + $0xe8] sm:$0xff]   ;;  %v1775_v31 = vld [vmem:[%s2172_s8 + $0x70] sm:$0xff]  }
  0x7a   : > { %v1776_v32 = vld [vmem:[%s2172_s8 + $0xf0] sm:$0xff]   ;;  %v1777_v33 = vld [vmem:[%s2172_s8 + $0x78] sm:$0xff]   ;;  %p1875_p5 = pnand %p1874_p0, %p1868_p6 }
  0x7b   : > { %v1778_v34 = vld [vmem:[%s2172_s8 + $0xf8] sm:$0xff]  }
  0x7c   : > { %1588 = vmatmul.mubr.msk.bf16.vlgmr.msra.gmra.mrb[0].mxu0 %vm623_vm0, %v1749_v5  ;;  %1620 = vmatmul.mubr.msk.bf16.vlgmr.msra.gmra.mrb[0].mxu1 %vm623_vm0, %v1750_v6  ;;  %v2247_v35 = vld [vmem:[#allocation8] ss:$0 sm:$0xff] }
  0x7d   : > { %1591 = vmatprep.mubr.msk.bf16.mxu0 %vm623_vm0, %v1751_v7  ;;  %1623 = vmatprep.mubr.msk.bf16.mxu1 %vm623_vm0, %v1752_v8 }
  0x84   : > { %1592 = vmatmul.mubr.msk.bf16.gmra.mrb[4].mxu0 %vm623_vm0, %v1753_v9  ;;  %1624 = vmatmul.mubr.msk.bf16.gmra.mrb[4].mxu1 %vm623_vm0, %v1754_v10 }
  0x85   : > { %1595 = vmatprep.mubr.msk.bf16.mxu0 %vm623_vm0, %v1755_v11  ;;  %1627 = vmatprep.mubr.msk.bf16.mxu1 %vm623_vm0, %v1756_v12 }
  0x8c   : > { %1596 = vmatmul.mubr.msk.bf16.gmra.mrb[8].mxu0 %vm623_vm0, %v1757_v13  ;;  %1628 = vmatmul.mubr.msk.bf16.gmra.mrb[8].mxu1 %vm623_vm0, %v1758_v14 }
  0x8d   : > { %1599 = vmatprep.mubr.msk.bf16.mxu0 %vm623_vm0, %v1759_v15  ;;  %1631 = vmatprep.mubr.msk.bf16.mxu1 %vm623_vm0, %v1760_v16 }
  0x94   : > { %1600 = vmatmul.mubr.msk.bf16.gmra.mrb[12].mxu0 %vm623_vm0, %v1761_v17  ;;  %1632 = vmatmul.mubr.msk.bf16.gmra.mrb[12].mxu1 %vm623_vm0, %v1762_v18 }
  0x95   : > { %1603 = vmatprep.mubr.msk.bf16.mxu0 %vm623_vm0, %v1763_v19  ;;  %1635 = vmatprep.mubr.msk.bf16.mxu1 %vm623_vm0, %v1764_v20 }
  0x9c   : > { %1604 = vmatmul.mubr.msk.bf16.gmra.mrb[16].mxu0 %vm623_vm0, %v1765_v21  ;;  %1636 = vmatmul.mubr.msk.bf16.gmra.mrb[16].mxu1 %vm623_vm0, %v1766_v22 }
  0x9d   : > { %1607 = vmatprep.mubr.msk.bf16.mxu0 %vm623_vm0, %v1767_v23  ;;  %1639 = vmatprep.mubr.msk.bf16.mxu1 %vm623_vm0, %v1768_v24 }
  0xa4   : > { %1608 = vmatmul.mubr.msk.bf16.gmra.mrb[20].mxu0 %vm623_vm0, %v1769_v25  ;;  %1640 = vmatmul.mubr.msk.bf16.gmra.mrb[20].mxu1 %vm623_vm0, %v1770_v26 }
  0xa5   : > { %1611 = vmatprep.mubr.msk.bf16.mxu0 %vm623_vm0, %v1771_v27  ;;  %1643 = vmatprep.mubr.msk.bf16.mxu1 %vm623_vm0, %v1772_v28 }
  0xac   : > { %1612 = vmatmul.mubr.msk.bf16.gmra.mrb[24].mxu0 %vm623_vm0, %v1773_v29  ;;  %1644 = vmatmul.mubr.msk.bf16.gmra.mrb[24].mxu1 %vm623_vm0, %v1774_v30 }
  0xad   : > { %1615 = vmatprep.mubr.msk.bf16.mxu0 %vm623_vm0, %v1775_v31  ;;  %1647 = vmatprep.mubr.msk.bf16.mxu1 %vm623_vm0, %v1776_v32 }
  0xb4   : > { %1616 = vmatmul.mubr.msk.bf16.gmra.mrb[28].mxu0 %vm623_vm0, %v1777_v33  ;;  %1648 = vmatmul.mubr.msk.bf16.gmra.mrb[28].mxu1 %vm623_vm0, %v1778_v34 }
 0x14f   : > { %v1589_v36 = vpop.f32.mrb[0].mxu0  ;;  %v1621_v37 = vpop.f32.mrb[0].mxu1 }
 0x150   : > { %v1213_v38 = vadd.f32 %v1589_v36, %v2247_v35  ;;  %v1245_v39 = vadd.f32 %v1621_v37, %v2247_v35  ;;  %v754_v40 = vpop.f32.mrb[1].mxu0  ;;  %v882_v41 = vpop.f32.mrb[1].mxu1 }
 0x151   : > { %v1211_v42 = vadd.f32 %v2247_v35, %v754_v40  ;;  %v1243_v43 = vadd.f32 %v2247_v35, %v882_v41  ;;  %v1590_v44 = vpop.f32.mrb[2].mxu0  ;;  %v1622_v45 = vpop.f32.mrb[2].mxu1 }
 0x152   : > { %1277 = vst [vmem:[%s2253_s22 + $0x10] sm:$0xff] %v1213_v38  ;;  %1309 = vst [vmem:[%s2253_s22 + $0x110] sm:$0xff] %v1245_v39  ;;  %v1214_v46 = vadd.f32 %v1590_v44, %v2247_v35  ;;  %v1246_v47 = vadd.f32 %v1622_v45, %v2247_v35  ;;  %v757_v48 = vpop.f32.mrb[3].mxu0  ;;  %v885_v49 = vpop.f32.mrb[3].mxu1 }
 0x153   : > { %1275 = vst [vmem:[%s2253_s22] sm:$0xff] %v1211_v42  ;;  %1307 = vst [vmem:[%s2253_s22 + $0x100] sm:$0xff] %v1243_v43  ;;  %v1212_v50 = vadd.f32 %v2247_v35, %v757_v48  ;;  %v1244_v51 = vadd.f32 %v2247_v35, %v885_v49 }
 0x154   : > { %1278 = vst [vmem:[%s2253_s22 + $0x18] sm:$0xff] %v1214_v46  ;;  %1310 = vst [vmem:[%s2253_s22 + $0x118] sm:$0xff] %v1246_v47 }
 0x155   : > { %1276 = vst [vmem:[%s2253_s22 + $0x8] sm:$0xff] %v1212_v50  ;;  %1308 = vst [vmem:[%s2253_s22 + $0x108] sm:$0xff] %v1244_v51 }
 0x157   : > { %v1593_v52 = vpop.f32.mrb[4].mxu0  ;;  %v1625_v53 = vpop.f32.mrb[4].mxu1 }
 0x158   : > { %v1217_v54 = vadd.f32 %v1593_v52, %v2247_v35  ;;  %v1249_v55 = vadd.f32 %v1625_v53, %v2247_v35  ;;  %v770_v56 = vpop.f32.mrb[5].mxu0  ;;  %v898_v57 = vpop.f32.mrb[5].mxu1 }
 0x159   : > { %v1215_v58 = vadd.f32 %v2247_v35, %v770_v56  ;;  %v1247_v59 = vadd.f32 %v2247_v35, %v898_v57  ;;  %v1594_v60 = vpop.f32.mrb[6].mxu0  ;;  %v1626_v61 = vpop.f32.mrb[6].mxu1 }
 0x15a   : > { %1281 = vst [vmem:[%s2253_s22 + $0x30] sm:$0xff] %v1217_v54  ;;  %1313 = vst [vmem:[%s2253_s22 + $0x130] sm:$0xff] %v1249_v55  ;;  %v1218_v62 = vadd.f32 %v1594_v60, %v2247_v35  ;;  %v1250_v63 = vadd.f32 %v1626_v61, %v2247_v35  ;;  %v773_v0 = vpop.f32.mrb[7].mxu0  ;;  %v901_v1 = vpop.f32.mrb[7].mxu1 }
 0x15b   : > { %1279 = vst [vmem:[%s2253_s22 + $0x20] sm:$0xff] %v1215_v58  ;;  %1311 = vst [vmem:[%s2253_s22 + $0x120] sm:$0xff] %v1247_v59  ;;  %v1216_v2 = vadd.f32 %v2247_v35, %v773_v0  ;;  %v1248_v3 = vadd.f32 %v2247_v35, %v901_v1 }
 0x15c   : > { %1282 = vst [vmem:[%s2253_s22 + $0x38] sm:$0xff] %v1218_v62  ;;  %1314 = vst [vmem:[%s2253_s22 + $0x138] sm:$0xff] %v1250_v63 }
 0x15d   : > { %1280 = vst [vmem:[%s2253_s22 + $0x28] sm:$0xff] %v1216_v2  ;;  %1312 = vst [vmem:[%s2253_s22 + $0x128] sm:$0xff] %v1248_v3 }
 0x15f   : > { %v1597_v4 = vpop.f32.mrb[8].mxu0  ;;  %v1629_v5 = vpop.f32.mrb[8].mxu1 }
 0x160   : > { %v1221_v6 = vadd.f32 %v1597_v4, %v2247_v35  ;;  %v1253_v7 = vadd.f32 %v1629_v5, %v2247_v35  ;;  %v786_v8 = vpop.f32.mrb[9].mxu0  ;;  %v914_v9 = vpop.f32.mrb[9].mxu1 }
 0x161   : > { %v1219_v10 = vadd.f32 %v2247_v35, %v786_v8  ;;  %v1251_v11 = vadd.f32 %v2247_v35, %v914_v9  ;;  %v1598_v12 = vpop.f32.mrb[10].mxu0  ;;  %v1630_v13 = vpop.f32.mrb[10].mxu1 }
 0x162   : > { %1285 = vst [vmem:[%s2253_s22 + $0x50] sm:$0xff] %v1221_v6  ;;  %1317 = vst [vmem:[%s2253_s22 + $0x150] sm:$0xff] %v1253_v7  ;;  %v1222_v14 = vadd.f32 %v1598_v12, %v2247_v35  ;;  %v1254_v15 = vadd.f32 %v1630_v13, %v2247_v35  ;;  %v789_v16 = vpop.f32.mrb[11].mxu0  ;;  %v917_v17 = vpop.f32.mrb[11].mxu1 }
 0x163   : > { %1283 = vst [vmem:[%s2253_s22 + $0x40] sm:$0xff] %v1219_v10  ;;  %1315 = vst [vmem:[%s2253_s22 + $0x140] sm:$0xff] %v1251_v11  ;;  %v1220_v18 = vadd.f32 %v2247_v35, %v789_v16  ;;  %v1252_v19 = vadd.f32 %v2247_v35, %v917_v17 }
 0x164   : > { %1286 = vst [vmem:[%s2253_s22 + $0x58] sm:$0xff] %v1222_v14  ;;  %1318 = vst [vmem:[%s2253_s22 + $0x158] sm:$0xff] %v1254_v15 }
 0x165   : > { %1284 = vst [vmem:[%s2253_s22 + $0x48] sm:$0xff] %v1220_v18  ;;  %1316 = vst [vmem:[%s2253_s22 + $0x148] sm:$0xff] %v1252_v19 }
 0x167   : > { %v1601_v20 = vpop.f32.mrb[12].mxu0  ;;  %v1633_v21 = vpop.f32.mrb[12].mxu1 }
 0x168   : > { %v1225_v22 = vadd.f32 %v1601_v20, %v2247_v35  ;;  %v1257_v23 = vadd.f32 %v1633_v21, %v2247_v35  ;;  %v802_v24 = vpop.f32.mrb[13].mxu0  ;;  %v930_v25 = vpop.f32.mrb[13].mxu1 }
 0x169   : > { %v1223_v26 = vadd.f32 %v2247_v35, %v802_v24  ;;  %v1255_v27 = vadd.f32 %v2247_v35, %v930_v25  ;;  %v1602_v28 = vpop.f32.mrb[14].mxu0  ;;  %v1634_v29 = vpop.f32.mrb[14].mxu1 }
 0x16a   : > { %1289 = vst [vmem:[%s2253_s22 + $0x70] sm:$0xff] %v1225_v22  ;;  %1321 = vst [vmem:[%s2253_s22 + $0x170] sm:$0xff] %v1257_v23  ;;  %v1226_v30 = vadd.f32 %v1602_v28, %v2247_v35  ;;  %v1258_v31 = vadd.f32 %v1634_v29, %v2247_v35  ;;  %v805_v32 = vpop.f32.mrb[15].mxu0  ;;  %v933_v33 = vpop.f32.mrb[15].mxu1 }
 0x16b   : > { %1287 = vst [vmem:[%s2253_s22 + $0x60] sm:$0xff] %v1223_v26  ;;  %1319 = vst [vmem:[%s2253_s22 + $0x160] sm:$0xff] %v1255_v27  ;;  %v1224_v34 = vadd.f32 %v2247_v35, %v805_v32  ;;  %v1256_v36 = vadd.f32 %v2247_v35, %v933_v33 }
 0x16c   : > { %1290 = vst [vmem:[%s2253_s22 + $0x78] sm:$0xff] %v1226_v30  ;;  %1322 = vst [vmem:[%s2253_s22 + $0x178] sm:$0xff] %v1258_v31 }
 0x16d   : > { %1288 = vst [vmem:[%s2253_s22 + $0x68] sm:$0xff] %v1224_v34  ;;  %1320 = vst [vmem:[%s2253_s22 + $0x168] sm:$0xff] %v1256_v36 }
 0x16f   : > { %v1605_v37 = vpop.f32.mrb[16].mxu0  ;;  %v1637_v38 = vpop.f32.mrb[16].mxu1 }
 0x170   : > { %v1229_v39 = vadd.f32 %v1605_v37, %v2247_v35  ;;  %v1261_v40 = vadd.f32 %v1637_v38, %v2247_v35  ;;  %v818_v41 = vpop.f32.mrb[17].mxu0  ;;  %v946_v42 = vpop.f32.mrb[17].mxu1 }
 0x171   : > { %v1227_v43 = vadd.f32 %v2247_v35, %v818_v41  ;;  %v1259_v44 = vadd.f32 %v2247_v35, %v946_v42  ;;  %v1606_v45 = vpop.f32.mrb[18].mxu0  ;;  %v1638_v46 = vpop.f32.mrb[18].mxu1 }
 0x172   : > { %1293 = vst [vmem:[%s2253_s22 + $0x90] sm:$0xff] %v1229_v39  ;;  %1325 = vst [vmem:[%s2253_s22 + $0x190] sm:$0xff] %v1261_v40  ;;  %v1230_v47 = vadd.f32 %v1606_v45, %v2247_v35  ;;  %v1262_v48 = vadd.f32 %v1638_v46, %v2247_v35  ;;  %v821_v49 = vpop.f32.mrb[19].mxu0  ;;  %v949_v50 = vpop.f32.mrb[19].mxu1 }
 0x173   : > { %1291 = vst [vmem:[%s2253_s22 + $0x80] sm:$0xff] %v1227_v43  ;;  %1323 = vst [vmem:[%s2253_s22 + $0x180] sm:$0xff] %v1259_v44  ;;  %v1228_v51 = vadd.f32 %v2247_v35, %v821_v49  ;;  %v1260_v52 = vadd.f32 %v2247_v35, %v949_v50 }
 0x174   : > { %1294 = vst [vmem:[%s2253_s22 + $0x98] sm:$0xff] %v1230_v47  ;;  %1326 = vst [vmem:[%s2253_s22 + $0x198] sm:$0xff] %v1262_v48 }
 0x175   : > { %1292 = vst [vmem:[%s2253_s22 + $0x88] sm:$0xff] %v1228_v51  ;;  %1324 = vst [vmem:[%s2253_s22 + $0x188] sm:$0xff] %v1260_v52 }
 0x177   : > { %v1609_v53 = vpop.f32.mrb[20].mxu0  ;;  %v1641_v54 = vpop.f32.mrb[20].mxu1 }
 0x178   : > { %v1233_v55 = vadd.f32 %v1609_v53, %v2247_v35  ;;  %v1265_v56 = vadd.f32 %v1641_v54, %v2247_v35  ;;  %v834_v57 = vpop.f32.mrb[21].mxu0  ;;  %v962_v58 = vpop.f32.mrb[21].mxu1 }
 0x179   : > { %v1231_v59 = vadd.f32 %v2247_v35, %v834_v57  ;;  %v1263_v60 = vadd.f32 %v2247_v35, %v962_v58  ;;  %v1610_v61 = vpop.f32.mrb[22].mxu0  ;;  %v1642_v62 = vpop.f32.mrb[22].mxu1 }
 0x17a   : > { %1297 = vst [vmem:[%s2253_s22 + $0xb0] sm:$0xff] %v1233_v55  ;;  %1329 = vst [vmem:[%s2253_s22 + $0x1b0] sm:$0xff] %v1265_v56  ;;  %v1234_v63 = vadd.f32 %v1610_v61, %v2247_v35  ;;  %v1266_v0 = vadd.f32 %v1642_v62, %v2247_v35  ;;  %v837_v1 = vpop.f32.mrb[23].mxu0  ;;  %v965_v2 = vpop.f32.mrb[23].mxu1 }
 0x17b   : > { %1295 = vst [vmem:[%s2253_s22 + $0xa0] sm:$0xff] %v1231_v59  ;;  %1327 = vst [vmem:[%s2253_s22 + $0x1a0] sm:$0xff] %v1263_v60  ;;  %v1232_v3 = vadd.f32 %v2247_v35, %v837_v1  ;;  %v1264_v4 = vadd.f32 %v2247_v35, %v965_v2 }
 0x17c   : > { %1298 = vst [vmem:[%s2253_s22 + $0xb8] sm:$0xff] %v1234_v63  ;;  %1330 = vst [vmem:[%s2253_s22 + $0x1b8] sm:$0xff] %v1266_v0 }
 0x17d   : > { %1296 = vst [vmem:[%s2253_s22 + $0xa8] sm:$0xff] %v1232_v3  ;;  %1328 = vst [vmem:[%s2253_s22 + $0x1a8] sm:$0xff] %v1264_v4 }
 0x17f   : > { %v1613_v5 = vpop.f32.mrb[24].mxu0  ;;  %v1645_v6 = vpop.f32.mrb[24].mxu1 }
 0x180   : > { %v1237_v7 = vadd.f32 %v1613_v5, %v2247_v35  ;;  %v1269_v8 = vadd.f32 %v1645_v6, %v2247_v35  ;;  %v850_v9 = vpop.f32.mrb[25].mxu0  ;;  %v978_v10 = vpop.f32.mrb[25].mxu1 }
 0x181   : > { %v1235_v11 = vadd.f32 %v2247_v35, %v850_v9  ;;  %v1267_v12 = vadd.f32 %v2247_v35, %v978_v10  ;;  %v1614_v13 = vpop.f32.mrb[26].mxu0  ;;  %v1646_v14 = vpop.f32.mrb[26].mxu1 }
 0x182   : > { %1301 = vst [vmem:[%s2253_s22 + $0xd0] sm:$0xff] %v1237_v7  ;;  %1333 = vst [vmem:[%s2253_s22 + $0x1d0] sm:$0xff] %v1269_v8  ;;  %v1238_v15 = vadd.f32 %v1614_v13, %v2247_v35  ;;  %v1270_v16 = vadd.f32 %v1646_v14, %v2247_v35  ;;  %v853_v17 = vpop.f32.mrb[27].mxu0  ;;  %v981_v18 = vpop.f32.mrb[27].mxu1 }
 0x183   : > { %1299 = vst [vmem:[%s2253_s22 + $0xc0] sm:$0xff] %v1235_v11  ;;  %1331 = vst [vmem:[%s2253_s22 + $0x1c0] sm:$0xff] %v1267_v12  ;;  %v1236_v19 = vadd.f32 %v2247_v35, %v853_v17  ;;  %v1268_v20 = vadd.f32 %v2247_v35, %v981_v18 }
 0x184   : > { %1302 = vst [vmem:[%s2253_s22 + $0xd8] sm:$0xff] %v1238_v15  ;;  %1334 = vst [vmem:[%s2253_s22 + $0x1d8] sm:$0xff] %v1270_v16 }
 0x185   : > { %1300 = vst [vmem:[%s2253_s22 + $0xc8] sm:$0xff] %v1236_v19  ;;  %1332 = vst [vmem:[%s2253_s22 + $0x1c8] sm:$0xff] %v1268_v20 }
 0x187   : > { %v1617_v21 = vpop.f32.mrb[28].mxu0  ;;  %v1649_v22 = vpop.f32.mrb[28].mxu1 }
 0x188   : > { %v1241_v23 = vadd.f32 %v1617_v21, %v2247_v35  ;;  %v1273_v24 = vadd.f32 %v1649_v22, %v2247_v35  ;;  %v866_v25 = vpop.f32.mrb[29].mxu0  ;;  %v994_v26 = vpop.f32.mrb[29].mxu1 }
 0x189   : > { %v1239_v27 = vadd.f32 %v2247_v35, %v866_v25  ;;  %v1271_v28 = vadd.f32 %v2247_v35, %v994_v26  ;;  %v1618_v29 = vpop.f32.mrb[30].mxu0  ;;  %v1650_v30 = vpop.f32.mrb[30].mxu1 }
 0x18a   : > { %1305 = vst [vmem:[%s2253_s22 + $0xf0] sm:$0xff] %v1241_v23  ;;  %1337 = vst [vmem:[%s2253_s22 + $0x1f0] sm:$0xff] %v1273_v24  ;;  %v1242_v31 = vadd.f32 %v1618_v29, %v2247_v35  ;;  %v1274_v32 = vadd.f32 %v1650_v30, %v2247_v35  ;;  %v869_v33 = vpop.f32.mrb[31].mxu0  ;;  %v997_v34 = vpop.f32.mrb[31].mxu1 }
 0x18b   : > { %1303 = vst [vmem:[%s2253_s22 + $0xe0] sm:$0xff] %v1239_v27  ;;  %1335 = vst [vmem:[%s2253_s22 + $0x1e0] sm:$0xff] %v1271_v28  ;;  %v1240_v36 = vadd.f32 %v2247_v35, %v869_v33  ;;  %v1272_v37 = vadd.f32 %v2247_v35, %v997_v34 }
 0x18c   : > { %1306 = vst [vmem:[%s2253_s22 + $0xf8] sm:$0xff] %v1242_v31  ;;  %1338 = vst [vmem:[%s2253_s22 + $0x1f8] sm:$0xff] %v1274_v32 }
 0x18d   : > { %1304 = vst [vmem:[%s2253_s22 + $0xe8] sm:$0xff] %v1240_v36  ;;  %1336 = vst [vmem:[%s2253_s22 + $0x1e8] sm:$0xff] %v1272_v37 }
 0x18e   : > { %1878 = shalt.err (!%p1875_p5)
}
 0x18f   : > { %s1879_s30 = scalar_lea.hbm %s2376_s26, 8192  ;;  %s1883_s7 = scalar_lea.hbm %s2437_s3, 32768 }
 0x190   : > { %p1880_p9 = scmp.ne.s32.totalorder %s2376_s26, %s1879_s30  ;;  %p1884_p3 = scmp.lt.u32.totalorder %s2376_s26, %s2437_s3 }
 0x191   : > { %p1885_p7 = scmp.lt.u32.totalorder %s1883_s7, %s1879_s30  ;;  %p1887_p2 = scmp.lt.u32.totalorder %s1879_s30, %s2376_s26 }
 0x192   : > { %p1881_p12 = pnand %p1880_p9, %p2110_p11 }
 0x193   : > { %p1886_p10 = por %p1885_p7, %p1884_p3 }
 0x194   : > { %p1882_p1 = pneg %p1881_p12 }
 0x195   : > { %p1888_p4 = por %p1887_p2, %p1886_p10 }
 0x197   : > { %p1889_p6 = pnand %p1888_p4, %p1882_p1 }
 0x199   : > { %1892 = shalt.err (!%p1889_p6)
}
 0x19a   : > { %s1959_s22 = smov 128   ;;  %s1960_s24 = smov 8  }
 0x19b   : > { %1667 = dma.vmem_to_hbm [thread:$0]  (%p2110_p11), %s2378_s11, 8192, %s2376_s26, %s1340_s9, %s1959_s22, %s1959_s22, %s1960_s24  }
 0x19c PF: > { %p1689_p8 = scmp.ge.s32.totalorder %s1951_s17, 2  ;;  %s1368_s15 = sand.u32 1, %s1931_s12  }
 0x19d   : > { %p2454_p13 = scmp.ne.s32.totalorder %s2445_s23, 0  ;;  %s1369_s18 = scalar_lea.sflag [#allocation5], %s1368_s15 }
 0x19f   : > { %p1681_p0 = pnand %p1689_p8, %p2454_p13 }
 0x1a1   : > { %1926 = dma.done.wait (!%p1681_p0), %s1369_s18, 8192  }
 0x1a2   : > { %1928 = vsyncadd (!%p1681_p0), %s1369_s18, 4294959104  ;;  %s20_s17 = sadd.s32 1, %s1951_s17   ;;  %s2455_s12 = smov %s1935_s13 }
 0x1a3   : > { %p17_p5 = scmp.ge.s32.totalorder %s20_s17, 6   ;;  %s2456_s13 = smov %s1939_s14 }
 0x1a4   : > { %s2457_s14 = smov %s2119_s6  ;;  %s2458_s15 = smov %s1947_s16 }
 0x1a5   : > { %s2459_s16 = smov %s2461_s25  ;;  %19 = sbr.rel (!%p17_p5) target bundleno = 7 (0x7), region = 94 }
 0x1ac   :  { %1374 = vsyncpa [#allocation4], 1 }
 0x1ad   :  { %1376 = vsyncpa [#allocation4 + $0x1], 1 }
 0x1ae   :  { %1377 = vsyncpa [#allocation7], 1 }
 0x1af   :  { %1378 = vsyncpa [#allocation5], 1 }
 0x1b0   :  { %1380 = vsyncpa [#allocation5 + $0x1], 1 }

// kernel: _lambda_.25
= control target key start
LH: loop header
LB: loop body
LE: loop exit
PB: predicated region body
PF: predicated region fallthrough
CT: control target
= control target key end

     0   :  { %8 = vsyncpa [#allocation4], 0  ;;  %s1814_s0 = inlined_call_operand.hbm [shape: bf16[512,128], index: 0, kind: input, shape index: {}]   ;;  %s1815_s1 = inlined_call_operand.hbm [shape: bf16[128,128], index: 1, kind: input, shape index: {}]   ;;  %s1816_s2 = inlined_call_operand.hbm [shape: f32[1,128], index: 2, kind: input, shape index: {}]   ;;  %s1817_s3 = inlined_call_operand.hbm [shape: f32[512,128], index: 3, kind: output, shape index: {}]  }
   0x1   :  { %9 = vsyncpa [#allocation7], 0 }
   0x2   :  { %10 = vsyncpa [#allocation5], 0  ;;  %s1624_s12 = smov [#allocation6]   ;;  %s1625_s14 = smov [#allocation3]  }
   0x3   :  { %s28_s13 = sshll.u32 %s1624_s12, 4  ;;  %s16_s15 = sshll.u32 %s1625_s14, 4  ;;  %s29_s13 = int_to_ptr.vmem [resolvable:$true] %s28_s13  ;;  %s1652_s15 = int_to_ptr.vmem [resolvable:$true] %s16_s15 }
   0x4   :  { %s1530_s18 = scalar_lea.hbm %s1815_s1, 1024 }
   0x5   :  { %p1531_p0 = scmp.ne.s32.totalorder %s1815_s1, %s1530_s18  ;;  %p1534_p1 = scmp.lt.u32.totalorder %s1530_s18, %s1815_s1 }
   0x7   :  { %p1536_p2 = pnand %p1534_p1, %p1531_p0 }
   0x9   :  { %1539 = shalt.err (!%p1536_p2)
}
   0xa   :  { %s1540_s23 = scalar_lea.vmem %s29_s13, 1024  ;;  %p1545_p4 = scmp.lt.s32.totalorder %s29_s13, %s29_s13 }
   0xb   :  { %p1541_p3 = scmp.ne.s32.totalorder %s29_s13, %s1540_s23  ;;  %p1546_p5 = scmp.lt.s32.totalorder %s1540_s23, %s1540_s23 }
   0xd   :  { %p1547_p6 = por %p1546_p5, %p1545_p4 }
   0xf   :  { %p1548_p7 = pnand %p1547_p6, %p1541_p3 }
  0x11   :  { %1551 = shalt.err (!%p1548_p7)
}
  0x12   :  { %s1626_s24 = smov 64   ;;  %s1627_s25 = smov 4  }
  0x13   :  { %34 = dma.hbm_to_vmem [thread:$0]  %s1815_s1, 1024, %s29_s13, [#allocation7], %s1626_s24, %s1626_s24, %s1627_s25  }
  0x14   :  { %s1552_s30 = scalar_lea.hbm %s1814_s0, 4096 }
  0x15   :  { %p1553_p8 = scmp.ne.s32.totalorder %s1814_s0, %s1552_s30  ;;  %p1556_p9 = scmp.lt.u32.totalorder %s1552_s30, %s1814_s0 }
  0x17   :  { %p1558_p10 = pnand %p1556_p9, %p1553_p8 }
  0x19   :  { %1561 = shalt.err (!%p1558_p10)
}
  0x1a   :  { %s1562_s8 = scalar_lea.vmem %s1652_s15, 4096  ;;  %p1567_p12 = scmp.lt.s32.totalorder %s1652_s15, %s1652_s15 }
  0x1b   :  { %p1563_p11 = scmp.ne.s32.totalorder %s1652_s15, %s1562_s8  ;;  %p1568_p13 = scmp.lt.s32.totalorder %s1562_s8, %s1562_s8 }
  0x1d   :  { %p1569_p0 = por %p1568_p13, %p1567_p12 }
  0x1f   :  { %p1570_p1 = pnand %p1569_p0, %p1563_p11 }
  0x21   :  { %1573 = shalt.err (!%p1570_p1)
}
  0x22   :  { %22 = dma.hbm_to_vmem [thread:$0]  %s1814_s0, 4096, %s1652_s15, [#allocation4], %s1626_s24, %s1626_s24, %s1627_s25  }
  0x23   :  { %s1628_s10 = smov [#allocation8]   ;;  %s1574_s14 = scalar_lea.hbm %s1816_s2, 16 }
  0x24   :  { %s41_s11 = sshll.u32 %s1628_s10, 4  ;;  %p1575_p2 = scmp.ne.s32.totalorder %s1816_s2, %s1574_s14  ;;  %s42_s11 = int_to_ptr.vmem [resolvable:$true] %s41_s11 }
  0x25   :  { %p1578_p3 = scmp.lt.u32.totalorder %s1574_s14, %s1816_s2 }
  0x27   :  { %p1580_p4 = pnand %p1578_p3, %p1575_p2 }
  0x29   :  { %1583 = shalt.err (!%p1580_p4)
}
  0x2a   :  { %s1584_s20 = scalar_lea.vmem %s42_s11, 16  ;;  %s1588_s0 = scalar_lea.vmem %s42_s11, 32 }
  0x2b   :  { %p1585_p5 = scmp.ne.s32.totalorder %s42_s11, %s1584_s20  ;;  %p1589_p6 = scmp.lt.s32.totalorder %s42_s11, %s42_s11 }
  0x2c   :  { %p1590_p7 = scmp.lt.s32.totalorder %s1588_s0, %s1584_s20 }
  0x2e   :  { %p1591_p8 = por %p1590_p7, %p1589_p6 }
  0x30   :  { %p1592_p9 = pnand %p1591_p8, %p1585_p5 }
  0x32   :  { %1595 = shalt.err (!%p1592_p9)
}
  0x33   :  { %44 = dma.hbm_to_vmem [thread:$0]  %s1816_s2, 16, %s42_s11, [#allocation7]  }
  0x34   :  { %1618 = dma.done.wait [#allocation4], 4096  }
  0x35   :  { %1619 = vsyncadd [#allocation4], 4294963200 }
  0x36   :  { %1620 = dma.done.wait [#allocation7], 1040  }
  0x37   :  { %1621 = vsyncadd [#allocation7], 4294966256  ;;  %v1522_v0 = vld [vmem:[#allocation6] sm:$0xff]   ;;  %v1523_v1 = vld [vmem:[#allocation6 + $0x8] sm:$0xff]   ;;  %s1629_s2 = smov [#allocation9]  }
  0x38   :  { %1418 = vmatprep.subr.bf16.mxu0 %v1522_v0  ;;  %1498 = vmatprep.subr.bf16.mxu1 %v1522_v0  ;;  %v1524_v2 = vld [vmem:[#allocation6 + $0x10] sm:$0xff]   ;;  %v1525_v3 = vld [vmem:[#allocation6 + $0x18] sm:$0xff]   ;;  %v124_v4 = vld [vmem:[#allocation3] sm:$0xf]  ;;  %s1324_s22 = sshll.u32 %s1629_s2, 4  ;;  %s1325_s22 = int_to_ptr.vmem [resolvable:$true] %s1324_s22 }
  0x39   :  { %1419 = vmatpush3.bf16.msra.mxu0 %v1522_v0  ;;  %1506 = vmatpush3.bf16.msra.mxu1 %v1522_v0  ;;  %v125_v5 = vld [vmem:[#allocation3 + $0x4] sm:$0xf]  ;;  %v156_v6 = vld [vmem:[#allocation3 + $0x80] sm:$0xf]  ;;  %vm188_vm0 = vcmp.ge.bf16.partialorder %v124_v4, 0  ;;  %v1527_v20 = vld [vmem:[#allocation6 + $0x28] sm:$0xff]   ;;  %p1601_p11 = scmp.lt.s32.totalorder %s1325_s22, %s1325_s22 }
  0x3a   :  { %1420 = vmatprep.subr.bf16.mxu0 %v1523_v1  ;;  %1499 = vmatprep.subr.bf16.mxu1 %v1523_v1  ;;  %vm189_vm1 = vcmp.ge.bf16.partialorder %v125_v5, 0  ;;  %v252_v7 = vmul.bf16 1045249613, %v124_v4  ;;  %v253_v8 = vmul.bf16 1045249613, %v125_v5  ;;  %vm220_vm2 = vcmp.ge.bf16.partialorder %v156_v6, 0 }
  0x3b   :  { %v157_v9 = vld [vmem:[#allocation3 + $0x84] sm:$0xf]  ;;  %v284_v10 = vmul.bf16 1045249613, %v156_v6  ;;  %v126_v19 = vld [vmem:[#allocation3 + $0x8] sm:$0xf] }
  0x3c   :  { %v316_v11 = vsel %vm188_vm0, %v124_v4, %v252_v7  ;;  %v317_v12 = vsel %vm189_vm1, %v125_v5, %v253_v8  ;;  %vm221_vm3 = vcmp.ge.bf16.partialorder %v157_v9, 0  ;;  %v285_v13 = vmul.bf16 1045249613, %v157_v9  ;;  %v1526_v14 = vld [vmem:[#allocation6 + $0x20] sm:$0xff]   ;;  %v127_v21 = vld [vmem:[#allocation3 + $0xc] sm:$0xf] }
  0x3d   :  { %1421 = vmatpush3.bf16.msra.mxu0 %v1523_v1  ;;  %1507 = vmatpush3.bf16.msra.mxu1 %v1523_v1  ;;  %v1337_v15 = vcombine.low %v316_v11, %v317_v12  ;;  %v348_v16 = vsel %vm220_vm2, %v156_v6, %v284_v10  ;;  %v158_v22 = vld [vmem:[#allocation3 + $0x88] sm:$0xf]  ;;  %vm190_vm4 = vcmp.ge.bf16.partialorder %v126_v19, 0  ;;  %v159_v23 = vld [vmem:[#allocation3 + $0x8c] sm:$0xf]  ;;  %v1528_v25 = vld [vmem:[#allocation6 + $0x30] sm:$0xff]  }
  0x3e   :  { %1422 = vmatprep.subr.bf16.mxu0 %v1524_v2  ;;  %1500 = vmatprep.subr.bf16.mxu1 %v1524_v2  ;;  %v349_v17 = vsel %vm221_vm3, %v157_v9, %v285_v13  ;;  %v128_v24 = vld [vmem:[#allocation3 + $0x10] sm:$0xf]  ;;  %v254_v26 = vmul.bf16 1045249613, %v126_v19  ;;  %v129_v27 = vld [vmem:[#allocation3 + $0x14] sm:$0xf] }
  0x3f   :  { %1434 = vmatprep.mubr.bf16.mxu0 %v1337_v15  ;;  %v1353_v18 = vcombine.low %v348_v16, %v349_v17  ;;  %v160_v28 = vld [vmem:[#allocation3 + $0x90] sm:$0xf]  ;;  %vm191_vm5 = vcmp.ge.bf16.partialorder %v127_v21, 0  ;;  %v255_v29 = vmul.bf16 1045249613, %v127_v21  ;;  %vm222_vm6 = vcmp.ge.bf16.partialorder %v158_v22, 0 }
  0x40   :  { %v161_v30 = vld [vmem:[#allocation3 + $0x94] sm:$0xf]  ;;  %v286_v31 = vmul.bf16 1045249613, %v158_v22  ;;  %v287_v32 = vmul.bf16 1045249613, %v159_v23  ;;  %v318_v38 = vsel %vm190_vm4, %v126_v19, %v254_v26 }
  0x41   :  { %1423 = vmatpush3.bf16.msra.mxu0 %v1524_v2  ;;  %1508 = vmatpush3.bf16.msra.mxu1 %v1524_v2  ;;  %v256_v33 = vmul.bf16 1045249613, %v128_v24  ;;  %vm223_vm7 = vcmp.ge.bf16.partialorder %v159_v23, 0  ;;  %vm192_vm8 = vcmp.ge.bf16.partialorder %v128_v24, 0  ;;  %v257_v34 = vmul.bf16 1045249613, %v129_v27 }
  0x42   :  { %1424 = vmatprep.subr.bf16.mxu0 %v1525_v3  ;;  %1501 = vmatprep.subr.bf16.mxu1 %v1525_v3  ;;  %v288_v35 = vmul.bf16 1045249613, %v160_v28  ;;  %vm193_vm9 = vcmp.ge.bf16.partialorder %v129_v27, 0  ;;  %vm224_vm10 = vcmp.ge.bf16.partialorder %v160_v28, 0  ;;  %v289_v36 = vmul.bf16 1045249613, %v161_v30 }
  0x43   :  { %1466 = vmatprep.mubr.bf16.mxu1 %v1353_v18  ;;  %v130_v37 = vld [vmem:[#allocation3 + $0x18] sm:$0xf]  ;;  %v319_v39 = vsel %vm191_vm5, %v127_v21, %v255_v29  ;;  %vm225_vm11 = vcmp.ge.bf16.partialorder %v161_v30, 0  ;;  %v131_v40 = vld [vmem:[#allocation3 + $0x1c] sm:$0xf]  ;;  %v350_v43 = vsel %vm222_vm6, %v158_v22, %v286_v31  ;;  %v351_v44 = vsel %vm223_vm7, %v159_v23, %v287_v32  ;;  %s1596_s23 = scalar_lea.vmem %s1325_s22, 8192 }
  0x44   :  { %v162_v41 = vld [vmem:[#allocation3 + $0x98] sm:$0xf]  ;;  %v320_v45 = vsel %vm192_vm8, %v128_v24, %v256_v33  ;;  %v163_v46 = vld [vmem:[#allocation3 + $0x9c] sm:$0xf]  ;;  %v321_v47 = vsel %vm193_vm9, %v129_v27, %v257_v34  ;;  %v352_v48 = vsel %vm224_vm10, %v160_v28, %v288_v35  ;;  %vm194_vm12 = vcmp.ge.bf16.partialorder %v130_v37, 0  ;;  %p1597_p10 = scmp.ne.s32.totalorder %s1325_s22, %s1596_s23  ;;  %p1602_p12 = scmp.lt.s32.totalorder %s1596_s23, %s1596_s23 }
  0x45   :  { %1425 = vmatpush3.bf16.msra.mxu0 %v1525_v3  ;;  %1509 = vmatpush3.bf16.msra.mxu1 %v1525_v3  ;;  %v1529_v42 = vld [vmem:[#allocation6 + $0x38] sm:$0xff]   ;;  %v258_v49 = vmul.bf16 1045249613, %v130_v37  ;;  %v353_v50 = vsel %vm225_vm11, %v161_v30, %v289_v36  ;;  %vm195_vm13 = vcmp.ge.bf16.partialorder %v131_v40, 0  ;;  %v259_v51 = vmul.bf16 1045249613, %v131_v40 }
  0x46   :  { %1426 = vmatprep.subr.bf16.mxu0 %v1526_v14  ;;  %1502 = vmatprep.subr.bf16.mxu1 %v1526_v14  ;;  %v290_v52 = vmul.bf16 1045249613, %v162_v41  ;;  %vm226_vm14 = vcmp.ge.bf16.partialorder %v162_v41, 0  ;;  %vm227_vm15 = vcmp.ge.bf16.partialorder %v163_v46, 0  ;;  %v291_v53 = vmul.bf16 1045249613, %v163_v46  ;;  %p1603_p13 = por %p1602_p12, %p1601_p11 }
  0x47   :  { %v132_v54 = vld [vmem:[#allocation3 + $0x20] sm:$0xf]  ;;  %v1338_v55 = vcombine.low %v318_v38, %v319_v39  ;;  %v133_v56 = vld [vmem:[#allocation3 + $0x24] sm:$0xf]  ;;  %v1354_v59 = vcombine.low %v350_v43, %v351_v44  ;;  %v1339_v60 = vcombine.low %v320_v45, %v321_v47  ;;  %v1355_v61 = vcombine.low %v352_v48, %v353_v50  ;;  %v134_v2 = vld [vmem:[#allocation3 + $0x28] sm:$0xf] }
  0x48   :  { %v164_v57 = vld [vmem:[#allocation3 + $0xa0] sm:$0xf]  ;;  %v165_v58 = vld [vmem:[#allocation3 + $0xa4] sm:$0xf]  ;;  %v322_v62 = vsel %vm194_vm12, %v130_v37, %v258_v49  ;;  %v323_v63 = vsel %vm195_vm13, %v131_v40, %v259_v51  ;;  %v354_v0 = vsel %vm226_vm14, %v162_v41, %v290_v52  ;;  %vm196_vm0 = vcmp.ge.bf16.partialorder %v132_v54, 0  ;;  %p1604_p0 = pnand %p1603_p13, %p1597_p10 }
  0x49   :  { %1427 = vmatpush3.bf16.msra.mxu0 %v1526_v14  ;;  %1510 = vmatpush3.bf16.msra.mxu1 %v1526_v14  ;;  %v260_v1 = vmul.bf16 1045249613, %v132_v54  ;;  %v355_v3 = vsel %vm227_vm15, %v163_v46, %v291_v53  ;;  %v261_v4 = vmul.bf16 1045249613, %v133_v56  ;;  %v292_v5 = vmul.bf16 1045249613, %v164_v57 }
  0x4a   :  { %1428 = vmatprep.subr.bf16.mxu0 %v1527_v20  ;;  %1503 = vmatprep.subr.bf16.mxu1 %v1527_v20  ;;  %v293_v6 = vmul.bf16 1045249613, %v165_v58  ;;  %vm197_vm1 = vcmp.ge.bf16.partialorder %v133_v56, 0  ;;  %vm228_vm2 = vcmp.ge.bf16.partialorder %v164_v57, 0  ;;  %vm229_vm3 = vcmp.ge.bf16.partialorder %v165_v58, 0 }
  0x4b   :  { %v135_v7 = vld [vmem:[#allocation3 + $0x2c] sm:$0xf]  ;;  %vm198_vm4 = vcmp.ge.bf16.partialorder %v134_v2, 0  ;;  %v166_v8 = vld [vmem:[#allocation3 + $0xa8] sm:$0xf]  ;;  %v1340_v9 = vcombine.low %v322_v62, %v323_v63  ;;  %v1356_v10 = vcombine.low %v354_v0, %v355_v3  ;;  %v324_v11 = vsel %vm196_vm0, %v132_v54, %v260_v1 }
  0x4c   :  { %v262_v12 = vmul.bf16 1045249613, %v134_v2  ;;  %v167_v13 = vld [vmem:[#allocation3 + $0xac] sm:$0xf]  ;;  %v136_v14 = vld [vmem:[#allocation3 + $0x30] sm:$0xf]  ;;  %v325_v15 = vsel %vm197_vm1, %v133_v56, %v261_v4  ;;  %v356_v16 = vsel %vm228_vm2, %v164_v57, %v292_v5  ;;  %v357_v17 = vsel %vm229_vm3, %v165_v58, %v293_v6 }
  0x4d   :  { %1429 = vmatpush3.bf16.msra.mxu0 %v1527_v20  ;;  %1511 = vmatpush3.bf16.msra.mxu1 %v1527_v20  ;;  %v137_v18 = vld [vmem:[#allocation3 + $0x34] sm:$0xf]  ;;  %v168_v19 = vld [vmem:[#allocation3 + $0xb0] sm:$0xf]  ;;  %vm199_vm5 = vcmp.ge.bf16.partialorder %v135_v7, 0  ;;  %vm230_vm6 = vcmp.ge.bf16.partialorder %v166_v8, 0  ;;  %v1357_v29 = vcombine.low %v356_v16, %v357_v17 }
  0x4e   :  { %1430 = vmatprep.subr.bf16.mxu0 %v1528_v25  ;;  %1504 = vmatprep.subr.bf16.mxu1 %v1528_v25  ;;  %v169_v20 = vld [vmem:[#allocation3 + $0xb4] sm:$0xf]  ;;  %v263_v21 = vmul.bf16 1045249613, %v135_v7  ;;  %v294_v22 = vmul.bf16 1045249613, %v166_v8  ;;  %v326_v30 = vsel %vm198_vm4, %v134_v2, %v262_v12 }
  0x4f   :  { %vm231_vm7 = vcmp.ge.bf16.partialorder %v167_v13, 0  ;;  %v295_v23 = vmul.bf16 1045249613, %v167_v13  ;;  %vm200_vm8 = vcmp.ge.bf16.partialorder %v136_v14, 0  ;;  %v264_v24 = vmul.bf16 1045249613, %v136_v14 }
  0x50   :  { %v265_v26 = vmul.bf16 1045249613, %v137_v18  ;;  %v296_v27 = vmul.bf16 1045249613, %v168_v19  ;;  %v297_v28 = vmul.bf16 1045249613, %v169_v20  ;;  %v327_v32 = vsel %vm199_vm5, %v135_v7, %v263_v21 }
  0x51   :  { %1431 = vmatpush3.bf16.msra.mxu0 %v1528_v25  ;;  %1512 = vmatpush3.bf16.msra.mxu1 %v1528_v25  ;;  %v1341_v25 = vcombine.low %v324_v11, %v325_v15  ;;  %vm201_vm9 = vcmp.ge.bf16.partialorder %v137_v18, 0  ;;  %vm232_vm10 = vcmp.ge.bf16.partialorder %v168_v19, 0  ;;  %vm233_vm11 = vcmp.ge.bf16.partialorder %v169_v20, 0  ;;  %v138_v31 = vld [vmem:[#allocation3 + $0x38] sm:$0xf] }
  0x52   :  { %1432 = vmatprep.subr.bf16.mxu0 %v1529_v42  ;;  %1505 = vmatprep.subr.bf16.mxu1 %v1529_v42  ;;  %v358_v33 = vsel %vm230_vm6, %v166_v8, %v294_v22  ;;  %v359_v34 = vsel %vm231_vm7, %v167_v13, %v295_v23  ;;  %v328_v35 = vsel %vm200_vm8, %v136_v14, %v264_v24  ;;  %v139_v36 = vld [vmem:[#allocation3 + $0x3c] sm:$0xf]  ;;  %v266_v40 = vmul.bf16 1045249613, %v138_v31  ;;  %v170_v41 = vld [vmem:[#allocation3 + $0xb8] sm:$0xf] }
  0x53   :  { %v329_v37 = vsel %vm201_vm9, %v137_v18, %v265_v26  ;;  %v360_v38 = vsel %vm232_vm10, %v168_v19, %v296_v27  ;;  %v361_v39 = vsel %vm233_vm11, %v169_v20, %v297_v28  ;;  %v1342_v43 = vcombine.low %v326_v30, %v327_v32  ;;  %v140_v44 = vld [vmem:[#allocation3 + $0x40] sm:$0xf]  ;;  %v141_v45 = vld [vmem:[#allocation3 + $0x44] sm:$0xf]  ;;  %v142_v58 = vld [vmem:[#allocation3 + $0x48] sm:$0xf] }
  0x54   :  { %vm202_vm12 = vcmp.ge.bf16.partialorder %v138_v31, 0  ;;  %vm203_vm13 = vcmp.ge.bf16.partialorder %v139_v36, 0  ;;  %v1358_v46 = vcombine.low %v358_v33, %v359_v34  ;;  %v1343_v47 = vcombine.low %v328_v35, %v329_v37  ;;  %v172_v50 = vld [vmem:[#allocation3 + $0xc0] sm:$0xf]  ;;  %v173_v51 = vld [vmem:[#allocation3 + $0xc4] sm:$0xf] }
  0x55   :  { %1433 = vmatpush3.bf16.msra.mxu0 %v1529_v42  ;;  %1513 = vmatpush3.bf16.msra.mxu1 %v1529_v42  ;;  %v171_v42 = vld [vmem:[#allocation3 + $0xbc] sm:$0xf]  ;;  %v1359_v48 = vcombine.low %v360_v38, %v361_v39  ;;  %v267_v49 = vmul.bf16 1045249613, %v139_v36  ;;  %vm234_vm14 = vcmp.ge.bf16.partialorder %v170_v41, 0  ;;  %vm204_vm0 = vcmp.ge.bf16.partialorder %v140_v44, 0 }
  0x56   :  { %vm235_vm15 = vcmp.ge.bf16.partialorder %v171_v42, 0  ;;  %v298_v52 = vmul.bf16 1045249613, %v170_v41  ;;  %v299_v53 = vmul.bf16 1045249613, %v171_v42  ;;  %vm205_vm1 = vcmp.ge.bf16.partialorder %v141_v45, 0 }
  0x57   :  { %v268_v54 = vmul.bf16 1045249613, %v140_v44  ;;  %v300_v56 = vmul.bf16 1045249613, %v172_v50  ;;  %v301_v57 = vmul.bf16 1045249613, %v173_v51 }
  0x58   :  { %1435 = vmatmul.mubr.bf16.vlgmr.msra.gmra.mrb[0].mxu0 %v1338_v55  ;;  %1467 = vmatmul.mubr.bf16.vlgmr.msra.gmra.mrb[0].mxu1 %v1354_v59  ;;  %v269_v55 = vmul.bf16 1045249613, %v141_v45  ;;  %v330_v59 = vsel %vm202_vm12, %v138_v31, %v266_v40  ;;  %vm236_vm2 = vcmp.ge.bf16.partialorder %v172_v50, 0  ;;  %vm237_vm3 = vcmp.ge.bf16.partialorder %v173_v51, 0  ;;  %v174_v0 = vld [vmem:[#allocation3 + $0xc8] sm:$0xf] }
  0x59   :  { %1438 = vmatprep.mubr.bf16.mxu0 %v1339_v60  ;;  %1470 = vmatprep.mubr.bf16.mxu1 %v1355_v61  ;;  %v143_v60 = vld [vmem:[#allocation3 + $0x4c] sm:$0xf]  ;;  %v331_v61 = vsel %vm203_vm13, %v139_v36, %v267_v49  ;;  %v362_v62 = vsel %vm234_vm14, %v170_v41, %v298_v52  ;;  %v363_v63 = vsel %vm235_vm15, %v171_v42, %v299_v53  ;;  %v270_v3 = vmul.bf16 1045249613, %v142_v58  ;;  %v144_v5 = vld [vmem:[#allocation3 + $0x50] sm:$0xf] }
  0x5a   :  { %v332_v1 = vsel %vm204_vm0, %v140_v44, %v268_v54  ;;  %v333_v2 = vsel %vm205_vm1, %v141_v45, %v269_v55  ;;  %v175_v4 = vld [vmem:[#allocation3 + $0xcc] sm:$0xf]  ;;  %v364_v6 = vsel %vm236_vm2, %v172_v50, %v300_v56  ;;  %v365_v7 = vsel %vm237_vm3, %v173_v51, %v301_v57  ;;  %v145_v8 = vld [vmem:[#allocation3 + $0x54] sm:$0xf]  ;;  %v146_v21 = vld [vmem:[#allocation3 + $0x58] sm:$0xf] }
  0x5b   :  { %vm206_vm4 = vcmp.ge.bf16.partialorder %v142_v58, 0  ;;  %vm207_vm5 = vcmp.ge.bf16.partialorder %v143_v60, 0  ;;  %v1360_v11 = vcombine.low %v362_v62, %v363_v63  ;;  %v271_v12 = vmul.bf16 1045249613, %v143_v60  ;;  %v177_v14 = vld [vmem:[#allocation3 + $0xd4] sm:$0xf] }
  0x5c   :  { %v302_v13 = vmul.bf16 1045249613, %v174_v0  ;;  %vm238_vm6 = vcmp.ge.bf16.partialorder %v174_v0, 0  ;;  %vm239_vm7 = vcmp.ge.bf16.partialorder %v175_v4, 0  ;;  %v303_v15 = vmul.bf16 1045249613, %v175_v4 }
  0x5d   :  { %v272_v16 = vmul.bf16 1045249613, %v144_v5  ;;  %v1345_v17 = vcombine.low %v332_v1, %v333_v2  ;;  %v1361_v18 = vcombine.low %v364_v6, %v365_v7  ;;  %v273_v19 = vmul.bf16 1045249613, %v145_v8  ;;  %v178_v26 = vld [vmem:[#allocation3 + $0xd8] sm:$0xf] }
  0x5e   :  { %vm208_vm8 = vcmp.ge.bf16.partialorder %v144_v5, 0  ;;  %vm209_vm9 = vcmp.ge.bf16.partialorder %v145_v8, 0  ;;  %v305_v22 = vmul.bf16 1045249613, %v177_v14  ;;  %v334_v23 = vsel %vm206_vm4, %v142_v58, %v270_v3  ;;  %v179_v33 = vld [vmem:[#allocation3 + $0xdc] sm:$0xf] }
  0x5f   :  { %v335_v24 = vsel %vm207_vm5, %v143_v60, %v271_v12  ;;  %vm241_vm11 = vcmp.ge.bf16.partialorder %v177_v14, 0  ;;  %v366_v27 = vsel %vm238_vm6, %v174_v0, %v302_v13  ;;  %v367_v28 = vsel %vm239_vm7, %v175_v4, %v303_v15  ;;  %v148_v34 = vld [vmem:[#allocation3 + $0x60] sm:$0xf]  ;;  %v149_v35 = vld [vmem:[#allocation3 + $0x64] sm:$0xf] }
  0x60   :  { %1439 = vmatmul.mubr.bf16.gmra.mrb[4].mxu0 %v1340_v9  ;;  %1471 = vmatmul.mubr.bf16.gmra.mrb[4].mxu1 %v1356_v10  ;;  %v176_v9 = vld [vmem:[#allocation3 + $0xd0] sm:$0xf]  ;;  %v1344_v10 = vcombine.low %v330_v59, %v331_v61  ;;  %vm210_vm12 = vcmp.ge.bf16.partialorder %v146_v21, 0  ;;  %v336_v30 = vsel %vm208_vm8, %v144_v5, %v272_v16  ;;  %v337_v31 = vsel %vm209_vm9, %v145_v8, %v273_v19  ;;  %v180_v41 = vld [vmem:[#allocation3 + $0xe0] sm:$0xf] }
  0x61   :  { %1442 = vmatprep.mubr.bf16.mxu0 %v1341_v25  ;;  %1474 = vmatprep.mubr.bf16.mxu1 %v1357_v29  ;;  %v304_v20 = vmul.bf16 1045249613, %v176_v9  ;;  %vm240_vm10 = vcmp.ge.bf16.partialorder %v176_v9, 0  ;;  %v147_v25 = vld [vmem:[#allocation3 + $0x5c] sm:$0xf]  ;;  %v369_v36 = vsel %vm241_vm11, %v177_v14, %v305_v22  ;;  %vm242_vm14 = vcmp.ge.bf16.partialorder %v178_v26, 0 }
  0x62   :  { %v274_v29 = vmul.bf16 1045249613, %v146_v21  ;;  %vm211_vm13 = vcmp.ge.bf16.partialorder %v147_v25, 0  ;;  %v275_v37 = vmul.bf16 1045249613, %v147_v25  ;;  %v1346_v38 = vcombine.low %v334_v23, %v335_v24 }
  0x63   :  { %v368_v32 = vsel %vm240_vm10, %v176_v9, %v304_v20  ;;  %v1362_v39 = vcombine.low %v366_v27, %v367_v28  ;;  %v306_v40 = vmul.bf16 1045249613, %v178_v26  ;;  %v181_v42 = vld [vmem:[#allocation3 + $0xe4] sm:$0xf]  ;;  %v307_v44 = vmul.bf16 1045249613, %v179_v33 }
  0x64   :  { %v276_v45 = vmul.bf16 1045249613, %v148_v34  ;;  %vm243_vm15 = vcmp.ge.bf16.partialorder %v179_v33, 0  ;;  %vm212_vm0 = vcmp.ge.bf16.partialorder %v148_v34, 0  ;;  %vm213_vm1 = vcmp.ge.bf16.partialorder %v149_v35, 0 }
  0x65   :  { %v308_v49 = vmul.bf16 1045249613, %v180_v41  ;;  %v309_v50 = vmul.bf16 1045249613, %v181_v42  ;;  %v339_v51 = vsel %vm211_vm13, %v147_v25, %v275_v37  ;;  %v370_v52 = vsel %vm242_vm14, %v178_v26, %v306_v40  ;;  %v150_v53 = vld [vmem:[#allocation3 + $0x68] sm:$0xf] }
  0x66   :  { %vm244_vm2 = vcmp.ge.bf16.partialorder %v180_v41, 0  ;;  %vm245_vm3 = vcmp.ge.bf16.partialorder %v181_v42, 0  ;;  %v371_v54 = vsel %vm243_vm15, %v179_v33, %v307_v44  ;;  %v340_v55 = vsel %vm212_vm0, %v148_v34, %v276_v45  ;;  %v151_v57 = vld [vmem:[#allocation3 + $0x6c] sm:$0xf]  ;;  %v182_v58 = vld [vmem:[#allocation3 + $0xe8] sm:$0xf] }
  0x67   :  { %v183_v59 = vld [vmem:[#allocation3 + $0xec] sm:$0xf]  ;;  %v372_v61 = vsel %vm244_vm2, %v180_v41, %v308_v49  ;;  %v373_v62 = vsel %vm245_vm3, %v181_v42, %v309_v50  ;;  %v278_v63 = vmul.bf16 1045249613, %v150_v53  ;;  %v152_v0 = vld [vmem:[#allocation3 + $0x70] sm:$0xf]  ;;  %v1364_v2 = vcombine.low %v370_v52, %v371_v54 }
  0x68   :  { %1443 = vmatmul.mubr.bf16.gmra.mrb[8].mxu0 %v1342_v43  ;;  %1475 = vmatmul.mubr.bf16.gmra.mrb[8].mxu1 %v1358_v46  ;;  %v1347_v43 = vcombine.low %v336_v30, %v337_v31  ;;  %v277_v46 = vmul.bf16 1045249613, %v149_v35  ;;  %v153_v1 = vld [vmem:[#allocation3 + $0x74] sm:$0xf]  ;;  %vm214_vm4 = vcmp.ge.bf16.partialorder %v150_v53, 0  ;;  %vm215_vm5 = vcmp.ge.bf16.partialorder %v151_v57, 0 }
  0x69   :  { %1446 = vmatprep.mubr.bf16.mxu0 %v1343_v47  ;;  %1478 = vmatprep.mubr.bf16.mxu1 %v1359_v48  ;;  %v1363_v47 = vcombine.low %v368_v32, %v369_v36  ;;  %v338_v48 = vsel %vm210_vm12, %v146_v21, %v274_v29  ;;  %v184_v4 = vld [vmem:[#allocation3 + $0xf0] sm:$0xf]  ;;  %v185_v5 = vld [vmem:[#allocation3 + $0xf4] sm:$0xf]  ;;  %v279_v6 = vmul.bf16 1045249613, %v151_v57  ;;  %v1365_v8 = vcombine.low %v372_v61, %v373_v62 }
  0x6a   :  { %v341_v56 = vsel %vm213_vm1, %v149_v35, %v277_v46  ;;  %v1348_v60 = vcombine.low %v338_v48, %v339_v51  ;;  %vm246_vm6 = vcmp.ge.bf16.partialorder %v182_v58, 0  ;;  %vm247_vm7 = vcmp.ge.bf16.partialorder %v183_v59, 0  ;;  %v154_v20 = vld [vmem:[#allocation3 + $0x78] sm:$0xf]  ;;  %v155_v23 = vld [vmem:[#allocation3 + $0x7c] sm:$0xf] }
  0x6b   :  { %v1349_v3 = vcombine.low %v340_v55, %v341_v56  ;;  %v310_v7 = vmul.bf16 1045249613, %v182_v58  ;;  %v311_v9 = vmul.bf16 1045249613, %v183_v59  ;;  %vm216_vm8 = vcmp.ge.bf16.partialorder %v152_v0, 0 }
  0x6c   :  { %vm217_vm9 = vcmp.ge.bf16.partialorder %v153_v1, 0  ;;  %v312_v12 = vmul.bf16 1045249613, %v184_v4  ;;  %v313_v13 = vmul.bf16 1045249613, %v185_v5  ;;  %vm248_vm10 = vcmp.ge.bf16.partialorder %v184_v4, 0 }
  0x6d   :  { %vm249_vm11 = vcmp.ge.bf16.partialorder %v185_v5, 0  ;;  %v342_v14 = vsel %vm214_vm4, %v150_v53, %v278_v63  ;;  %v343_v15 = vsel %vm215_vm5, %v151_v57, %v279_v6  ;;  %v374_v16 = vsel %vm246_vm6, %v182_v58, %v310_v7  ;;  %v186_v24 = vld [vmem:[#allocation3 + $0xf8] sm:$0xf]  ;;  %v187_v25 = vld [vmem:[#allocation3 + $0xfc] sm:$0xf] }
  0x6e   :  { %v376_v21 = vsel %vm248_vm10, %v184_v4, %v312_v12  ;;  %v377_v22 = vsel %vm249_vm11, %v185_v5, %v313_v13  ;;  %v1350_v26 = vcombine.low %v342_v14, %v343_v15  ;;  %vm218_vm12 = vcmp.ge.bf16.partialorder %v154_v20, 0  ;;  %v1736_v40 = vld [vmem:[#allocation8] ss:$0 sm:$0xff] }
  0x6f   :  { %v282_v29 = vmul.bf16 1045249613, %v154_v20  ;;  %v1367_v30 = vcombine.low %v376_v21, %v377_v22  ;;  %v283_v31 = vmul.bf16 1045249613, %v155_v23  ;;  %v314_v32 = vmul.bf16 1045249613, %v186_v24 }
  0x70   :  { %1447 = vmatmul.mubr.bf16.gmra.mrb[12].mxu0 %v1344_v10  ;;  %1479 = vmatmul.mubr.bf16.gmra.mrb[12].mxu1 %v1360_v11  ;;  %v280_v10 = vmul.bf16 1045249613, %v152_v0  ;;  %v281_v11 = vmul.bf16 1045249613, %v153_v1  ;;  %v315_v33 = vmul.bf16 1045249613, %v187_v25 }
  0x71   :  { %1450 = vmatprep.mubr.bf16.mxu0 %v1345_v17  ;;  %1482 = vmatprep.mubr.bf16.mxu1 %v1361_v18  ;;  %v375_v17 = vsel %vm247_vm7, %v183_v59, %v311_v9  ;;  %vm219_vm13 = vcmp.ge.bf16.partialorder %v155_v23, 0  ;;  %vm250_vm14 = vcmp.ge.bf16.partialorder %v186_v24, 0  ;;  %vm251_vm15 = vcmp.ge.bf16.partialorder %v187_v25, 0 }
  0x72   :  { %v344_v18 = vsel %vm216_vm8, %v152_v0, %v280_v10  ;;  %v345_v19 = vsel %vm217_vm9, %v153_v1, %v281_v11  ;;  %v1366_v27 = vcombine.low %v374_v16, %v375_v17  ;;  %v346_v34 = vsel %vm218_vm12, %v154_v20, %v282_v29 }
  0x73   :  { %v1351_v28 = vcombine.low %v344_v18, %v345_v19  ;;  %v347_v35 = vsel %vm219_vm13, %v155_v23, %v283_v31  ;;  %v378_v36 = vsel %vm250_vm14, %v186_v24, %v314_v32  ;;  %v379_v37 = vsel %vm251_vm15, %v187_v25, %v315_v33 }
  0x78   :  { %1451 = vmatmul.mubr.bf16.gmra.mrb[16].mxu0 %v1346_v38  ;;  %1483 = vmatmul.mubr.bf16.gmra.mrb[16].mxu1 %v1362_v39  ;;  %v1352_v38 = vcombine.low %v346_v34, %v347_v35  ;;  %v1368_v39 = vcombine.low %v378_v36, %v379_v37 }
  0x79   :  { %1454 = vmatprep.mubr.bf16.mxu0 %v1347_v43  ;;  %1486 = vmatprep.mubr.bf16.mxu1 %v1363_v47 }
  0x80   :  { %1455 = vmatmul.mubr.bf16.gmra.mrb[20].mxu0 %v1348_v60  ;;  %1487 = vmatmul.mubr.bf16.gmra.mrb[20].mxu1 %v1364_v2 }
  0x81   :  { %1458 = vmatprep.mubr.bf16.mxu0 %v1349_v3  ;;  %1490 = vmatprep.mubr.bf16.mxu1 %v1365_v8 }
  0x88   :  { %1459 = vmatmul.mubr.bf16.gmra.mrb[24].mxu0 %v1350_v26  ;;  %1491 = vmatmul.mubr.bf16.gmra.mrb[24].mxu1 %v1366_v27 }
  0x89   :  { %1462 = vmatprep.mubr.bf16.mxu0 %v1351_v28  ;;  %1494 = vmatprep.mubr.bf16.mxu1 %v1367_v30 }
  0x90   :  { %1463 = vmatmul.mubr.bf16.gmra.mrb[28].mxu0 %v1352_v38  ;;  %1495 = vmatmul.mubr.bf16.gmra.mrb[28].mxu1 %v1368_v39 }
 0x12b   :  { %v1436_v41 = vpop.f32.mrb[0].mxu0  ;;  %v1468_v42 = vpop.f32.mrb[0].mxu1 }
 0x12c   :  { %v1193_v43 = vadd.f32 %v1436_v41, %v1736_v40  ;;  %v1225_v44 = vadd.f32 %v1468_v42, %v1736_v40  ;;  %v734_v45 = vpop.f32.mrb[1].mxu0  ;;  %v862_v46 = vpop.f32.mrb[1].mxu1 }
 0x12d   :  { %v1191_v47 = vadd.f32 %v1736_v40, %v734_v45  ;;  %v1223_v48 = vadd.f32 %v1736_v40, %v862_v46  ;;  %v1437_v49 = vpop.f32.mrb[2].mxu0  ;;  %v1469_v50 = vpop.f32.mrb[2].mxu1 }
 0x12e   :  { %1257 = vst [vmem:[#allocation9 + $0x10] sm:$0xff] %v1193_v43  ;;  %1289 = vst [vmem:[#allocation9 + $0x110] sm:$0xff] %v1225_v44  ;;  %v1194_v51 = vadd.f32 %v1437_v49, %v1736_v40  ;;  %v1226_v52 = vadd.f32 %v1469_v50, %v1736_v40  ;;  %v737_v53 = vpop.f32.mrb[3].mxu0  ;;  %v865_v54 = vpop.f32.mrb[3].mxu1 }
 0x12f   :  { %1255 = vst [vmem:[#allocation9] sm:$0xff] %v1191_v47  ;;  %1287 = vst [vmem:[#allocation9 + $0x100] sm:$0xff] %v1223_v48  ;;  %v1192_v55 = vadd.f32 %v1736_v40, %v737_v53  ;;  %v1224_v56 = vadd.f32 %v1736_v40, %v865_v54 }
 0x130   :  { %1258 = vst [vmem:[#allocation9 + $0x18] sm:$0xff] %v1194_v51  ;;  %1290 = vst [vmem:[#allocation9 + $0x118] sm:$0xff] %v1226_v52 }
 0x131   :  { %1256 = vst [vmem:[#allocation9 + $0x8] sm:$0xff] %v1192_v55  ;;  %1288 = vst [vmem:[#allocation9 + $0x108] sm:$0xff] %v1224_v56 }
 0x133   :  { %v1440_v57 = vpop.f32.mrb[4].mxu0  ;;  %v1472_v58 = vpop.f32.mrb[4].mxu1 }
 0x134   :  { %v1197_v59 = vadd.f32 %v1440_v57, %v1736_v40  ;;  %v1229_v60 = vadd.f32 %v1472_v58, %v1736_v40  ;;  %v750_v61 = vpop.f32.mrb[5].mxu0  ;;  %v878_v62 = vpop.f32.mrb[5].mxu1 }
 0x135   :  { %v1195_v63 = vadd.f32 %v1736_v40, %v750_v61  ;;  %v1227_v0 = vadd.f32 %v1736_v40, %v878_v62  ;;  %v1441_v1 = vpop.f32.mrb[6].mxu0  ;;  %v1473_v2 = vpop.f32.mrb[6].mxu1 }
 0x136   :  { %1261 = vst [vmem:[#allocation9 + $0x30] sm:$0xff] %v1197_v59  ;;  %1293 = vst [vmem:[#allocation9 + $0x130] sm:$0xff] %v1229_v60  ;;  %v1198_v3 = vadd.f32 %v1441_v1, %v1736_v40  ;;  %v1230_v4 = vadd.f32 %v1473_v2, %v1736_v40  ;;  %v753_v5 = vpop.f32.mrb[7].mxu0  ;;  %v881_v6 = vpop.f32.mrb[7].mxu1 }
 0x137   :  { %1259 = vst [vmem:[#allocation9 + $0x20] sm:$0xff] %v1195_v63  ;;  %1291 = vst [vmem:[#allocation9 + $0x120] sm:$0xff] %v1227_v0  ;;  %v1196_v7 = vadd.f32 %v1736_v40, %v753_v5  ;;  %v1228_v8 = vadd.f32 %v1736_v40, %v881_v6 }
 0x138   :  { %1262 = vst [vmem:[#allocation9 + $0x38] sm:$0xff] %v1198_v3  ;;  %1294 = vst [vmem:[#allocation9 + $0x138] sm:$0xff] %v1230_v4 }
 0x139   :  { %1260 = vst [vmem:[#allocation9 + $0x28] sm:$0xff] %v1196_v7  ;;  %1292 = vst [vmem:[#allocation9 + $0x128] sm:$0xff] %v1228_v8 }
 0x13b   :  { %v1444_v9 = vpop.f32.mrb[8].mxu0  ;;  %v1476_v10 = vpop.f32.mrb[8].mxu1 }
 0x13c   :  { %v1201_v11 = vadd.f32 %v1444_v9, %v1736_v40  ;;  %v1233_v12 = vadd.f32 %v1476_v10, %v1736_v40  ;;  %v766_v13 = vpop.f32.mrb[9].mxu0  ;;  %v894_v14 = vpop.f32.mrb[9].mxu1 }
 0x13d   :  { %v1199_v15 = vadd.f32 %v1736_v40, %v766_v13  ;;  %v1231_v16 = vadd.f32 %v1736_v40, %v894_v14  ;;  %v1445_v17 = vpop.f32.mrb[10].mxu0  ;;  %v1477_v18 = vpop.f32.mrb[10].mxu1 }
 0x13e   :  { %1265 = vst [vmem:[#allocation9 + $0x50] sm:$0xff] %v1201_v11  ;;  %1297 = vst [vmem:[#allocation9 + $0x150] sm:$0xff] %v1233_v12  ;;  %v1202_v19 = vadd.f32 %v1445_v17, %v1736_v40  ;;  %v1234_v20 = vadd.f32 %v1477_v18, %v1736_v40  ;;  %v769_v21 = vpop.f32.mrb[11].mxu0  ;;  %v897_v22 = vpop.f32.mrb[11].mxu1 }
 0x13f   :  { %1263 = vst [vmem:[#allocation9 + $0x40] sm:$0xff] %v1199_v15  ;;  %1295 = vst [vmem:[#allocation9 + $0x140] sm:$0xff] %v1231_v16  ;;  %v1200_v23 = vadd.f32 %v1736_v40, %v769_v21  ;;  %v1232_v24 = vadd.f32 %v1736_v40, %v897_v22 }
 0x140   :  { %1266 = vst [vmem:[#allocation9 + $0x58] sm:$0xff] %v1202_v19  ;;  %1298 = vst [vmem:[#allocation9 + $0x158] sm:$0xff] %v1234_v20 }
 0x141   :  { %1264 = vst [vmem:[#allocation9 + $0x48] sm:$0xff] %v1200_v23  ;;  %1296 = vst [vmem:[#allocation9 + $0x148] sm:$0xff] %v1232_v24 }
 0x143   :  { %v1448_v25 = vpop.f32.mrb[12].mxu0  ;;  %v1480_v26 = vpop.f32.mrb[12].mxu1 }
 0x144   :  { %v1205_v27 = vadd.f32 %v1448_v25, %v1736_v40  ;;  %v1237_v28 = vadd.f32 %v1480_v26, %v1736_v40  ;;  %v782_v29 = vpop.f32.mrb[13].mxu0  ;;  %v910_v30 = vpop.f32.mrb[13].mxu1 }
 0x145   :  { %v1203_v31 = vadd.f32 %v1736_v40, %v782_v29  ;;  %v1235_v32 = vadd.f32 %v1736_v40, %v910_v30  ;;  %v1449_v33 = vpop.f32.mrb[14].mxu0  ;;  %v1481_v34 = vpop.f32.mrb[14].mxu1 }
 0x146   :  { %1269 = vst [vmem:[#allocation9 + $0x70] sm:$0xff] %v1205_v27  ;;  %1301 = vst [vmem:[#allocation9 + $0x170] sm:$0xff] %v1237_v28  ;;  %v1206_v35 = vadd.f32 %v1449_v33, %v1736_v40  ;;  %v1238_v36 = vadd.f32 %v1481_v34, %v1736_v40  ;;  %v785_v37 = vpop.f32.mrb[15].mxu0  ;;  %v913_v38 = vpop.f32.mrb[15].mxu1 }
 0x147   :  { %1267 = vst [vmem:[#allocation9 + $0x60] sm:$0xff] %v1203_v31  ;;  %1299 = vst [vmem:[#allocation9 + $0x160] sm:$0xff] %v1235_v32  ;;  %v1204_v39 = vadd.f32 %v1736_v40, %v785_v37  ;;  %v1236_v41 = vadd.f32 %v1736_v40, %v913_v38 }
 0x148   :  { %1270 = vst [vmem:[#allocation9 + $0x78] sm:$0xff] %v1206_v35  ;;  %1302 = vst [vmem:[#allocation9 + $0x178] sm:$0xff] %v1238_v36 }
 0x149   :  { %1268 = vst [vmem:[#allocation9 + $0x68] sm:$0xff] %v1204_v39  ;;  %1300 = vst [vmem:[#allocation9 + $0x168] sm:$0xff] %v1236_v41 }
 0x14b   :  { %v1452_v42 = vpop.f32.mrb[16].mxu0  ;;  %v1484_v43 = vpop.f32.mrb[16].mxu1 }
 0x14c   :  { %v1209_v44 = vadd.f32 %v1452_v42, %v1736_v40  ;;  %v1241_v45 = vadd.f32 %v1484_v43, %v1736_v40  ;;  %v798_v46 = vpop.f32.mrb[17].mxu0  ;;  %v926_v47 = vpop.f32.mrb[17].mxu1 }
 0x14d   :  { %v1207_v48 = vadd.f32 %v1736_v40, %v798_v46  ;;  %v1239_v49 = vadd.f32 %v1736_v40, %v926_v47  ;;  %v1453_v50 = vpop.f32.mrb[18].mxu0  ;;  %v1485_v51 = vpop.f32.mrb[18].mxu1 }
 0x14e   :  { %1273 = vst [vmem:[#allocation9 + $0x90] sm:$0xff] %v1209_v44  ;;  %1305 = vst [vmem:[#allocation9 + $0x190] sm:$0xff] %v1241_v45  ;;  %v1210_v52 = vadd.f32 %v1453_v50, %v1736_v40  ;;  %v1242_v53 = vadd.f32 %v1485_v51, %v1736_v40  ;;  %v801_v54 = vpop.f32.mrb[19].mxu0  ;;  %v929_v55 = vpop.f32.mrb[19].mxu1 }
 0x14f   :  { %1271 = vst [vmem:[#allocation9 + $0x80] sm:$0xff] %v1207_v48  ;;  %1303 = vst [vmem:[#allocation9 + $0x180] sm:$0xff] %v1239_v49  ;;  %v1208_v56 = vadd.f32 %v1736_v40, %v801_v54  ;;  %v1240_v57 = vadd.f32 %v1736_v40, %v929_v55 }
 0x150   :  { %1274 = vst [vmem:[#allocation9 + $0x98] sm:$0xff] %v1210_v52  ;;  %1306 = vst [vmem:[#allocation9 + $0x198] sm:$0xff] %v1242_v53 }
 0x151   :  { %1272 = vst [vmem:[#allocation9 + $0x88] sm:$0xff] %v1208_v56  ;;  %1304 = vst [vmem:[#allocation9 + $0x188] sm:$0xff] %v1240_v57 }
 0x153   :  { %v1456_v58 = vpop.f32.mrb[20].mxu0  ;;  %v1488_v59 = vpop.f32.mrb[20].mxu1 }
 0x154   :  { %v1213_v60 = vadd.f32 %v1456_v58, %v1736_v40  ;;  %v1245_v61 = vadd.f32 %v1488_v59, %v1736_v40  ;;  %v814_v62 = vpop.f32.mrb[21].mxu0  ;;  %v942_v63 = vpop.f32.mrb[21].mxu1 }
 0x155   :  { %v1211_v0 = vadd.f32 %v1736_v40, %v814_v62  ;;  %v1243_v1 = vadd.f32 %v1736_v40, %v942_v63  ;;  %v1457_v2 = vpop.f32.mrb[22].mxu0  ;;  %v1489_v3 = vpop.f32.mrb[22].mxu1 }
 0x156   :  { %1277 = vst [vmem:[#allocation9 + $0xb0] sm:$0xff] %v1213_v60  ;;  %1309 = vst [vmem:[#allocation9 + $0x1b0] sm:$0xff] %v1245_v61  ;;  %v1214_v4 = vadd.f32 %v1457_v2, %v1736_v40  ;;  %v1246_v5 = vadd.f32 %v1489_v3, %v1736_v40  ;;  %v817_v6 = vpop.f32.mrb[23].mxu0  ;;  %v945_v7 = vpop.f32.mrb[23].mxu1 }
 0x157   :  { %1275 = vst [vmem:[#allocation9 + $0xa0] sm:$0xff] %v1211_v0  ;;  %1307 = vst [vmem:[#allocation9 + $0x1a0] sm:$0xff] %v1243_v1  ;;  %v1212_v8 = vadd.f32 %v1736_v40, %v817_v6  ;;  %v1244_v9 = vadd.f32 %v1736_v40, %v945_v7 }
 0x158   :  { %1278 = vst [vmem:[#allocation9 + $0xb8] sm:$0xff] %v1214_v4  ;;  %1310 = vst [vmem:[#allocation9 + $0x1b8] sm:$0xff] %v1246_v5 }
 0x159   :  { %1276 = vst [vmem:[#allocation9 + $0xa8] sm:$0xff] %v1212_v8  ;;  %1308 = vst [vmem:[#allocation9 + $0x1a8] sm:$0xff] %v1244_v9 }
 0x15b   :  { %v1460_v10 = vpop.f32.mrb[24].mxu0  ;;  %v1492_v11 = vpop.f32.mrb[24].mxu1 }
 0x15c   :  { %v1217_v12 = vadd.f32 %v1460_v10, %v1736_v40  ;;  %v1249_v13 = vadd.f32 %v1492_v11, %v1736_v40  ;;  %v830_v14 = vpop.f32.mrb[25].mxu0  ;;  %v958_v15 = vpop.f32.mrb[25].mxu1 }
 0x15d   :  { %v1215_v16 = vadd.f32 %v1736_v40, %v830_v14  ;;  %v1247_v17 = vadd.f32 %v1736_v40, %v958_v15  ;;  %v1461_v18 = vpop.f32.mrb[26].mxu0  ;;  %v1493_v19 = vpop.f32.mrb[26].mxu1 }
 0x15e   :  { %1281 = vst [vmem:[#allocation9 + $0xd0] sm:$0xff] %v1217_v12  ;;  %1313 = vst [vmem:[#allocation9 + $0x1d0] sm:$0xff] %v1249_v13  ;;  %v1218_v20 = vadd.f32 %v1461_v18, %v1736_v40  ;;  %v1250_v21 = vadd.f32 %v1493_v19, %v1736_v40  ;;  %v833_v22 = vpop.f32.mrb[27].mxu0  ;;  %v961_v23 = vpop.f32.mrb[27].mxu1 }
 0x15f   :  { %1279 = vst [vmem:[#allocation9 + $0xc0] sm:$0xff] %v1215_v16  ;;  %1311 = vst [vmem:[#allocation9 + $0x1c0] sm:$0xff] %v1247_v17  ;;  %v1216_v24 = vadd.f32 %v1736_v40, %v833_v22  ;;  %v1248_v25 = vadd.f32 %v1736_v40, %v961_v23 }
 0x160   :  { %1282 = vst [vmem:[#allocation9 + $0xd8] sm:$0xff] %v1218_v20  ;;  %1314 = vst [vmem:[#allocation9 + $0x1d8] sm:$0xff] %v1250_v21 }
 0x161   :  { %1280 = vst [vmem:[#allocation9 + $0xc8] sm:$0xff] %v1216_v24  ;;  %1312 = vst [vmem:[#allocation9 + $0x1c8] sm:$0xff] %v1248_v25 }
 0x163   :  { %v1464_v26 = vpop.f32.mrb[28].mxu0  ;;  %v1496_v27 = vpop.f32.mrb[28].mxu1 }
 0x164   :  { %v1221_v28 = vadd.f32 %v1464_v26, %v1736_v40  ;;  %v1253_v29 = vadd.f32 %v1496_v27, %v1736_v40  ;;  %v846_v30 = vpop.f32.mrb[29].mxu0  ;;  %v974_v31 = vpop.f32.mrb[29].mxu1 }
 0x165   :  { %v1219_v32 = vadd.f32 %v1736_v40, %v846_v30  ;;  %v1251_v33 = vadd.f32 %v1736_v40, %v974_v31  ;;  %v1465_v34 = vpop.f32.mrb[30].mxu0  ;;  %v1497_v35 = vpop.f32.mrb[30].mxu1 }
 0x166   :  { %1285 = vst [vmem:[#allocation9 + $0xf0] sm:$0xff] %v1221_v28  ;;  %1317 = vst [vmem:[#allocation9 + $0x1f0] sm:$0xff] %v1253_v29  ;;  %v1222_v36 = vadd.f32 %v1465_v34, %v1736_v40  ;;  %v1254_v37 = vadd.f32 %v1497_v35, %v1736_v40  ;;  %v849_v38 = vpop.f32.mrb[31].mxu0  ;;  %v977_v39 = vpop.f32.mrb[31].mxu1 }
 0x167   :  { %1283 = vst [vmem:[#allocation9 + $0xe0] sm:$0xff] %v1219_v32  ;;  %1315 = vst [vmem:[#allocation9 + $0x1e0] sm:$0xff] %v1251_v33  ;;  %v1220_v41 = vadd.f32 %v1736_v40, %v849_v38  ;;  %v1252_v42 = vadd.f32 %v1736_v40, %v977_v39 }
 0x168   :  { %1286 = vst [vmem:[#allocation9 + $0xf8] sm:$0xff] %v1222_v36  ;;  %1318 = vst [vmem:[#allocation9 + $0x1f8] sm:$0xff] %v1254_v37 }
 0x169   :  { %1284 = vst [vmem:[#allocation9 + $0xe8] sm:$0xff] %v1220_v41  ;;  %1316 = vst [vmem:[#allocation9 + $0x1e8] sm:$0xff] %v1252_v42 }
 0x16a   :  { %1607 = shalt.err (!%p1604_p0)
}
 0x16b   :  { %s1608_s26 = scalar_lea.hbm %s1817_s3, 8192 }
 0x16c   :  { %p1609_p1 = scmp.ne.s32.totalorder %s1817_s3, %s1608_s26  ;;  %p1612_p2 = scmp.lt.u32.totalorder %s1608_s26, %s1817_s3 }
 0x16e   :  { %p1614_p3 = pnand %p1612_p2, %p1609_p1 }
 0x170   :  { %1617 = shalt.err (!%p1614_p3)
}
 0x171   :  { %s1630_s4 = smov 128   ;;  %s1631_s5 = smov 8  }
 0x172   :  { %1330 = dma.vmem_to_hbm [thread:$0]  %s1325_s22, 8192, %s1817_s3, [#allocation5], %s1630_s4, %s1630_s4, %s1631_s5  }
 0x173   :  { %1622 = dma.done.wait [#allocation5], 8192  }
 0x174   :  { %1623 = vsyncadd [#allocation5], 4294959104 }
 0x175   :  { %1334 = vsyncpa [#allocation4], 1 }
 0x176   :  { %1335 = vsyncpa [#allocation7], 1 }
 0x177   :  { %1336 = vsyncpa [#allocation5], 1 }

// kernel: _lambda_.26
= control target key start
LH: loop header
LB: loop body
LE: loop exit
PB: predicated region body
PF: predicated region fallthrough
CT: control target
= control target key end

     0   :  { %v73_v0 = vmov 0.0   ;;  %s131_s1 = inlined_call_operand.vmem [shape: f32[1,128], index: 1, kind: output, shape index: {0}]   ;;  %s132_s2 = inlined_call_operand.vmem [shape: f32[1,128], index: 2, kind: output, shape index: {1}]   ;;  %s133_s0 = inlined_call_operand.vmem [shape: f32[64,128], index: 0, kind: input, shape index: {}]  }
   0x1   :  { %14 = vst [vmem:[%s131_s1] sm:$0x1] %v73_v0  ;;  %15 = vst [vmem:[%s132_s2] sm:$0x1] %v73_v0  ;;  %v16_v1 = vld [vmem:[%s133_s0] sm:$0xff]  ;;  %v17_v2 = vld [vmem:[%s133_s0 + $0x8] sm:$0xff] }
   0x2   :  { %v18_v3 = vld [vmem:[%s133_s0 + $0x10] sm:$0xff]  ;;  %v19_v4 = vld [vmem:[%s133_s0 + $0x18] sm:$0xff]  ;;  %v25_v5 = vadd.f32 %v17_v2, %v16_v1  ;;  %v41_v6 = vmul.f32 %v16_v1, %v16_v1  ;;  %v42_v7 = vmul.f32 %v17_v2, %v17_v2  ;;  %v20_v9 = vld [vmem:[%s133_s0 + $0x20] sm:$0xff] }
   0x3   :  { %v43_v8 = vmul.f32 %v18_v3, %v18_v3  ;;  %v44_v11 = vmul.f32 %v19_v4, %v19_v4  ;;  %v21_v13 = vld [vmem:[%s133_s0 + $0x28] sm:$0xff]  ;;  %v45_v15 = vmul.f32 %v20_v9, %v20_v9  ;;  %v22_v17 = vld [vmem:[%s133_s0 + $0x30] sm:$0xff]  ;;  %v23_v21 = vld [vmem:[%s133_s0 + $0x38] sm:$0xff] }
   0x4   :  { %v26_v10 = vadd.f32 %v25_v5, %v18_v3  ;;  %v49_v12 = vadd.f32 %v42_v7, %v41_v6  ;;  %v46_v19 = vmul.f32 %v21_v13, %v21_v13  ;;  %v47_v23 = vmul.f32 %v22_v17, %v22_v17 }
   0x5   :  { %v48_v26 = vmul.f32 %v23_v21, %v23_v21 }
   0x6   :  { %v27_v14 = vadd.f32 %v26_v10, %v19_v4  ;;  %v50_v16 = vadd.f32 %v49_v12, %v43_v8 }
   0x8   :  { %v28_v18 = vadd.f32 %v27_v14, %v20_v9  ;;  %v51_v20 = vadd.f32 %v50_v16, %v44_v11  ;;  %v24_v40 = vld [vmem:[%s131_s1] sm:$0x1] }
   0x9   :  { %v40_v43 = vld [vmem:[%s132_s2] sm:$0x1] }
   0xa   :  { %v29_v22 = vadd.f32 %v28_v18, %v21_v13  ;;  %v52_v24 = vadd.f32 %v51_v20, %v45_v15 }
   0xc   :  { %v30_v25 = vadd.f32 %v29_v22, %v22_v17  ;;  %v53_v27 = vadd.f32 %v52_v24, %v46_v19 }
   0xe   :  { %v31_v28 = vadd.f32 %v30_v25, %v23_v21  ;;  %v54_v29 = vadd.f32 %v53_v27, %v47_v23 }
  0x10   :  { %v32_v30 = vrot.slane %v31_v28, 4  ;;  %v55_v31 = vadd.f32 %v54_v29, %v48_v26 }
  0x12   :  { %v33_v32 = vadd.f32 %v32_v30, %v31_v28  ;;  %v56_v33 = vrot.slane %v55_v31, 4 }
  0x14   :  { %v34_v34 = vrot.slane %v33_v32, 2  ;;  %v57_v35 = vadd.f32 %v56_v33, %v55_v31 }
  0x16   :  { %v35_v36 = vadd.f32 %v34_v34, %v33_v32  ;;  %v58_v37 = vrot.slane %v57_v35, 2 }
  0x18   :  { %v36_v38 = vrot.slane %v35_v36, 1  ;;  %v59_v39 = vadd.f32 %v58_v37, %v57_v35 }
  0x1a   :  { %v37_v41 = vadd.f32 %v36_v38, %v35_v36  ;;  %v60_v42 = vrot.slane %v59_v39, 1 }
  0x1c   :  { %v38_v44 = vadd.f32 %v37_v41, %v24_v40  ;;  %v61_v45 = vadd.f32 %v60_v42, %v59_v39 }
  0x1e   :  { %39 = vst [vmem:[%s131_s1] sm:$0x1] %v38_v44  ;;  %v62_v46 = vadd.f32 %v61_v45, %v40_v43 }
  0x20   :  { %63 = vst [vmem:[%s132_s2] sm:$0x1] %v62_v46 }

// kernel: _lambda_.27
= control target key start
LH: loop header
LB: loop body
LE: loop exit
PB: predicated region body
PF: predicated region fallthrough
CT: control target
= control target key end

     0   :  { %s140_s0 = inlined_call_operand.vmem [shape: f32[64,128], index: 0, kind: input, shape index: {}]   ;;  %s141_s1 = inlined_call_operand.vmem [shape: f32[1,128], index: 1, kind: input, shape index: {}]   ;;  %s142_s2 = inlined_call_operand.vmem [shape: f32[1,128], index: 2, kind: input, shape index: {}]   ;;  %s143_s3 = inlined_call_operand.vmem [shape: f32[64,128], index: 3, kind: output, shape index: {}]  }
   0x1   :  { %v14_v0 = vld [vmem:[%s140_s0] sm:$0xff]  ;;  %v15_v4 = vld [vmem:[%s140_s0 + $0x8] sm:$0xff]  ;;  %v16_v5 = vld [vmem:[%s140_s0 + $0x10] sm:$0xff] }
   0x2   :  { %v64_v1 = vld [vmem:[%s141_s1] ss:$0 sm:$0xff]  ;;  %v17_v6 = vld [vmem:[%s140_s0 + $0x18] sm:$0xff]  ;;  %v19_v11 = vld [vmem:[%s140_s0 + $0x28] sm:$0xff] }
   0x3   :  { %v65_v2 = vld [vmem:[%s142_s2] ss:$0 sm:$0xff]  ;;  %v29_v3 = vmul.f32 %v64_v1, %v14_v0  ;;  %v30_v7 = vmul.f32 %v64_v1, %v15_v4  ;;  %v31_v8 = vmul.f32 %v64_v1, %v16_v5  ;;  %v32_v9 = vmul.f32 %v64_v1, %v17_v6  ;;  %v20_v12 = vld [vmem:[%s140_s0 + $0x30] sm:$0xff]  ;;  %v21_v17 = vld [vmem:[%s140_s0 + $0x38] sm:$0xff] }
   0x4   :  { %v18_v10 = vld [vmem:[%s140_s0 + $0x20] sm:$0xff]  ;;  %v34_v15 = vmul.f32 %v64_v1, %v19_v11  ;;  %v35_v16 = vmul.f32 %v64_v1, %v20_v12  ;;  %v36_v21 = vmul.f32 %v64_v1, %v21_v17 }
   0x5   :  { %v44_v13 = vadd.f32 %v65_v2, %v29_v3  ;;  %v33_v14 = vmul.f32 %v64_v1, %v18_v10  ;;  %v45_v18 = vadd.f32 %v65_v2, %v30_v7  ;;  %v46_v19 = vadd.f32 %v65_v2, %v31_v8 }
   0x6   :  { %v47_v20 = vadd.f32 %v65_v2, %v32_v9  ;;  %v49_v23 = vadd.f32 %v65_v2, %v34_v15  ;;  %v50_v24 = vadd.f32 %v65_v2, %v35_v16  ;;  %v51_v25 = vadd.f32 %v65_v2, %v36_v21 }
   0x7   :  { %52 = vst [vmem:[%s143_s3] sm:$0xff] %v44_v13  ;;  %v48_v22 = vadd.f32 %v65_v2, %v33_v14  ;;  %53 = vst [vmem:[%s143_s3 + $0x8] sm:$0xff] %v45_v18 }
   0x8   :  { %54 = vst [vmem:[%s143_s3 + $0x10] sm:$0xff] %v46_v19  ;;  %55 = vst [vmem:[%s143_s3 + $0x18] sm:$0xff] %v47_v20 }
   0x9   :  { %56 = vst [vmem:[%s143_s3 + $0x20] sm:$0xff] %v48_v22  ;;  %57 = vst [vmem:[%s143_s3 + $0x28] sm:$0xff] %v49_v23 }
   0xa   :  { %58 = vst [vmem:[%s143_s3 + $0x30] sm:$0xff] %v50_v24  ;;  %59 = vst [vmem:[%s143_s3 + $0x38] sm:$0xff] %v51_v25 }

// kernel: _lambda_.28
= control target key start
LH: loop header
LB: loop body
LE: loop exit
PB: predicated region body
PF: predicated region fallthrough
CT: control target
= control target key end

     0   :  { %8 = vsyncpa [#allocation4], 0  ;;  %s900_s0 = inlined_call_operand.hbm [shape: bf16[128,256], index: 0, kind: input, shape index: {}]   ;;  %s901_s1 = inlined_call_operand.hbm [shape: bf16[256,128], index: 1, kind: input, shape index: {}]   ;;  %s902_s2 = inlined_call_operand.hbm [shape: f32[1,128], index: 2, kind: input, shape index: {}]   ;;  %s903_s3 = inlined_call_operand.hbm [shape: f32[128,128], index: 3, kind: output, shape index: {}]  }
   0x1   :  { %9 = vsyncpa [#allocation7], 0 }
   0x2   :  { %10 = vsyncpa [#allocation5], 0  ;;  %s800_s12 = smov [#allocation6]   ;;  %s706_s16 = scalar_lea.hbm %s901_s1, 2048 }
   0x3   :  { %s28_s13 = sshll.u32 %s800_s12, 4  ;;  %p707_p0 = scmp.ne.s32.totalorder %s901_s1, %s706_s16  ;;  %s29_s13 = int_to_ptr.vmem [resolvable:$true] %s28_s13 }
   0x4   :  { %p710_p1 = scmp.lt.u32.totalorder %s706_s16, %s901_s1 }
   0x6   :  { %p712_p2 = pnand %p710_p1, %p707_p0 }
   0x8   :  { %715 = shalt.err (!%p712_p2)
}
   0x9   :  { %s716_s21 = scalar_lea.vmem %s29_s13, 2048  ;;  %p721_p4 = scmp.lt.s32.totalorder %s29_s13, %s29_s13 }
   0xa   :  { %p717_p3 = scmp.ne.s32.totalorder %s29_s13, %s716_s21  ;;  %p722_p5 = scmp.lt.s32.totalorder %s716_s21, %s716_s21 }
   0xc   :  { %p723_p6 = por %p722_p5, %p721_p4 }
   0xe   :  { %p724_p7 = pnand %p723_p6, %p717_p3 }
  0x10   :  { %727 = shalt.err (!%p724_p7)
}
  0x11   :  { %s801_s22 = smov 64   ;;  %s802_s23 = smov 4  }
  0x12   :  { %34 = dma.hbm_to_vmem [thread:$0]  %s901_s1, 2048, %s29_s13, [#allocation7], %s801_s22, %s801_s22, %s802_s23  }
  0x13   :  { %s803_s26 = smov [#allocation3]   ;;  %s728_s30 = scalar_lea.hbm %s900_s0, 2048 }
  0x14   :  { %s16_s27 = sshll.u32 %s803_s26, 4  ;;  %p729_p8 = scmp.ne.s32.totalorder %s900_s0, %s728_s30  ;;  %s17_s27 = int_to_ptr.vmem [resolvable:$true] %s16_s27 }
  0x15   :  { %p732_p9 = scmp.lt.u32.totalorder %s728_s30, %s900_s0 }
  0x17   :  { %p734_p10 = pnand %p732_p9, %p729_p8 }
  0x19   :  { %737 = shalt.err (!%p734_p10)
}
  0x1a   :  { %s738_s8 = scalar_lea.vmem %s17_s27, 2048  ;;  %p743_p12 = scmp.lt.s32.totalorder %s17_s27, %s17_s27 }
  0x1b   :  { %p739_p11 = scmp.ne.s32.totalorder %s17_s27, %s738_s8  ;;  %p744_p13 = scmp.lt.s32.totalorder %s738_s8, %s738_s8 }
  0x1d   :  { %p745_p0 = por %p744_p13, %p743_p12 }
  0x1f   :  { %p746_p1 = pnand %p745_p0, %p739_p11 }
  0x21   :  { %749 = shalt.err (!%p746_p1)
}
  0x22   :  { %s804_s1 = smov 128   ;;  %s805_s9 = smov 8  }
  0x23   :  { %22 = dma.hbm_to_vmem [thread:$0]  %s900_s0, 2048, %s17_s27, [#allocation4], %s804_s1, %s804_s1, %s805_s9  }
  0x24   :  { %s806_s12 = smov [#allocation8]   ;;  %s750_s16 = scalar_lea.hbm %s902_s2, 16 }
  0x25   :  { %s41_s13 = sshll.u32 %s806_s12, 4  ;;  %p751_p2 = scmp.ne.s32.totalorder %s902_s2, %s750_s16  ;;  %s42_s13 = int_to_ptr.vmem [resolvable:$true] %s41_s13 }
  0x26   :  { %p754_p3 = scmp.lt.u32.totalorder %s750_s16, %s902_s2 }
  0x28   :  { %p756_p4 = pnand %p754_p3, %p751_p2 }
  0x2a   :  { %759 = shalt.err (!%p756_p4)
}
  0x2b   :  { %s760_s21 = scalar_lea.vmem %s42_s13, 16  ;;  %s764_s0 = scalar_lea.vmem %s42_s13, 32 }
  0x2c   :  { %p761_p5 = scmp.ne.s32.totalorder %s42_s13, %s760_s21  ;;  %p765_p6 = scmp.lt.s32.totalorder %s42_s13, %s42_s13 }
  0x2d   :  { %p766_p7 = scmp.lt.s32.totalorder %s764_s0, %s760_s21 }
  0x2f   :  { %p767_p8 = por %p766_p7, %p765_p6 }
  0x31   :  { %p768_p9 = pnand %p767_p8, %p761_p5 }
  0x33   :  { %771 = shalt.err (!%p768_p9)
}
  0x34   :  { %44 = dma.hbm_to_vmem [thread:$0]  %s902_s2, 16, %s42_s13, [#allocation7]  }
  0x35   :  { %794 = dma.done.wait [#allocation4], 2048  }
  0x36   :  { %795 = vsyncadd [#allocation4], 4294965248 }
  0x37   :  { %796 = dma.done.wait [#allocation7], 2064  }
  0x38   :  { %797 = vsyncadd [#allocation7], 4294965232  ;;  %v690_v0 = vld [vmem:[#allocation6 + $0x40] sm:$0xff]   ;;  %v692_v2 = vld [vmem:[#allocation6 + $0x48] sm:$0xff]   ;;  %s807_s2 = smov [#allocation9]  }
  0x39   :  { %v691_v1 = vld [vmem:[#allocation6] sm:$0xff]   ;;  %602 = vmatprep.subr.bf16.mxu0 %v690_v0  ;;  %666 = vmatprep.subr.bf16.mxu1 %v690_v0  ;;  %v693_v3 = vld [vmem:[#allocation6 + $0x8] sm:$0xff]   ;;  %v694_v4 = vld [vmem:[#allocation6 + $0x50] sm:$0xff]   ;;  %s556_s24 = sshll.u32 %s807_s2, 4  ;;  %s557_s24 = int_to_ptr.vmem [resolvable:$true] %s556_s24 }
  0x3a   :  { %603 = vmatpush3.bf16.msra.mxu0 %v691_v1  ;;  %674 = vmatpush3.bf16.msra.mxu1 %v691_v1  ;;  %v695_v5 = vld [vmem:[#allocation6 + $0x10] sm:$0xff]   ;;  %v696_v6 = vld [vmem:[#allocation6 + $0x58] sm:$0xff]   ;;  %v698_v8 = vld [vmem:[#allocation6 + $0x60] sm:$0xff]   ;;  %s772_s25 = scalar_lea.vmem %s557_s24, 2048  ;;  %p777_p11 = scmp.lt.s32.totalorder %s557_s24, %s557_s24 }
  0x3b   :  { %604 = vmatprep.subr.bf16.mxu0 %v692_v2  ;;  %667 = vmatprep.subr.bf16.mxu1 %v692_v2  ;;  %v697_v7 = vld [vmem:[#allocation6 + $0x18] sm:$0xff]   ;;  %v699_v9 = vld [vmem:[#allocation6 + $0x20] sm:$0xff]   ;;  %v700_v10 = vld [vmem:[#allocation6 + $0x68] sm:$0xff]   ;;  %p773_p10 = scmp.ne.s32.totalorder %s557_s24, %s772_s25  ;;  %p778_p12 = scmp.lt.s32.totalorder %s772_s25, %s772_s25 }
  0x3c   :  { %v76_v11 = vld [vmem:[#allocation3] sm:$0xff]  ;;  %v77_v12 = vld [vmem:[#allocation3 + $0x8] sm:$0xff]  ;;  %v702_v22 = vld [vmem:[#allocation6 + $0x70] sm:$0xff]  }
  0x3d   :  { %v84_v13 = vld [vmem:[#allocation3 + $0x40] sm:$0xff]  ;;  %vm92_vm0 = vcmp.ge.bf16.partialorder %v76_v11, 0  ;;  %vm93_vm1 = vcmp.ge.bf16.partialorder %v77_v12, 0  ;;  %v108_v14 = vmul.bf16 1045249613, %v76_v11  ;;  %v85_v16 = vld [vmem:[#allocation3 + $0x48] sm:$0xff]  ;;  %p779_p13 = por %p778_p12, %p777_p11 }
  0x3e   :  { %605 = vmatpush3.bf16.msra.mxu0 %v693_v3  ;;  %675 = vmatpush3.bf16.msra.mxu1 %v693_v3  ;;  %v109_v15 = vmul.bf16 1045249613, %v77_v12  ;;  %vm100_vm2 = vcmp.ge.bf16.partialorder %v84_v13, 0  ;;  %v116_v17 = vmul.bf16 1045249613, %v84_v13  ;;  %v701_v18 = vld [vmem:[#allocation6 + $0x28] sm:$0xff]  }
  0x3f   :  { %606 = vmatprep.subr.bf16.mxu0 %v694_v4  ;;  %668 = vmatprep.subr.bf16.mxu1 %v694_v4  ;;  %v124_v19 = vsel %vm92_vm0, %v76_v11, %v108_v14  ;;  %vm101_vm3 = vcmp.ge.bf16.partialorder %v85_v16, 0  ;;  %v117_v21 = vmul.bf16 1045249613, %v85_v16  ;;  %v78_v25 = vld [vmem:[#allocation3 + $0x10] sm:$0xff]  ;;  %v79_v27 = vld [vmem:[#allocation3 + $0x18] sm:$0xff]  ;;  %v80_v42 = vld [vmem:[#allocation3 + $0x20] sm:$0xff]  ;;  %p780_p0 = pnand %p779_p13, %p773_p10 }
  0x40   :  { %v125_v20 = vsel %vm93_vm1, %v77_v12, %v109_v15  ;;  %v132_v24 = vsel %vm100_vm2, %v84_v13, %v116_v17  ;;  %v86_v28 = vld [vmem:[#allocation3 + $0x50] sm:$0xff]  ;;  %v87_v29 = vld [vmem:[#allocation3 + $0x58] sm:$0xff]  ;;  %vm94_vm4 = vcmp.ge.bf16.partialorder %v78_v25, 0  ;;  %v110_v33 = vmul.bf16 1045249613, %v78_v25  ;;  %v81_v43 = vld [vmem:[#allocation3 + $0x28] sm:$0xff] }
  0x41   :  { %v570_v23 = vcombine.high %v124_v19, %v125_v20  ;;  %v133_v26 = vsel %vm101_vm3, %v85_v16, %v117_v21  ;;  %v703_v31 = vld [vmem:[#allocation6 + $0x30] sm:$0xff]   ;;  %v704_v32 = vld [vmem:[#allocation6 + $0x78] sm:$0xff]   ;;  %v111_v34 = vmul.bf16 1045249613, %v79_v27  ;;  %v118_v35 = vmul.bf16 1045249613, %v86_v28 }
  0x42   :  { %607 = vmatpush3.bf16.msra.mxu0 %v695_v5  ;;  %676 = vmatpush3.bf16.msra.mxu1 %v695_v5  ;;  %v578_v30 = vcombine.high %v132_v24, %v133_v26  ;;  %v119_v36 = vmul.bf16 1045249613, %v87_v29  ;;  %vm95_vm5 = vcmp.ge.bf16.partialorder %v79_v27, 0  ;;  %vm102_vm6 = vcmp.ge.bf16.partialorder %v86_v28, 0  ;;  %v705_v37 = vld [vmem:[#allocation6 + $0x38] sm:$0xff]   ;;  %v88_v44 = vld [vmem:[#allocation3 + $0x60] sm:$0xff] }
  0x43   :  { %608 = vmatprep.subr.bf16.mxu0 %v696_v6  ;;  %669 = vmatprep.subr.bf16.mxu1 %v696_v6  ;;  %vm103_vm7 = vcmp.ge.bf16.partialorder %v87_v29, 0  ;;  %v126_v38 = vsel %vm94_vm4, %v78_v25, %v110_v33  ;;  %v127_v39 = vsel %vm95_vm5, %v79_v27, %v111_v34  ;;  %v134_v40 = vsel %vm102_vm6, %v86_v28, %v118_v35  ;;  %v89_v45 = vld [vmem:[#allocation3 + $0x68] sm:$0xff]  ;;  %v82_v58 = vld [vmem:[#allocation3 + $0x30] sm:$0xff]  ;;  %v83_v59 = vld [vmem:[#allocation3 + $0x38] sm:$0xff] }
  0x44   :  { %396 = vmatprep.mubr.bf16.mxu0 %v570_v23  ;;  %428 = vmatprep.mubr.bf16.mxu1 %v578_v30  ;;  %v135_v41 = vsel %vm103_vm7, %v87_v29, %v119_v36  ;;  %v569_v46 = vcombine.low %v124_v19, %v125_v20  ;;  %v577_v47 = vcombine.low %v132_v24, %v133_v26  ;;  %v112_v50 = vmul.bf16 1045249613, %v80_v42  ;;  %v90_v60 = vld [vmem:[#allocation3 + $0x70] sm:$0xff]  ;;  %v91_v61 = vld [vmem:[#allocation3 + $0x78] sm:$0xff]  ;;  %v867_v19 = vld [vmem:[#allocation8] ss:$0 sm:$0xff] }
  0x45   :  { %v572_v48 = vcombine.high %v126_v38, %v127_v39  ;;  %v580_v49 = vcombine.high %v134_v40, %v135_v41  ;;  %v113_v51 = vmul.bf16 1045249613, %v81_v43  ;;  %v120_v52 = vmul.bf16 1045249613, %v88_v44 }
  0x46   :  { %609 = vmatpush3.bf16.msra.mxu0 %v697_v7  ;;  %677 = vmatpush3.bf16.msra.mxu1 %v697_v7  ;;  %v121_v53 = vmul.bf16 1045249613, %v89_v45  ;;  %vm96_vm8 = vcmp.ge.bf16.partialorder %v80_v42, 0  ;;  %vm97_vm9 = vcmp.ge.bf16.partialorder %v81_v43, 0  ;;  %vm104_vm10 = vcmp.ge.bf16.partialorder %v88_v44, 0 }
  0x47   :  { %610 = vmatprep.subr.bf16.mxu0 %v698_v8  ;;  %670 = vmatprep.subr.bf16.mxu1 %v698_v8  ;;  %vm105_vm11 = vcmp.ge.bf16.partialorder %v89_v45, 0  ;;  %v128_v54 = vsel %vm96_vm8, %v80_v42, %v112_v50  ;;  %v129_v55 = vsel %vm97_vm9, %v81_v43, %v113_v51  ;;  %v136_v56 = vsel %vm104_vm10, %v88_v44, %v120_v52 }
  0x48   :  { %v137_v57 = vsel %vm105_vm11, %v89_v45, %v121_v53  ;;  %v571_v62 = vcombine.low %v126_v38, %v127_v39  ;;  %v579_v63 = vcombine.low %v134_v40, %v135_v41  ;;  %v574_v0 = vcombine.high %v128_v54, %v129_v55 }
  0x49   :  { %v582_v1 = vcombine.high %v136_v56, %v137_v57  ;;  %v114_v2 = vmul.bf16 1045249613, %v82_v58  ;;  %v115_v3 = vmul.bf16 1045249613, %v83_v59  ;;  %v122_v4 = vmul.bf16 1045249613, %v90_v60 }
  0x4a   :  { %611 = vmatpush3.bf16.msra.mxu0 %v699_v9  ;;  %678 = vmatpush3.bf16.msra.mxu1 %v699_v9  ;;  %v123_v5 = vmul.bf16 1045249613, %v91_v61  ;;  %vm98_vm12 = vcmp.ge.bf16.partialorder %v82_v58, 0  ;;  %vm99_vm13 = vcmp.ge.bf16.partialorder %v83_v59, 0  ;;  %vm106_vm14 = vcmp.ge.bf16.partialorder %v90_v60, 0 }
  0x4b   :  { %612 = vmatprep.subr.bf16.mxu0 %v700_v10  ;;  %671 = vmatprep.subr.bf16.mxu1 %v700_v10  ;;  %vm107_vm15 = vcmp.ge.bf16.partialorder %v91_v61, 0  ;;  %v130_v6 = vsel %vm98_vm12, %v82_v58, %v114_v2  ;;  %v131_v7 = vsel %vm99_vm13, %v83_v59, %v115_v3  ;;  %v138_v8 = vsel %vm106_vm14, %v90_v60, %v122_v4 }
  0x4c   :  { %v139_v9 = vsel %vm107_vm15, %v91_v61, %v123_v5  ;;  %v573_v10 = vcombine.low %v128_v54, %v129_v55  ;;  %v581_v11 = vcombine.low %v136_v56, %v137_v57  ;;  %v576_v12 = vcombine.high %v130_v6, %v131_v7 }
  0x4d   :  { %v584_v13 = vcombine.high %v138_v8, %v139_v9  ;;  %v575_v14 = vcombine.low %v130_v6, %v131_v7  ;;  %v583_v15 = vcombine.low %v138_v8, %v139_v9 }
  0x4e   :  { %613 = vmatpush3.bf16.msra.mxu0 %v701_v18  ;;  %679 = vmatpush3.bf16.msra.mxu1 %v701_v18 }
  0x4f   :  { %614 = vmatprep.subr.bf16.mxu0 %v702_v22  ;;  %672 = vmatprep.subr.bf16.mxu1 %v702_v22 }
  0x52   :  { %615 = vmatpush3.bf16.msra.mxu0 %v703_v31  ;;  %680 = vmatpush3.bf16.msra.mxu1 %v703_v31 }
  0x53   :  { %616 = vmatprep.subr.bf16.mxu0 %v704_v32  ;;  %673 = vmatprep.subr.bf16.mxu1 %v704_v32 }
  0x56   :  { %617 = vmatpush3.bf16.msra.mxu0 %v705_v37  ;;  %681 = vmatpush3.bf16.msra.mxu1 %v705_v37 }
  0x59   :  { %397 = vmatmul.mubr.bf16.vlgmr.msra.gmra.mrb[0].mxu0 %v569_v46  ;;  %429 = vmatmul.mubr.bf16.vlgmr.msra.gmra.mrb[0].mxu1 %v577_v47 }
  0x5a   :  { %404 = vmatprep.mubr.bf16.mxu0 %v572_v48  ;;  %436 = vmatprep.mubr.bf16.mxu1 %v580_v49 }
  0x61   :  { %405 = vmatmul.mubr.bf16.gmra.mrb[4].mxu0 %v571_v62  ;;  %437 = vmatmul.mubr.bf16.gmra.mrb[4].mxu1 %v579_v63 }
  0x62   :  { %412 = vmatprep.mubr.bf16.mxu0 %v574_v0  ;;  %444 = vmatprep.mubr.bf16.mxu1 %v582_v1 }
  0x69   :  { %413 = vmatmul.mubr.bf16.gmra.mrb[8].mxu0 %v573_v10  ;;  %445 = vmatmul.mubr.bf16.gmra.mrb[8].mxu1 %v581_v11 }
  0x6a   :  { %420 = vmatprep.mubr.bf16.mxu0 %v576_v12  ;;  %452 = vmatprep.mubr.bf16.mxu1 %v584_v13 }
  0x71   :  { %421 = vmatmul.mubr.bf16.gmra.mrb[12].mxu0 %v575_v14  ;;  %453 = vmatmul.mubr.bf16.gmra.mrb[12].mxu1 %v583_v15 }
 0x12c   :  { %v618_v16 = vpop.f32.mrb[0].mxu0  ;;  %v642_v17 = vpop.f32.mrb[0].mxu1 }
 0x12d   :  { %v619_v18 = vpop.f32.mrb[1].mxu0  ;;  %v643_v20 = vpop.f32.mrb[1].mxu1 }
 0x12e   :  { %v620_v21 = vadd.f32 %v619_v18, %v618_v16  ;;  %v644_v22 = vadd.f32 %v643_v20, %v642_v17  ;;  %v621_v23 = vpop.f32.mrb[2].mxu0  ;;  %v645_v24 = vpop.f32.mrb[2].mxu1 }
 0x12f   :  { %v622_v25 = vpop.f32.mrb[3].mxu0  ;;  %v646_v26 = vpop.f32.mrb[3].mxu1 }
 0x130   :  { %v519_v27 = vadd.f32 %v620_v21, %v867_v19  ;;  %v527_v28 = vadd.f32 %v644_v22, %v867_v19  ;;  %v623_v29 = vadd.f32 %v622_v25, %v621_v23  ;;  %v647_v30 = vadd.f32 %v646_v26, %v645_v24 }
 0x132   :  { %535 = vst [vmem:[#allocation9] sm:$0xff] %v519_v27  ;;  %543 = vst [vmem:[#allocation9 + $0x40] sm:$0xff] %v527_v28  ;;  %v520_v31 = vadd.f32 %v623_v29, %v867_v19  ;;  %v528_v32 = vadd.f32 %v647_v30, %v867_v19 }
 0x134   :  { %536 = vst [vmem:[#allocation9 + $0x8] sm:$0xff] %v520_v31  ;;  %544 = vst [vmem:[#allocation9 + $0x48] sm:$0xff] %v528_v32  ;;  %v624_v33 = vpop.f32.mrb[4].mxu0  ;;  %v648_v34 = vpop.f32.mrb[4].mxu1 }
 0x135   :  { %v625_v35 = vpop.f32.mrb[5].mxu0  ;;  %v649_v36 = vpop.f32.mrb[5].mxu1 }
 0x136   :  { %v626_v37 = vadd.f32 %v625_v35, %v624_v33  ;;  %v650_v38 = vadd.f32 %v649_v36, %v648_v34  ;;  %v627_v39 = vpop.f32.mrb[6].mxu0  ;;  %v651_v40 = vpop.f32.mrb[6].mxu1 }
 0x137   :  { %v628_v41 = vpop.f32.mrb[7].mxu0  ;;  %v652_v42 = vpop.f32.mrb[7].mxu1 }
 0x138   :  { %v521_v43 = vadd.f32 %v626_v37, %v867_v19  ;;  %v529_v44 = vadd.f32 %v650_v38, %v867_v19  ;;  %v629_v45 = vadd.f32 %v628_v41, %v627_v39  ;;  %v653_v46 = vadd.f32 %v652_v42, %v651_v40 }
 0x13a   :  { %537 = vst [vmem:[#allocation9 + $0x10] sm:$0xff] %v521_v43  ;;  %545 = vst [vmem:[#allocation9 + $0x50] sm:$0xff] %v529_v44  ;;  %v522_v47 = vadd.f32 %v629_v45, %v867_v19  ;;  %v530_v48 = vadd.f32 %v653_v46, %v867_v19 }
 0x13c   :  { %538 = vst [vmem:[#allocation9 + $0x18] sm:$0xff] %v522_v47  ;;  %546 = vst [vmem:[#allocation9 + $0x58] sm:$0xff] %v530_v48  ;;  %v630_v49 = vpop.f32.mrb[8].mxu0  ;;  %v654_v50 = vpop.f32.mrb[8].mxu1 }
 0x13d   :  { %v631_v51 = vpop.f32.mrb[9].mxu0  ;;  %v655_v52 = vpop.f32.mrb[9].mxu1 }
 0x13e   :  { %v632_v53 = vadd.f32 %v631_v51, %v630_v49  ;;  %v656_v54 = vadd.f32 %v655_v52, %v654_v50  ;;  %v633_v55 = vpop.f32.mrb[10].mxu0  ;;  %v657_v56 = vpop.f32.mrb[10].mxu1 }
 0x13f   :  { %v634_v57 = vpop.f32.mrb[11].mxu0  ;;  %v658_v58 = vpop.f32.mrb[11].mxu1 }
 0x140   :  { %v523_v59 = vadd.f32 %v632_v53, %v867_v19  ;;  %v531_v60 = vadd.f32 %v656_v54, %v867_v19  ;;  %v635_v61 = vadd.f32 %v634_v57, %v633_v55  ;;  %v659_v62 = vadd.f32 %v658_v58, %v657_v56 }
 0x142   :  { %539 = vst [vmem:[#allocation9 + $0x20] sm:$0xff] %v523_v59  ;;  %547 = vst [vmem:[#allocation9 + $0x60] sm:$0xff] %v531_v60  ;;  %v524_v63 = vadd.f32 %v635_v61, %v867_v19  ;;  %v532_v0 = vadd.f32 %v659_v62, %v867_v19 }
 0x144   :  { %540 = vst [vmem:[#allocation9 + $0x28] sm:$0xff] %v524_v63  ;;  %548 = vst [vmem:[#allocation9 + $0x68] sm:$0xff] %v532_v0  ;;  %v636_v1 = vpop.f32.mrb[12].mxu0  ;;  %v660_v2 = vpop.f32.mrb[12].mxu1 }
 0x145   :  { %v637_v3 = vpop.f32.mrb[13].mxu0  ;;  %v661_v4 = vpop.f32.mrb[13].mxu1 }
 0x146   :  { %v638_v5 = vadd.f32 %v637_v3, %v636_v1  ;;  %v662_v6 = vadd.f32 %v661_v4, %v660_v2  ;;  %v639_v7 = vpop.f32.mrb[14].mxu0  ;;  %v663_v8 = vpop.f32.mrb[14].mxu1 }
 0x147   :  { %v640_v9 = vpop.f32.mrb[15].mxu0  ;;  %v664_v10 = vpop.f32.mrb[15].mxu1 }
 0x148   :  { %v525_v11 = vadd.f32 %v638_v5, %v867_v19  ;;  %v533_v12 = vadd.f32 %v662_v6, %v867_v19  ;;  %v641_v13 = vadd.f32 %v640_v9, %v639_v7  ;;  %v665_v14 = vadd.f32 %v664_v10, %v663_v8 }
 0x14a   :  { %541 = vst [vmem:[#allocation9 + $0x30] sm:$0xff] %v525_v11  ;;  %549 = vst [vmem:[#allocation9 + $0x70] sm:$0xff] %v533_v12  ;;  %v526_v15 = vadd.f32 %v641_v13, %v867_v19  ;;  %v534_v16 = vadd.f32 %v665_v14, %v867_v19 }
 0x14c   :  { %542 = vst [vmem:[#allocation9 + $0x38] sm:$0xff] %v526_v15  ;;  %550 = vst [vmem:[#allocation9 + $0x78] sm:$0xff] %v534_v16 }
 0x14d   :  { %783 = shalt.err (!%p780_p0)
}
 0x14e   :  { %s784_s28 = scalar_lea.hbm %s903_s3, 2048 }
 0x14f   :  { %p785_p1 = scmp.ne.s32.totalorder %s903_s3, %s784_s28  ;;  %p788_p2 = scmp.lt.u32.totalorder %s784_s28, %s903_s3 }
 0x151   :  { %p790_p3 = pnand %p788_p2, %p785_p1 }
 0x153   :  { %793 = shalt.err (!%p790_p3)
}
 0x154   :  { %562 = dma.vmem_to_hbm [thread:$0]  %s557_s24, 2048, %s903_s3, [#allocation5], %s804_s1, %s804_s1, %s805_s9  }
 0x155   :  { %798 = dma.done.wait [#allocation5], 2048  }
 0x156   :  { %799 = vsyncadd [#allocation5], 4294965248 }
 0x157   :  { %566 = vsyncpa [#allocation4], 1 }
 0x158   :  { %567 = vsyncpa [#allocation7], 1 }
 0x159   :  { %568 = vsyncpa [#allocation5], 1 }

// kernel: _lambda_.29
= control target key start
LH: loop header
LB: loop body
LE: loop exit
PB: predicated region body
PF: predicated region fallthrough
CT: control target
= control target key end

     0   :  { %v57_v0 = vmov 0.0   ;;  %s103_s1 = inlined_call_operand.vmem [shape: f32[1,128], index: 1, kind: output, shape index: {0}]   ;;  %s104_s2 = inlined_call_operand.vmem [shape: f32[1,128], index: 2, kind: output, shape index: {1}]   ;;  %s105_s0 = inlined_call_operand.vmem [shape: f32[32,128], index: 0, kind: input, shape index: {}]  }
   0x1   :  { %14 = vst [vmem:[%s103_s1] sm:$0x1] %v57_v0  ;;  %15 = vst [vmem:[%s104_s2] sm:$0x1] %v57_v0  ;;  %v16_v1 = vld [vmem:[%s105_s0] sm:$0xff]  ;;  %v17_v2 = vld [vmem:[%s105_s0 + $0x8] sm:$0xff] }
   0x2   :  { %v18_v3 = vld [vmem:[%s105_s0 + $0x10] sm:$0xff]  ;;  %v19_v4 = vld [vmem:[%s105_s0 + $0x18] sm:$0xff]  ;;  %v21_v5 = vadd.f32 %v17_v2, %v16_v1  ;;  %v33_v6 = vmul.f32 %v16_v1, %v16_v1  ;;  %v34_v7 = vmul.f32 %v17_v2, %v17_v2 }
   0x3   :  { %v35_v8 = vmul.f32 %v18_v3, %v18_v3  ;;  %v36_v10 = vmul.f32 %v19_v4, %v19_v4 }
   0x4   :  { %v22_v9 = vadd.f32 %v21_v5, %v18_v3  ;;  %v37_v11 = vadd.f32 %v34_v7, %v33_v6 }
   0x6   :  { %v23_v12 = vadd.f32 %v22_v9, %v19_v4  ;;  %v38_v13 = vadd.f32 %v37_v11, %v35_v8 }
   0x8   :  { %v24_v14 = vrot.slane %v23_v12, 4  ;;  %v39_v15 = vadd.f32 %v38_v13, %v36_v10  ;;  %v20_v24 = vld [vmem:[%s103_s1] sm:$0x1] }
   0x9   :  { %v32_v27 = vld [vmem:[%s104_s2] sm:$0x1] }
   0xa   :  { %v25_v16 = vadd.f32 %v24_v14, %v23_v12  ;;  %v40_v17 = vrot.slane %v39_v15, 4 }
   0xc   :  { %v26_v18 = vrot.slane %v25_v16, 2  ;;  %v41_v19 = vadd.f32 %v40_v17, %v39_v15 }
   0xe   :  { %v27_v20 = vadd.f32 %v26_v18, %v25_v16  ;;  %v42_v21 = vrot.slane %v41_v19, 2 }
  0x10   :  { %v28_v22 = vrot.slane %v27_v20, 1  ;;  %v43_v23 = vadd.f32 %v42_v21, %v41_v19 }
  0x12   :  { %v29_v25 = vadd.f32 %v28_v22, %v27_v20  ;;  %v44_v26 = vrot.slane %v43_v23, 1 }
  0x14   :  { %v30_v28 = vadd.f32 %v29_v25, %v20_v24  ;;  %v45_v29 = vadd.f32 %v44_v26, %v43_v23 }
  0x16   :  { %31 = vst [vmem:[%s103_s1] sm:$0x1] %v30_v28  ;;  %v46_v30 = vadd.f32 %v45_v29, %v32_v27 }
  0x18   :  { %47 = vst [vmem:[%s104_s2] sm:$0x1] %v46_v30 }

// kernel: _lambda_.30
= control target key start
LH: loop header
LB: loop body
LE: loop exit
PB: predicated region body
PF: predicated region fallthrough
CT: control target
= control target key end

     0   :  { %s100_s0 = inlined_call_operand.vmem [shape: f32[32,128], index: 0, kind: input, shape index: {}]   ;;  %s101_s1 = inlined_call_operand.vmem [shape: f32[1,128], index: 1, kind: input, shape index: {}]   ;;  %s102_s2 = inlined_call_operand.vmem [shape: f32[1,128], index: 2, kind: input, shape index: {}]   ;;  %s103_s3 = inlined_call_operand.vmem [shape: f32[32,128], index: 3, kind: output, shape index: {}]  }
   0x1   :  { %v14_v0 = vld [vmem:[%s100_s0] sm:$0xff]  ;;  %v15_v4 = vld [vmem:[%s100_s0 + $0x8] sm:$0xff]  ;;  %v16_v5 = vld [vmem:[%s100_s0 + $0x10] sm:$0xff] }
   0x2   :  { %v48_v1 = vld [vmem:[%s101_s1] ss:$0 sm:$0xff]  ;;  %v17_v6 = vld [vmem:[%s100_s0 + $0x18] sm:$0xff] }
   0x3   :  { %v49_v2 = vld [vmem:[%s102_s2] ss:$0 sm:$0xff]  ;;  %v25_v3 = vmul.f32 %v48_v1, %v14_v0  ;;  %v26_v7 = vmul.f32 %v48_v1, %v15_v4  ;;  %v27_v8 = vmul.f32 %v48_v1, %v16_v5  ;;  %v28_v9 = vmul.f32 %v48_v1, %v17_v6 }
   0x5   :  { %v36_v10 = vadd.f32 %v49_v2, %v25_v3  ;;  %v37_v11 = vadd.f32 %v49_v2, %v26_v7  ;;  %v38_v12 = vadd.f32 %v49_v2, %v27_v8  ;;  %v39_v13 = vadd.f32 %v49_v2, %v28_v9 }
   0x7   :  { %40 = vst [vmem:[%s103_s3] sm:$0xff] %v36_v10  ;;  %41 = vst [vmem:[%s103_s3 + $0x8] sm:$0xff] %v37_v11 }
   0x8   :  { %42 = vst [vmem:[%s103_s3 + $0x10] sm:$0xff] %v38_v12  ;;  %43 = vst [vmem:[%s103_s3 + $0x18] sm:$0xff] %v39_v13 }

// kernel: _lambda_.31
= control target key start
LH: loop header
LB: loop body
LE: loop exit
PB: predicated region body
PF: predicated region fallthrough
CT: control target
= control target key end

     0   :  { %8 = vsyncpa [#allocation4], 0  ;;  %s853_s0 = inlined_call_operand.hbm [shape: bf16[32,512], index: 0, kind: input, shape index: {}]   ;;  %s854_s1 = inlined_call_operand.hbm [shape: bf16[512,128], index: 1, kind: input, shape index: {}]   ;;  %s855_s2 = inlined_call_operand.hbm [shape: f32[1,128], index: 2, kind: input, shape index: {}]   ;;  %s856_s3 = inlined_call_operand.hbm [shape: f32[32,128], index: 3, kind: output, shape index: {}]  }
   0x1   :  { %9 = vsyncpa [#allocation7], 0 }
   0x2   :  { %10 = vsyncpa [#allocation5], 0  ;;  %s775_s12 = smov [#allocation6]   ;;  %s681_s16 = scalar_lea.hbm %s854_s1, 4096 }
   0x3   :  { %s28_s13 = sshll.u32 %s775_s12, 4  ;;  %p682_p0 = scmp.ne.s32.totalorder %s854_s1, %s681_s16  ;;  %s29_s13 = int_to_ptr.vmem [resolvable:$true] %s28_s13 }
   0x4   :  { %p685_p1 = scmp.lt.u32.totalorder %s681_s16, %s854_s1 }
   0x6   :  { %p687_p2 = pnand %p685_p1, %p682_p0 }
   0x8   :  { %690 = shalt.err (!%p687_p2)
}
   0x9   :  { %s691_s21 = scalar_lea.vmem %s29_s13, 4096  ;;  %p696_p4 = scmp.lt.s32.totalorder %s29_s13, %s29_s13 }
   0xa   :  { %p692_p3 = scmp.ne.s32.totalorder %s29_s13, %s691_s21  ;;  %p697_p5 = scmp.lt.s32.totalorder %s691_s21, %s691_s21 }
   0xc   :  { %p698_p6 = por %p697_p5, %p696_p4 }
   0xe   :  { %p699_p7 = pnand %p698_p6, %p692_p3 }
  0x10   :  { %702 = shalt.err (!%p699_p7)
}
  0x11   :  { %s776_s22 = smov 64   ;;  %s777_s23 = smov 4  }
  0x12   :  { %34 = dma.hbm_to_vmem [thread:$0]  %s854_s1, 4096, %s29_s13, [#allocation7], %s776_s22, %s776_s22, %s777_s23  }
  0x13   :  { %s778_s26 = smov [#allocation3]   ;;  %s703_s30 = scalar_lea.hbm %s853_s0, 1024 }
  0x14   :  { %s16_s27 = sshll.u32 %s778_s26, 4  ;;  %p704_p8 = scmp.ne.s32.totalorder %s853_s0, %s703_s30  ;;  %s17_s27 = int_to_ptr.vmem [resolvable:$true] %s16_s27 }
  0x15   :  { %p707_p9 = scmp.lt.u32.totalorder %s703_s30, %s853_s0 }
  0x17   :  { %p709_p10 = pnand %p707_p9, %p704_p8 }
  0x19   :  { %712 = shalt.err (!%p709_p10)
}
  0x1a   :  { %s713_s8 = scalar_lea.vmem %s17_s27, 1024  ;;  %p718_p12 = scmp.lt.s32.totalorder %s17_s27, %s17_s27 }
  0x1b   :  { %p714_p11 = scmp.ne.s32.totalorder %s17_s27, %s713_s8  ;;  %p719_p13 = scmp.lt.s32.totalorder %s713_s8, %s713_s8 }
  0x1d   :  { %p720_p0 = por %p719_p13, %p718_p12 }
  0x1f   :  { %p721_p1 = pnand %p720_p0, %p714_p11 }
  0x21   :  { %724 = shalt.err (!%p721_p1)
}
  0x22   :  { %s779_s1 = smov 256   ;;  %s780_s9 = smov 16  }
  0x23   :  { %22 = dma.hbm_to_vmem [thread:$0]  %s853_s0, 1024, %s17_s27, [#allocation4], %s779_s1, %s779_s1, %s780_s9  }
  0x24   :  { %s781_s12 = smov [#allocation8]   ;;  %s725_s16 = scalar_lea.hbm %s855_s2, 16 }
  0x25   :  { %s41_s13 = sshll.u32 %s781_s12, 4  ;;  %p726_p2 = scmp.ne.s32.totalorder %s855_s2, %s725_s16  ;;  %s42_s13 = int_to_ptr.vmem [resolvable:$true] %s41_s13 }
  0x26   :  { %p729_p3 = scmp.lt.u32.totalorder %s725_s16, %s855_s2 }
  0x28   :  { %p731_p4 = pnand %p729_p3, %p726_p2 }
  0x2a   :  { %734 = shalt.err (!%p731_p4)
}
  0x2b   :  { %s735_s21 = scalar_lea.vmem %s42_s13, 16  ;;  %s739_s0 = scalar_lea.vmem %s42_s13, 32 }
  0x2c   :  { %p736_p5 = scmp.ne.s32.totalorder %s42_s13, %s735_s21  ;;  %p740_p6 = scmp.lt.s32.totalorder %s42_s13, %s42_s13 }
  0x2d   :  { %p741_p7 = scmp.lt.s32.totalorder %s739_s0, %s735_s21 }
  0x2f   :  { %p742_p8 = por %p741_p7, %p740_p6 }
  0x31   :  { %p743_p9 = pnand %p742_p8, %p736_p5 }
  0x33   :  { %746 = shalt.err (!%p743_p9)
}
  0x34   :  { %44 = dma.hbm_to_vmem [thread:$0]  %s855_s2, 16, %s42_s13, [#allocation7]  }
  0x35   :  { %769 = dma.done.wait [#allocation4], 1024  }
  0x36   :  { %770 = vsyncadd [#allocation4], 4294966272 }
  0x37   :  { %771 = dma.done.wait [#allocation7], 4112  }
  0x38   :  { %772 = vsyncadd [#allocation7], 4294963184  ;;  %v649_v0 = vld [vmem:[#allocation6 + $0x40] sm:$0xff]   ;;  %v653_v4 = vld [vmem:[#allocation6 + $0x48] sm:$0xff]   ;;  %s782_s2 = smov [#allocation9]  }
  0x39   :  { %v650_v1 = vld [vmem:[#allocation6 + $0xc0] sm:$0xff]   ;;  %583 = vmatprep.subr.bf16.mxu0 %v649_v0  ;;  %v654_v5 = vld [vmem:[#allocation6 + $0xc8] sm:$0xff]   ;;  %v657_v8 = vld [vmem:[#allocation6 + $0x50] sm:$0xff]   ;;  %s529_s24 = sshll.u32 %s782_s2, 4  ;;  %s530_s24 = int_to_ptr.vmem [resolvable:$true] %s529_s24 }
  0x3a   :  { %v651_v2 = vld [vmem:[#allocation6] sm:$0xff]   ;;  %611 = vmatprep.subr.bf16.mxu1 %v650_v1  ;;  %v655_v6 = vld [vmem:[#allocation6 + $0x8] sm:$0xff]   ;;  %v658_v9 = vld [vmem:[#allocation6 + $0xd0] sm:$0xff]   ;;  %s747_s25 = scalar_lea.vmem %s530_s24, 512  ;;  %p752_p11 = scmp.lt.s32.totalorder %s530_s24, %s530_s24 }
  0x3b   :  { %v652_v3 = vld [vmem:[#allocation6 + $0x80] sm:$0xff]   ;;  %584 = vmatpush3.bf16.msra.mxu0 %v651_v2  ;;  %v656_v7 = vld [vmem:[#allocation6 + $0x88] sm:$0xff]   ;;  %v659_v10 = vld [vmem:[#allocation6 + $0x10] sm:$0xff]   ;;  %p748_p10 = scmp.ne.s32.totalorder %s530_s24, %s747_s25  ;;  %p753_p12 = scmp.lt.s32.totalorder %s747_s25, %s747_s25 }
  0x3c   :  { %612 = vmatpush3.bf16.msra.mxu1 %v652_v3  ;;  %585 = vmatprep.subr.bf16.mxu0 %v653_v4  ;;  %v660_v11 = vld [vmem:[#allocation6 + $0x90] sm:$0xff]   ;;  %v661_v12 = vld [vmem:[#allocation6 + $0x58] sm:$0xff]   ;;  %v665_v16 = vld [vmem:[#allocation6 + $0x60] sm:$0xff]  }
  0x3d   :  { %613 = vmatprep.subr.bf16.mxu1 %v654_v5  ;;  %v662_v13 = vld [vmem:[#allocation6 + $0xd8] sm:$0xff]   ;;  %v666_v17 = vld [vmem:[#allocation6 + $0xe0] sm:$0xff]   ;;  %v669_v20 = vld [vmem:[#allocation6 + $0x68] sm:$0xff]   ;;  %p754_p13 = por %p753_p12, %p752_p11 }
  0x3e   :  { %v663_v14 = vld [vmem:[#allocation6 + $0x18] sm:$0xff]   ;;  %v667_v18 = vld [vmem:[#allocation6 + $0x20] sm:$0xff]   ;;  %v670_v21 = vld [vmem:[#allocation6 + $0xe8] sm:$0xff]  }
  0x3f   :  { %586 = vmatpush3.bf16.msra.mxu0 %v655_v6  ;;  %v664_v15 = vld [vmem:[#allocation6 + $0x98] sm:$0xff]   ;;  %v668_v19 = vld [vmem:[#allocation6 + $0xa0] sm:$0xff]   ;;  %v671_v22 = vld [vmem:[#allocation6 + $0x28] sm:$0xff]   ;;  %p755_p0 = pnand %p754_p13, %p748_p10 }
  0x40   :  { %614 = vmatpush3.bf16.msra.mxu1 %v656_v7  ;;  %587 = vmatprep.subr.bf16.mxu0 %v657_v8  ;;  %v672_v23 = vld [vmem:[#allocation6 + $0xa8] sm:$0xff]   ;;  %v673_v24 = vld [vmem:[#allocation6 + $0x70] sm:$0xff]   ;;  %v677_v28 = vld [vmem:[#allocation6 + $0x78] sm:$0xff]  }
  0x41   :  { %615 = vmatprep.subr.bf16.mxu1 %v658_v9  ;;  %v674_v25 = vld [vmem:[#allocation6 + $0xf0] sm:$0xff]   ;;  %v678_v29 = vld [vmem:[#allocation6 + $0xf8] sm:$0xff]   ;;  %v64_v32 = vld [vmem:[#allocation3] sm:$0xff] }
  0x42   :  { %v675_v26 = vld [vmem:[#allocation6 + $0x30] sm:$0xff]   ;;  %v679_v30 = vld [vmem:[#allocation6 + $0x38] sm:$0xff]   ;;  %v65_v34 = vld [vmem:[#allocation3 + $0x8] sm:$0xff]  ;;  %vm72_vm0 = vcmp.ge.bf16.partialorder %v64_v32, 0  ;;  %v80_v35 = vmul.bf16 1045249613, %v64_v32 }
  0x43   :  { %588 = vmatpush3.bf16.msra.mxu0 %v659_v10  ;;  %v676_v27 = vld [vmem:[#allocation6 + $0xb0] sm:$0xff]   ;;  %v680_v31 = vld [vmem:[#allocation6 + $0xb8] sm:$0xff]   ;;  %vm73_vm2 = vcmp.ge.bf16.partialorder %v65_v34, 0  ;;  %v81_v38 = vmul.bf16 1045249613, %v65_v34  ;;  %v68_v39 = vld [vmem:[#allocation3 + $0x20] sm:$0xff] }
  0x44   :  { %616 = vmatpush3.bf16.msra.mxu1 %v660_v11  ;;  %589 = vmatprep.subr.bf16.mxu0 %v661_v12  ;;  %v66_v33 = vld [vmem:[#allocation3 + $0x10] sm:$0xff]  ;;  %v67_v37 = vld [vmem:[#allocation3 + $0x18] sm:$0xff]  ;;  %v88_v41 = vsel %vm72_vm0, %v64_v32, %v80_v35  ;;  %v69_v44 = vld [vmem:[#allocation3 + $0x28] sm:$0xff]  ;;  %vm76_vm4 = vcmp.ge.bf16.partialorder %v68_v39, 0  ;;  %v84_v50 = vmul.bf16 1045249613, %v68_v39 }
  0x45   :  { %617 = vmatprep.subr.bf16.mxu1 %v662_v13  ;;  %vm74_vm1 = vcmp.ge.bf16.partialorder %v66_v33, 0  ;;  %v82_v36 = vmul.bf16 1045249613, %v66_v33  ;;  %v70_v40 = vld [vmem:[#allocation3 + $0x30] sm:$0xff]  ;;  %vm75_vm3 = vcmp.ge.bf16.partialorder %v67_v37, 0  ;;  %v71_v45 = vld [vmem:[#allocation3 + $0x38] sm:$0xff]  ;;  %v89_v48 = vsel %vm73_vm2, %v65_v34, %v81_v38 }
  0x46   :  { %v83_v43 = vmul.bf16 1045249613, %v67_v37  ;;  %vm78_vm5 = vcmp.ge.bf16.partialorder %v70_v40, 0  ;;  %v86_v51 = vmul.bf16 1045249613, %v70_v40  ;;  %vm77_vm6 = vcmp.ge.bf16.partialorder %v69_v44, 0 }
  0x47   :  { %590 = vmatpush3.bf16.msra.mxu0 %v663_v14  ;;  %v90_v42 = vsel %vm74_vm1, %v66_v33, %v82_v36  ;;  %vm79_vm7 = vcmp.ge.bf16.partialorder %v71_v45, 0  ;;  %v92_v54 = vsel %vm76_vm4, %v68_v39, %v84_v50  ;;  %v85_v56 = vmul.bf16 1045249613, %v69_v44  ;;  %v582_v10 = vld [vmem:[#allocation8] ss:$0 sm:$0xff] }
  0x48   :  { %618 = vmatpush3.bf16.msra.mxu1 %v664_v15  ;;  %591 = vmatprep.subr.bf16.mxu0 %v665_v16  ;;  %v542_v46 = vcombine.low %v88_v41, %v90_v42  ;;  %v543_v47 = vcombine.high %v88_v41, %v90_v42  ;;  %v91_v49 = vsel %vm75_vm3, %v67_v37, %v83_v43  ;;  %v87_v57 = vmul.bf16 1045249613, %v71_v45 }
  0x49   :  { %619 = vmatprep.subr.bf16.mxu1 %v666_v17  ;;  %v544_v52 = vcombine.low %v89_v48, %v91_v49  ;;  %v545_v53 = vcombine.high %v89_v48, %v91_v49  ;;  %v94_v55 = vsel %vm78_vm5, %v70_v40, %v86_v51  ;;  %v93_v59 = vsel %vm77_vm6, %v69_v44, %v85_v56 }
  0x4a   :  { %428 = vmatprep.mubr.bf16.mxu0 %v543_v47  ;;  %v547_v58 = vcombine.high %v92_v54, %v94_v55  ;;  %v95_v60 = vsel %vm79_vm7, %v71_v45, %v87_v57  ;;  %v546_v62 = vcombine.low %v92_v54, %v94_v55 }
  0x4b   :  { %592 = vmatpush3.bf16.msra.mxu0 %v667_v18  ;;  %477 = vmatprep.mubr.bf16.mxu1 %v545_v53  ;;  %v549_v61 = vcombine.high %v93_v59, %v95_v60  ;;  %v548_v63 = vcombine.low %v93_v59, %v95_v60 }
  0x4c   :  { %620 = vmatpush3.bf16.msra.mxu1 %v668_v19  ;;  %593 = vmatprep.subr.bf16.mxu0 %v669_v20 }
  0x4d   :  { %621 = vmatprep.subr.bf16.mxu1 %v670_v21 }
  0x4f   :  { %594 = vmatpush3.bf16.msra.mxu0 %v671_v22 }
  0x50   :  { %622 = vmatpush3.bf16.msra.mxu1 %v672_v23  ;;  %595 = vmatprep.subr.bf16.mxu0 %v673_v24 }
  0x51   :  { %623 = vmatprep.subr.bf16.mxu1 %v674_v25 }
  0x53   :  { %596 = vmatpush3.bf16.msra.mxu0 %v675_v26 }
  0x54   :  { %624 = vmatpush3.bf16.msra.mxu1 %v676_v27  ;;  %597 = vmatprep.subr.bf16.mxu0 %v677_v28 }
  0x55   :  { %625 = vmatprep.subr.bf16.mxu1 %v678_v29 }
  0x57   :  { %598 = vmatpush3.bf16.msra.mxu0 %v679_v30 }
  0x58   :  { %626 = vmatpush3.bf16.msra.mxu1 %v680_v31 }
  0x5a   :  { %429 = vmatmul.mubr.bf16.vlgmr.msra.gmra.mrb[0].mxu0 %v542_v46 }
  0x5b   :  { %478 = vmatmul.mubr.bf16.vlgmr.msra.gmra.mrb[0].mxu1 %v544_v52  ;;  %436 = vmatprep.mubr.bf16.mxu0 %v547_v58 }
  0x5c   :  { %485 = vmatprep.mubr.bf16.mxu1 %v549_v61 }
  0x62   :  { %437 = vmatmul.mubr.bf16.gmra.mrb[4].mxu0 %v546_v62 }
  0x63   :  { %486 = vmatmul.mubr.bf16.gmra.mrb[4].mxu1 %v548_v63 }
 0x12d   :  { %v599_v0 = vpop.f32.mrb[0].mxu0 }
 0x12e   :  { %v600_v1 = vpop.f32.mrb[1].mxu0  ;;  %v627_v2 = vpop.f32.mrb[0].mxu1 }
 0x12f   :  { %v601_v3 = vadd.f32 %v600_v1, %v599_v0  ;;  %v602_v4 = vpop.f32.mrb[2].mxu0  ;;  %v628_v5 = vpop.f32.mrb[1].mxu1 }
 0x130   :  { %v603_v6 = vpop.f32.mrb[3].mxu0  ;;  %v629_v7 = vadd.f32 %v628_v5, %v627_v2  ;;  %v630_v8 = vpop.f32.mrb[2].mxu1 }
 0x131   :  { %v604_v9 = vadd.f32 %v603_v6, %v602_v4  ;;  %v631_v11 = vpop.f32.mrb[3].mxu1 }
 0x132   :  { %v480_v12 = vadd.f32 %v629_v7, %v601_v3  ;;  %v632_v13 = vadd.f32 %v631_v11, %v630_v8 }
 0x134   :  { %v516_v14 = vadd.f32 %v582_v10, %v480_v12  ;;  %v483_v15 = vadd.f32 %v632_v13, %v604_v9 }
 0x135   :  { %v605_v16 = vpop.f32.mrb[4].mxu0 }
 0x136   :  { %v606_v17 = vpop.f32.mrb[5].mxu0  ;;  %520 = vst [vmem:[#allocation9] sm:$0xff] %v516_v14  ;;  %v517_v18 = vadd.f32 %v582_v10, %v483_v15  ;;  %v633_v19 = vpop.f32.mrb[4].mxu1 }
 0x137   :  { %v607_v20 = vadd.f32 %v606_v17, %v605_v16  ;;  %v608_v21 = vpop.f32.mrb[6].mxu0  ;;  %v634_v22 = vpop.f32.mrb[5].mxu1 }
 0x138   :  { %v609_v23 = vpop.f32.mrb[7].mxu0  ;;  %521 = vst [vmem:[#allocation9 + $0x8] sm:$0xff] %v517_v18  ;;  %v635_v24 = vadd.f32 %v634_v22, %v633_v19  ;;  %v636_v25 = vpop.f32.mrb[6].mxu1 }
 0x139   :  { %v610_v26 = vadd.f32 %v609_v23, %v608_v21  ;;  %v637_v27 = vpop.f32.mrb[7].mxu1 }
 0x13a   :  { %v488_v28 = vadd.f32 %v635_v24, %v607_v20  ;;  %v638_v29 = vadd.f32 %v637_v27, %v636_v25 }
 0x13c   :  { %v518_v30 = vadd.f32 %v582_v10, %v488_v28  ;;  %v491_v31 = vadd.f32 %v638_v29, %v610_v26 }
 0x13e   :  { %522 = vst [vmem:[#allocation9 + $0x10] sm:$0xff] %v518_v30  ;;  %v519_v32 = vadd.f32 %v582_v10, %v491_v31 }
 0x140   :  { %523 = vst [vmem:[#allocation9 + $0x18] sm:$0xff] %v519_v32 }
 0x141   :  { %758 = shalt.err (!%p755_p0)
}
 0x142   :  { %s759_s28 = scalar_lea.hbm %s856_s3, 512 }
 0x143   :  { %p760_p1 = scmp.ne.s32.totalorder %s856_s3, %s759_s28  ;;  %p763_p2 = scmp.lt.u32.totalorder %s759_s28, %s856_s3 }
 0x145   :  { %p765_p3 = pnand %p763_p2, %p760_p1 }
 0x147   :  { %768 = shalt.err (!%p765_p3)
}
 0x148   :  { %s783_s6 = smov 128   ;;  %s784_s7 = smov 8  }
 0x149   :  { %535 = dma.vmem_to_hbm [thread:$0]  %s530_s24, 512, %s856_s3, [#allocation5], %s783_s6, %s783_s6, %s784_s7  }
 0x14a   :  { %773 = dma.done.wait [#allocation5], 512  }
 0x14b   :  { %774 = vsyncadd [#allocation5], 4294966784 }
 0x14c   :  { %539 = vsyncpa [#allocation4], 1 }
 0x14d   :  { %540 = vsyncpa [#allocation7], 1 }
 0x14e   :  { %541 = vsyncpa [#allocation5], 1 }

// kernel: _lambda_.33
= control target key start
LH: loop header
LB: loop body
LE: loop exit
PB: predicated region body
PF: predicated region fallthrough
CT: control target
= control target key end

     0   :  { %s80_s0 = inlined_call_operand.vmem [shape: f32[16,128], index: 0, kind: input, shape index: {}]   ;;  %s81_s1 = inlined_call_operand.vmem [shape: f32[1,128], index: 1, kind: input, shape index: {}]   ;;  %s82_s2 = inlined_call_operand.vmem [shape: f32[1,128], index: 2, kind: input, shape index: {}]   ;;  %s83_s3 = inlined_call_operand.vmem [shape: f32[16,128], index: 3, kind: output, shape index: {}]  }
   0x1   :  { %v14_v0 = vld [vmem:[%s80_s0] sm:$0xff]  ;;  %v15_v4 = vld [vmem:[%s80_s0 + $0x8] sm:$0xff] }
   0x2   :  { %v40_v1 = vld [vmem:[%s81_s1] ss:$0 sm:$0xff] }
   0x3   :  { %v41_v2 = vld [vmem:[%s82_s2] ss:$0 sm:$0xff]  ;;  %v23_v3 = vmul.f32 %v40_v1, %v14_v0  ;;  %v24_v5 = vmul.f32 %v40_v1, %v15_v4 }
   0x5   :  { %v32_v6 = vadd.f32 %v41_v2, %v23_v3  ;;  %v33_v7 = vadd.f32 %v41_v2, %v24_v5 }
   0x7   :  { %34 = vst [vmem:[%s83_s3] sm:$0xff] %v32_v6  ;;  %35 = vst [vmem:[%s83_s3 + $0x8] sm:$0xff] %v33_v7 }

// kernel: _lambda_.32
= control target key start
LH: loop header
LB: loop body
LE: loop exit
PB: predicated region body
PF: predicated region fallthrough
CT: control target
= control target key end

     0   :  { %v49_v0 = vmov 0.0   ;;  %s89_s1 = inlined_call_operand.vmem [shape: f32[1,128], index: 1, kind: output, shape index: {0}]   ;;  %s90_s2 = inlined_call_operand.vmem [shape: f32[1,128], index: 2, kind: output, shape index: {1}]   ;;  %s91_s0 = inlined_call_operand.vmem [shape: f32[16,128], index: 0, kind: input, shape index: {}]  }
   0x1   :  { %14 = vst [vmem:[%s89_s1] sm:$0x1] %v49_v0  ;;  %15 = vst [vmem:[%s90_s2] sm:$0x1] %v49_v0  ;;  %v16_v1 = vld [vmem:[%s91_s0] sm:$0xff]  ;;  %v17_v2 = vld [vmem:[%s91_s0 + $0x8] sm:$0xff] }
   0x2   :  { %v19_v3 = vadd.f32 %v17_v2, %v16_v1  ;;  %v29_v4 = vmul.f32 %v16_v1, %v16_v1  ;;  %v30_v5 = vmul.f32 %v17_v2, %v17_v2 }
   0x4   :  { %v20_v6 = vrot.slane %v19_v3, 4  ;;  %v31_v7 = vadd.f32 %v30_v5, %v29_v4 }
   0x6   :  { %v21_v8 = vadd.f32 %v20_v6, %v19_v3  ;;  %v32_v9 = vrot.slane %v31_v7, 4 }
   0x8   :  { %v22_v10 = vrot.slane %v21_v8, 2  ;;  %v33_v11 = vadd.f32 %v32_v9, %v31_v7  ;;  %v18_v16 = vld [vmem:[%s89_s1] sm:$0x1] }
   0x9   :  { %v28_v19 = vld [vmem:[%s90_s2] sm:$0x1] }
   0xa   :  { %v23_v12 = vadd.f32 %v22_v10, %v21_v8  ;;  %v34_v13 = vrot.slane %v33_v11, 2 }
   0xc   :  { %v24_v14 = vrot.slane %v23_v12, 1  ;;  %v35_v15 = vadd.f32 %v34_v13, %v33_v11 }
   0xe   :  { %v25_v17 = vadd.f32 %v24_v14, %v23_v12  ;;  %v36_v18 = vrot.slane %v35_v15, 1 }
  0x10   :  { %v26_v20 = vadd.f32 %v25_v17, %v18_v16  ;;  %v37_v21 = vadd.f32 %v36_v18, %v35_v15 }
  0x12   :  { %27 = vst [vmem:[%s89_s1] sm:$0x1] %v26_v20  ;;  %v38_v22 = vadd.f32 %v37_v21, %v28_v19 }
  0x14   :  { %39 = vst [vmem:[%s90_s2] sm:$0x1] %v38_v22 }

// kernel: tile.73
= control target key start
LH: loop header
LB: loop body
LE: loop exit
PB: predicated region body
PF: predicated region fallthrough
CT: control target
= control target key end

     0   :  { %s68_s0 = inlined_call_operand.<no memory space> [shape: f32[], index: 0, kind: input, shape index: {}]   ;;  %s69_s1 = inlined_call_operand.hbm [shape: f32[1,256], index: 1, kind: output, shape index: {}]  }
   0x1   :  { %v2_v0 = vstv %s68_s0 }
   0x2   :  { %3 = vsyncpa [#allocation1], 0  ;;  %4 = vst [vmem:[#allocation0] sm:$0x1] %v2_v0  ;;  %s42_s0 = smov [#allocation0]  }
   0x3   :  { %6 = vst [vmem:[#allocation0 + $0x1] sm:$0x1] %v2_v0  ;;  %s11_s8 = sshll.u32 %s42_s0, 4  ;;  %s12_s8 = int_to_ptr.vmem [resolvable:$true] %s11_s8 }
   0x4   :  { %s18_s9 = scalar_lea.vmem %s12_s8, 32  ;;  %p23_p1 = scmp.lt.s32.totalorder %s12_s8, %s12_s8 }
   0x5   :  { %p19_p0 = scmp.ne.s32.totalorder %s12_s8, %s18_s9  ;;  %p24_p2 = scmp.lt.s32.totalorder %s18_s9, %s18_s9 }
   0x7   :  { %p25_p3 = por %p24_p2, %p23_p1 }
   0x9   :  { %p26_p4 = pnand %p25_p3, %p19_p0 }
   0xb   :  { %29 = shalt.err (!%p26_p4)
}
   0xc   :  { %s30_s12 = scalar_lea.hbm %s69_s1, 32 }
   0xd   :  { %p31_p5 = scmp.ne.s32.totalorder %s69_s1, %s30_s12  ;;  %p34_p6 = scmp.lt.u32.totalorder %s30_s12, %s69_s1 }
   0xf   :  { %p36_p7 = pnand %p34_p6, %p31_p5 }
  0x11   :  { %39 = shalt.err (!%p36_p7)
}
  0x12   :  { %14 = dma.vmem_to_hbm [thread:$0]  %s12_s8, 32, %s69_s1, [#allocation1]  }
  0x13   :  { %40 = dma.done.wait [#allocation1], 32  }
  0x14   :  { %41 = vsyncadd [#allocation1], 4294967264 }
  0x15   :  { %16 = vsyncpa [#allocation1], 1 }

// kernel: _lambda_.34
= control target key start
LH: loop header
LB: loop body
LE: loop exit
PB: predicated region body
PF: predicated region fallthrough
CT: control target
= control target key end

     0   :  { %8 = vsyncpa [#allocation4], 0  ;;  %s1206_s0 = inlined_call_operand.hbm [shape: bf16[8,1024], index: 0, kind: input, shape index: {}]   ;;  %s1207_s1 = inlined_call_operand.hbm [shape: bf16[1024,128], index: 1, kind: input, shape index: {}]   ;;  %s1208_s2 = inlined_call_operand.hbm [shape: f32[1,128], index: 2, kind: input, shape index: {}]   ;;  %s1209_s3 = inlined_call_operand.hbm [shape: f32[8,128], index: 3, kind: output, shape index: {}]  }
   0x1   :  { %9 = vsyncpa [#allocation7], 0 }
   0x2   :  { %10 = vsyncpa [#allocation5], 0  ;;  %s1132_s12 = smov [#allocation6]   ;;  %s1038_s16 = scalar_lea.hbm %s1207_s1, 8192 }
   0x3   :  { %s26_s13 = sshll.u32 %s1132_s12, 4  ;;  %p1039_p0 = scmp.ne.s32.totalorder %s1207_s1, %s1038_s16  ;;  %s27_s13 = int_to_ptr.vmem [resolvable:$true] %s26_s13 }
   0x4   :  { %p1042_p1 = scmp.lt.u32.totalorder %s1038_s16, %s1207_s1 }
   0x6   :  { %p1044_p2 = pnand %p1042_p1, %p1039_p0 }
   0x8   :  { %1047 = shalt.err (!%p1044_p2)
}
   0x9   :  { %s1048_s21 = scalar_lea.vmem %s27_s13, 8192  ;;  %p1053_p4 = scmp.lt.s32.totalorder %s27_s13, %s27_s13 }
   0xa   :  { %p1049_p3 = scmp.ne.s32.totalorder %s27_s13, %s1048_s21  ;;  %p1054_p5 = scmp.lt.s32.totalorder %s1048_s21, %s1048_s21 }
   0xc   :  { %p1055_p6 = por %p1054_p5, %p1053_p4 }
   0xe   :  { %p1056_p7 = pnand %p1055_p6, %p1049_p3 }
  0x10   :  { %1059 = shalt.err (!%p1056_p7)
}
  0x11   :  { %s1133_s22 = smov 64   ;;  %s1134_s23 = smov 4  }
  0x12   :  { %32 = dma.hbm_to_vmem [thread:$0]  %s1207_s1, 8192, %s27_s13, [#allocation7], %s1133_s22, %s1133_s22, %s1134_s23  }
  0x13   :  { %s1135_s26 = smov [#allocation3]   ;;  %s1136_s28 = smov [#allocation8]  }
  0x14   :  { %s17_s27 = sshll.u32 %s1135_s26, 4  ;;  %s39_s29 = sshll.u32 %s1136_s28, 4  ;;  %s18_s27 = int_to_ptr.vmem [resolvable:$true] %s17_s27  ;;  %s40_s29 = int_to_ptr.vmem [resolvable:$true] %s39_s29 }
  0x15   :  { %s1060_s5 = scalar_lea.hbm %s1206_s0, 512 }
  0x16   :  { %p1061_p8 = scmp.ne.s32.totalorder %s1206_s0, %s1060_s5  ;;  %p1064_p9 = scmp.lt.u32.totalorder %s1060_s5, %s1206_s0 }
  0x18   :  { %p1066_p10 = pnand %p1064_p9, %p1061_p8 }
  0x1a   :  { %1069 = shalt.err (!%p1066_p10)
}
  0x1b   :  { %s1070_s1 = scalar_lea.vmem %s18_s27, 512  ;;  %p1075_p12 = scmp.lt.s32.totalorder %s18_s27, %s18_s27 }
  0x1c   :  { %p1071_p11 = scmp.ne.s32.totalorder %s18_s27, %s1070_s1  ;;  %p1076_p13 = scmp.lt.s32.totalorder %s1070_s1, %s1070_s1 }
  0x1e   :  { %p1077_p0 = por %p1076_p13, %p1075_p12 }
  0x20   :  { %p1078_p1 = pnand %p1077_p0, %p1071_p11 }
  0x22   :  { %1081 = shalt.err (!%p1078_p1)
}
  0x23   :  { %20 = dma.hbm_to_vmem [thread:$0]  %s1206_s0, 512, %s18_s27, [#allocation4]  }
  0x24   :  { %s1082_s14 = scalar_lea.hbm %s1208_s2, 16 }
  0x25   :  { %p1083_p2 = scmp.ne.s32.totalorder %s1208_s2, %s1082_s14  ;;  %p1086_p3 = scmp.lt.u32.totalorder %s1082_s14, %s1208_s2 }
  0x27   :  { %p1088_p4 = pnand %p1086_p3, %p1083_p2 }
  0x29   :  { %1091 = shalt.err (!%p1088_p4)
}
  0x2a   :  { %s1092_s19 = scalar_lea.vmem %s40_s29, 16  ;;  %s1096_s20 = scalar_lea.vmem %s40_s29, 32 }
  0x2b   :  { %p1093_p5 = scmp.ne.s32.totalorder %s40_s29, %s1092_s19  ;;  %p1097_p6 = scmp.lt.s32.totalorder %s40_s29, %s40_s29 }
  0x2c   :  { %p1098_p7 = scmp.lt.s32.totalorder %s1096_s20, %s1092_s19 }
  0x2e   :  { %p1099_p8 = por %p1098_p7, %p1097_p6 }
  0x30   :  { %p1100_p9 = pnand %p1099_p8, %p1093_p5 }
  0x32   :  { %1103 = shalt.err (!%p1100_p9)
}
  0x33   :  { %42 = dma.hbm_to_vmem [thread:$0]  %s1208_s2, 16, %s40_s29, [#allocation7]  }
  0x34   :  { %1126 = dma.done.wait [#allocation4], 512  }
  0x35   :  { %1127 = vsyncadd [#allocation4], 4294966784 }
  0x36   :  { %1128 = dma.done.wait [#allocation7], 8208  }
  0x37   :  { %1129 = vsyncadd [#allocation7], 4294959088  ;;  %v974_v0 = vld [vmem:[#allocation6 + $0x40] sm:$0xff]   ;;  %v978_v4 = vld [vmem:[#allocation6 + $0x48] sm:$0xff]   ;;  %s1137_s2 = smov [#allocation9]  }
  0x38   :  { %v975_v1 = vld [vmem:[#allocation6 + $0xc0] sm:$0xff]   ;;  %880 = vmatprep.subr.bf16.mxu0 %v974_v0  ;;  %v979_v5 = vld [vmem:[#allocation6 + $0xc8] sm:$0xff]   ;;  %v982_v8 = vld [vmem:[#allocation6 + $0x50] sm:$0xff]   ;;  %s797_s22 = sshll.u32 %s1137_s2, 4  ;;  %s798_s22 = int_to_ptr.vmem [resolvable:$true] %s797_s22 }
  0x39   :  { %v976_v2 = vld [vmem:[#allocation6] sm:$0xff]   ;;  %902 = vmatprep.subr.bf16.mxu1 %v975_v1  ;;  %v980_v6 = vld [vmem:[#allocation6 + $0x8] sm:$0xff]   ;;  %v983_v9 = vld [vmem:[#allocation6 + $0xd0] sm:$0xff]   ;;  %s1104_s23 = scalar_lea.vmem %s798_s22, 128  ;;  %p1109_p11 = scmp.lt.s32.totalorder %s798_s22, %s798_s22 }
  0x3a   :  { %v977_v3 = vld [vmem:[#allocation6 + $0x80] sm:$0xff]   ;;  %881 = vmatpush3.bf16.msra.mxu0 %v976_v2  ;;  %v981_v7 = vld [vmem:[#allocation6 + $0x88] sm:$0xff]   ;;  %v984_v10 = vld [vmem:[#allocation6 + $0x10] sm:$0xff]   ;;  %p1105_p10 = scmp.ne.s32.totalorder %s798_s22, %s1104_s23  ;;  %p1110_p12 = scmp.lt.s32.totalorder %s1104_s23, %s1104_s23 }
  0x3b   :  { %903 = vmatpush3.bf16.msra.mxu1 %v977_v3  ;;  %882 = vmatprep.subr.bf16.mxu0 %v978_v4  ;;  %v985_v11 = vld [vmem:[#allocation6 + $0x90] sm:$0xff]   ;;  %v986_v12 = vld [vmem:[#allocation6 + $0x58] sm:$0xff]   ;;  %v990_v16 = vld [vmem:[#allocation6 + $0x60] sm:$0xff]  }
  0x3c   :  { %904 = vmatprep.subr.bf16.mxu1 %v979_v5  ;;  %v987_v13 = vld [vmem:[#allocation6 + $0xd8] sm:$0xff]   ;;  %v991_v17 = vld [vmem:[#allocation6 + $0xe0] sm:$0xff]   ;;  %v994_v20 = vld [vmem:[#allocation6 + $0x68] sm:$0xff]   ;;  %p1111_p13 = por %p1110_p12, %p1109_p11 }
  0x3d   :  { %v988_v14 = vld [vmem:[#allocation6 + $0x18] sm:$0xff]   ;;  %v992_v18 = vld [vmem:[#allocation6 + $0x20] sm:$0xff]   ;;  %v995_v21 = vld [vmem:[#allocation6 + $0xe8] sm:$0xff]  }
  0x3e   :  { %883 = vmatpush3.bf16.msra.mxu0 %v980_v6  ;;  %v989_v15 = vld [vmem:[#allocation6 + $0x98] sm:$0xff]   ;;  %v993_v19 = vld [vmem:[#allocation6 + $0xa0] sm:$0xff]   ;;  %v996_v22 = vld [vmem:[#allocation6 + $0x28] sm:$0xff]   ;;  %p1112_p0 = pnand %p1111_p13, %p1105_p10 }
  0x3f   :  { %905 = vmatpush3.bf16.msra.mxu1 %v981_v7  ;;  %884 = vmatprep.subr.bf16.mxu0 %v982_v8  ;;  %v997_v23 = vld [vmem:[#allocation6 + $0xa8] sm:$0xff]   ;;  %v998_v24 = vld [vmem:[#allocation6 + $0x70] sm:$0xff]   ;;  %v1002_v28 = vld [vmem:[#allocation6 + $0x78] sm:$0xff]  }
  0x40   :  { %906 = vmatprep.subr.bf16.mxu1 %v983_v9  ;;  %v999_v25 = vld [vmem:[#allocation6 + $0xf0] sm:$0xff]   ;;  %v1003_v29 = vld [vmem:[#allocation6 + $0xf8] sm:$0xff]   ;;  %v59_v32 = vld [vmem:[#allocation3] sm:$0xff] }
  0x41   :  { %v1000_v26 = vld [vmem:[#allocation6 + $0x30] sm:$0xff]   ;;  %v1004_v30 = vld [vmem:[#allocation6 + $0x38] sm:$0xff]   ;;  %v60_v33 = vld [vmem:[#allocation3 + $0x8] sm:$0xff]  ;;  %vm63_vm0 = vcmp.ge.bf16.partialorder %v59_v32, 0  ;;  %v67_v34 = vmul.bf16 1045249613, %v59_v32 }
  0x42   :  { %885 = vmatpush3.bf16.msra.mxu0 %v984_v10  ;;  %v1001_v27 = vld [vmem:[#allocation6 + $0xb0] sm:$0xff]   ;;  %v1005_v31 = vld [vmem:[#allocation6 + $0xb8] sm:$0xff]   ;;  %vm64_vm1 = vcmp.ge.bf16.partialorder %v60_v33, 0  ;;  %v68_v35 = vmul.bf16 1045249613, %v60_v33  ;;  %v1006_v36 = vld [vmem:[#allocation6 + $0x140] sm:$0xff]  }
  0x43   :  { %907 = vmatpush3.bf16.msra.mxu1 %v985_v11  ;;  %886 = vmatprep.subr.bf16.mxu0 %v986_v12  ;;  %v71_v37 = vsel %vm63_vm0, %v59_v32, %v67_v34  ;;  %v1007_v39 = vld [vmem:[#allocation6 + $0x1c0] sm:$0xff]   ;;  %v1010_v46 = vld [vmem:[#allocation6 + $0x148] sm:$0xff]   ;;  %v1014_v50 = vld [vmem:[#allocation6 + $0x150] sm:$0xff]  }
  0x44   :  { %908 = vmatprep.subr.bf16.mxu1 %v987_v13  ;;  %v72_v38 = vsel %vm64_vm1, %v60_v33, %v68_v35  ;;  %v807_v40 = vcombine.low %v71_v37, %v71_v37  ;;  %v808_v41 = vcombine.high %v71_v37, %v71_v37  ;;  %v1008_v44 = vld [vmem:[#allocation6 + $0x100] sm:$0xff]   ;;  %v1011_v47 = vld [vmem:[#allocation6 + $0x1c8] sm:$0xff]   ;;  %v1015_v51 = vld [vmem:[#allocation6 + $0x1d0] sm:$0xff]  }
  0x45   :  { %v809_v42 = vcombine.low %v72_v38, %v72_v38  ;;  %v810_v43 = vcombine.high %v72_v38, %v72_v38  ;;  %v1009_v45 = vld [vmem:[#allocation6 + $0x180] sm:$0xff]   ;;  %v1012_v48 = vld [vmem:[#allocation6 + $0x108] sm:$0xff]   ;;  %v1016_v52 = vld [vmem:[#allocation6 + $0x110] sm:$0xff]  }
  0x46   :  { %887 = vmatpush3.bf16.msra.mxu0 %v988_v14  ;;  %648 = vmatprep.mubr.bf16.mxu0 %v808_v41  ;;  %v1013_v49 = vld [vmem:[#allocation6 + $0x188] sm:$0xff]   ;;  %v1017_v53 = vld [vmem:[#allocation6 + $0x190] sm:$0xff]   ;;  %v1018_v54 = vld [vmem:[#allocation6 + $0x158] sm:$0xff]  }
  0x47   :  { %909 = vmatpush3.bf16.msra.mxu1 %v989_v15  ;;  %888 = vmatprep.subr.bf16.mxu0 %v990_v16  ;;  %v1019_v55 = vld [vmem:[#allocation6 + $0x1d8] sm:$0xff]   ;;  %v1022_v58 = vld [vmem:[#allocation6 + $0x160] sm:$0xff]   ;;  %v1026_v62 = vld [vmem:[#allocation6 + $0x168] sm:$0xff]  }
  0x48   :  { %910 = vmatprep.subr.bf16.mxu1 %v991_v17  ;;  %688 = vmatprep.mubr.bf16.mxu1 %v810_v43  ;;  %v1020_v56 = vld [vmem:[#allocation6 + $0x118] sm:$0xff]   ;;  %v1023_v59 = vld [vmem:[#allocation6 + $0x1e0] sm:$0xff]   ;;  %v1027_v63 = vld [vmem:[#allocation6 + $0x1e8] sm:$0xff]  }
  0x49   :  { %v1021_v57 = vld [vmem:[#allocation6 + $0x198] sm:$0xff]   ;;  %v1024_v60 = vld [vmem:[#allocation6 + $0x120] sm:$0xff]   ;;  %v1028_v0 = vld [vmem:[#allocation6 + $0x128] sm:$0xff]  }
  0x4a   :  { %889 = vmatpush3.bf16.msra.mxu0 %v992_v18  ;;  %v1025_v61 = vld [vmem:[#allocation6 + $0x1a0] sm:$0xff]   ;;  %v1029_v1 = vld [vmem:[#allocation6 + $0x1a8] sm:$0xff]   ;;  %v1030_v2 = vld [vmem:[#allocation6 + $0x170] sm:$0xff]  }
  0x4b   :  { %911 = vmatpush3.bf16.msra.mxu1 %v993_v19  ;;  %890 = vmatprep.subr.bf16.mxu0 %v994_v20  ;;  %v1031_v3 = vld [vmem:[#allocation6 + $0x1f0] sm:$0xff]   ;;  %v1034_v6 = vld [vmem:[#allocation6 + $0x178] sm:$0xff]  }
  0x4c   :  { %912 = vmatprep.subr.bf16.mxu1 %v995_v21  ;;  %v1032_v4 = vld [vmem:[#allocation6 + $0x130] sm:$0xff]   ;;  %v1035_v7 = vld [vmem:[#allocation6 + $0x1f8] sm:$0xff]  }
  0x4d   :  { %v1033_v5 = vld [vmem:[#allocation6 + $0x1b0] sm:$0xff]   ;;  %v1036_v8 = vld [vmem:[#allocation6 + $0x138] sm:$0xff]  }
  0x4e   :  { %891 = vmatpush3.bf16.msra.mxu0 %v996_v22  ;;  %v1037_v9 = vld [vmem:[#allocation6 + $0x1b8] sm:$0xff]   ;;  %v61_v10 = vld [vmem:[#allocation3 + $0x10] sm:$0xff] }
  0x4f   :  { %913 = vmatpush3.bf16.msra.mxu1 %v997_v23  ;;  %892 = vmatprep.subr.bf16.mxu0 %v998_v24  ;;  %vm65_vm2 = vcmp.ge.bf16.partialorder %v61_v10, 0  ;;  %v69_v11 = vmul.bf16 1045249613, %v61_v10  ;;  %v62_v12 = vld [vmem:[#allocation3 + $0x18] sm:$0xff] }
  0x50   :  { %914 = vmatprep.subr.bf16.mxu1 %v999_v25  ;;  %vm66_vm3 = vcmp.ge.bf16.partialorder %v62_v12, 0  ;;  %v70_v13 = vmul.bf16 1045249613, %v62_v12 }
  0x51   :  { %v73_v14 = vsel %vm65_vm2, %v61_v10, %v69_v11 }
  0x52   :  { %893 = vmatpush3.bf16.msra.mxu0 %v1000_v26  ;;  %v811_v15 = vcombine.low %v73_v14, %v73_v14  ;;  %v812_v16 = vcombine.high %v73_v14, %v73_v14  ;;  %v74_v17 = vsel %vm66_vm3, %v62_v12, %v70_v13 }
  0x53   :  { %915 = vmatpush3.bf16.msra.mxu1 %v1001_v27  ;;  %894 = vmatprep.subr.bf16.mxu0 %v1002_v28  ;;  %v813_v18 = vcombine.low %v74_v17, %v74_v17  ;;  %v814_v19 = vcombine.high %v74_v17, %v74_v17 }
  0x54   :  { %916 = vmatprep.subr.bf16.mxu1 %v1003_v29 }
  0x56   :  { %895 = vmatpush3.bf16.msra.mxu0 %v1004_v30 }
  0x57   :  { %917 = vmatpush3.bf16.msra.mxu1 %v1005_v31  ;;  %924 = vmatprep.subr.bf16.mxu0 %v1006_v36 }
  0x58   :  { %946 = vmatprep.subr.bf16.mxu1 %v1007_v39 }
  0x59   :  { %649 = vmatmul.mubr.bf16.vlgmr.msra.gmra.mrb[0].mxu0 %v807_v40 }
  0x5a   :  { %689 = vmatmul.mubr.bf16.vlgmr.msra.gmra.mrb[0].mxu1 %v809_v42  ;;  %925 = vmatpush3.bf16.msra.mxu0 %v1008_v44  ;;  %v879_v42 = vld [vmem:[#allocation8] ss:$0 sm:$0xff] }
  0x5b   :  { %947 = vmatpush3.bf16.msra.mxu1 %v1009_v45  ;;  %926 = vmatprep.subr.bf16.mxu0 %v1010_v46 }
  0x5c   :  { %948 = vmatprep.subr.bf16.mxu1 %v1011_v47  ;;  %728 = vmatprep.mubr.bf16.mxu0 %v812_v16 }
  0x5d   :  { %768 = vmatprep.mubr.bf16.mxu1 %v814_v19 }
  0x5e   :  { %927 = vmatpush3.bf16.msra.mxu0 %v1012_v48 }
  0x5f   :  { %949 = vmatpush3.bf16.msra.mxu1 %v1013_v49  ;;  %928 = vmatprep.subr.bf16.mxu0 %v1014_v50 }
  0x60   :  { %950 = vmatprep.subr.bf16.mxu1 %v1015_v51 }
  0x62   :  { %929 = vmatpush3.bf16.msra.mxu0 %v1016_v52 }
  0x63   :  { %951 = vmatpush3.bf16.msra.mxu1 %v1017_v53  ;;  %930 = vmatprep.subr.bf16.mxu0 %v1018_v54 }
  0x64   :  { %952 = vmatprep.subr.bf16.mxu1 %v1019_v55 }
  0x66   :  { %931 = vmatpush3.bf16.msra.mxu0 %v1020_v56 }
  0x67   :  { %953 = vmatpush3.bf16.msra.mxu1 %v1021_v57  ;;  %932 = vmatprep.subr.bf16.mxu0 %v1022_v58 }
  0x68   :  { %954 = vmatprep.subr.bf16.mxu1 %v1023_v59 }
  0x6a   :  { %933 = vmatpush3.bf16.msra.mxu0 %v1024_v60 }
  0x6b   :  { %955 = vmatpush3.bf16.msra.mxu1 %v1025_v61  ;;  %934 = vmatprep.subr.bf16.mxu0 %v1026_v62 }
  0x6c   :  { %956 = vmatprep.subr.bf16.mxu1 %v1027_v63 }
  0x6e   :  { %935 = vmatpush3.bf16.msra.mxu0 %v1028_v0 }
  0x6f   :  { %957 = vmatpush3.bf16.msra.mxu1 %v1029_v1  ;;  %936 = vmatprep.subr.bf16.mxu0 %v1030_v2 }
  0x70   :  { %958 = vmatprep.subr.bf16.mxu1 %v1031_v3 }
  0x72   :  { %937 = vmatpush3.bf16.msra.mxu0 %v1032_v4 }
  0x73   :  { %959 = vmatpush3.bf16.msra.mxu1 %v1033_v5  ;;  %938 = vmatprep.subr.bf16.mxu0 %v1034_v6 }
  0x74   :  { %960 = vmatprep.subr.bf16.mxu1 %v1035_v7 }
  0x76   :  { %939 = vmatpush3.bf16.msra.mxu0 %v1036_v8 }
  0x77   :  { %961 = vmatpush3.bf16.msra.mxu1 %v1037_v9 }
  0x79   :  { %729 = vmatmul.mubr.bf16.vlgmr.msra.gmra.mrb[4].mxu0 %v811_v15 }
  0x7a   :  { %769 = vmatmul.mubr.bf16.vlgmr.msra.gmra.mrb[4].mxu1 %v813_v18 }
 0x12c   :  { %v896_v20 = vpop.f32.mrb[0].mxu0 }
 0x12d   :  { %v918_v21 = vpop.f32.mrb[0].mxu1  ;;  %v897_v22 = vpop.f32.mrb[1].mxu0 }
 0x12e   :  { %v919_v23 = vpop.f32.mrb[1].mxu1  ;;  %v898_v24 = vadd.f32 %v897_v22, %v896_v20  ;;  %v899_v26 = vpop.f32.mrb[2].mxu0 }
 0x12f   :  { %v920_v25 = vadd.f32 %v919_v23, %v918_v21  ;;  %v921_v27 = vpop.f32.mrb[2].mxu1  ;;  %v900_v28 = vpop.f32.mrb[3].mxu0 }
 0x130   :  { %v922_v29 = vpop.f32.mrb[3].mxu1 }
 0x131   :  { %v691_v30 = vadd.f32 %v920_v25, %v898_v24 }
 0x14c   :  { %v940_v31 = vpop.f32.mrb[4].mxu0 }
 0x14d   :  { %v962_v32 = vpop.f32.mrb[4].mxu1  ;;  %v941_v33 = vpop.f32.mrb[5].mxu0 }
 0x14e   :  { %v942_v34 = vadd.f32 %v941_v33, %v940_v31  ;;  %v963_v35 = vpop.f32.mrb[5].mxu1  ;;  %v943_v36 = vpop.f32.mrb[6].mxu0 }
 0x14f   :  { %v964_v37 = vadd.f32 %v963_v35, %v962_v32  ;;  %v965_v38 = vpop.f32.mrb[6].mxu1  ;;  %v944_v39 = vpop.f32.mrb[7].mxu0 }
 0x150   :  { %v731_v40 = vadd.f32 %v942_v34, %v691_v30  ;;  %v966_v41 = vpop.f32.mrb[7].mxu1 }
 0x152   :  { %v771_v43 = vadd.f32 %v964_v37, %v731_v40 }
 0x154   :  { %v789_v44 = vadd.f32 %v879_v42, %v771_v43 }
 0x156   :  { %790 = vst [vmem:[#allocation9] sm:$0xff] %v789_v44 }
 0x157   :  { %1115 = shalt.err (!%p1112_p0)
}
 0x158   :  { %s1116_s26 = scalar_lea.hbm %s1209_s3, 128 }
 0x159   :  { %p1117_p1 = scmp.ne.s32.totalorder %s1209_s3, %s1116_s26  ;;  %p1120_p2 = scmp.lt.u32.totalorder %s1116_s26, %s1209_s3 }
 0x15b   :  { %p1122_p3 = pnand %p1120_p2, %p1117_p1 }
 0x15d   :  { %1125 = shalt.err (!%p1122_p3)
}
 0x15e   :  { %800 = dma.vmem_to_hbm [thread:$0]  %s798_s22, 128, %s1209_s3, [#allocation5]  }
 0x15f   :  { %1130 = dma.done.wait [#allocation5], 128  }
 0x160   :  { %1131 = vsyncadd [#allocation5], 4294967168 }
 0x161   :  { %804 = vsyncpa [#allocation4], 1 }
 0x162   :  { %805 = vsyncpa [#allocation7], 1 }
 0x163   :  { %806 = vsyncpa [#allocation5], 1 }

// kernel: tile.72
= control target key start
LH: loop header
LB: loop body
LE: loop exit
PB: predicated region body
PF: predicated region fallthrough
CT: control target
= control target key end

     0   :  { %s66_s0 = inlined_call_operand.<no memory space> [shape: f32[], index: 0, kind: input, shape index: {}]   ;;  %s67_s1 = inlined_call_operand.hbm [shape: f32[1,128], index: 1, kind: output, shape index: {}]  }
   0x1   :  { %v2_v0 = vstv %s66_s0 }
   0x2   :  { %3 = vsyncpa [#allocation1], 0  ;;  %4 = vst [vmem:[#allocation0] sm:$0x1] %v2_v0  ;;  %s40_s0 = smov [#allocation0]  }
   0x3   :  { %s9_s8 = sshll.u32 %s40_s0, 4  ;;  %s10_s8 = int_to_ptr.vmem [resolvable:$true] %s9_s8 }
   0x4   :  { %s16_s9 = scalar_lea.vmem %s10_s8, 16  ;;  %s20_s10 = scalar_lea.vmem %s10_s8, 32 }
   0x5   :  { %p17_p0 = scmp.ne.s32.totalorder %s10_s8, %s16_s9  ;;  %p21_p1 = scmp.lt.s32.totalorder %s10_s8, %s10_s8 }
   0x6   :  { %p22_p2 = scmp.lt.s32.totalorder %s20_s10, %s16_s9 }
   0x8   :  { %p23_p3 = por %p22_p2, %p21_p1 }
   0xa   :  { %p24_p4 = pnand %p23_p3, %p17_p0 }
   0xc   :  { %27 = shalt.err (!%p24_p4)
}
   0xd   :  { %s28_s13 = scalar_lea.hbm %s67_s1, 16 }
   0xe   :  { %p29_p5 = scmp.ne.s32.totalorder %s67_s1, %s28_s13  ;;  %p32_p6 = scmp.lt.u32.totalorder %s28_s13, %s67_s1 }
  0x10   :  { %p34_p7 = pnand %p32_p6, %p29_p5 }
  0x12   :  { %37 = shalt.err (!%p34_p7)
}
  0x13   :  { %12 = dma.vmem_to_hbm [thread:$0]  %s10_s8, 16, %s67_s1, [#allocation1]  }
  0x14   :  { %38 = dma.done.wait [#allocation1], 16  }
  0x15   :  { %39 = vsyncadd [#allocation1], 4294967280 }
  0x16   :  { %14 = vsyncpa [#allocation1], 1 }

// kernel: _lambda_.35
= control target key start
LH: loop header
LB: loop body
LE: loop exit
PB: predicated region body
PF: predicated region fallthrough
CT: control target
= control target key end

     0   :  { %8 = vsyncpa [#allocation4], 0  ;;  %s1050_s0 = inlined_call_operand.hbm [shape: bf16[8,576], index: 0, kind: input, shape index: {}]   ;;  %s1051_s1 = inlined_call_operand.hbm [shape: bf16[576,256], index: 1, kind: input, shape index: {}]   ;;  %s1052_s2 = inlined_call_operand.hbm [shape: f32[1,256], index: 2, kind: input, shape index: {}]   ;;  %s1053_s3 = inlined_call_operand.hbm [shape: f32[8,256], index: 3, kind: output, shape index: {}]  }
   0x1   :  { %9 = vsyncpa [#allocation7], 0 }
   0x2   :  { %10 = vsyncpa [#allocation5], 0  ;;  %s971_s12 = smov [#allocation6]   ;;  %s877_s16 = scalar_lea.hbm %s1051_s1, 9216 }
   0x3   :  { %s26_s13 = sshll.u32 %s971_s12, 4  ;;  %p878_p0 = scmp.ne.s32.totalorder %s1051_s1, %s877_s16  ;;  %s27_s13 = int_to_ptr.vmem [resolvable:$true] %s26_s13 }
   0x4   :  { %p881_p1 = scmp.lt.u32.totalorder %s877_s16, %s1051_s1 }
   0x6   :  { %p883_p2 = pnand %p881_p1, %p878_p0 }
   0x8   :  { %886 = shalt.err (!%p883_p2)
}
   0x9   :  { %s887_s21 = scalar_lea.vmem %s27_s13, 9216  ;;  %p892_p4 = scmp.lt.s32.totalorder %s27_s13, %s27_s13 }
   0xa   :  { %p888_p3 = scmp.ne.s32.totalorder %s27_s13, %s887_s21  ;;  %p893_p5 = scmp.lt.s32.totalorder %s887_s21, %s887_s21 }
   0xc   :  { %p894_p6 = por %p893_p5, %p892_p4 }
   0xe   :  { %p895_p7 = pnand %p894_p6, %p888_p3 }
  0x10   :  { %898 = shalt.err (!%p895_p7)
}
  0x11   :  { %s972_s22 = smov 128   ;;  %s973_s23 = smov 8  }
  0x12   :  { %32 = dma.hbm_to_vmem [thread:$0]  %s1051_s1, 9216, %s27_s13, [#allocation7], %s972_s22, %s972_s22, %s973_s23  }
  0x13   :  { %s974_s26 = smov [#allocation3]   ;;  %s975_s28 = smov [#allocation8]  }
  0x14   :  { %s17_s27 = sshll.u32 %s974_s26, 4  ;;  %s39_s29 = sshll.u32 %s975_s28, 4  ;;  %s18_s27 = int_to_ptr.vmem [resolvable:$true] %s17_s27  ;;  %s40_s29 = int_to_ptr.vmem [resolvable:$true] %s39_s29 }
  0x15   :  { %s899_s5 = scalar_lea.hbm %s1050_s0, 320 }
  0x16   :  { %p900_p8 = scmp.ne.s32.totalorder %s1050_s0, %s899_s5  ;;  %p903_p9 = scmp.lt.u32.totalorder %s899_s5, %s1050_s0 }
  0x18   :  { %p905_p10 = pnand %p903_p9, %p900_p8 }
  0x1a   :  { %908 = shalt.err (!%p905_p10)
}
  0x1b   :  { %s909_s1 = scalar_lea.vmem %s18_s27, 320  ;;  %p914_p12 = scmp.lt.s32.totalorder %s18_s27, %s18_s27 }
  0x1c   :  { %p910_p11 = scmp.ne.s32.totalorder %s18_s27, %s909_s1  ;;  %p915_p13 = scmp.lt.s32.totalorder %s909_s1, %s909_s1 }
  0x1e   :  { %p916_p0 = por %p915_p13, %p914_p12 }
  0x20   :  { %p917_p1 = pnand %p916_p0, %p910_p11 }
  0x22   :  { %920 = shalt.err (!%p917_p1)
}
  0x23   :  { %20 = dma.hbm_to_vmem [thread:$0]  %s1050_s0, 320, %s18_s27, [#allocation4]  }
  0x24   :  { %s921_s14 = scalar_lea.hbm %s1052_s2, 32 }
  0x25   :  { %p922_p2 = scmp.ne.s32.totalorder %s1052_s2, %s921_s14  ;;  %p925_p3 = scmp.lt.u32.totalorder %s921_s14, %s1052_s2 }
  0x27   :  { %p927_p4 = pnand %p925_p3, %p922_p2 }
  0x29   :  { %930 = shalt.err (!%p927_p4)
}
  0x2a   :  { %s931_s19 = scalar_lea.vmem %s40_s29, 32  ;;  %p936_p6 = scmp.lt.s32.totalorder %s40_s29, %s40_s29 }
  0x2b   :  { %p932_p5 = scmp.ne.s32.totalorder %s40_s29, %s931_s19  ;;  %p937_p7 = scmp.lt.s32.totalorder %s931_s19, %s931_s19 }
  0x2d   :  { %p938_p8 = por %p937_p7, %p936_p6 }
  0x2f   :  { %p939_p9 = pnand %p938_p8, %p932_p5 }
  0x31   :  { %942 = shalt.err (!%p939_p9)
}
  0x32   :  { %42 = dma.hbm_to_vmem [thread:$0]  %s1052_s2, 32, %s40_s29, [#allocation7]  }
  0x33   :  { %965 = dma.done.wait [#allocation4], 320  }
  0x34   :  { %966 = vsyncadd [#allocation4], 4294966976 }
  0x35   :  { %967 = dma.done.wait [#allocation7], 9248  }
  0x36   :  { %968 = vsyncadd [#allocation7], 4294958048  ;;  %v769_v0 = vld [vmem:[#allocation6 + $0x4] ss:$8 sps:$4 sm:$0xff]   ;;  %v773_v2 = vld [vmem:[#allocation6] ss:$8 sps:$4 sm:$0xff]  }
  0x37   :  { %v771_v1 = vld [vmem:[#allocation6 + $0x104] ss:$8 sps:$4 sm:$0xff]   ;;  %520 = vmatprep.subr.bf16.mxu0 %v769_v0  ;;  %v774_v3 = vld [vmem:[#allocation6 + $0x100] ss:$8 sps:$4 sm:$0xff]   ;;  %v775_v4 = vld [vmem:[#allocation6 + $0x14] ss:$8 sps:$4 sm:$0xff]  }
  0x38   :  { %561 = vmatprep.subr.bf16.mxu1 %v771_v1  ;;  %521 = vmatpush1.bf16.msra.mxu0 %v773_v2  ;;  %v777_v5 = vld [vmem:[#allocation6 + $0x114] ss:$8 sps:$4 sm:$0xff]   ;;  %v779_v6 = vld [vmem:[#allocation6 + $0x10] ss:$8 sps:$4 sm:$0xff]   ;;  %v781_v8 = vld [vmem:[#allocation6 + $0x24] ss:$8 sps:$4 sm:$0xff]  }
  0x39   :  { %562 = vmatpush1.bf16.msra.mxu1 %v774_v3  ;;  %522 = vmatprep.subr.bf16.mxu0 %v775_v4  ;;  %v780_v7 = vld [vmem:[#allocation6 + $0x110] ss:$8 sps:$4 sm:$0xff]   ;;  %v783_v9 = vld [vmem:[#allocation6 + $0x124] ss:$8 sps:$4 sm:$0xff]   ;;  %v785_v10 = vld [vmem:[#allocation6 + $0x20] ss:$8 sps:$4 sm:$0xff]  }
  0x3a   :  { %563 = vmatprep.subr.bf16.mxu1 %v777_v5  ;;  %v786_v11 = vld [vmem:[#allocation6 + $0x120] ss:$8 sps:$4 sm:$0xff]   ;;  %v787_v12 = vld [vmem:[#allocation6 + $0x34] ss:$8 sps:$4 sm:$0xff]   ;;  %v791_v14 = vld [vmem:[#allocation6 + $0x30] ss:$8 sps:$4 sm:$0xff]  }
  0x3b   :  { %v789_v13 = vld [vmem:[#allocation6 + $0x134] ss:$8 sps:$4 sm:$0xff]   ;;  %v792_v15 = vld [vmem:[#allocation6 + $0x130] ss:$8 sps:$4 sm:$0xff]   ;;  %v793_v16 = vld [vmem:[#allocation6 + $0x44] ss:$8 sps:$4 sm:$0xff]  }
  0x3c   :  { %523 = vmatpush1.bf16.msra.mxu0 %v779_v6  ;;  %v795_v17 = vld [vmem:[#allocation6 + $0x144] ss:$8 sps:$4 sm:$0xff]   ;;  %v797_v18 = vld [vmem:[#allocation6 + $0x40] ss:$8 sps:$4 sm:$0xff]   ;;  %v799_v20 = vld [vmem:[#allocation6 + $0x54] ss:$8 sps:$4 sm:$0xff]  }
  0x3d   :  { %564 = vmatpush1.bf16.msra.mxu1 %v780_v7  ;;  %524 = vmatprep.subr.bf16.mxu0 %v781_v8  ;;  %v798_v19 = vld [vmem:[#allocation6 + $0x140] ss:$8 sps:$4 sm:$0xff]   ;;  %v801_v21 = vld [vmem:[#allocation6 + $0x154] ss:$8 sps:$4 sm:$0xff]   ;;  %v803_v22 = vld [vmem:[#allocation6 + $0x50] ss:$8 sps:$4 sm:$0xff]  }
  0x3e   :  { %565 = vmatprep.subr.bf16.mxu1 %v783_v9  ;;  %v804_v23 = vld [vmem:[#allocation6 + $0x150] ss:$8 sps:$4 sm:$0xff]   ;;  %v805_v24 = vld [vmem:[#allocation6 + $0x64] ss:$8 sps:$4 sm:$0xff]   ;;  %v809_v26 = vld [vmem:[#allocation6 + $0x60] ss:$8 sps:$4 sm:$0xff]  }
  0x3f   :  { %v807_v25 = vld [vmem:[#allocation6 + $0x164] ss:$8 sps:$4 sm:$0xff]   ;;  %v810_v27 = vld [vmem:[#allocation6 + $0x160] ss:$8 sps:$4 sm:$0xff]   ;;  %v811_v28 = vld [vmem:[#allocation6 + $0x74] ss:$8 sps:$4 sm:$0xff]  }
  0x40   :  { %525 = vmatpush1.bf16.msra.mxu0 %v785_v10  ;;  %v813_v29 = vld [vmem:[#allocation6 + $0x174] ss:$8 sps:$4 sm:$0xff]   ;;  %v815_v30 = vld [vmem:[#allocation6 + $0x70] ss:$8 sps:$4 sm:$0xff]   ;;  %v817_v32 = vld [vmem:[#allocation6 + $0x84] ss:$8 sps:$4 sm:$0xff]  }
  0x41   :  { %566 = vmatpush1.bf16.msra.mxu1 %v786_v11  ;;  %526 = vmatprep.subr.bf16.mxu0 %v787_v12  ;;  %v816_v31 = vld [vmem:[#allocation6 + $0x170] ss:$8 sps:$4 sm:$0xff]   ;;  %v819_v33 = vld [vmem:[#allocation6 + $0x184] ss:$8 sps:$4 sm:$0xff]   ;;  %v821_v34 = vld [vmem:[#allocation6 + $0x80] ss:$8 sps:$4 sm:$0xff]  }
  0x42   :  { %567 = vmatprep.subr.bf16.mxu1 %v789_v13  ;;  %v822_v35 = vld [vmem:[#allocation6 + $0x180] ss:$8 sps:$4 sm:$0xff]   ;;  %v823_v36 = vld [vmem:[#allocation6 + $0x94] ss:$8 sps:$4 sm:$0xff]   ;;  %v827_v38 = vld [vmem:[#allocation6 + $0x90] ss:$8 sps:$4 sm:$0xff]  }
  0x43   :  { %v825_v37 = vld [vmem:[#allocation6 + $0x194] ss:$8 sps:$4 sm:$0xff]   ;;  %v828_v39 = vld [vmem:[#allocation6 + $0x190] ss:$8 sps:$4 sm:$0xff]   ;;  %v829_v40 = vld [vmem:[#allocation6 + $0xa4] ss:$8 sps:$4 sm:$0xff]  }
  0x44   :  { %527 = vmatpush1.bf16.msra.mxu0 %v791_v14  ;;  %v831_v41 = vld [vmem:[#allocation6 + $0x1a4] ss:$8 sps:$4 sm:$0xff]   ;;  %v833_v42 = vld [vmem:[#allocation6 + $0xa0] ss:$8 sps:$4 sm:$0xff]   ;;  %v835_v44 = vld [vmem:[#allocation6 + $0xb4] ss:$8 sps:$4 sm:$0xff]  }
  0x45   :  { %568 = vmatpush1.bf16.msra.mxu1 %v792_v15  ;;  %528 = vmatprep.subr.bf16.mxu0 %v793_v16  ;;  %v834_v43 = vld [vmem:[#allocation6 + $0x1a0] ss:$8 sps:$4 sm:$0xff]   ;;  %v837_v45 = vld [vmem:[#allocation6 + $0x1b4] ss:$8 sps:$4 sm:$0xff]   ;;  %v59_v46 = vld [vmem:[#allocation3] sm:$0xff]  ;;  %v976_v48 = vmov 0  }
  0x46   :  { %569 = vmatprep.subr.bf16.mxu1 %v795_v17  ;;  %v839_v47 = vld [vmem:[#allocation6 + $0xb0] ss:$8 sps:$4 sm:$0xff]   ;;  %v62_v49 = vmax.bf16 %v976_v48, %v59_v46  ;;  %v841_v52 = vld [vmem:[#allocation6 + $0xc4] ss:$8 sps:$4 sm:$0xff]   ;;  %v845_v57 = vld [vmem:[#allocation6 + $0xc0] ss:$8 sps:$4 sm:$0xff]  }
  0x47   :  { %v60_v50 = vld [vmem:[#allocation3 + $0x8] sm:$0xff]  ;;  %v843_v54 = vld [vmem:[#allocation6 + $0x1c4] ss:$8 sps:$4 sm:$0xff]   ;;  %v846_v58 = vld [vmem:[#allocation6 + $0x1c0] ss:$8 sps:$4 sm:$0xff]   ;;  %vm516_vm0 = vcmask 523264  }
  0x48   :  { %529 = vmatpush1.bf16.msra.mxu0 %v797_v18  ;;  %v840_v51 = vld [vmem:[#allocation6 + $0x1b0] ss:$8 sps:$4 sm:$0xff]   ;;  %v63_v53 = vmax.bf16 %v976_v48, %v60_v50  ;;  %v685_v55 = vcombine.high %v62_v49, %v62_v49  ;;  %v847_v59 = vld [vmem:[#allocation6 + $0xd4] ss:$8 sps:$4 sm:$0xff]   ;;  %v853_v63 = vld [vmem:[#allocation6 + $0xe4] ss:$8 sps:$4 sm:$0xff]   ;;  %v684_v8 = vcombine.low %v62_v49, %v62_v49 }
  0x49   :  { %570 = vmatpush1.bf16.msra.mxu1 %v798_v19  ;;  %530 = vmatprep.subr.bf16.mxu0 %v799_v20  ;;  %v849_v60 = vld [vmem:[#allocation6 + $0x1d4] ss:$8 sps:$4 sm:$0xff]   ;;  %v851_v61 = vld [vmem:[#allocation6 + $0xd0] ss:$8 sps:$4 sm:$0xff]   ;;  %v855_v0 = vld [vmem:[#allocation6 + $0x1e4] ss:$8 sps:$4 sm:$0xff]  }
  0x4a   :  { %571 = vmatprep.subr.bf16.mxu1 %v801_v21  ;;  %v687_v56 = vcombine.high %v63_v53, %v63_v53  ;;  %552 = vmatprep.mubr.bf16.mxu0 %v685_v55  ;;  %v852_v62 = vld [vmem:[#allocation6 + $0x1d0] ss:$8 sps:$4 sm:$0xff]   ;;  %v857_v1 = vld [vmem:[#allocation6 + $0xe0] ss:$8 sps:$4 sm:$0xff]   ;;  %v859_v3 = vld [vmem:[#allocation6 + $0xf4] ss:$8 sps:$4 sm:$0xff]   ;;  %v686_v9 = vcombine.low %v63_v53, %v63_v53 }
  0x4b   :  { %v858_v2 = vld [vmem:[#allocation6 + $0x1e0] ss:$8 sps:$4 sm:$0xff]   ;;  %v861_v4 = vld [vmem:[#allocation6 + $0x1f4] ss:$8 sps:$4 sm:$0xff]   ;;  %v863_v5 = vld [vmem:[#allocation6 + $0xf0] ss:$8 sps:$4 sm:$0xff]  }
  0x4c   :  { %531 = vmatpush1.bf16.msra.mxu0 %v803_v22  ;;  %593 = vmatprep.mubr.bf16.mxu1 %v687_v56  ;;  %v864_v6 = vld [vmem:[#allocation6 + $0x1f0] ss:$8 sps:$4 sm:$0xff]   ;;  %v867_v7 = vld [vmem:[#allocation6 + $0x204] ss:$8 sps:$4 sm:$0xff]   ;;  %v865_v10 = vld [vmem:[#allocation6 + $0x200] ss:$8 sps:$4 sm:$0xff]  }
  0x4d   :  { %572 = vmatpush1.bf16.msra.mxu1 %v804_v23  ;;  %532 = vmatprep.subr.bf16.mxu0 %v805_v24  ;;  %v870_v11 = vld [vmem:[#allocation6 + $0x214] ss:$8 sps:$4 sm:$0xff]   ;;  %v868_v12 = vld [vmem:[#allocation6 + $0x210] ss:$8 sps:$4 sm:$0xff]   ;;  %v873_v13 = vld [vmem:[#allocation6 + $0x224] ss:$8 sps:$4 sm:$0xff]  }
  0x4e   :  { %573 = vmatprep.subr.bf16.mxu1 %v807_v25  ;;  %v61_v14 = vld [vmem:[#allocation3 + $0x10] sm:$0xf]  ;;  %v871_v15 = vld [vmem:[#allocation6 + $0x220] ss:$8 sps:$4 sm:$0xff]   ;;  %v874_v18 = vld [vmem:[#allocation6 + $0x230] ss:$8 sps:$4 sm:$0xff]  }
  0x4f   :  { %v876_v16 = vld [vmem:[#allocation6 + $0x234] ss:$8 sps:$4 sm:$0xff]   ;;  %v64_v17 = vmax.bf16 %v976_v48, %v61_v14  ;;  %s977_s2 = smov [#allocation9]  }
  0x50   :  { %533 = vmatpush1.bf16.msra.mxu0 %v809_v26  ;;  %s674_s21 = sshll.u32 %s977_s2, 4  ;;  %s675_s21 = int_to_ptr.vmem [resolvable:$true] %s674_s21 }
  0x51   :  { %574 = vmatpush1.bf16.msra.mxu1 %v810_v27  ;;  %534 = vmatprep.subr.bf16.mxu0 %v811_v28  ;;  %v688_v19 = vcombine.low %v64_v17, %v64_v17  ;;  %s943_s22 = scalar_lea.vmem %s675_s21, 256  ;;  %p948_p11 = scmp.lt.s32.totalorder %s675_s21, %s675_s21 }
  0x52   :  { %575 = vmatprep.subr.bf16.mxu1 %v813_v29  ;;  %p944_p10 = scmp.ne.s32.totalorder %s675_s21, %s943_s22  ;;  %p949_p12 = scmp.lt.s32.totalorder %s943_s22, %s943_s22 }
  0x54   :  { %535 = vmatpush1.bf16.msra.mxu0 %v815_v30  ;;  %v654_v30 = vlaneseq  ;;  %p950_p13 = por %p949_p12, %p948_p11 }
  0x55   :  { %576 = vmatpush1.bf16.msra.mxu1 %v816_v31  ;;  %536 = vmatprep.subr.bf16.mxu0 %v817_v32 }
  0x56   :  { %577 = vmatprep.subr.bf16.mxu1 %v819_v33  ;;  %v655_v31 = vshrl.u32 %v654_v30, 7  ;;  %v652_v33 = vld [vmem:[#allocation8] sm:$0x3]  ;;  %p951_p0 = pnand %p950_p13, %p944_p10 }
  0x58   :  { %537 = vmatpush1.bf16.msra.mxu0 %v821_v34  ;;  %v656_v32 = vsub.s32 0, %v655_v31  ;;  %v660_v34 = vsub.s32 1, %v655_v31 }
  0x59   :  { %578 = vmatpush1.bf16.msra.mxu1 %v822_v35  ;;  %538 = vmatprep.subr.bf16.mxu0 %v823_v36 }
  0x5a   :  { %579 = vmatprep.subr.bf16.mxu1 %v825_v37  ;;  %v657_v35 = vrot.slane %v652_v33, %v656_v32  ;;  %v661_v37 = vrot.slane %v652_v33, %v660_v34 }
  0x5c   :  { %539 = vmatpush1.bf16.msra.mxu0 %v827_v38 }
  0x5d   :  { %580 = vmatpush1.bf16.msra.mxu1 %v828_v39  ;;  %540 = vmatprep.subr.bf16.mxu0 %v829_v40 }
  0x5e   :  { %581 = vmatprep.subr.bf16.mxu1 %v831_v41 }
  0x60   :  { %541 = vmatpush1.bf16.msra.mxu0 %v833_v42 }
  0x61   :  { %582 = vmatpush1.bf16.msra.mxu1 %v834_v43  ;;  %542 = vmatprep.subr.bf16.mxu0 %v835_v44 }
  0x62   :  { %583 = vmatprep.subr.bf16.mxu1 %v837_v45 }
  0x64   :  { %543 = vmatpush1.bf16.msra.mxu0 %v839_v47 }
  0x65   :  { %584 = vmatpush1.bf16.msra.mxu1 %v840_v51  ;;  %544 = vmatprep.subr.bf16.mxu0 %v841_v52 }
  0x66   :  { %585 = vmatprep.subr.bf16.mxu1 %v843_v54 }
  0x68   :  { %545 = vmatpush1.bf16.msra.mxu0 %v845_v57 }
  0x69   :  { %586 = vmatpush1.bf16.msra.mxu1 %v846_v58  ;;  %546 = vmatprep.subr.bf16.mxu0 %v847_v59 }
  0x6a   :  { %587 = vmatprep.subr.bf16.mxu1 %v849_v60 }
  0x6c   :  { %547 = vmatpush1.bf16.msra.mxu0 %v851_v61 }
  0x6d   :  { %588 = vmatpush1.bf16.msra.mxu1 %v852_v62  ;;  %548 = vmatprep.subr.bf16.mxu0 %v853_v63 }
  0x6e   :  { %589 = vmatprep.subr.bf16.mxu1 %v855_v0 }
  0x70   :  { %549 = vmatpush1.bf16.msra.mxu0 %v857_v1 }
  0x71   :  { %590 = vmatpush1.bf16.msra.mxu1 %v858_v2  ;;  %550 = vmatprep.subr.bf16.mxu0 %v859_v3 }
  0x72   :  { %591 = vmatprep.subr.bf16.mxu1 %v861_v4 }
  0x74   :  { %551 = vmatpush1.bf16.msra.mxu0 %v863_v5 }
  0x75   :  { %592 = vmatpush1.bf16.msra.mxu1 %v864_v6  ;;  %602 = vmatprep.subr.bf16.mxu0 %v867_v7 }
  0x77   :  { %553 = vmatmul.mubr.bf16.vlgmr.msra.gmra.mrb[0].mxu0 %v684_v8 }
  0x78   :  { %594 = vmatmul.mubr.bf16.vlgmr.msra.gmra.mrb[0].mxu1 %v686_v9  ;;  %603 = vmatpush1.bf16.msra.mxu0 %v865_v10 }
  0x79   :  { %634 = vmatprep.mubr.bf16.mxu0 %v976_v48  ;;  %604 = vmatprep.subr.bf16.mxu0 %v870_v11 }
  0x7c   :  { %605 = vmatpush1.bf16.msra.mxu0 %v868_v12 }
  0x7d   :  { %606 = vmatprep.subr.bf16.mxu0 %v873_v13 }
  0x80   :  { %607 = vmatpush1.bf16.msra.mxu0 %v871_v15 }
  0x81   :  { %608 = vmatprep.subr.bf16.mxu0 %v876_v16 }
  0x84   :  { %609 = vmatpush1.bf16.msra.mxu0 %v874_v18 }
  0x87   :  { %761 = vmatmul.mubr.msk.bf16.vlgmr.msra.gmra.mrb[4].mxu0 %vm516_vm0, %v688_v19 }
 0x14a   :  { %v554_v20 = vpop.f32.mrb[0].mxu0 }
 0x14b   :  { %v595_v21 = vpop.f32.mrb[0].mxu1  ;;  %v556_v23 = vpop.f32.mrb[1].mxu0 }
 0x14c   :  { %v596_v22 = vadd.f32 %v595_v21, %v554_v20  ;;  %v597_v24 = vpop.f32.mrb[1].mxu1  ;;  %v558_v26 = vpop.f32.mrb[2].mxu0 }
 0x14d   :  { %v598_v25 = vadd.f32 %v597_v24, %v556_v23  ;;  %v599_v27 = vpop.f32.mrb[2].mxu1  ;;  %v559_v28 = vpop.f32.mrb[3].mxu0 }
 0x14e   :  { %v600_v29 = vpop.f32.mrb[3].mxu1 }
 0x15a   :  { %v636_v36 = vpop.f32.mrb[4].mxu0 }
 0x15b   :  { %v637_v38 = vadd.f32 %v636_v36, %v596_v22  ;;  %v638_v39 = vpop.f32.mrb[5].mxu0 }
 0x15c   :  { %v639_v40 = vadd.f32 %v638_v39, %v598_v25  ;;  %v640_v41 = vpop.f32.mrb[6].mxu0 }
 0x15d   :  { %v664_v42 = vadd.f32 %v657_v35, %v637_v38  ;;  %v641_v43 = vpop.f32.mrb[7].mxu0 }
 0x15e   :  { %v665_v44 = vadd.f32 %v661_v37, %v639_v40 }
 0x15f   :  { %666 = vst [vmem:[#allocation9] sm:$0xff] %v664_v42 }
 0x160   :  { %667 = vst [vmem:[#allocation9 + $0x8] sm:$0xff] %v665_v44 }
 0x161   :  { %954 = shalt.err (!%p951_p0)
}
 0x162   :  { %s955_s25 = scalar_lea.hbm %s1053_s3, 256 }
 0x163   :  { %p956_p1 = scmp.ne.s32.totalorder %s1053_s3, %s955_s25  ;;  %p959_p2 = scmp.lt.u32.totalorder %s955_s25, %s1053_s3 }
 0x165   :  { %p961_p3 = pnand %p959_p2, %p956_p1 }
 0x167   :  { %964 = shalt.err (!%p961_p3)
}
 0x168   :  { %677 = dma.vmem_to_hbm [thread:$0]  %s675_s21, 256, %s1053_s3, [#allocation5]  }
 0x169   :  { %969 = dma.done.wait [#allocation5], 256  }
 0x16a   :  { %970 = vsyncadd [#allocation5], 4294967040 }
 0x16b   :  { %681 = vsyncpa [#allocation4], 1 }
 0x16c   :  { %682 = vsyncpa [#allocation7], 1 }
 0x16d   :  { %683 = vsyncpa [#allocation5], 1 }

// kernel: _lambda_.38
= control target key start
LH: loop header
LB: loop body
LE: loop exit
PB: predicated region body
PF: predicated region fallthrough
CT: control target
= control target key end

     0   :  { %s1437_s0 = inlined_call_operand.hbm [shape: bf16[32,1152], index: 0, kind: input, shape index: {}]   ;;  %s1438_s1 = inlined_call_operand.hbm [shape: bf16[1152,128], index: 1, kind: input, shape index: {}]   ;;  %s1439_s2 = inlined_call_operand.hbm [shape: f32[1,128], index: 2, kind: input, shape index: {}]   ;;  %s1440_s3 = inlined_call_operand.hbm [shape: f32[32,128], index: 3, kind: output, shape index: {}]  }
   0x1   :  { %1445 = sst [smem:[#allocation14_spill]] %s1437_s0 }
   0x2   :  { %8 = vsyncpa [#allocation4], 0 }
   0x3   :  { %10 = vsyncpa [#allocation4 + $0x1], 0 }
   0x4   :  { %11 = vsyncpa [#allocation7], 0 }
   0x5   :  { %13 = vsyncpa [#allocation7 + $0x1], 0 }
   0x6   :  { %14 = vsyncpa [#allocation5], 0  ;;  %s1176_s12 = smov 0   ;;  %s1178_s13 = smov 0  }
   0x7   :  { %s1180_s14 = smov 0   ;;  %s1182_s15 = smov 0  }
   0x8   :  { %s1184_s16 = smov 0   ;;  %s1186_s17 = smov 0  }
   0x9 LB: > { %s1205_s18 = sadd.s32 4294967295, %s1141_s17   ;;  %s41_s19 = sadd.s32 1, %s1129_s14  ;;  %s1141_s17 = sphi %s1186_s17, %s20_s17   ;;  %s1137_s16 = sphi %s1184_s16, %s1460_s16   ;;  %s1133_s15 = sphi %s1182_s15, %s1459_s15   ;;  %s1129_s14 = sphi %s1180_s14, %s1458_s14   ;;  %s1125_s13 = sphi %s1178_s13, %s1457_s13   ;;  %s1121_s12 = sphi %s1176_s12, %s1456_s12  }
   0xa   : > { %p48_p0 = scmp.ne.s32.totalorder %s1129_s14, %s1125_s13  ;;  %p49_p1 = scmp.eq.s32.totalorder %s1141_s17, 0 }
   0xb   : > { %p54_p2 = scmp.ne.s32.totalorder %s1125_s13, %s1121_s12  ;;  %p1441_p3 = scmp.eq.s32.totalorder %s1205_s18, 0 }
   0xc   : > { %p50_p4 = por %p49_p1, %p48_p0  ;;  %p746_p5 = scmp.ge.s32.totalorder %s1141_s17, 1 }
   0xd   : > { %p1216_p6 = por %p1441_p3, %p54_p2  ;;  %p138_p7 = scmp.lt.s32.totalorder %s1141_s17, 4 }
   0xe   : > { %s1143_s22 = smov [#allocation8]   ;;  %p878_p10 = scmp.lt.s32.totalorder %s1141_s17, 3 }
   0xf   : > { %s1446_s20 = scalar_select %p1216_p6, 1, 0 }
  0x10   : > { %p1221_p8 = pnand %p746_p5, %p138_p7  ;;  %s151_s23 = sshll.u32 %s1143_s22, 4  ;;  %s152_s23 = int_to_ptr.vmem [resolvable:$true] %s151_s23 }
  0x11   : > { %s1229_s24 = sand.u32 1, %s1129_s14   ;;  %p1237_p12 = pnand %p878_p10, %p50_p4 }
  0x12   : > { %s1447_s21 = scalar_select %p1221_p8, 1, 0 }
  0x13   : > { %p866_p9 = pneg %p1221_p8  ;;  %s965_s29 = scalar_lea.hbm %s1439_s2, 16 }
  0x14   : > { %s1449_s26 = scalar_select %p1237_p12, 1, 0 }
  0x15   : > { %p1233_p11 = pnand %p866_p9, %p1441_p3  ;;  %p966_p13 = scmp.ne.s32.totalorder %s1439_s2, %s965_s29 }
  0x16   : > { %p972_p5 = scmp.lt.u32.totalorder %s965_s29, %s1439_s2 }
  0x17   : > { %p967_p0 = pneg %p1233_p11 }
  0x19   : > { %p968_p1 = pnand %p967_p0, %p966_p13 }
  0x1b   : > { %p969_p2 = pneg %p968_p1 }
  0x1d   : > { %p974_p4 = pnand %p972_p5, %p969_p2 }
  0x1f   : > { %977 = shalt.err (!%p974_p4)
}
  0x20   : > { %s978_s7 = scalar_lea.vmem %s152_s23, 16  ;;  %s985_s8 = scalar_lea.vmem %s152_s23, 32 }
  0x21   : > { %p979_p7 = scmp.ne.s32.totalorder %s152_s23, %s978_s7  ;;  %p986_p3 = scmp.lt.s32.totalorder %s152_s23, %s152_s23 }
  0x22   : > { %p987_p6 = scmp.lt.s32.totalorder %s985_s8, %s978_s7 }
  0x23   : > { %p981_p9 = pnand %p979_p7, %p967_p0 }
  0x24   : > { %p988_p8 = por %p987_p6, %p986_p3 }
  0x25   : > { %p982_p10 = pneg %p981_p9 }
  0x27   : > { %p989_p12 = pnand %p988_p8, %p982_p10 }
  0x29   : > { %992 = shalt.err (!%p989_p12)
}
  0x2a   : > { %869 = dma.hbm_to_vmem [thread:$0]  (!%p1233_p11), %s1439_s2, 16, %s152_s23, [#allocation7]  }
  0x2b   : > { %s29_s11 = sadd.s32 1, %s1137_s16  ;;  %s850_s12 = smul.u32 48, %s1229_s24 }
  0x2c   : > { %p30_p3 = scmp.ge.s32.totalorder %s29_s11, 3  ;;  %s790_s22 = smul.u32 192, %s1137_s16 }
  0x2d   : > { %s1450_s0 = sld [smem:[#allocation14_spill]]  ;;  %s166_s29 = scalar_lea.vmem [#allocation3], %s850_s12 }
  0x2e   : > { %s1462_s11 = smov (%p30_p3, %s29_s11), 0  ;;  %s176_s30 = sshll.u32 %s166_s29, 4  ;;  %s1269_s30 = int_to_ptr.vmem [resolvable:$true] %s176_s30 }
  0x2f   : > { %s37_s23 = ssub.s32 %s1137_s16, %s1462_s11  ;;  %s186_s4 = sand.u32 1, %s1141_s17  }
  0x30   : > { %p39_p6 = scmp.eq.s32.totalorder %s37_s23, 0  ;;  %s163_s6 = scalar_lea.sflag [#allocation4], %s1229_s24 }
  0x31   : > { %p1451_p11 = scmp.ne.s32.totalorder %s1449_s26, 0 }
  0x32   : > { %s1275_s5 = scalar_select %p39_p6, %s1129_s14, %s41_s19  }
  0x33   : > { %s1265_s28 = scalar_lea.hbm %s1450_s0, %s790_s22  ;;  %p995_p12 = pneg %p1451_p11 }
  0x34   : > { %s993_s7 = scalar_lea.hbm %s1265_s28, 768  ;;  %s998_s10 = scalar_lea.hbm %s1450_s0, 2304 }
  0x35   : > { %p994_p8 = scmp.ne.s32.totalorder %s1265_s28, %s993_s7  ;;  %p999_p1 = scmp.lt.u32.totalorder %s1265_s28, %s1450_s0 }
  0x36   : > { %p1000_p2 = scmp.lt.u32.totalorder %s998_s10, %s993_s7  ;;  %p1002_p4 = scmp.lt.u32.totalorder %s993_s7, %s1265_s28 }
  0x37   : > { %p996_p13 = pnand %p995_p12, %p994_p8 }
  0x38   : > { %p1001_p5 = por %p1000_p2, %p999_p1 }
  0x39   : > { %p997_p0 = pneg %p996_p13 }
  0x3a   : > { %p1003_p7 = por %p1002_p4, %p1001_p5 }
  0x3c   : > { %p1004_p9 = pnand %p1003_p7, %p997_p0 }
  0x3e   : > { %1007 = shalt.err (!%p1004_p9)
}
  0x3f   : > { %s1008_s19 = scalar_lea.vmem %s1269_s30, 768  ;;  %s1144_s25 = smov [#allocation3]  }
  0x40   : > { %p1009_p10 = scmp.ne.s32.totalorder %s1269_s30, %s1008_s19  ;;  %s1013_s27 = sshll.u32 %s1144_s25, 4  ;;  %s1014_s27 = int_to_ptr.vmem [resolvable:$false] %s1013_s27 }
  0x41   : > { %s1015_s29 = scalar_lea.vmem %s1014_s27, 1536  ;;  %p1016_p8 = scmp.lt.s32.totalorder %s1269_s30, %s1014_s27 }
  0x42   : > { %p1011_p3 = pnand %p1009_p10, %p995_p12  ;;  %p1017_p13 = scmp.lt.s32.totalorder %s1015_s29, %s1008_s19 }
  0x44   : > { %p1012_p6 = pneg %p1011_p3  ;;  %p1018_p1 = por %p1017_p13, %p1016_p8 }
  0x46   : > { %p1019_p2 = pnand %p1018_p1, %p1012_p6 }
  0x48   : > { %1022 = shalt.err (!%p1019_p2)
}
  0x49   : > { %s1145_s23 = smov 576   ;;  %s1146_s7 = smov 192  }
  0x4a   : > { %s1147_s8 = smov 12   ;;  %s851_s9 = smul.u32 192, %s1229_s24 }
  0x4b   : > { %873 = dma.hbm_to_vmem [thread:$0]  (!%p1451_p11), %s1265_s28, 768, %s1269_s30, %s163_s6, %s1145_s23, %s1146_s7, %s1147_s8  }
  0x4c   : > { %s791_s10 = smul.u32 3072, %s1137_s16  ;;  %s190_s25 = scalar_lea.vmem [#allocation6], %s851_s9 }
  0x4d   : > { %s197_s27 = sshll.u32 %s190_s25, 4  ;;  %s1316_s29 = scalar_lea.sflag [#allocation7], %s186_s4  ;;  %s1312_s27 = int_to_ptr.vmem [resolvable:$true] %s197_s27 }
  0x4e   : > { %s1310_s19 = scalar_lea.hbm %s1438_s1, %s791_s10  ;;  %s1028_s30 = scalar_lea.hbm %s1438_s1, 9216 }
  0x4f   : > { %s1023_s0 = scalar_lea.hbm %s1310_s19, 3072  ;;  %p1029_p7 = scmp.lt.u32.totalorder %s1310_s19, %s1438_s1 }
  0x50   : > { %p1024_p0 = scmp.ne.s32.totalorder %s1310_s19, %s1023_s0  ;;  %p1030_p9 = scmp.lt.u32.totalorder %s1028_s30, %s1023_s0 }
  0x51   : > { %p1032_p3 = scmp.lt.u32.totalorder %s1023_s0, %s1310_s19 }
  0x52   : > { %p1026_p5 = pnand %p1024_p0, %p995_p12  ;;  %p1031_p10 = por %p1030_p9, %p1029_p7 }
  0x54   : > { %p1027_p4 = pneg %p1026_p5  ;;  %p1033_p6 = por %p1032_p3, %p1031_p10 }
  0x56   : > { %p1034_p8 = pnand %p1033_p6, %p1027_p4 }
  0x58   : > { %1037 = shalt.err (!%p1034_p8)
}
  0x59   : > { %s1038_s4 = scalar_lea.vmem %s1312_s27, 3072  ;;  %s1148_s7 = smov [#allocation6]  }
  0x5a   : > { %p1039_p13 = scmp.ne.s32.totalorder %s1312_s27, %s1038_s4  ;;  %s1043_s8 = sshll.u32 %s1148_s7, 4  ;;  %s1044_s8 = int_to_ptr.vmem [resolvable:$false] %s1043_s8 }
  0x5b   : > { %s1045_s9 = scalar_lea.vmem %s1044_s8, 6144  ;;  %p1046_p0 = scmp.lt.s32.totalorder %s1312_s27, %s1044_s8 }
  0x5c   : > { %p1041_p1 = pnand %p1039_p13, %p995_p12  ;;  %p1047_p5 = scmp.lt.s32.totalorder %s1045_s9, %s1038_s4 }
  0x5e   : > { %p1042_p2 = pneg %p1041_p1  ;;  %p1048_p7 = por %p1047_p5, %p1046_p0 }
  0x60   : > { %p1049_p9 = pnand %p1048_p7, %p1042_p2 }
  0x62   : > { %1052 = shalt.err (!%p1049_p9)
}
  0x63   : > { %s1149_s0 = smov 64   ;;  %s1150_s10 = smov 4  }
  0x64   : > { %876 = dma.hbm_to_vmem [thread:$0]  (!%p1451_p11), %s1310_s19, 3072, %s1312_s27, %s1316_s29, %s1149_s0, %s1149_s0, %s1150_s10  }
  0x65   : > { %p1452_p12 = scmp.ne.s32.totalorder %s1447_s21, 0 }
  0x66   : > { %s211_s12 = sand.u32 (!%p1452_p12), 1, %s1125_s13   ;;  %p1453_p4 = scmp.ne.s32.totalorder (!%p1452_p12), %s1446_s20, 0 }
  0x67   : > { %209 = sbr.rel (%p1452_p12) target bundleno = 426 (0x1aa), region = 32  ;;  %s212_s25 = scalar_lea.sflag (!%p1452_p12), [#allocation4], %s211_s12 }
  0x68   : > { %s852_s22 = smul.u32 (!%p1452_p12), 48, %s211_s12 }
  0x6a   : > { %s1345_s24 = scalar_lea.vmem (!%p1452_p12), [#allocation3], %s852_s22 }
  0x6e   : > { %1104 = dma.done.wait (%p1453_p4), %s212_s25, 768  }
  0x6f   : > { %1106 = vsyncadd (%p1453_p4), %s212_s25, 4294966528  ;;  %s220_s28 = sand.u32 1, %s1205_s18   ;;  %s853_s26 = smul.u32 192, %s211_s12 }
  0x70   : > { %s221_s19 = scalar_lea.sflag [#allocation7], %s220_s28 }
  0x71   : > { %s1352_s27 = scalar_lea.vmem [#allocation6], %s853_s26 }
  0x72   : > { %1108 = dma.done.wait (%p1453_p4), %s221_s19, 3072  }
  0x73   : > { %1110 = vsyncadd (%p1453_p4), %s221_s19, 4294964224  ;;  %p1454_p11 = scmp.eq.s32.totalorder %s1205_s18, 0 }
  0x75   : > { %1112 = dma.done.wait (%p1454_p11), [#allocation7], 16   ;;  %p1455_p10 = pmov %p1454_p11 }
  0x76   : > { %p753_p3 = scmp.ne.s32.totalorder %s1133_s15, 0 }
  0x77   : > { %1114 = vsyncadd (%p1455_p10), [#allocation7], 4294967280  ;;  %v1151_v0 = vmov (!%p753_p3), 0.0  }
  0x78   : > { %259 = sbr.rel (%p753_p3) target bundleno = 127 (0x7f), region = 48  ;;  %260 = vst [vmem:[#allocation2] sm:$0xff] (!%p753_p3), %v1151_v0  ;;  %261 = vst [vmem:[#allocation2 + $0x8] sm:$0xff] (!%p753_p3), %v1151_v0 }
  0x79   : > { %262 = vst [vmem:[#allocation2 + $0x10] sm:$0xff] (!%p753_p3), %v1151_v0  ;;  %263 = vst [vmem:[#allocation2 + $0x18] sm:$0xff] (!%p753_p3), %v1151_v0 }
  0x7f PF: > { %v941_v1 = vld [vmem:[%s1352_s27 + $0x40] sm:$0xff]   ;;  %v944_v4 = vld [vmem:[%s1352_s27 + $0x48] sm:$0xff]   ;;  %v947_v7 = vld [vmem:[%s1352_s27 + $0x50] sm:$0xff]   ;;  %v1152_v26 = vmov 0   ;;  %p784_p6 = scmp.ne.s32.totalorder %s1133_s15, 2 }
  0x80   : > { %v942_v2 = vld [vmem:[%s1352_s27] sm:$0xff]   ;;  %792 = vmatprep.subr.bf16.mxu0 %v941_v1  ;;  %v945_v5 = vld [vmem:[%s1352_s27 + $0x8] sm:$0xff]   ;;  %v948_v8 = vld [vmem:[%s1352_s27 + $0x10] sm:$0xff]  }
  0x81   : > { %v943_v3 = vld [vmem:[%s1352_s27 + $0x80] sm:$0xff]   ;;  %793 = vmatpush3.bf16.msra.mxu0 %v942_v2  ;;  %v946_v6 = vld [vmem:[%s1352_s27 + $0x88] sm:$0xff]   ;;  %v949_v9 = vld [vmem:[%s1352_s27 + $0x90] sm:$0xff]  }
  0x82   : > { %830 = vmatprep.subr.bf16.mxu1 %v943_v3  ;;  %794 = vmatprep.subr.bf16.mxu0 %v944_v4  ;;  %v950_v10 = vld [vmem:[%s1352_s27 + $0x58] sm:$0xff]   ;;  %v953_v13 = vld [vmem:[%s1352_s27 + $0x60] sm:$0xff]   ;;  %v956_v16 = vld [vmem:[%s1352_s27 + $0x68] sm:$0xff]  }
  0x83   : > { %831 = vmatpush3.bf16.msra.mxu1 %v943_v3  ;;  %v951_v11 = vld [vmem:[%s1352_s27 + $0x18] sm:$0xff]   ;;  %v955_v14 = vld [vmem:[%s1352_s27 + $0xa0] sm:$0xff]   ;;  %v958_v17 = vld [vmem:[%s1352_s27 + $0xa8] sm:$0xff]  }
  0x84   : > { %832 = vmatprep.subr.bf16.mxu1 %v946_v6  ;;  %v952_v12 = vld [vmem:[%s1352_s27 + $0x98] sm:$0xff]   ;;  %v954_v15 = vld [vmem:[%s1352_s27 + $0x20] sm:$0xff]   ;;  %v957_v18 = vld [vmem:[%s1352_s27 + $0x28] sm:$0xff]  }
  0x85   : > { %795 = vmatpush3.bf16.msra.mxu0 %v945_v5  ;;  %v959_v19 = vld [vmem:[%s1352_s27 + $0x70] sm:$0xff]   ;;  %v962_v22 = vld [vmem:[%s1352_s27 + $0x78] sm:$0xff]   ;;  %v280_v54 = vld [vmem:[#allocation2] sm:$0xff] }
  0x86   : > { %796 = vmatprep.subr.bf16.mxu0 %v947_v7  ;;  %v960_v20 = vld [vmem:[%s1352_s27 + $0x30] sm:$0xff]   ;;  %v265_v25 = vld [vmem:[%s1345_s24 + $0x8] sm:$0xf]  ;;  %v271_v32 = vld [vmem:[%s1345_s24 + $0x2c] sm:$0xf] }
  0x87   : > { %833 = vmatpush3.bf16.msra.mxu1 %v946_v6  ;;  %v961_v21 = vld [vmem:[%s1352_s27 + $0xb0] sm:$0xff]   ;;  %v273_v30 = vmax.bf16 %v1152_v26, %v265_v25  ;;  %v964_v33 = vld [vmem:[%s1352_s27 + $0xb8] sm:$0xff]   ;;  %v279_v43 = vmax.bf16 %v1152_v26, %v271_v32  ;;  %v281_v59 = vld [vmem:[#allocation2 + $0x8] sm:$0xff] }
  0x88   : > { %834 = vmatprep.subr.bf16.mxu1 %v949_v9  ;;  %v264_v23 = vld [vmem:[%s1345_s24] sm:$0xff]  ;;  %v266_v24 = vld [vmem:[%s1345_s24 + $0xc] sm:$0xff]  ;;  %v267_v29 = vld [vmem:[%s1345_s24 + $0x14] sm:$0xf] }
  0x89   : > { %797 = vmatpush3.bf16.msra.mxu0 %v948_v8  ;;  %v272_v27 = vmax.bf16 %v1152_v26, %v264_v23  ;;  %v274_v28 = vmax.bf16 %v1152_v26, %v266_v24  ;;  %v269_v31 = vld [vmem:[%s1345_s24 + $0x20] sm:$0xf]  ;;  %v275_v34 = vmax.bf16 %v1152_v26, %v267_v29  ;;  %v268_v35 = vld [vmem:[%s1345_s24 + $0x18] sm:$0xff]  ;;  %v270_v36 = vld [vmem:[%s1345_s24 + $0x24] sm:$0xff] }
  0x8a   : > { %798 = vmatprep.subr.bf16.mxu0 %v950_v10  ;;  %v963_v37 = vld [vmem:[%s1352_s27 + $0x38] sm:$0xff]   ;;  %v276_v39 = vmax.bf16 %v1152_v26, %v268_v35  ;;  %v278_v40 = vmax.bf16 %v1152_v26, %v270_v36  ;;  %v277_v42 = vmax.bf16 %v1152_v26, %v269_v31  ;;  %v282_v4 = vld [vmem:[#allocation2 + $0x10] sm:$0xff] }
  0x8b   : > { %835 = vmatpush3.bf16.msra.mxu1 %v949_v9  ;;  %v755_v38 = vcombine.high %v272_v27, %v274_v28  ;;  %v756_v41 = vcombine.low %v273_v30, %v275_v34  ;;  %v754_v44 = vcombine.low %v272_v27, %v274_v28  ;;  %v283_v8 = vld [vmem:[#allocation2 + $0x18] sm:$0xff] }
  0x8c   : > { %836 = vmatprep.subr.bf16.mxu1 %v952_v12  ;;  %v758_v45 = vcombine.high %v276_v39, %v278_v40  ;;  %v759_v46 = vcombine.low %v277_v42, %v279_v43  ;;  %v757_v47 = vcombine.low %v276_v39, %v278_v40 }
  0x8d   : > { %799 = vmatpush3.bf16.msra.mxu0 %v951_v11  ;;  %540 = vmatprep.mubr.bf16.mxu0 %v755_v38 }
  0x8e   : > { %800 = vmatprep.subr.bf16.mxu0 %v953_v13  ;;  %846 = vmatprep.mubr.bf16.mxu1 %v756_v41  ;;  %v785_v13 = vld [vmem:[#allocation8] ss:$0 sm:$0xff] (!%p784_p6) }
  0x8f   : > { %837 = vmatpush3.bf16.msra.mxu1 %v952_v12 }
  0x90   : > { %838 = vmatprep.subr.bf16.mxu1 %v955_v14 }
  0x91   : > { %801 = vmatpush3.bf16.msra.mxu0 %v954_v15 }
  0x92   : > { %802 = vmatprep.subr.bf16.mxu0 %v956_v16 }
  0x93   : > { %839 = vmatpush3.bf16.msra.mxu1 %v955_v14 }
  0x94   : > { %840 = vmatprep.subr.bf16.mxu1 %v958_v17 }
  0x95   : > { %803 = vmatpush3.bf16.msra.mxu0 %v957_v18 }
  0x96   : > { %804 = vmatprep.subr.bf16.mxu0 %v959_v19 }
  0x97   : > { %841 = vmatpush3.bf16.msra.mxu1 %v958_v17 }
  0x98   : > { %842 = vmatprep.subr.bf16.mxu1 %v961_v21 }
  0x99   : > { %805 = vmatpush3.bf16.msra.mxu0 %v960_v20 }
  0x9a   : > { %806 = vmatprep.subr.bf16.mxu0 %v962_v22 }
  0x9b   : > { %843 = vmatpush3.bf16.msra.mxu1 %v961_v21 }
  0x9c   : > { %844 = vmatprep.subr.bf16.mxu1 %v964_v33 }
  0x9d   : > { %807 = vmatpush3.bf16.msra.mxu0 %v963_v37 }
  0x9f   : > { %845 = vmatpush3.bf16.msra.mxu1 %v964_v33 }
  0xa0   : > { %541 = vmatmul.mubr.bf16.vlgmr.msra.gmra.mrb[0].mxu0 %v754_v44 }
  0xa1   : > { %548 = vmatprep.mubr.bf16.mxu0 %v758_v45 }
  0xa2   : > { %847 = vmatmul.mubr.bf16.vlgmr.msra.gmra.mrb[0].mxu1 %v759_v46 }
  0xa8   : > { %549 = vmatmul.mubr.bf16.gmra.mrb[4].mxu0 %v757_v47 }
 0x173   : > { %v808_v48 = vpop.f32.mrb[0].mxu0 }
 0x174   : > { %v809_v49 = vpop.f32.mrb[1].mxu0 }
 0x175   : > { %v810_v50 = vadd.f32 %v809_v49, %v808_v48  ;;  %v811_v51 = vpop.f32.mrb[2].mxu0  ;;  %v848_v52 = vpop.f32.mrb[0].mxu1 }
 0x176   : > { %v812_v53 = vpop.f32.mrb[3].mxu0  ;;  %v591_v55 = vpop.f32.mrb[1].mxu1 }
 0x177   : > { %v813_v56 = vadd.f32 %v812_v53, %v811_v51  ;;  %v592_v57 = vadd.f32 %v810_v50, %v591_v55  ;;  %v849_v58 = vpop.f32.mrb[2].mxu1 }
 0x178   : > { %v594_v60 = vpop.f32.mrb[3].mxu1 }
 0x179   : > { %v606_v61 = vadd.f32 %v592_v57, %v280_v54  ;;  %v595_v62 = vadd.f32 %v813_v56, %v594_v60 }
 0x17b   : > { %610 = vst [vmem:[#allocation2] sm:$0xff] %v606_v61  ;;  %v607_v63 = vadd.f32 %v595_v62, %v281_v59  ;;  %v814_v0 = vpop.f32.mrb[4].mxu0 }
 0x17c   : > { %v815_v1 = vpop.f32.mrb[5].mxu0 }
 0x17d   : > { %611 = vst [vmem:[#allocation2 + $0x8] sm:$0xff] %v607_v63  ;;  %v816_v2 = vadd.f32 %v815_v1, %v814_v0  ;;  %v817_v3 = vpop.f32.mrb[6].mxu0 }
 0x17e   : > { %v818_v5 = vpop.f32.mrb[7].mxu0 }
 0x17f   : > { %v600_v6 = vadd.f32 %v848_v52, %v816_v2  ;;  %v819_v7 = vadd.f32 %v818_v5, %v817_v3  ;;  %617 = sbr.rel (%p784_p6) target bundleno = 400 (0x190), region = 52 }
 0x181   : > { %v608_v9 = vadd.f32 %v600_v6, %v282_v4  ;;  %v603_v10 = vadd.f32 %v849_v58, %v819_v7 }
 0x182   : > { %v618_v12 = vld [vmem:[#allocation2] sm:$0xff] (!%p784_p6) }
 0x183   : > { %612 = vst [vmem:[#allocation2 + $0x10] sm:$0xff] %v608_v9  ;;  %v609_v11 = vadd.f32 %v603_v10, %v283_v8  ;;  %v629_v15 = vadd.f32 (!%p784_p6), %v785_v13, %v618_v12 }
 0x184   : > { %v619_v14 = vld [vmem:[#allocation2 + $0x8] sm:$0xff] (!%p784_p6) }
 0x185   : > { %613 = vst [vmem:[#allocation2 + $0x18] sm:$0xff] %v609_v11  ;;  %v630_v16 = vadd.f32 (!%p784_p6), %v785_v13, %v619_v14  ;;  %633 = vst [vmem:[#allocation9] sm:$0xff] (!%p784_p6), %v629_v15 }
 0x187   : > { %634 = vst [vmem:[#allocation9 + $0x8] sm:$0xff] %v630_v16 }
 0x18a   : > { %v620_v17 = vld [vmem:[#allocation2 + $0x10] sm:$0xff] }
 0x18b   : > { %v631_v19 = vadd.f32 %v785_v13, %v620_v17 }
 0x18c   : > { %v621_v18 = vld [vmem:[#allocation2 + $0x18] sm:$0xff] }
 0x18d   : > { %v632_v20 = vadd.f32 %v785_v13, %v621_v18  ;;  %635 = vst [vmem:[#allocation9 + $0x10] sm:$0xff] %v631_v19 }
 0x18f   : > { %636 = vst [vmem:[#allocation9 + $0x18] sm:$0xff] %v632_v20 }
 0x190 PF: > { %p880_p8 = scmp.eq.s32.totalorder %s1205_s18, 2  ;;  %s1153_s20 = smov [#allocation9]  }
 0x191   : > { %s646_s15 = sshll.u32 %s1153_s20, 4  ;;  %s647_s15 = int_to_ptr.vmem [resolvable:$true] %s646_s15 }
 0x192   : > { %s1053_s21 = scalar_lea.vmem %s647_s15, 512  ;;  %p1060_p0 = scmp.lt.s32.totalorder %s647_s15, %s647_s15 }
 0x193   : > { %p1054_p13 = scmp.ne.s32.totalorder %s647_s15, %s1053_s21  ;;  %p1061_p5 = scmp.lt.s32.totalorder %s1053_s21, %s1053_s21 }
 0x195   : > { %p1055_p1 = pnand %p1054_p13, %p880_p8  ;;  %p1062_p7 = por %p1061_p5, %p1060_p0 }
 0x197   : > { %p1056_p2 = pneg %p1055_p1 }
 0x199   : > { %p1063_p9 = pnand %p1062_p7, %p1056_p2 }
 0x19b   : > { %1066 = shalt.err (!%p1063_p9)
}
 0x19c   : > { %s1067_s6 = scalar_lea.hbm %s1440_s3, 512 }
 0x19d   : > { %p1068_p12 = scmp.ne.s32.totalorder %s1440_s3, %s1067_s6  ;;  %p1073_p10 = scmp.lt.u32.totalorder %s1067_s6, %s1440_s3 }
 0x19f   : > { %p1069_p4 = pnand %p1068_p12, %p880_p8 }
 0x1a1   : > { %p1070_p11 = pneg %p1069_p4 }
 0x1a3   : > { %p1075_p3 = pnand %p1073_p10, %p1070_p11 }
 0x1a5   : > { %1078 = shalt.err (!%p1075_p3)
}
 0x1a6   : > { %s1154_s9 = smov 128   ;;  %s1155_s0 = smov 8  }
 0x1a7   : > { %863 = dma.vmem_to_hbm [thread:$0]  (%p880_p8), %s647_s15, 512, %s1440_s3, [#allocation5], %s1154_s9, %s1154_s9, %s1155_s0  }
 0x1a8   : > { %1116 = dma.done.wait (%p880_p8), [#allocation5], 512  }
 0x1a9   : > { %1118 = vsyncadd (%p880_p8), [#allocation5], 4294966784 }
 0x1aa PF: > { %s20_s17 = sadd.s32 1, %s1141_s17   ;;  %s1456_s12 = smov %s1125_s13 }
 0x1ab   : > { %p17_p6 = scmp.ge.s32.totalorder %s20_s17, 5   ;;  %s1457_s13 = smov %s1129_s14 }
 0x1ac   : > { %s1458_s14 = smov %s1275_s5  ;;  %s1459_s15 = smov %s1137_s16 }
 0x1ad   : > { %s1460_s16 = smov %s1462_s11  ;;  %19 = sbr.rel (!%p17_p6) target bundleno = 9 (0x9), region = 95 }
 0x1b4   :  { %662 = vsyncpa [#allocation4], 1 }
 0x1b5   :  { %664 = vsyncpa [#allocation4 + $0x1], 1 }
 0x1b6   :  { %665 = vsyncpa [#allocation7], 1 }
 0x1b7   :  { %667 = vsyncpa [#allocation7 + $0x1], 1 }
 0x1b8   :  { %668 = vsyncpa [#allocation5], 1 }
 0x1b9   :  { %670 = vsyncpa [#allocation5 + $0x1], 1 }

// kernel: _lambda_.41
= control target key start
LH: loop header
LB: loop body
LE: loop exit
PB: predicated region body
PF: predicated region fallthrough
CT: control target
= control target key end

     0   :  { %8 = vsyncpa [#allocation4], 0  ;;  %s1680_s0 = inlined_call_operand.hbm [shape: bf16[128,576], index: 0, kind: input, shape index: {}]   ;;  %s1681_s1 = inlined_call_operand.hbm [shape: bf16[576,128], index: 1, kind: input, shape index: {}]   ;;  %s1682_s2 = inlined_call_operand.hbm [shape: f32[1,128], index: 2, kind: input, shape index: {}]   ;;  %s1683_s3 = inlined_call_operand.hbm [shape: f32[128,128], index: 3, kind: output, shape index: {}]  }
   0x1   :  { %9 = vsyncpa [#allocation7], 0 }
   0x2   :  { %10 = vsyncpa [#allocation5], 0  ;;  %s1497_s12 = smov [#allocation6]   ;;  %s1403_s16 = scalar_lea.hbm %s1681_s1, 4608 }
   0x3   :  { %s28_s13 = sshll.u32 %s1497_s12, 4  ;;  %p1404_p0 = scmp.ne.s32.totalorder %s1681_s1, %s1403_s16  ;;  %s29_s13 = int_to_ptr.vmem [resolvable:$true] %s28_s13 }
   0x4   :  { %p1407_p1 = scmp.lt.u32.totalorder %s1403_s16, %s1681_s1 }
   0x6   :  { %p1409_p2 = pnand %p1407_p1, %p1404_p0 }
   0x8   :  { %1412 = shalt.err (!%p1409_p2)
}
   0x9   :  { %s1413_s21 = scalar_lea.vmem %s29_s13, 4608  ;;  %p1418_p4 = scmp.lt.s32.totalorder %s29_s13, %s29_s13 }
   0xa   :  { %p1414_p3 = scmp.ne.s32.totalorder %s29_s13, %s1413_s21  ;;  %p1419_p5 = scmp.lt.s32.totalorder %s1413_s21, %s1413_s21 }
   0xc   :  { %p1420_p6 = por %p1419_p5, %p1418_p4 }
   0xe   :  { %p1421_p7 = pnand %p1420_p6, %p1414_p3 }
  0x10   :  { %1424 = shalt.err (!%p1421_p7)
}
  0x11   :  { %s1498_s22 = smov 64   ;;  %s1499_s23 = smov 4  }
  0x12   :  { %34 = dma.hbm_to_vmem [thread:$0]  %s1681_s1, 4608, %s29_s13, [#allocation7], %s1498_s22, %s1498_s22, %s1499_s23  }
  0x13   :  { %s1500_s26 = smov [#allocation3]   ;;  %s1425_s30 = scalar_lea.hbm %s1680_s0, 5120 }
  0x14   :  { %s16_s27 = sshll.u32 %s1500_s26, 4  ;;  %p1426_p8 = scmp.ne.s32.totalorder %s1680_s0, %s1425_s30  ;;  %s17_s27 = int_to_ptr.vmem [resolvable:$true] %s16_s27 }
  0x15   :  { %p1429_p9 = scmp.lt.u32.totalorder %s1425_s30, %s1680_s0 }
  0x17   :  { %p1431_p10 = pnand %p1429_p9, %p1426_p8 }
  0x19   :  { %1434 = shalt.err (!%p1431_p10)
}
  0x1a   :  { %s1435_s8 = scalar_lea.vmem %s17_s27, 5120  ;;  %p1440_p12 = scmp.lt.s32.totalorder %s17_s27, %s17_s27 }
  0x1b   :  { %p1436_p11 = scmp.ne.s32.totalorder %s17_s27, %s1435_s8  ;;  %p1441_p13 = scmp.lt.s32.totalorder %s1435_s8, %s1435_s8 }
  0x1d   :  { %p1442_p0 = por %p1441_p13, %p1440_p12 }
  0x1f   :  { %p1443_p1 = pnand %p1442_p0, %p1436_p11 }
  0x21   :  { %1446 = shalt.err (!%p1443_p1)
}
  0x22   :  { %s1501_s1 = smov 320   ;;  %s1502_s9 = smov 20  }
  0x23   :  { %22 = dma.hbm_to_vmem [thread:$0]  %s1680_s0, 5120, %s17_s27, [#allocation4], %s1501_s1, %s1501_s1, %s1502_s9  }
  0x24   :  { %s1503_s12 = smov [#allocation8]   ;;  %s1447_s16 = scalar_lea.hbm %s1682_s2, 16 }
  0x25   :  { %s41_s13 = sshll.u32 %s1503_s12, 4  ;;  %p1448_p2 = scmp.ne.s32.totalorder %s1682_s2, %s1447_s16  ;;  %s42_s13 = int_to_ptr.vmem [resolvable:$true] %s41_s13 }
  0x26   :  { %p1451_p3 = scmp.lt.u32.totalorder %s1447_s16, %s1682_s2 }
  0x28   :  { %p1453_p4 = pnand %p1451_p3, %p1448_p2 }
  0x2a   :  { %1456 = shalt.err (!%p1453_p4)
}
  0x2b   :  { %s1457_s21 = scalar_lea.vmem %s42_s13, 16  ;;  %s1461_s0 = scalar_lea.vmem %s42_s13, 32 }
  0x2c   :  { %p1458_p5 = scmp.ne.s32.totalorder %s42_s13, %s1457_s21  ;;  %p1462_p6 = scmp.lt.s32.totalorder %s42_s13, %s42_s13 }
  0x2d   :  { %p1463_p7 = scmp.lt.s32.totalorder %s1461_s0, %s1457_s21 }
  0x2f   :  { %p1464_p8 = por %p1463_p7, %p1462_p6 }
  0x31   :  { %p1465_p9 = pnand %p1464_p8, %p1458_p5 }
  0x33   :  { %1468 = shalt.err (!%p1465_p9)
}
  0x34   :  { %44 = dma.hbm_to_vmem [thread:$0]  %s1682_s2, 16, %s42_s13, [#allocation7]  }
  0x35   :  { %1491 = dma.done.wait [#allocation4], 5120  }
  0x36   :  { %1492 = vsyncadd [#allocation4], 4294962176 }
  0x37   :  { %1493 = dma.done.wait [#allocation7], 4624  }
  0x38   :  { %1494 = vsyncadd [#allocation7], 4294962672  ;;  %v1367_v0 = vld [vmem:[#allocation6 + $0x40] sm:$0xff]   ;;  %v1371_v4 = vld [vmem:[#allocation6 + $0x48] sm:$0xff]   ;;  %v1504_v35 = vmov 0   ;;  %vm675_vm0 = vcmask 523264  }
  0x39   :  { %v1368_v1 = vld [vmem:[#allocation6 + $0xc0] sm:$0xff]   ;;  %1184 = vmatprep.subr.bf16.mxu0 %v1367_v0  ;;  %v1372_v5 = vld [vmem:[#allocation6 + $0xc8] sm:$0xff]   ;;  %v1375_v8 = vld [vmem:[#allocation6 + $0x50] sm:$0xff]   ;;  %s1505_s2 = smov [#allocation9]  }
  0x3a   :  { %v1369_v2 = vld [vmem:[#allocation6] sm:$0xff]   ;;  %1248 = vmatprep.subr.bf16.mxu1 %v1368_v1  ;;  %v1373_v6 = vld [vmem:[#allocation6 + $0x8] sm:$0xff]   ;;  %v1376_v9 = vld [vmem:[#allocation6 + $0xd0] sm:$0xff]   ;;  %s1086_s24 = sshll.u32 %s1505_s2, 4  ;;  %s1087_s24 = int_to_ptr.vmem [resolvable:$true] %s1086_s24 }
  0x3b   :  { %v1370_v3 = vld [vmem:[#allocation6 + $0x80] sm:$0xff]   ;;  %1185 = vmatpush3.bf16.msra.mxu0 %v1369_v2  ;;  %v1374_v7 = vld [vmem:[#allocation6 + $0x88] sm:$0xff]   ;;  %v1377_v10 = vld [vmem:[#allocation6 + $0x10] sm:$0xff]   ;;  %s1469_s25 = scalar_lea.vmem %s1087_s24, 2048  ;;  %p1474_p11 = scmp.lt.s32.totalorder %s1087_s24, %s1087_s24 }
  0x3c   :  { %1249 = vmatpush3.bf16.msra.mxu1 %v1370_v3  ;;  %1186 = vmatprep.subr.bf16.mxu0 %v1371_v4  ;;  %v1378_v11 = vld [vmem:[#allocation6 + $0x90] sm:$0xff]   ;;  %v1379_v12 = vld [vmem:[#allocation6 + $0x58] sm:$0xff]   ;;  %v1383_v16 = vld [vmem:[#allocation6 + $0x60] sm:$0xff]   ;;  %p1470_p10 = scmp.ne.s32.totalorder %s1087_s24, %s1469_s25  ;;  %p1475_p12 = scmp.lt.s32.totalorder %s1469_s25, %s1469_s25 }
  0x3d   :  { %1250 = vmatprep.subr.bf16.mxu1 %v1372_v5  ;;  %v1380_v13 = vld [vmem:[#allocation6 + $0xd8] sm:$0xff]   ;;  %v1384_v17 = vld [vmem:[#allocation6 + $0xe0] sm:$0xff]   ;;  %v1387_v20 = vld [vmem:[#allocation6 + $0x68] sm:$0xff]  }
  0x3e   :  { %v1381_v14 = vld [vmem:[#allocation6 + $0x18] sm:$0xff]   ;;  %v1385_v18 = vld [vmem:[#allocation6 + $0x20] sm:$0xff]   ;;  %v1388_v21 = vld [vmem:[#allocation6 + $0xe8] sm:$0xff]   ;;  %p1476_p13 = por %p1475_p12, %p1474_p11 }
  0x3f   :  { %1187 = vmatpush3.bf16.msra.mxu0 %v1373_v6  ;;  %v1382_v15 = vld [vmem:[#allocation6 + $0x98] sm:$0xff]   ;;  %v1386_v19 = vld [vmem:[#allocation6 + $0xa0] sm:$0xff]   ;;  %v1389_v22 = vld [vmem:[#allocation6 + $0x28] sm:$0xff]  }
  0x40   :  { %1251 = vmatpush3.bf16.msra.mxu1 %v1374_v7  ;;  %1188 = vmatprep.subr.bf16.mxu0 %v1375_v8  ;;  %v1390_v23 = vld [vmem:[#allocation6 + $0xa8] sm:$0xff]   ;;  %v1391_v24 = vld [vmem:[#allocation6 + $0x70] sm:$0xff]   ;;  %v1395_v28 = vld [vmem:[#allocation6 + $0x78] sm:$0xff]   ;;  %p1477_p0 = pnand %p1476_p13, %p1470_p10 }
  0x41   :  { %1252 = vmatprep.subr.bf16.mxu1 %v1376_v9  ;;  %v1392_v25 = vld [vmem:[#allocation6 + $0xf0] sm:$0xff]   ;;  %v1396_v29 = vld [vmem:[#allocation6 + $0xf8] sm:$0xff]   ;;  %v75_v32 = vld [vmem:[#allocation3] sm:$0xff] }
  0x42   :  { %v1393_v26 = vld [vmem:[#allocation6 + $0x30] sm:$0xff]   ;;  %v1397_v30 = vld [vmem:[#allocation6 + $0x38] sm:$0xff]   ;;  %v76_v34 = vld [vmem:[#allocation3 + $0x8] sm:$0xff]  ;;  %v123_v36 = vmax.bf16 %v1504_v35, %v75_v32 }
  0x43   :  { %1189 = vmatpush3.bf16.msra.mxu0 %v1377_v10  ;;  %v1394_v27 = vld [vmem:[#allocation6 + $0xb0] sm:$0xff]   ;;  %v1398_v31 = vld [vmem:[#allocation6 + $0xb8] sm:$0xff]   ;;  %v124_v39 = vmax.bf16 %v1504_v35, %v76_v34  ;;  %v1399_v41 = vld [vmem:[#allocation6 + $0x100] sm:$0xff]  }
  0x44   :  { %1253 = vmatpush3.bf16.msra.mxu1 %v1378_v11  ;;  %1190 = vmatprep.subr.bf16.mxu0 %v1379_v12  ;;  %v78_v33 = vld [vmem:[#allocation3 + $0x14] sm:$0xff]  ;;  %v79_v38 = vld [vmem:[#allocation3 + $0x1c] sm:$0xff]  ;;  %v81_v42 = vld [vmem:[#allocation3 + $0x28] sm:$0xff] }
  0x45   :  { %1254 = vmatprep.subr.bf16.mxu1 %v1380_v13  ;;  %v126_v37 = vmax.bf16 %v1504_v35, %v78_v33  ;;  %v127_v40 = vmax.bf16 %v1504_v35, %v79_v38  ;;  %v84_v43 = vld [vmem:[#allocation3 + $0x3c] sm:$0xff]  ;;  %v129_v46 = vmax.bf16 %v1504_v35, %v81_v42  ;;  %v82_v48 = vld [vmem:[#allocation3 + $0x30] sm:$0xff]  ;;  %v85_v49 = vld [vmem:[#allocation3 + $0x44] sm:$0xff] }
  0x46   :  { %v132_v47 = vmax.bf16 %v1504_v35, %v84_v43  ;;  %v87_v50 = vld [vmem:[#allocation3 + $0x50] sm:$0xff]  ;;  %v130_v53 = vmax.bf16 %v1504_v35, %v82_v48  ;;  %v90_v54 = vld [vmem:[#allocation3 + $0x64] sm:$0xff]  ;;  %v88_v55 = vld [vmem:[#allocation3 + $0x58] sm:$0xff]  ;;  %v133_v58 = vmax.bf16 %v1504_v35, %v85_v49 }
  0x47   :  { %1191 = vmatpush3.bf16.msra.mxu0 %v1381_v14  ;;  %v1100_v44 = vcombine.high %v123_v36, %v126_v37  ;;  %v1099_v45 = vcombine.low %v123_v36, %v126_v37  ;;  %v1102_v51 = vcombine.high %v124_v39, %v127_v40  ;;  %v1101_v52 = vcombine.low %v124_v39, %v127_v40  ;;  %v91_v56 = vld [vmem:[#allocation3 + $0x6c] sm:$0xff]  ;;  %v93_v5 = vld [vmem:[#allocation3 + $0x78] sm:$0xff]  ;;  %v94_v8 = vld [vmem:[#allocation3 + $0x80] sm:$0xff] }
  0x48   :  { %1255 = vmatpush3.bf16.msra.mxu1 %v1382_v15  ;;  %1192 = vmatprep.subr.bf16.mxu0 %v1383_v16  ;;  %v1105_v57 = vcombine.high %v129_v46, %v132_v47  ;;  %v1400_v59 = vld [vmem:[#allocation6 + $0x108] sm:$0xff]   ;;  %v1107_v60 = vcombine.high %v130_v53, %v133_v58  ;;  %v135_v61 = vmax.bf16 %v1504_v35, %v87_v50  ;;  %v1401_v1 = vld [vmem:[#allocation6 + $0x110] sm:$0xff]   ;;  %v1402_v10 = vld [vmem:[#allocation6 + $0x118] sm:$0xff]  }
  0x49   :  { %1256 = vmatprep.subr.bf16.mxu1 %v1384_v17  ;;  %732 = vmatprep.mubr.bf16.mxu0 %v1100_v44  ;;  %v138_v62 = vmax.bf16 %v1504_v35, %v90_v54  ;;  %v136_v63 = vmax.bf16 %v1504_v35, %v88_v55  ;;  %v139_v0 = vmax.bf16 %v1504_v35, %v91_v56  ;;  %v96_v7 = vld [vmem:[#allocation3 + $0x8c] sm:$0xff]  ;;  %v97_v9 = vld [vmem:[#allocation3 + $0x94] sm:$0xff]  ;;  %v108_v32 = vld [vmem:[#allocation3 + $0xdc] sm:$0xff] }
  0x4a   :  { %829 = vmatprep.mubr.bf16.mxu1 %v1102_v51  ;;  %v1104_v2 = vcombine.low %v129_v46, %v132_v47  ;;  %v1106_v3 = vcombine.low %v130_v53, %v133_v58  ;;  %v141_v11 = vmax.bf16 %v1504_v35, %v93_v5  ;;  %v144_v12 = vmax.bf16 %v1504_v35, %v96_v7  ;;  %v106_v33 = vld [vmem:[#allocation3 + $0xd0] sm:$0xff]  ;;  %v109_v34 = vld [vmem:[#allocation3 + $0xe4] sm:$0xff]  ;;  %v112_v46 = vld [vmem:[#allocation3 + $0xf8] sm:$0xff] }
  0x4b   :  { %1193 = vmatpush3.bf16.msra.mxu0 %v1385_v18  ;;  %v1110_v4 = vcombine.high %v135_v61, %v138_v62  ;;  %v1112_v6 = vcombine.high %v136_v63, %v139_v0  ;;  %v142_v13 = vmax.bf16 %v1504_v35, %v94_v8  ;;  %v145_v14 = vmax.bf16 %v1504_v35, %v97_v9  ;;  %v111_v44 = vld [vmem:[#allocation3 + $0xf0] sm:$0xff]  ;;  %v117_v56 = vld [vmem:[#allocation3 + $0x118] sm:$0xff]  ;;  %v118_v58 = vld [vmem:[#allocation3 + $0x120] sm:$0xff] }
  0x4c   :  { %1257 = vmatpush3.bf16.msra.mxu1 %v1386_v19  ;;  %1194 = vmatprep.subr.bf16.mxu0 %v1387_v20  ;;  %v1109_v15 = vcombine.low %v135_v61, %v138_v62  ;;  %v1111_v16 = vcombine.low %v136_v63, %v139_v0  ;;  %v1115_v17 = vcombine.high %v141_v11, %v144_v12  ;;  %v99_v19 = vld [vmem:[#allocation3 + $0xa0] sm:$0xff]  ;;  %v102_v20 = vld [vmem:[#allocation3 + $0xb4] sm:$0xff]  ;;  %v115_v47 = vld [vmem:[#allocation3 + $0x10c] sm:$0xff] }
  0x4d   :  { %1258 = vmatprep.subr.bf16.mxu1 %v1388_v21  ;;  %v1117_v18 = vcombine.high %v142_v13, %v145_v14  ;;  %v100_v21 = vld [vmem:[#allocation3 + $0xa8] sm:$0xff]  ;;  %v156_v37 = vmax.bf16 %v1504_v35, %v108_v32  ;;  %v154_v38 = vmax.bf16 %v1504_v35, %v106_v33  ;;  %v157_v39 = vmax.bf16 %v1504_v35, %v109_v34  ;;  %v80_v5 = vld [vmem:[#allocation3 + $0x24] sm:$0xf] }
  0x4e   :  { %v159_v48 = vmax.bf16 %v1504_v35, %v111_v44  ;;  %v160_v50 = vmax.bf16 %v1504_v35, %v112_v46  ;;  %v163_v51 = vmax.bf16 %v1504_v35, %v115_v47  ;;  %v166_v62 = vmax.bf16 %v1504_v35, %v118_v58  ;;  %v104_v7 = vld [vmem:[#allocation3 + $0xc4] sm:$0xf] }
  0x4f   :  { %1195 = vmatpush3.bf16.msra.mxu0 %v1389_v22  ;;  %v103_v22 = vld [vmem:[#allocation3 + $0xbc] sm:$0xff]  ;;  %v1127_v43 = vcombine.high %v154_v38, %v157_v39  ;;  %v1126_v53 = vcombine.low %v154_v38, %v157_v39  ;;  %v128_v9 = vmax.bf16 %v1504_v35, %v80_v5  ;;  %v119_v39 = vld [vmem:[#allocation3 + $0x128] sm:$0xf] }
  0x50   :  { %1259 = vmatpush3.bf16.msra.mxu1 %v1390_v23  ;;  %1196 = vmatprep.subr.bf16.mxu0 %v1391_v24  ;;  %v147_v23 = vmax.bf16 %v1504_v35, %v99_v19  ;;  %v150_v24 = vmax.bf16 %v1504_v35, %v102_v20  ;;  %v1132_v55 = vcombine.high %v160_v50, %v163_v51  ;;  %v110_v19 = vld [vmem:[#allocation3 + $0xec] sm:$0xf]  ;;  %v89_v20 = vld [vmem:[#allocation3 + $0x60] sm:$0xf] }
  0x51   :  { %1260 = vmatprep.subr.bf16.mxu1 %v1392_v25  ;;  %v148_v25 = vmax.bf16 %v1504_v35, %v100_v21  ;;  %v92_v21 = vld [vmem:[#allocation3 + $0x74] sm:$0xf] }
  0x52   :  { %v1119_v40 = vcombine.low %v147_v23, %v150_v24 }
  0x53   :  { %1197 = vmatpush3.bf16.msra.mxu0 %v1393_v26  ;;  %v151_v26 = vmax.bf16 %v1504_v35, %v103_v22  ;;  %v113_v22 = vld [vmem:[#allocation3 + $0x100] sm:$0xf] }
  0x54   :  { %1261 = vmatpush3.bf16.msra.mxu1 %v1394_v27  ;;  %1198 = vmatprep.subr.bf16.mxu0 %v1395_v28  ;;  %v1114_v27 = vcombine.low %v141_v11, %v144_v12  ;;  %v1116_v28 = vcombine.low %v142_v13, %v145_v14  ;;  %v152_v11 = vmax.bf16 %v1504_v35, %v104_v7 }
  0x55   :  { %1262 = vmatprep.subr.bf16.mxu1 %v1396_v29  ;;  %v1120_v29 = vcombine.high %v147_v23, %v150_v24  ;;  %v116_v23 = vld [vmem:[#allocation3 + $0x114] sm:$0xf] }
  0x57   :  { %1199 = vmatpush3.bf16.msra.mxu0 %v1397_v30  ;;  %v1122_v30 = vcombine.high %v148_v25, %v151_v26 }
  0x58   :  { %1263 = vmatpush3.bf16.msra.mxu1 %v1398_v31  ;;  %1324 = vmatprep.subr.bf16.mxu0 %v1399_v41  ;;  %v105_v31 = vld [vmem:[#allocation3 + $0xc8] sm:$0xff] }
  0x59   :  { %1348 = vmatprep.subr.bf16.mxu1 %v1399_v41  ;;  %v153_v36 = vmax.bf16 %v1504_v35, %v105_v31  ;;  %v164_v31 = vmax.bf16 %v1504_v35, %v116_v23 }
  0x5a   :  { %733 = vmatmul.mubr.bf16.vlgmr.msra.gmra.mrb[0].mxu0 %v1099_v45  ;;  %v114_v45 = vld [vmem:[#allocation3 + $0x104] sm:$0xff] }
  0x5b   :  { %830 = vmatmul.mubr.bf16.vlgmr.msra.gmra.mrb[0].mxu1 %v1101_v52  ;;  %1325 = vmatpush3.bf16.msra.mxu0 %v1399_v41  ;;  %v1125_v42 = vcombine.high %v153_v36, %v156_v37  ;;  %v162_v49 = vmax.bf16 %v1504_v35, %v114_v45  ;;  %v1124_v52 = vcombine.low %v153_v36, %v156_v37  ;;  %v95_v36 = vld [vmem:[#allocation3 + $0x88] sm:$0xf]  ;;  %v98_v37 = vld [vmem:[#allocation3 + $0x9c] sm:$0xf] }
  0x5c   :  { %1352 = vmatpush3.bf16.msra.mxu1 %v1399_v41  ;;  %740 = vmatprep.mubr.bf16.mxu0 %v1105_v57  ;;  %v1121_v41 = vcombine.low %v148_v25, %v151_v26  ;;  %v120_v57 = vld [vmem:[#allocation3 + $0x12c] sm:$0xff] }
  0x5d   :  { %837 = vmatprep.mubr.bf16.mxu1 %v1107_v60  ;;  %1326 = vmatprep.subr.bf16.mxu0 %v1400_v59  ;;  %v1130_v54 = vcombine.high %v159_v48, %v162_v49  ;;  %v165_v60 = vmax.bf16 %v1504_v35, %v117_v56  ;;  %v168_v61 = vmax.bf16 %v1504_v35, %v120_v57 }
  0x5e   :  { %1349 = vmatprep.subr.bf16.mxu1 %v1400_v59  ;;  %v1129_v0 = vcombine.low %v159_v48, %v162_v49 }
  0x5f   :  { %1327 = vmatpush3.bf16.msra.mxu0 %v1400_v59  ;;  %v1134_v12 = vcombine.low %v165_v60, %v168_v61 }
  0x60   :  { %1353 = vmatpush3.bf16.msra.mxu1 %v1400_v59  ;;  %1328 = vmatprep.subr.bf16.mxu0 %v1401_v1  ;;  %v121_v59 = vld [vmem:[#allocation3 + $0x134] sm:$0xff] }
  0x61   :  { %1350 = vmatprep.subr.bf16.mxu1 %v1401_v1  ;;  %v169_v63 = vmax.bf16 %v1504_v35, %v121_v59 }
  0x62   :  { %741 = vmatmul.mubr.bf16.gmra.mrb[4].mxu0 %v1104_v2  ;;  %v1135_v2 = vcombine.high %v165_v60, %v168_v61 }
  0x63   :  { %838 = vmatmul.mubr.bf16.gmra.mrb[4].mxu1 %v1106_v3  ;;  %748 = vmatprep.mubr.bf16.mxu0 %v1110_v4  ;;  %v1137_v3 = vcombine.high %v166_v62, %v169_v63  ;;  %v77_v4 = vld [vmem:[#allocation3 + $0x10] sm:$0xf]  ;;  %v1136_v13 = vcombine.low %v166_v62, %v169_v63 }
  0x64   :  { %845 = vmatprep.mubr.bf16.mxu1 %v1112_v6  ;;  %1329 = vmatpush3.bf16.msra.mxu0 %v1401_v1  ;;  %v101_v6 = vld [vmem:[#allocation3 + $0xb0] sm:$0xf]  ;;  %v125_v8 = vmax.bf16 %v1504_v35, %v77_v4 }
  0x65   :  { %1354 = vmatpush3.bf16.msra.mxu1 %v1401_v1  ;;  %1330 = vmatprep.subr.bf16.mxu0 %v1402_v10  ;;  %v1131_v1 = vcombine.low %v160_v50, %v163_v51 }
  0x66   :  { %1351 = vmatprep.subr.bf16.mxu1 %v1402_v10  ;;  %v1103_v14 = vcombine.low %v125_v8, %v128_v9 }
  0x68   :  { %1331 = vmatpush3.bf16.msra.mxu0 %v1402_v10 }
  0x69   :  { %1355 = vmatpush3.bf16.msra.mxu1 %v1402_v10  ;;  %v149_v10 = vmax.bf16 %v1504_v35, %v101_v6 }
  0x6a   :  { %749 = vmatmul.mubr.bf16.gmra.mrb[8].mxu0 %v1109_v15  ;;  %v83_v15 = vld [vmem:[#allocation3 + $0x38] sm:$0xf] }
  0x6b   :  { %846 = vmatmul.mubr.bf16.gmra.mrb[8].mxu1 %v1111_v16  ;;  %756 = vmatprep.mubr.bf16.mxu0 %v1115_v17  ;;  %v86_v16 = vld [vmem:[#allocation3 + $0x4c] sm:$0xf]  ;;  %v107_v17 = vld [vmem:[#allocation3 + $0xd8] sm:$0xf]  ;;  %v131_v24 = vmax.bf16 %v1504_v35, %v83_v15 }
  0x6c   :  { %853 = vmatprep.mubr.bf16.mxu1 %v1117_v18  ;;  %v1123_v18 = vcombine.low %v149_v10, %v152_v11  ;;  %v134_v25 = vmax.bf16 %v1504_v35, %v86_v16  ;;  %v155_v26 = vmax.bf16 %v1504_v35, %v107_v17 }
  0x6e   :  { %v1108_v32 = vcombine.low %v131_v24, %v134_v25 }
  0x72   :  { %757 = vmatmul.mubr.bf16.gmra.mrb[12].mxu0 %v1114_v27  ;;  %v158_v27 = vmax.bf16 %v1504_v35, %v110_v19 }
  0x73   :  { %854 = vmatmul.mubr.bf16.gmra.mrb[12].mxu1 %v1116_v28  ;;  %764 = vmatprep.mubr.bf16.mxu0 %v1120_v29  ;;  %v137_v28 = vmax.bf16 %v1504_v35, %v89_v20  ;;  %v140_v29 = vmax.bf16 %v1504_v35, %v92_v21 }
  0x74   :  { %861 = vmatprep.mubr.bf16.mxu1 %v1122_v30  ;;  %v161_v30 = vmax.bf16 %v1504_v35, %v113_v22  ;;  %v1128_v33 = vcombine.low %v155_v26, %v158_v27 }
  0x75   :  { %v1113_v34 = vcombine.low %v137_v28, %v140_v29 }
  0x76   :  { %v1133_v38 = vcombine.low %v161_v30, %v164_v31 }
  0x7a   :  { %765 = vmatmul.mubr.bf16.gmra.mrb[16].mxu0 %v1119_v40  ;;  %v122_v40 = vld [vmem:[#allocation3 + $0x13c] sm:$0xf] }
  0x7b   :  { %862 = vmatmul.mubr.bf16.gmra.mrb[16].mxu1 %v1121_v41  ;;  %772 = vmatprep.mubr.bf16.mxu0 %v1125_v42  ;;  %v143_v41 = vmax.bf16 %v1504_v35, %v95_v36  ;;  %v146_v42 = vmax.bf16 %v1504_v35, %v98_v37  ;;  %v170_v44 = vmax.bf16 %v1504_v35, %v122_v40 }
  0x7c   :  { %869 = vmatprep.mubr.bf16.mxu1 %v1127_v43  ;;  %v167_v43 = vmax.bf16 %v1504_v35, %v119_v39 }
  0x7d   :  { %v1118_v45 = vcombine.low %v143_v41, %v146_v42 }
  0x7e   :  { %v1138_v46 = vcombine.low %v167_v43, %v170_v44 }
  0x82   :  { %773 = vmatmul.mubr.bf16.gmra.mrb[20].mxu0 %v1124_v52 }
  0x83   :  { %870 = vmatmul.mubr.bf16.gmra.mrb[20].mxu1 %v1126_v53  ;;  %780 = vmatprep.mubr.bf16.mxu0 %v1130_v54 }
  0x84   :  { %877 = vmatprep.mubr.bf16.mxu1 %v1132_v55 }
  0x8a   :  { %781 = vmatmul.mubr.bf16.gmra.mrb[24].mxu0 %v1129_v0 }
  0x8b   :  { %878 = vmatmul.mubr.bf16.gmra.mrb[24].mxu1 %v1131_v1  ;;  %788 = vmatprep.mubr.bf16.mxu0 %v1135_v2 }
  0x8c   :  { %885 = vmatprep.mubr.bf16.mxu1 %v1137_v3 }
  0x92   :  { %789 = vmatmul.mubr.bf16.gmra.mrb[28].mxu0 %v1134_v12 }
  0x93   :  { %886 = vmatmul.mubr.bf16.gmra.mrb[28].mxu1 %v1136_v13  ;;  %1332 = vmatprep.mubr.msk.bf16.mxu0 %vm675_vm0, %v1103_v14 }
  0x94   :  { %1340 = vmatprep.mubr.msk.bf16.mxu1 %vm675_vm0, %v1123_v18 }
  0x9a   :  { %1333 = vmatmul.mubr.msk.bf16.vlgmr.msra.gmra.mrb[32].mxu0 %vm675_vm0, %v1108_v32 }
  0x9b   :  { %1341 = vmatmul.mubr.msk.bf16.vlgmr.msra.gmra.mrb[32].mxu1 %vm675_vm0, %v1128_v33  ;;  %1336 = vmatprep.mubr.msk.bf16.mxu0 %vm675_vm0, %v1113_v34 }
  0x9c   :  { %1344 = vmatprep.mubr.msk.bf16.mxu1 %vm675_vm0, %v1133_v38 }
  0xa2   :  { %1337 = vmatmul.mubr.msk.bf16.gmra.mrb[36].mxu0 %vm675_vm0, %v1118_v45 }
  0xa3   :  { %1345 = vmatmul.mubr.msk.bf16.gmra.mrb[36].mxu1 %vm675_vm0, %v1138_v46 }
 0x12d   :  { %v1200_v47 = vpop.f32.mrb[0].mxu0 }
 0x12e   :  { %v1264_v48 = vpop.f32.mrb[0].mxu1  ;;  %v1201_v49 = vpop.f32.mrb[1].mxu0 }
 0x12f   :  { %v1202_v50 = vadd.f32 %v1201_v49, %v1200_v47  ;;  %v1265_v51 = vpop.f32.mrb[1].mxu1  ;;  %v1203_v52 = vpop.f32.mrb[2].mxu0 }
 0x130   :  { %v1266_v53 = vadd.f32 %v1265_v51, %v1264_v48  ;;  %v1267_v54 = vpop.f32.mrb[2].mxu1  ;;  %v1204_v55 = vpop.f32.mrb[3].mxu0 }
 0x131   :  { %v1205_v56 = vadd.f32 %v1204_v55, %v1203_v52  ;;  %v1268_v57 = vpop.f32.mrb[3].mxu1 }
 0x132   :  { %v1269_v35 = vadd.f32 %v1268_v57, %v1267_v54  ;;  %v1620_v58 = vadd.f32 %v1266_v53, %v1202_v50 }
 0x134   :  { %v1622_v59 = vadd.f32 %v1269_v35, %v1205_v56 }
 0x135   :  { %v1206_v60 = vpop.f32.mrb[4].mxu0 }
 0x136   :  { %v1270_v61 = vpop.f32.mrb[4].mxu1  ;;  %v1207_v62 = vpop.f32.mrb[5].mxu0 }
 0x137   :  { %v1208_v63 = vadd.f32 %v1207_v62, %v1206_v60  ;;  %v1271_v0 = vpop.f32.mrb[5].mxu1  ;;  %v1209_v1 = vpop.f32.mrb[6].mxu0 }
 0x138   :  { %v1272_v2 = vadd.f32 %v1271_v0, %v1270_v61  ;;  %v1273_v3 = vpop.f32.mrb[6].mxu1  ;;  %v1210_v4 = vpop.f32.mrb[7].mxu0 }
 0x139   :  { %v1211_v5 = vadd.f32 %v1210_v4, %v1209_v1  ;;  %v1274_v6 = vpop.f32.mrb[7].mxu1 }
 0x13a   :  { %v1275_v7 = vadd.f32 %v1274_v6, %v1273_v3  ;;  %v1624_v8 = vadd.f32 %v1272_v2, %v1208_v63 }
 0x13c   :  { %v1626_v9 = vadd.f32 %v1275_v7, %v1211_v5 }
 0x13d   :  { %v1212_v10 = vpop.f32.mrb[8].mxu0 }
 0x13e   :  { %v1276_v11 = vpop.f32.mrb[8].mxu1  ;;  %v1213_v12 = vpop.f32.mrb[9].mxu0 }
 0x13f   :  { %v1214_v13 = vadd.f32 %v1213_v12, %v1212_v10  ;;  %v1277_v14 = vpop.f32.mrb[9].mxu1  ;;  %v1215_v15 = vpop.f32.mrb[10].mxu0 }
 0x140   :  { %v1278_v16 = vadd.f32 %v1277_v14, %v1276_v11  ;;  %v1279_v17 = vpop.f32.mrb[10].mxu1  ;;  %v1216_v18 = vpop.f32.mrb[11].mxu0 }
 0x141   :  { %v1217_v19 = vadd.f32 %v1216_v18, %v1215_v15  ;;  %v1280_v20 = vpop.f32.mrb[11].mxu1 }
 0x142   :  { %v1281_v21 = vadd.f32 %v1280_v20, %v1279_v17  ;;  %v1628_v22 = vadd.f32 %v1278_v16, %v1214_v13 }
 0x144   :  { %v1630_v23 = vadd.f32 %v1281_v21, %v1217_v19 }
 0x145   :  { %v1218_v24 = vpop.f32.mrb[12].mxu0 }
 0x146   :  { %v1282_v25 = vpop.f32.mrb[12].mxu1  ;;  %v1219_v26 = vpop.f32.mrb[13].mxu0 }
 0x147   :  { %v1220_v27 = vadd.f32 %v1219_v26, %v1218_v24  ;;  %v1283_v28 = vpop.f32.mrb[13].mxu1  ;;  %v1221_v29 = vpop.f32.mrb[14].mxu0 }
 0x148   :  { %v1284_v30 = vadd.f32 %v1283_v28, %v1282_v25  ;;  %v1285_v31 = vpop.f32.mrb[14].mxu1  ;;  %v1222_v32 = vpop.f32.mrb[15].mxu0 }
 0x149   :  { %v1223_v33 = vadd.f32 %v1222_v32, %v1221_v29  ;;  %v1286_v34 = vpop.f32.mrb[15].mxu1 }
 0x14a   :  { %v1287_v36 = vadd.f32 %v1286_v34, %v1285_v31  ;;  %v1632_v37 = vadd.f32 %v1284_v30, %v1220_v27 }
 0x14c   :  { %v1634_v38 = vadd.f32 %v1287_v36, %v1223_v33 }
 0x14d   :  { %v1224_v39 = vpop.f32.mrb[16].mxu0 }
 0x14e   :  { %v1288_v40 = vpop.f32.mrb[16].mxu1  ;;  %v1225_v41 = vpop.f32.mrb[17].mxu0 }
 0x14f   :  { %v1226_v42 = vadd.f32 %v1225_v41, %v1224_v39  ;;  %v1289_v43 = vpop.f32.mrb[17].mxu1  ;;  %v1227_v44 = vpop.f32.mrb[18].mxu0 }
 0x150   :  { %v1290_v45 = vadd.f32 %v1289_v43, %v1288_v40  ;;  %v1291_v46 = vpop.f32.mrb[18].mxu1  ;;  %v1228_v47 = vpop.f32.mrb[19].mxu0  ;;  %v1640_v40 = vld [vmem:[#allocation8] ss:$0 sm:$0xff] }
 0x151   :  { %v1229_v48 = vadd.f32 %v1228_v47, %v1227_v44  ;;  %v1292_v49 = vpop.f32.mrb[19].mxu1 }
 0x152   :  { %v1293_v50 = vadd.f32 %v1292_v49, %v1291_v46  ;;  %v864_v51 = vadd.f32 %v1290_v45, %v1226_v42 }
 0x154   :  { %v1636_v52 = vadd.f32 %v1293_v50, %v1229_v48 }
 0x155   :  { %v1230_v53 = vpop.f32.mrb[20].mxu0 }
 0x156   :  { %v1294_v54 = vpop.f32.mrb[20].mxu1  ;;  %v1231_v55 = vpop.f32.mrb[21].mxu0 }
 0x157   :  { %v1232_v56 = vadd.f32 %v1231_v55, %v1230_v53  ;;  %v1295_v57 = vpop.f32.mrb[21].mxu1  ;;  %v1233_v35 = vpop.f32.mrb[22].mxu0 }
 0x158   :  { %v1296_v60 = vadd.f32 %v1295_v57, %v1294_v54  ;;  %v1297_v61 = vpop.f32.mrb[22].mxu1  ;;  %v1234_v62 = vpop.f32.mrb[23].mxu0 }
 0x159   :  { %v1235_v63 = vadd.f32 %v1234_v62, %v1233_v35  ;;  %v1298_v0 = vpop.f32.mrb[23].mxu1 }
 0x15a   :  { %v1299_v1 = vadd.f32 %v1298_v0, %v1297_v61  ;;  %v872_v2 = vadd.f32 %v1296_v60, %v1232_v56 }
 0x15c   :  { %v875_v3 = vadd.f32 %v1299_v1, %v1235_v63 }
 0x15d   :  { %v1236_v4 = vpop.f32.mrb[24].mxu0 }
 0x15e   :  { %v1300_v5 = vpop.f32.mrb[24].mxu1  ;;  %v1237_v6 = vpop.f32.mrb[25].mxu0 }
 0x15f   :  { %v1238_v7 = vadd.f32 %v1237_v6, %v1236_v4  ;;  %v1301_v10 = vpop.f32.mrb[25].mxu1  ;;  %v1239_v11 = vpop.f32.mrb[26].mxu0 }
 0x160   :  { %v1302_v12 = vadd.f32 %v1301_v10, %v1300_v5  ;;  %v1303_v13 = vpop.f32.mrb[26].mxu1  ;;  %v1240_v14 = vpop.f32.mrb[27].mxu0 }
 0x161   :  { %v1241_v15 = vadd.f32 %v1240_v14, %v1239_v11  ;;  %v1304_v16 = vpop.f32.mrb[27].mxu1 }
 0x162   :  { %v1305_v17 = vadd.f32 %v1304_v16, %v1303_v13  ;;  %v880_v18 = vadd.f32 %v1302_v12, %v1238_v7 }
 0x164   :  { %v1638_v19 = vadd.f32 %v1305_v17, %v1241_v15 }
 0x165   :  { %v1242_v20 = vpop.f32.mrb[28].mxu0 }
 0x166   :  { %v1306_v21 = vpop.f32.mrb[28].mxu1  ;;  %v1243_v24 = vpop.f32.mrb[29].mxu0 }
 0x167   :  { %v1244_v25 = vadd.f32 %v1243_v24, %v1242_v20  ;;  %v1307_v26 = vpop.f32.mrb[29].mxu1  ;;  %v1245_v27 = vpop.f32.mrb[30].mxu0 }
 0x168   :  { %v1308_v28 = vadd.f32 %v1307_v26, %v1306_v21  ;;  %v1309_v29 = vpop.f32.mrb[30].mxu1  ;;  %v1246_v30 = vpop.f32.mrb[31].mxu0 }
 0x169   :  { %v1247_v31 = vadd.f32 %v1246_v30, %v1245_v27  ;;  %v1310_v32 = vpop.f32.mrb[31].mxu1 }
 0x16a   :  { %v1311_v33 = vadd.f32 %v1310_v32, %v1309_v29  ;;  %v888_v34 = vadd.f32 %v1308_v28, %v1244_v25 }
 0x16c   :  { %v891_v36 = vadd.f32 %v1311_v33, %v1247_v31 }
 0x16d   :  { %v1334_v39 = vpop.f32.mrb[32].mxu0 }
 0x16e   :  { %v937_v41 = vadd.f32 %v1334_v39, %v1624_v8  ;;  %v1342_v42 = vpop.f32.mrb[32].mxu1  ;;  %v928_v43 = vpop.f32.mrb[33].mxu0 }
 0x16f   :  { %v969_v44 = vadd.f32 %v1342_v42, %v872_v2  ;;  %v929_v45 = vadd.f32 %v928_v43, %v1620_v58  ;;  %v960_v46 = vpop.f32.mrb[33].mxu1  ;;  %v1335_v47 = vpop.f32.mrb[34].mxu0 }
 0x170   :  { %v1051_v48 = vadd.f32 %v1640_v40, %v937_v41  ;;  %v961_v49 = vadd.f32 %v960_v46, %v864_v51  ;;  %v940_v50 = vadd.f32 %v1335_v47, %v1626_v9  ;;  %v1343_v53 = vpop.f32.mrb[34].mxu1  ;;  %v931_v54 = vpop.f32.mrb[35].mxu0 }
 0x171   :  { %v1059_v55 = vadd.f32 %v1640_v40, %v969_v44  ;;  %v1049_v56 = vadd.f32 %v1640_v40, %v929_v45  ;;  %v972_v57 = vadd.f32 %v1343_v53, %v875_v3  ;;  %v932_v8 = vadd.f32 %v931_v54, %v1622_v59  ;;  %v963_v35 = vpop.f32.mrb[35].mxu1 }
 0x172   :  { %1067 = vst [vmem:[#allocation9 + $0x10] sm:$0xff] %v1051_v48  ;;  %v1057_v58 = vadd.f32 %v1640_v40, %v961_v49  ;;  %v1052_v60 = vadd.f32 %v1640_v40, %v940_v50  ;;  %v964_v61 = vadd.f32 %v963_v35, %v1636_v52 }
 0x173   :  { %1075 = vst [vmem:[#allocation9 + $0x50] sm:$0xff] %v1059_v55  ;;  %1065 = vst [vmem:[#allocation9] sm:$0xff] %v1049_v56  ;;  %v1060_v9 = vadd.f32 %v1640_v40, %v972_v57  ;;  %v1050_v51 = vadd.f32 %v1640_v40, %v932_v8 }
 0x174   :  { %1073 = vst [vmem:[#allocation9 + $0x40] sm:$0xff] %v1057_v58  ;;  %1068 = vst [vmem:[#allocation9 + $0x18] sm:$0xff] %v1052_v60  ;;  %v1058_v62 = vadd.f32 %v1640_v40, %v964_v61 }
 0x175   :  { %1076 = vst [vmem:[#allocation9 + $0x58] sm:$0xff] %v1060_v9  ;;  %1066 = vst [vmem:[#allocation9 + $0x8] sm:$0xff] %v1050_v51  ;;  %v1338_v59 = vpop.f32.mrb[36].mxu0 }
 0x176   :  { %1074 = vst [vmem:[#allocation9 + $0x48] sm:$0xff] %v1058_v62  ;;  %v953_v63 = vadd.f32 %v1338_v59, %v1632_v37  ;;  %v1346_v0 = vpop.f32.mrb[36].mxu1  ;;  %v944_v1 = vpop.f32.mrb[37].mxu0 }
 0x177   :  { %v985_v2 = vadd.f32 %v1346_v0, %v888_v34  ;;  %v945_v52 = vadd.f32 %v944_v1, %v1628_v22  ;;  %v976_v3 = vpop.f32.mrb[37].mxu1  ;;  %v1339_v4 = vpop.f32.mrb[38].mxu0 }
 0x178   :  { %v1055_v5 = vadd.f32 %v1640_v40, %v953_v63  ;;  %v977_v6 = vadd.f32 %v976_v3, %v880_v18  ;;  %v956_v7 = vadd.f32 %v1339_v4, %v1634_v38  ;;  %v1347_v10 = vpop.f32.mrb[38].mxu1  ;;  %v947_v11 = vpop.f32.mrb[39].mxu0 }
 0x179   :  { %v1063_v12 = vadd.f32 %v1640_v40, %v985_v2  ;;  %v1053_v37 = vadd.f32 %v1640_v40, %v945_v52  ;;  %v988_v13 = vadd.f32 %v1347_v10, %v891_v36  ;;  %v948_v14 = vadd.f32 %v947_v11, %v1630_v23  ;;  %v979_v15 = vpop.f32.mrb[39].mxu1 }
 0x17a   :  { %1071 = vst [vmem:[#allocation9 + $0x30] sm:$0xff] %v1055_v5  ;;  %v1061_v22 = vadd.f32 %v1640_v40, %v977_v6  ;;  %v1056_v16 = vadd.f32 %v1640_v40, %v956_v7  ;;  %v980_v17 = vadd.f32 %v979_v15, %v1638_v19 }
 0x17b   :  { %1079 = vst [vmem:[#allocation9 + $0x70] sm:$0xff] %v1063_v12  ;;  %1069 = vst [vmem:[#allocation9 + $0x20] sm:$0xff] %v1053_v37  ;;  %v1064_v38 = vadd.f32 %v1640_v40, %v988_v13  ;;  %v1054_v18 = vadd.f32 %v1640_v40, %v948_v14 }
 0x17c   :  { %1077 = vst [vmem:[#allocation9 + $0x60] sm:$0xff] %v1061_v22  ;;  %1072 = vst [vmem:[#allocation9 + $0x38] sm:$0xff] %v1056_v16  ;;  %v1062_v20 = vadd.f32 %v1640_v40, %v980_v17 }
 0x17d   :  { %1080 = vst [vmem:[#allocation9 + $0x78] sm:$0xff] %v1064_v38  ;;  %1070 = vst [vmem:[#allocation9 + $0x28] sm:$0xff] %v1054_v18 }
 0x17e   :  { %1078 = vst [vmem:[#allocation9 + $0x68] sm:$0xff] %v1062_v20 }
 0x17f   :  { %1480 = shalt.err (!%p1477_p0)
}
 0x180   :  { %s1481_s28 = scalar_lea.hbm %s1683_s3, 2048 }
 0x181   :  { %p1482_p1 = scmp.ne.s32.totalorder %s1683_s3, %s1481_s28  ;;  %p1485_p2 = scmp.lt.u32.totalorder %s1481_s28, %s1683_s3 }
 0x183   :  { %p1487_p3 = pnand %p1485_p2, %p1482_p1 }
 0x185   :  { %1490 = shalt.err (!%p1487_p3)
}
 0x186   :  { %s1506_s6 = smov 128   ;;  %s1507_s7 = smov 8  }
 0x187   :  { %1092 = dma.vmem_to_hbm [thread:$0]  %s1087_s24, 2048, %s1683_s3, [#allocation5], %s1506_s6, %s1506_s6, %s1507_s7  }
 0x188   :  { %1495 = dma.done.wait [#allocation5], 2048  }
 0x189   :  { %1496 = vsyncadd [#allocation5], 4294965248 }
 0x18a   :  { %1096 = vsyncpa [#allocation4], 1 }
 0x18b   :  { %1097 = vsyncpa [#allocation7], 1 }
 0x18c   :  { %1098 = vsyncpa [#allocation5], 1 }

// kernel: _lambda_.44
= control target key start
LH: loop header
LB: loop body
LE: loop exit
PB: predicated region body
PF: predicated region fallthrough
CT: control target
= control target key end

     0   :  { %8 = vsyncpa [#allocation4], 0  ;;  %s2964_s0 = inlined_call_operand.hbm [shape: bf16[512,288], index: 0, kind: input, shape index: {}]   ;;  %s2965_s1 = inlined_call_operand.hbm [shape: bf16[288,128], index: 1, kind: input, shape index: {}]   ;;  %s2966_s2 = inlined_call_operand.hbm [shape: f32[1,128], index: 2, kind: input, shape index: {}]   ;;  %s2967_s3 = inlined_call_operand.hbm [shape: f32[512,128], index: 3, kind: output, shape index: {}]  }
   0x1   :  { %9 = vsyncpa [#allocation7], 0 }
   0x2   :  { %10 = vsyncpa [#allocation5], 0  ;;  %s2494_s12 = smov [#allocation6]   ;;  %s2400_s16 = scalar_lea.hbm %s2965_s1, 2304 }
   0x3   :  { %s28_s13 = sshll.u32 %s2494_s12, 4  ;;  %p2401_p0 = scmp.ne.s32.totalorder %s2965_s1, %s2400_s16  ;;  %s29_s13 = int_to_ptr.vmem [resolvable:$true] %s28_s13 }
   0x4   :  { %p2404_p1 = scmp.lt.u32.totalorder %s2400_s16, %s2965_s1 }
   0x6   :  { %p2406_p2 = pnand %p2404_p1, %p2401_p0 }
   0x8   :  { %2409 = shalt.err (!%p2406_p2)
}
   0x9   :  { %s2410_s21 = scalar_lea.vmem %s29_s13, 2304  ;;  %p2415_p4 = scmp.lt.s32.totalorder %s29_s13, %s29_s13 }
   0xa   :  { %p2411_p3 = scmp.ne.s32.totalorder %s29_s13, %s2410_s21  ;;  %p2416_p5 = scmp.lt.s32.totalorder %s2410_s21, %s2410_s21 }
   0xc   :  { %p2417_p6 = por %p2416_p5, %p2415_p4 }
   0xe   :  { %p2418_p7 = pnand %p2417_p6, %p2411_p3 }
  0x10   :  { %2421 = shalt.err (!%p2418_p7)
}
  0x11   :  { %s2495_s22 = smov 64   ;;  %s2496_s23 = smov 4  }
  0x12   :  { %34 = dma.hbm_to_vmem [thread:$0]  %s2965_s1, 2304, %s29_s13, [#allocation7], %s2495_s22, %s2495_s22, %s2496_s23  }
  0x13   :  { %s2497_s26 = smov [#allocation3]   ;;  %s2422_s30 = scalar_lea.hbm %s2964_s0, 12288 }
  0x14   :  { %s16_s27 = sshll.u32 %s2497_s26, 4  ;;  %p2423_p8 = scmp.ne.s32.totalorder %s2964_s0, %s2422_s30  ;;  %s17_s27 = int_to_ptr.vmem [resolvable:$true] %s16_s27 }
  0x15   :  { %p2426_p9 = scmp.lt.u32.totalorder %s2422_s30, %s2964_s0 }
  0x17   :  { %p2428_p10 = pnand %p2426_p9, %p2423_p8 }
  0x19   :  { %2431 = shalt.err (!%p2428_p10)
}
  0x1a   :  { %s2432_s8 = scalar_lea.vmem %s17_s27, 12288  ;;  %p2437_p12 = scmp.lt.s32.totalorder %s17_s27, %s17_s27 }
  0x1b   :  { %p2433_p11 = scmp.ne.s32.totalorder %s17_s27, %s2432_s8  ;;  %p2438_p13 = scmp.lt.s32.totalorder %s2432_s8, %s2432_s8 }
  0x1d   :  { %p2439_p0 = por %p2438_p13, %p2437_p12 }
  0x1f   :  { %p2440_p1 = pnand %p2439_p0, %p2433_p11 }
  0x21   :  { %2443 = shalt.err (!%p2440_p1)
}
  0x22   :  { %s2498_s1 = smov 192   ;;  %s2499_s9 = smov 12  }
  0x23   :  { %22 = dma.hbm_to_vmem [thread:$0]  %s2964_s0, 12288, %s17_s27, [#allocation4], %s2498_s1, %s2498_s1, %s2499_s9  }
  0x24   :  { %s2500_s12 = smov [#allocation8]   ;;  %s2444_s16 = scalar_lea.hbm %s2966_s2, 16 }
  0x25   :  { %s41_s13 = sshll.u32 %s2500_s12, 4  ;;  %p2445_p2 = scmp.ne.s32.totalorder %s2966_s2, %s2444_s16  ;;  %s42_s13 = int_to_ptr.vmem [resolvable:$true] %s41_s13 }
  0x26   :  { %p2448_p3 = scmp.lt.u32.totalorder %s2444_s16, %s2966_s2 }
  0x28   :  { %p2450_p4 = pnand %p2448_p3, %p2445_p2 }
  0x2a   :  { %2453 = shalt.err (!%p2450_p4)
}
  0x2b   :  { %s2454_s21 = scalar_lea.vmem %s42_s13, 16  ;;  %s2458_s0 = scalar_lea.vmem %s42_s13, 32 }
  0x2c   :  { %p2455_p5 = scmp.ne.s32.totalorder %s42_s13, %s2454_s21  ;;  %p2459_p6 = scmp.lt.s32.totalorder %s42_s13, %s42_s13 }
  0x2d   :  { %p2460_p7 = scmp.lt.s32.totalorder %s2458_s0, %s2454_s21 }
  0x2f   :  { %p2461_p8 = por %p2460_p7, %p2459_p6 }
  0x31   :  { %p2462_p9 = pnand %p2461_p8, %p2455_p5 }
  0x33   :  { %2465 = shalt.err (!%p2462_p9)
}
  0x34   :  { %44 = dma.hbm_to_vmem [thread:$0]  %s2966_s2, 16, %s42_s13, [#allocation7]  }
  0x35   :  { %2488 = dma.done.wait [#allocation4], 12288  }
  0x36   :  { %2489 = vsyncadd [#allocation4], 4294955008 }
  0x37   :  { %2490 = dma.done.wait [#allocation7], 2320  }
  0x38   :  { %2491 = vsyncadd [#allocation7], 4294964976  ;;  %v2501_v0 = vmov 0   ;;  %v2382_v1 = vld [vmem:[#allocation6] sm:$0xff]   ;;  %v2383_v2 = vld [vmem:[#allocation6 + $0x8] sm:$0xff]   ;;  %vm1067_vm0 = vcmask 261120  }
  0x39   :  { %1164 = vmatprep.subr.bf16.mxu0 %v2501_v0  ;;  %2339 = vmatprep.subr.bf16.mxu1 %v2501_v0  ;;  %v2384_v3 = vld [vmem:[#allocation6 + $0x10] sm:$0xff]   ;;  %v2385_v4 = vld [vmem:[#allocation6 + $0x18] sm:$0xff]   ;;  %v2386_v5 = vld [vmem:[#allocation6 + $0x20] sm:$0xff]   ;;  %s2502_s2 = smov [#allocation9]  }
  0x3a   :  { %1165 = vmatpush1.bf16.msra.mxu0 %v2382_v1  ;;  %2355 = vmatpush1.bf16.msra.mxu1 %v2382_v1  ;;  %v123_v6 = vld [vmem:[#allocation3] sm:$0xff]  ;;  %v125_v7 = vld [vmem:[#allocation3 + $0xc] sm:$0xff]  ;;  %v2389_v18 = vld [vmem:[#allocation6 + $0x38] sm:$0xff]   ;;  %s2077_s24 = sshll.u32 %s2502_s2, 4  ;;  %s2078_s24 = int_to_ptr.vmem [resolvable:$true] %s2077_s24 }
  0x3b   :  { %1166 = vmatprep.subr.bf16.mxu0 %v2501_v0  ;;  %2340 = vmatprep.subr.bf16.mxu1 %v2501_v0  ;;  %v219_v8 = vld [vmem:[#allocation3 + $0x240] sm:$0xff]  ;;  %v2572_v9 = vmax.bf16 %v2501_v0, %v123_v6  ;;  %v2575_v10 = vmax.bf16 %v2501_v0, %v125_v7  ;;  %v221_v11 = vld [vmem:[#allocation3 + $0x24c] sm:$0xff]  ;;  %v2393_v22 = vld [vmem:[#allocation6 + $0x58] sm:$0xff]   ;;  %s2466_s25 = scalar_lea.vmem %s2078_s24, 8192  ;;  %p2471_p11 = scmp.lt.s32.totalorder %s2078_s24, %s2078_s24 }
  0x3c   :  { %v2578_v12 = vmax.bf16 %v2501_v0, %v219_v8  ;;  %v2387_v13 = vld [vmem:[#allocation6 + $0x28] sm:$0xff]   ;;  %v2581_v14 = vmax.bf16 %v2501_v0, %v221_v11  ;;  %v2388_v17 = vld [vmem:[#allocation6 + $0x30] sm:$0xff]   ;;  %v2390_v19 = vld [vmem:[#allocation6 + $0x40] sm:$0xff]   ;;  %p2467_p10 = scmp.ne.s32.totalorder %s2078_s24, %s2466_s25  ;;  %p2472_p12 = scmp.lt.s32.totalorder %s2466_s25, %s2466_s25 }
  0x3d   :  { %v2091_v15 = vcombine.high %v2572_v9, %v2575_v10  ;;  %v2391_v20 = vld [vmem:[#allocation6 + $0x48] sm:$0xff]   ;;  %v2392_v21 = vld [vmem:[#allocation6 + $0x50] sm:$0xff]   ;;  %v2394_v23 = vld [vmem:[#allocation6 + $0x60] sm:$0xff]   ;;  %v2090_v36 = vcombine.low %v2572_v9, %v2575_v10 }
  0x3e   :  { %1167 = vmatpush1.bf16.msra.mxu0 %v2383_v2  ;;  %2356 = vmatpush1.bf16.msra.mxu1 %v2383_v2  ;;  %v2163_v16 = vcombine.high %v2578_v12, %v2581_v14  ;;  %v2395_v24 = vld [vmem:[#allocation6 + $0x68] sm:$0xff]   ;;  %v2396_v25 = vld [vmem:[#allocation6 + $0x70] sm:$0xff]   ;;  %v127_v26 = vld [vmem:[#allocation3 + $0x18] sm:$0xff]  ;;  %v2162_v37 = vcombine.low %v2578_v12, %v2581_v14  ;;  %p2473_p13 = por %p2472_p12, %p2471_p11 }
  0x3f   :  { %1168 = vmatprep.subr.bf16.mxu0 %v2501_v0  ;;  %2341 = vmatprep.subr.bf16.mxu1 %v2501_v0  ;;  %v129_v27 = vld [vmem:[#allocation3 + $0x24] sm:$0xff]  ;;  %v223_v28 = vld [vmem:[#allocation3 + $0x258] sm:$0xff]  ;;  %v255_v31 = vmax.bf16 %v2501_v0, %v127_v26  ;;  %v131_v39 = vld [vmem:[#allocation3 + $0x30] sm:$0xff] }
  0x40   :  { %1196 = vmatprep.mubr.bf16.mxu0 %v2091_v15  ;;  %1388 = vmatprep.mubr.bf16.mxu1 %v2163_v16  ;;  %v225_v29 = vld [vmem:[#allocation3 + $0x264] sm:$0xff]  ;;  %v2397_v30 = vld [vmem:[#allocation6 + $0x78] sm:$0xff]   ;;  %v257_v32 = vmax.bf16 %v2501_v0, %v129_v27  ;;  %v351_v34 = vmax.bf16 %v2501_v0, %v223_v28  ;;  %v227_v42 = vld [vmem:[#allocation3 + $0x270] sm:$0xff]  ;;  %v259_v45 = vmax.bf16 %v2501_v0, %v131_v39  ;;  %p2474_p0 = pnand %p2473_p13, %p2467_p10 }
  0x41   :  { %v2398_v33 = vld [vmem:[#allocation6 + $0x80] sm:$0xff]   ;;  %v353_v35 = vmax.bf16 %v2501_v0, %v225_v29  ;;  %v2399_v44 = vld [vmem:[#allocation6 + $0x88] sm:$0xff]   ;;  %v355_v47 = vmax.bf16 %v2501_v0, %v227_v42  ;;  %v137_v54 = vld [vmem:[#allocation3 + $0x54] sm:$0xff] }
  0x42   :  { %1169 = vmatpush1.bf16.msra.mxu0 %v2384_v3  ;;  %2357 = vmatpush1.bf16.msra.mxu1 %v2384_v3  ;;  %v2094_v38 = vcombine.high %v255_v31, %v257_v32  ;;  %v133_v40 = vld [vmem:[#allocation3 + $0x3c] sm:$0xff]  ;;  %v2093_v49 = vcombine.low %v255_v31, %v257_v32  ;;  %v135_v53 = vld [vmem:[#allocation3 + $0x48] sm:$0xff]  ;;  %v233_v56 = vld [vmem:[#allocation3 + $0x294] sm:$0xff]  ;;  %v265_v58 = vmax.bf16 %v2501_v0, %v137_v54 }
  0x43   :  { %1170 = vmatprep.subr.bf16.mxu0 %v2501_v0  ;;  %2342 = vmatprep.subr.bf16.mxu1 %v2501_v0  ;;  %v2166_v41 = vcombine.high %v351_v34, %v353_v35  ;;  %v229_v43 = vld [vmem:[#allocation3 + $0x27c] sm:$0xff]  ;;  %v261_v46 = vmax.bf16 %v2501_v0, %v133_v40  ;;  %v2165_v50 = vcombine.low %v351_v34, %v353_v35  ;;  %v231_v55 = vld [vmem:[#allocation3 + $0x288] sm:$0xff]  ;;  %v147_v26 = vld [vmem:[#allocation3 + $0x90] sm:$0xff] }
  0x44   :  { %v357_v48 = vmax.bf16 %v2501_v0, %v229_v43  ;;  %v263_v57 = vmax.bf16 %v2501_v0, %v135_v53  ;;  %v359_v59 = vmax.bf16 %v2501_v0, %v231_v55  ;;  %v361_v60 = vmax.bf16 %v2501_v0, %v233_v56  ;;  %v139_v2 = vld [vmem:[#allocation3 + $0x60] sm:$0xff]  ;;  %v141_v3 = vld [vmem:[#allocation3 + $0x6c] sm:$0xff]  ;;  %v143_v14 = vld [vmem:[#allocation3 + $0x78] sm:$0xff] }
  0x45   :  { %v2097_v51 = vcombine.high %v259_v45, %v261_v46  ;;  %v2096_v61 = vcombine.low %v259_v45, %v261_v46  ;;  %v267_v6 = vmax.bf16 %v2501_v0, %v139_v2  ;;  %v269_v7 = vmax.bf16 %v2501_v0, %v141_v3  ;;  %v145_v15 = vld [vmem:[#allocation3 + $0x84] sm:$0xff]  ;;  %v239_v16 = vld [vmem:[#allocation3 + $0x2b8] sm:$0xff]  ;;  %v243_v28 = vld [vmem:[#allocation3 + $0x2d0] sm:$0xff] }
  0x46   :  { %1171 = vmatpush1.bf16.msra.mxu0 %v2385_v4  ;;  %2358 = vmatpush1.bf16.msra.mxu1 %v2385_v4  ;;  %v2169_v52 = vcombine.high %v355_v47, %v357_v48  ;;  %v2168_v62 = vcombine.low %v355_v47, %v357_v48  ;;  %v2100_v63 = vcombine.high %v263_v57, %v265_v58  ;;  %v235_v4 = vld [vmem:[#allocation3 + $0x2a0] sm:$0xff]  ;;  %v153_v39 = vld [vmem:[#allocation3 + $0xb4] sm:$0xff]  ;;  %v247_v40 = vld [vmem:[#allocation3 + $0x2e8] sm:$0xff] }
  0x47   :  { %1172 = vmatprep.subr.bf16.mxu0 %v2501_v0  ;;  %2343 = vmatprep.subr.bf16.mxu1 %v2501_v0  ;;  %v2172_v1 = vcombine.high %v359_v59, %v361_v60  ;;  %v363_v8 = vmax.bf16 %v2501_v0, %v235_v4  ;;  %v2099_v10 = vcombine.low %v263_v57, %v265_v58  ;;  %v149_v27 = vld [vmem:[#allocation3 + $0x9c] sm:$0xff]  ;;  %v126_v53 = vld [vmem:[#allocation3 + $0x14] sm:$0xf]  ;;  %v161_v2 = vld [vmem:[#allocation3 + $0xe4] sm:$0xff] }
  0x48   :  { %v2171_v11 = vcombine.low %v359_v59, %v361_v60  ;;  %v2103_v12 = vcombine.high %v267_v6, %v269_v7  ;;  %v245_v29 = vld [vmem:[#allocation3 + $0x2dc] sm:$0xff]  ;;  %v277_v31 = vmax.bf16 %v2501_v0, %v149_v27  ;;  %v371_v32 = vmax.bf16 %v2501_v0, %v243_v28  ;;  %v132_v3 = vld [vmem:[#allocation3 + $0x38] sm:$0xf]  ;;  %v134_v4 = vld [vmem:[#allocation3 + $0x44] sm:$0xf] }
  0x49   :  { %v281_v43 = vmax.bf16 %v2501_v0, %v153_v39  ;;  %v254_v57 = vmax.bf16 %v2501_v0, %v126_v53 }
  0x4a   :  { %1173 = vmatpush1.bf16.msra.mxu0 %v2386_v5  ;;  %2359 = vmatpush1.bf16.msra.mxu1 %v2386_v5  ;;  %v237_v5 = vld [vmem:[#allocation3 + $0x2ac] sm:$0xff] }
  0x4b   :  { %1174 = vmatprep.subr.bf16.mxu0 %v2501_v0  ;;  %2344 = vmatprep.subr.bf16.mxu1 %v2501_v0  ;;  %v365_v9 = vmax.bf16 %v2501_v0, %v237_v5 }
  0x4e   :  { %1175 = vmatpush1.bf16.msra.mxu0 %v2387_v13  ;;  %2360 = vmatpush1.bf16.msra.mxu1 %v2387_v13  ;;  %v2175_v13 = vcombine.high %v363_v8, %v365_v9 }
  0x4f   :  { %1176 = vmatprep.subr.bf16.mxu0 %v2501_v0  ;;  %2345 = vmatprep.subr.bf16.mxu1 %v2501_v0 }
  0x52   :  { %1177 = vmatpush1.bf16.msra.mxu0 %v2388_v17  ;;  %2361 = vmatpush1.bf16.msra.mxu1 %v2388_v17  ;;  %v241_v17 = vld [vmem:[#allocation3 + $0x2c4] sm:$0xff] }
  0x53   :  { %1178 = vmatprep.subr.bf16.mxu0 %v2501_v0  ;;  %2346 = vmatprep.subr.bf16.mxu1 %v2501_v0 }
  0x56   :  { %1179 = vmatpush1.bf16.msra.mxu0 %v2389_v18  ;;  %2362 = vmatpush1.bf16.msra.mxu1 %v2389_v18  ;;  %v271_v18 = vmax.bf16 %v2501_v0, %v143_v14 }
  0x57   :  { %1180 = vmatprep.subr.bf16.mxu0 %v2501_v0  ;;  %2347 = vmatprep.subr.bf16.mxu1 %v2501_v0 }
  0x5a   :  { %1181 = vmatpush1.bf16.msra.mxu0 %v2390_v19  ;;  %2363 = vmatpush1.bf16.msra.mxu1 %v2390_v19  ;;  %v273_v19 = vmax.bf16 %v2501_v0, %v145_v15  ;;  %v136_v15 = vld [vmem:[#allocation3 + $0x50] sm:$0xf] }
  0x5b   :  { %1182 = vmatprep.subr.bf16.mxu0 %v2501_v0  ;;  %2348 = vmatprep.subr.bf16.mxu1 %v2501_v0 }
  0x5c   :  { %v2105_v34 = vcombine.low %v271_v18, %v273_v19 }
  0x5e   :  { %1183 = vmatpush1.bf16.msra.mxu0 %v2391_v20  ;;  %2364 = vmatpush1.bf16.msra.mxu1 %v2391_v20  ;;  %v367_v20 = vmax.bf16 %v2501_v0, %v239_v16  ;;  %v138_v16 = vld [vmem:[#allocation3 + $0x5c] sm:$0xf] }
  0x5f   :  { %1184 = vmatprep.subr.bf16.mxu0 %v2501_v0  ;;  %2349 = vmatprep.subr.bf16.mxu1 %v2501_v0 }
  0x62   :  { %1185 = vmatpush1.bf16.msra.mxu0 %v2392_v21  ;;  %2365 = vmatpush1.bf16.msra.mxu1 %v2392_v21  ;;  %v369_v21 = vmax.bf16 %v2501_v0, %v241_v17  ;;  %v163_v17 = vld [vmem:[#allocation3 + $0xf0] sm:$0xff] }
  0x63   :  { %1186 = vmatprep.subr.bf16.mxu0 %v2501_v0  ;;  %2350 = vmatprep.subr.bf16.mxu1 %v2501_v0 }
  0x64   :  { %v2177_v35 = vcombine.low %v367_v20, %v369_v21 }
  0x66   :  { %1187 = vmatpush1.bf16.msra.mxu0 %v2393_v22  ;;  %2366 = vmatpush1.bf16.msra.mxu1 %v2393_v22  ;;  %v2102_v22 = vcombine.low %v267_v6, %v269_v7 }
  0x67   :  { %1188 = vmatprep.subr.bf16.mxu0 %v2501_v0  ;;  %2351 = vmatprep.subr.bf16.mxu1 %v2501_v0 }
  0x6a   :  { %1189 = vmatpush1.bf16.msra.mxu0 %v2394_v23  ;;  %2367 = vmatpush1.bf16.msra.mxu1 %v2394_v23  ;;  %v2174_v23 = vcombine.low %v363_v8, %v365_v9  ;;  %v289_v8 = vmax.bf16 %v2501_v0, %v161_v2  ;;  %v260_v9 = vmax.bf16 %v2501_v0, %v132_v3  ;;  %v175_v2 = vld [vmem:[#allocation3 + $0x138] sm:$0xff]  ;;  %v177_v3 = vld [vmem:[#allocation3 + $0x144] sm:$0xff] }
  0x6b   :  { %1190 = vmatprep.subr.bf16.mxu0 %v2501_v0  ;;  %2352 = vmatprep.subr.bf16.mxu1 %v2501_v0 }
  0x6e   :  { %1191 = vmatpush1.bf16.msra.mxu0 %v2395_v24  ;;  %2368 = vmatpush1.bf16.msra.mxu1 %v2395_v24  ;;  %v2106_v24 = vcombine.high %v271_v18, %v273_v19  ;;  %v165_v18 = vld [vmem:[#allocation3 + $0xfc] sm:$0xff]  ;;  %v140_v19 = vld [vmem:[#allocation3 + $0x68] sm:$0xf] }
  0x6f   :  { %1192 = vmatprep.subr.bf16.mxu0 %v2501_v0  ;;  %2353 = vmatprep.subr.bf16.mxu1 %v2501_v0 }
  0x72   :  { %1193 = vmatpush1.bf16.msra.mxu0 %v2396_v25  ;;  %2369 = vmatpush1.bf16.msra.mxu1 %v2396_v25  ;;  %v2178_v25 = vcombine.high %v367_v20, %v369_v21  ;;  %v142_v20 = vld [vmem:[#allocation3 + $0x74] sm:$0xf]  ;;  %v264_v21 = vmax.bf16 %v2501_v0, %v136_v15 }
  0x73   :  { %1194 = vmatprep.subr.bf16.mxu0 %v2501_v0  ;;  %2354 = vmatprep.subr.bf16.mxu1 %v2501_v0 }
  0x76   :  { %1195 = vmatpush1.bf16.msra.mxu0 %v2397_v30  ;;  %2370 = vmatpush1.bf16.msra.mxu1 %v2397_v30  ;;  %v275_v30 = vmax.bf16 %v2501_v0, %v147_v26  ;;  %v270_v26 = vmax.bf16 %v2501_v0, %v142_v20  ;;  %v172_v20 = vld [vmem:[#allocation3 + $0x128] sm:$0xf] }
  0x77   :  { %2271 = vmatprep.subr.bf16.mxu1 %v2398_v33 }
  0x78   :  { %v2108_v46 = vcombine.low %v275_v30, %v277_v31 }
  0x79   :  { %1197 = vmatmul.mubr.bf16.vlgmr.msra.gmra.mrb[0].mxu0 %v2090_v36  ;;  %1389 = vmatmul.mubr.bf16.vlgmr.msra.gmra.mrb[0].mxu1 %v2162_v37  ;;  %v2109_v36 = vcombine.high %v275_v30, %v277_v31  ;;  %v144_v31 = vld [vmem:[#allocation3 + $0x80] sm:$0xf] }
  0x7a   :  { %2272 = vmatpush3.bf16.msra.mxu1 %v2398_v33  ;;  %1204 = vmatprep.mubr.bf16.mxu0 %v2094_v38  ;;  %v373_v33 = vmax.bf16 %v2501_v0, %v245_v29  ;;  %v151_v38 = vld [vmem:[#allocation3 + $0xa8] sm:$0xff] }
  0x7b   :  { %1396 = vmatprep.mubr.bf16.mxu1 %v2166_v41  ;;  %2273 = vmatprep.subr.bf16.mxu1 %v2399_v44  ;;  %v249_v41 = vld [vmem:[#allocation3 + $0x2f4] sm:$0xff]  ;;  %v279_v42 = vmax.bf16 %v2501_v0, %v151_v38 }
  0x7c   :  { %v2181_v37 = vcombine.high %v371_v32, %v373_v33  ;;  %v377_v45 = vmax.bf16 %v2501_v0, %v249_v41  ;;  %v2180_v47 = vcombine.low %v371_v32, %v373_v33  ;;  %v146_v32 = vld [vmem:[#allocation3 + $0x8c] sm:$0xf] }
  0x7d   :  { %v2112_v48 = vcombine.high %v279_v42, %v281_v43  ;;  %v2111_v58 = vcombine.low %v279_v42, %v281_v43  ;;  %v167_v33 = vld [vmem:[#allocation3 + $0x108] sm:$0xff]  ;;  %v274_v38 = vmax.bf16 %v2501_v0, %v146_v32  ;;  %v176_v32 = vld [vmem:[#allocation3 + $0x140] sm:$0xf] }
  0x7e   :  { %2274 = vmatpush3.bf16.msra.mxu1 %v2399_v44  ;;  %v375_v44 = vmax.bf16 %v2501_v0, %v247_v40  ;;  %v295_v39 = vmax.bf16 %v2501_v0, %v167_v33  ;;  %v178_v33 = vld [vmem:[#allocation3 + $0x14c] sm:$0xf] }
  0x80   :  { %v2183_v59 = vcombine.low %v375_v44, %v377_v45 }
  0x81   :  { %1205 = vmatmul.mubr.bf16.gmra.mrb[4].mxu0 %v2093_v49  ;;  %1397 = vmatmul.mubr.bf16.gmra.mrb[4].mxu1 %v2165_v50  ;;  %v2184_v49 = vcombine.high %v375_v44, %v377_v45  ;;  %v155_v50 = vld [vmem:[#allocation3 + $0xc0] sm:$0xff] }
  0x82   :  { %1212 = vmatprep.mubr.bf16.mxu0 %v2097_v51  ;;  %1404 = vmatprep.mubr.bf16.mxu1 %v2169_v52  ;;  %v157_v51 = vld [vmem:[#allocation3 + $0xcc] sm:$0xff]  ;;  %v124_v52 = vld [vmem:[#allocation3 + $0x8] sm:$0xf]  ;;  %v283_v54 = vmax.bf16 %v2501_v0, %v155_v50 }
  0x83   :  { %v285_v55 = vmax.bf16 %v2501_v0, %v157_v51  ;;  %v252_v56 = vmax.bf16 %v2501_v0, %v124_v52  ;;  %v173_v50 = vld [vmem:[#allocation3 + $0x12c] sm:$0xff]  ;;  %v156_v51 = vld [vmem:[#allocation3 + $0xc8] sm:$0xf]  ;;  %v158_v52 = vld [vmem:[#allocation3 + $0xd4] sm:$0xf] }
  0x85   :  { %v2115_v60 = vcombine.high %v283_v54, %v285_v55 }
  0x89   :  { %1213 = vmatmul.mubr.bf16.gmra.mrb[8].mxu0 %v2096_v61  ;;  %1405 = vmatmul.mubr.bf16.gmra.mrb[8].mxu1 %v2168_v62  ;;  %v2092_v61 = vcombine.low %v252_v56, %v254_v57  ;;  %v128_v62 = vld [vmem:[#allocation3 + $0x20] sm:$0xf]  ;;  %v301_v56 = vmax.bf16 %v2501_v0, %v173_v50  ;;  %v284_v57 = vmax.bf16 %v2501_v0, %v156_v51  ;;  %v189_v51 = vld [vmem:[#allocation3 + $0x18c] sm:$0xff] }
  0x8a   :  { %1220 = vmatprep.mubr.bf16.mxu0 %v2100_v63  ;;  %1412 = vmatprep.mubr.bf16.mxu1 %v2172_v1  ;;  %v130_v63 = vld [vmem:[#allocation3 + $0x2c] sm:$0xf]  ;;  %v159_v1 = vld [vmem:[#allocation3 + $0xd8] sm:$0xff]  ;;  %v256_v5 = vmax.bf16 %v2501_v0, %v128_v62  ;;  %v187_v50 = vld [vmem:[#allocation3 + $0x180] sm:$0xff] }
  0x8b   :  { %v258_v6 = vmax.bf16 %v2501_v0, %v130_v63  ;;  %v287_v7 = vmax.bf16 %v2501_v0, %v159_v1  ;;  %v160_v63 = vld [vmem:[#allocation3 + $0xe0] sm:$0xf]  ;;  %v162_v1 = vld [vmem:[#allocation3 + $0xec] sm:$0xf] }
  0x8d   :  { %v2117_v27 = vcombine.low %v287_v7, %v289_v8 }
  0x91   :  { %1221 = vmatmul.mubr.bf16.gmra.mrb[12].mxu0 %v2099_v10  ;;  %1413 = vmatmul.mubr.bf16.gmra.mrb[12].mxu1 %v2171_v11  ;;  %v262_v10 = vmax.bf16 %v2501_v0, %v134_v4  ;;  %v2114_v11 = vcombine.low %v283_v54, %v285_v55  ;;  %v164_v4 = vld [vmem:[#allocation3 + $0xf8] sm:$0xf] }
  0x92   :  { %1228 = vmatprep.mubr.bf16.mxu0 %v2103_v12  ;;  %1420 = vmatprep.mubr.bf16.mxu1 %v2175_v13  ;;  %v2095_v12 = vcombine.low %v256_v5, %v258_v6  ;;  %v2118_v13 = vcombine.high %v287_v7, %v289_v8  ;;  %v166_v5 = vld [vmem:[#allocation3 + $0x104] sm:$0xf]  ;;  %v288_v6 = vmax.bf16 %v2501_v0, %v160_v63 }
  0x93   :  { %v2098_v14 = vcombine.low %v260_v9, %v262_v10  ;;  %v290_v7 = vmax.bf16 %v2501_v0, %v162_v1  ;;  %v303_v8 = vmax.bf16 %v2501_v0, %v175_v2  ;;  %v305_v9 = vmax.bf16 %v2501_v0, %v177_v3  ;;  %v192_v1 = vld [vmem:[#allocation3 + $0x1a0] sm:$0xf]  ;;  %v194_v2 = vld [vmem:[#allocation3 + $0x1ac] sm:$0xf]  ;;  %v191_v3 = vld [vmem:[#allocation3 + $0x198] sm:$0xff] }
  0x94   :  { %v292_v10 = vmax.bf16 %v2501_v0, %v164_v4  ;;  %v193_v4 = vld [vmem:[#allocation3 + $0x1a4] sm:$0xff] }
  0x99   :  { %1229 = vmatmul.mubr.bf16.gmra.mrb[16].mxu0 %v2102_v22  ;;  %1421 = vmatmul.mubr.bf16.gmra.mrb[16].mxu1 %v2174_v23  ;;  %v266_v22 = vmax.bf16 %v2501_v0, %v138_v16  ;;  %v291_v23 = vmax.bf16 %v2501_v0, %v163_v17  ;;  %v168_v16 = vld [vmem:[#allocation3 + $0x110] sm:$0xf]  ;;  %v170_v17 = vld [vmem:[#allocation3 + $0x11c] sm:$0xf] }
  0x9a   :  { %1236 = vmatprep.mubr.bf16.mxu0 %v2106_v24  ;;  %1428 = vmatprep.mubr.bf16.mxu1 %v2178_v25  ;;  %v293_v24 = vmax.bf16 %v2501_v0, %v165_v18  ;;  %v268_v25 = vmax.bf16 %v2501_v0, %v140_v19  ;;  %v179_v18 = vld [vmem:[#allocation3 + $0x150] sm:$0xff]  ;;  %v181_v19 = vld [vmem:[#allocation3 + $0x15c] sm:$0xff] }
  0x9b   :  { %v2101_v28 = vcombine.low %v264_v21, %v266_v22  ;;  %v174_v21 = vld [vmem:[#allocation3 + $0x134] sm:$0xf]  ;;  %v296_v22 = vmax.bf16 %v2501_v0, %v168_v16 }
  0x9c   :  { %v2121_v29 = vcombine.high %v291_v23, %v293_v24  ;;  %v2104_v30 = vcombine.low %v268_v25, %v270_v26  ;;  %v2120_v43 = vcombine.low %v291_v23, %v293_v24  ;;  %v298_v23 = vmax.bf16 %v2501_v0, %v170_v17  ;;  %v200_v17 = vld [vmem:[#allocation3 + $0x1d0] sm:$0xf] }
  0x9d   :  { %v307_v24 = vmax.bf16 %v2501_v0, %v179_v18  ;;  %v309_v25 = vmax.bf16 %v2501_v0, %v181_v19  ;;  %v300_v26 = vmax.bf16 %v2501_v0, %v172_v20  ;;  %v202_v18 = vld [vmem:[#allocation3 + $0x1dc] sm:$0xf]  ;;  %v195_v19 = vld [vmem:[#allocation3 + $0x1b0] sm:$0xff] }
  0x9e   :  { %v197_v20 = vld [vmem:[#allocation3 + $0x1bc] sm:$0xff] }
  0xa1   :  { %1237 = vmatmul.mubr.bf16.gmra.mrb[20].mxu0 %v2105_v34  ;;  %1429 = vmatmul.mubr.bf16.gmra.mrb[20].mxu1 %v2177_v35  ;;  %v169_v34 = vld [vmem:[#allocation3 + $0x114] sm:$0xff] }
  0xa2   :  { %1244 = vmatprep.mubr.bf16.mxu0 %v2109_v36  ;;  %1436 = vmatprep.mubr.bf16.mxu1 %v2181_v37  ;;  %v148_v35 = vld [vmem:[#allocation3 + $0x98] sm:$0xf]  ;;  %v150_v36 = vld [vmem:[#allocation3 + $0xa4] sm:$0xf]  ;;  %v272_v37 = vmax.bf16 %v2501_v0, %v144_v31  ;;  %v297_v40 = vmax.bf16 %v2501_v0, %v169_v34  ;;  %v183_v34 = vld [vmem:[#allocation3 + $0x168] sm:$0xff] }
  0xa3   :  { %v276_v41 = vmax.bf16 %v2501_v0, %v148_v35  ;;  %v278_v42 = vmax.bf16 %v2501_v0, %v150_v36  ;;  %v185_v35 = vld [vmem:[#allocation3 + $0x174] sm:$0xff] }
  0xa4   :  { %v2107_v44 = vcombine.low %v272_v37, %v274_v38  ;;  %v2124_v45 = vcombine.high %v295_v39, %v297_v40  ;;  %v180_v36 = vld [vmem:[#allocation3 + $0x158] sm:$0xf]  ;;  %v182_v37 = vld [vmem:[#allocation3 + $0x164] sm:$0xf]  ;;  %v304_v38 = vmax.bf16 %v2501_v0, %v176_v32 }
  0xa9   :  { %1245 = vmatmul.mubr.bf16.gmra.mrb[24].mxu0 %v2108_v46  ;;  %1437 = vmatmul.mubr.bf16.gmra.mrb[24].mxu1 %v2180_v47  ;;  %v2110_v46 = vcombine.low %v276_v41, %v278_v42  ;;  %v152_v47 = vld [vmem:[#allocation3 + $0xb0] sm:$0xf]  ;;  %v313_v41 = vmax.bf16 %v2501_v0, %v185_v35  ;;  %v308_v42 = vmax.bf16 %v2501_v0, %v180_v36  ;;  %v199_v35 = vld [vmem:[#allocation3 + $0x1c8] sm:$0xff]  ;;  %v201_v36 = vld [vmem:[#allocation3 + $0x1d4] sm:$0xff] }
  0xaa   :  { %1252 = vmatprep.mubr.bf16.mxu0 %v2112_v48  ;;  %1444 = vmatprep.mubr.bf16.mxu1 %v2184_v49  ;;  %v154_v48 = vld [vmem:[#allocation3 + $0xbc] sm:$0xf]  ;;  %v171_v49 = vld [vmem:[#allocation3 + $0x120] sm:$0xff]  ;;  %v280_v53 = vmax.bf16 %v2501_v0, %v152_v47 }
  0xab   :  { %v282_v54 = vmax.bf16 %v2501_v0, %v154_v48  ;;  %v299_v55 = vmax.bf16 %v2501_v0, %v171_v49  ;;  %v184_v48 = vld [vmem:[#allocation3 + $0x170] sm:$0xf]  ;;  %v186_v49 = vld [vmem:[#allocation3 + $0x17c] sm:$0xf] }
  0xb1   :  { %1253 = vmatmul.mubr.bf16.gmra.mrb[28].mxu0 %v2111_v58  ;;  %1445 = vmatmul.mubr.bf16.gmra.mrb[28].mxu1 %v2183_v59  ;;  %v286_v58 = vmax.bf16 %v2501_v0, %v158_v52  ;;  %v2123_v59 = vcombine.low %v295_v39, %v297_v40  ;;  %v306_v39 = vmax.bf16 %v2501_v0, %v178_v33  ;;  %v188_v52 = vld [vmem:[#allocation3 + $0x188] sm:$0xf]  ;;  %v208_v33 = vld [vmem:[#allocation3 + $0x200] sm:$0xf] }
  0xb2   :  { %1260 = vmatprep.mubr.bf16.mxu0 %v2115_v60  ;;  %2275 = vmatprep.mubr.msk.bf16.mxu1 %vm1067_vm0, %v2092_v61  ;;  %v2113_v60 = vcombine.low %v280_v53, %v282_v54  ;;  %v2127_v61 = vcombine.high %v299_v55, %v301_v56  ;;  %v311_v40 = vmax.bf16 %v2501_v0, %v183_v34  ;;  %v190_v53 = vld [vmem:[#allocation3 + $0x194] sm:$0xf]  ;;  %v210_v34 = vld [vmem:[#allocation3 + $0x20c] sm:$0xf] }
  0xb3   :  { %v2116_v62 = vcombine.low %v284_v57, %v286_v58  ;;  %v312_v54 = vmax.bf16 %v2501_v0, %v184_v48  ;;  %v317_v57 = vmax.bf16 %v2501_v0, %v189_v51  ;;  %v316_v58 = vmax.bf16 %v2501_v0, %v188_v52  ;;  %v203_v51 = vld [vmem:[#allocation3 + $0x1e0] sm:$0xff]  ;;  %v205_v52 = vld [vmem:[#allocation3 + $0x1ec] sm:$0xff] }
  0xb9   :  { %1261 = vmatmul.mubr.bf16.gmra.mrb[32].mxu0 %v2114_v11  ;;  %2276 = vmatmul.mubr.msk.bf16.vlgmr.msra.gmra.mrb[32].mxu1 %vm1067_vm0, %v2095_v12  ;;  %v294_v11 = vmax.bf16 %v2501_v0, %v166_v5  ;;  %v2126_v12 = vcombine.low %v299_v55, %v301_v56  ;;  %v314_v55 = vmax.bf16 %v2501_v0, %v186_v49  ;;  %v196_v5 = vld [vmem:[#allocation3 + $0x1b8] sm:$0xf]  ;;  %v216_v49 = vld [vmem:[#allocation3 + $0x230] sm:$0xf] }
  0xba   :  { %1268 = vmatprep.mubr.bf16.mxu0 %v2118_v13  ;;  %2279 = vmatprep.mubr.msk.bf16.mxu1 %vm1067_vm0, %v2098_v14  ;;  %v2119_v13 = vcombine.low %v288_v6, %v290_v7  ;;  %v2130_v14 = vcombine.high %v303_v8, %v305_v9  ;;  %v315_v56 = vmax.bf16 %v2501_v0, %v187_v50  ;;  %v198_v6 = vld [vmem:[#allocation3 + $0x1c4] sm:$0xf]  ;;  %v218_v50 = vld [vmem:[#allocation3 + $0x23c] sm:$0xf] }
  0xbb   :  { %v2122_v15 = vcombine.low %v292_v10, %v294_v11  ;;  %v320_v7 = vmax.bf16 %v2501_v0, %v192_v1  ;;  %v321_v10 = vmax.bf16 %v2501_v0, %v193_v4  ;;  %v324_v11 = vmax.bf16 %v2501_v0, %v196_v5  ;;  %v207_v4 = vld [vmem:[#allocation3 + $0x1f8] sm:$0xff]  ;;  %v209_v5 = vld [vmem:[#allocation3 + $0x204] sm:$0xff] }
  0xc1   :  { %1269 = vmatmul.mubr.bf16.gmra.mrb[36].mxu0 %v2117_v27  ;;  %2280 = vmatmul.mubr.msk.bf16.gmra.mrb[36].mxu1 %vm1067_vm0, %v2101_v28  ;;  %v302_v27 = vmax.bf16 %v2501_v0, %v174_v21  ;;  %v2129_v28 = vcombine.low %v303_v8, %v305_v9  ;;  %v322_v8 = vmax.bf16 %v2501_v0, %v194_v2  ;;  %v204_v21 = vld [vmem:[#allocation3 + $0x1e8] sm:$0xf]  ;;  %v224_v2 = vld [vmem:[#allocation3 + $0x260] sm:$0xf] }
  0xc2   :  { %1276 = vmatprep.mubr.bf16.mxu0 %v2121_v29  ;;  %2283 = vmatprep.mubr.msk.bf16.mxu1 %vm1067_vm0, %v2104_v30  ;;  %v2125_v29 = vcombine.low %v296_v22, %v298_v23  ;;  %v2133_v30 = vcombine.high %v307_v24, %v309_v25  ;;  %v319_v9 = vmax.bf16 %v2501_v0, %v191_v3  ;;  %v206_v22 = vld [vmem:[#allocation3 + $0x1f4] sm:$0xf]  ;;  %v226_v3 = vld [vmem:[#allocation3 + $0x26c] sm:$0xf] }
  0xc3   :  { %v2128_v31 = vcombine.low %v300_v26, %v302_v27  ;;  %v328_v23 = vmax.bf16 %v2501_v0, %v200_v17  ;;  %v325_v26 = vmax.bf16 %v2501_v0, %v197_v20  ;;  %v332_v27 = vmax.bf16 %v2501_v0, %v204_v21  ;;  %v211_v20 = vld [vmem:[#allocation3 + $0x210] sm:$0xff]  ;;  %v213_v21 = vld [vmem:[#allocation3 + $0x21c] sm:$0xff] }
  0xc9   :  { %1277 = vmatmul.mubr.bf16.gmra.mrb[40].mxu0 %v2120_v43  ;;  %2284 = vmatmul.mubr.msk.bf16.gmra.mrb[40].mxu1 %vm1067_vm0, %v2107_v44  ;;  %v310_v43 = vmax.bf16 %v2501_v0, %v182_v37  ;;  %v2132_v44 = vcombine.low %v307_v24, %v309_v25  ;;  %v330_v24 = vmax.bf16 %v2501_v0, %v202_v18  ;;  %v212_v37 = vld [vmem:[#allocation3 + $0x218] sm:$0xf]  ;;  %v232_v18 = vld [vmem:[#allocation3 + $0x290] sm:$0xf] }
  0xca   :  { %1284 = vmatprep.mubr.bf16.mxu0 %v2124_v45  ;;  %2287 = vmatprep.mubr.msk.bf16.mxu1 %vm1067_vm0, %v2110_v46  ;;  %v2131_v45 = vcombine.low %v304_v38, %v306_v39  ;;  %v2136_v46 = vcombine.high %v311_v40, %v313_v41  ;;  %v323_v25 = vmax.bf16 %v2501_v0, %v195_v19  ;;  %v214_v38 = vld [vmem:[#allocation3 + $0x224] sm:$0xf]  ;;  %v234_v19 = vld [vmem:[#allocation3 + $0x29c] sm:$0xf] }
  0xcb   :  { %v2134_v47 = vcombine.low %v308_v42, %v310_v43  ;;  %v336_v39 = vmax.bf16 %v2501_v0, %v208_v33  ;;  %v329_v42 = vmax.bf16 %v2501_v0, %v201_v36  ;;  %v340_v43 = vmax.bf16 %v2501_v0, %v212_v37  ;;  %v215_v36 = vld [vmem:[#allocation3 + $0x228] sm:$0xff]  ;;  %v217_v37 = vld [vmem:[#allocation3 + $0x234] sm:$0xff] }
  0xd1   :  { %1285 = vmatmul.mubr.bf16.gmra.mrb[44].mxu0 %v2123_v59  ;;  %2288 = vmatmul.mubr.msk.bf16.gmra.mrb[44].mxu1 %vm1067_vm0, %v2113_v60  ;;  %v318_v59 = vmax.bf16 %v2501_v0, %v190_v53  ;;  %v2135_v60 = vcombine.low %v311_v40, %v313_v41  ;;  %v338_v40 = vmax.bf16 %v2501_v0, %v210_v34  ;;  %v220_v53 = vld [vmem:[#allocation3 + $0x248] sm:$0xf]  ;;  %v240_v34 = vld [vmem:[#allocation3 + $0x2c0] sm:$0xf] }
  0xd2   :  { %1292 = vmatprep.mubr.bf16.mxu0 %v2127_v61  ;;  %2291 = vmatprep.mubr.msk.bf16.mxu1 %vm1067_vm0, %v2116_v62  ;;  %v2137_v61 = vcombine.low %v312_v54, %v314_v55  ;;  %v2139_v62 = vcombine.high %v315_v56, %v317_v57  ;;  %v327_v41 = vmax.bf16 %v2501_v0, %v199_v35  ;;  %v222_v54 = vld [vmem:[#allocation3 + $0x254] sm:$0xf]  ;;  %v242_v35 = vld [vmem:[#allocation3 + $0x2cc] sm:$0xf] }
  0xd3   :  { %v2140_v63 = vcombine.low %v316_v58, %v318_v59  ;;  %v344_v55 = vmax.bf16 %v2501_v0, %v216_v49  ;;  %v333_v58 = vmax.bf16 %v2501_v0, %v205_v52  ;;  %v348_v59 = vmax.bf16 %v2501_v0, %v220_v53 }
  0xd9   :  { %1293 = vmatmul.mubr.bf16.gmra.mrb[48].mxu0 %v2126_v12  ;;  %2292 = vmatmul.mubr.msk.bf16.gmra.mrb[48].mxu1 %vm1067_vm0, %v2119_v13  ;;  %v326_v12 = vmax.bf16 %v2501_v0, %v198_v6  ;;  %v2138_v13 = vcombine.low %v315_v56, %v317_v57  ;;  %v346_v56 = vmax.bf16 %v2501_v0, %v218_v50  ;;  %v228_v6 = vld [vmem:[#allocation3 + $0x278] sm:$0xf]  ;;  %v248_v50 = vld [vmem:[#allocation3 + $0x2f0] sm:$0xf] }
  0xda   :  { %1300 = vmatprep.mubr.bf16.mxu0 %v2130_v14  ;;  %2295 = vmatprep.mubr.msk.bf16.mxu1 %vm1067_vm0, %v2122_v15  ;;  %v2143_v14 = vcombine.low %v320_v7, %v322_v8  ;;  %v2142_v15 = vcombine.high %v319_v9, %v321_v10  ;;  %v331_v57 = vmax.bf16 %v2501_v0, %v203_v51  ;;  %v230_v7 = vld [vmem:[#allocation3 + $0x284] sm:$0xf]  ;;  %v250_v51 = vld [vmem:[#allocation3 + $0x2fc] sm:$0xf] }
  0xdb   :  { %v2146_v16 = vcombine.low %v324_v11, %v326_v12  ;;  %v352_v8 = vmax.bf16 %v2501_v0, %v224_v2  ;;  %v337_v11 = vmax.bf16 %v2501_v0, %v209_v5  ;;  %v356_v12 = vmax.bf16 %v2501_v0, %v228_v6 }
  0xdc   :  { %v376_v52 = vmax.bf16 %v2501_v0, %v248_v50  ;;  %v378_v53 = vmax.bf16 %v2501_v0, %v250_v51 }
  0xe1   :  { %1301 = vmatmul.mubr.bf16.gmra.mrb[52].mxu0 %v2129_v28  ;;  %2296 = vmatmul.mubr.msk.bf16.gmra.mrb[52].mxu1 %vm1067_vm0, %v2125_v29  ;;  %v334_v28 = vmax.bf16 %v2501_v0, %v206_v22  ;;  %v2141_v29 = vcombine.low %v319_v9, %v321_v10  ;;  %v354_v9 = vmax.bf16 %v2501_v0, %v226_v3  ;;  %v236_v22 = vld [vmem:[#allocation3 + $0x2a8] sm:$0xf] }
  0xe2   :  { %1308 = vmatprep.mubr.bf16.mxu0 %v2133_v30  ;;  %2299 = vmatprep.mubr.msk.bf16.mxu1 %vm1067_vm0, %v2128_v31  ;;  %v2149_v30 = vcombine.low %v328_v23, %v330_v24  ;;  %v2145_v31 = vcombine.high %v323_v25, %v325_v26  ;;  %v335_v10 = vmax.bf16 %v2501_v0, %v207_v4  ;;  %v238_v23 = vld [vmem:[#allocation3 + $0x2b4] sm:$0xf] }
  0xe3   :  { %v2152_v32 = vcombine.low %v332_v27, %v334_v28  ;;  %v360_v24 = vmax.bf16 %v2501_v0, %v232_v18  ;;  %v341_v27 = vmax.bf16 %v2501_v0, %v213_v21  ;;  %v364_v28 = vmax.bf16 %v2501_v0, %v236_v22 }
  0xe9   :  { %1309 = vmatmul.mubr.bf16.gmra.mrb[56].mxu0 %v2132_v44  ;;  %2300 = vmatmul.mubr.msk.bf16.gmra.mrb[56].mxu1 %vm1067_vm0, %v2131_v45  ;;  %v342_v44 = vmax.bf16 %v2501_v0, %v214_v38  ;;  %v2144_v45 = vcombine.low %v323_v25, %v325_v26  ;;  %v362_v25 = vmax.bf16 %v2501_v0, %v234_v19  ;;  %v244_v38 = vld [vmem:[#allocation3 + $0x2d8] sm:$0xf] }
  0xea   :  { %1316 = vmatprep.mubr.bf16.mxu0 %v2136_v46  ;;  %2303 = vmatprep.mubr.msk.bf16.mxu1 %vm1067_vm0, %v2134_v47  ;;  %v2155_v46 = vcombine.low %v336_v39, %v338_v40  ;;  %v2148_v47 = vcombine.high %v327_v41, %v329_v42  ;;  %v339_v26 = vmax.bf16 %v2501_v0, %v211_v20  ;;  %v246_v39 = vld [vmem:[#allocation3 + $0x2e4] sm:$0xf] }
  0xeb   :  { %v2158_v48 = vcombine.low %v340_v43, %v342_v44  ;;  %v368_v40 = vmax.bf16 %v2501_v0, %v240_v34  ;;  %v345_v43 = vmax.bf16 %v2501_v0, %v217_v37  ;;  %v372_v44 = vmax.bf16 %v2501_v0, %v244_v38 }
  0xf1   :  { %1317 = vmatmul.mubr.bf16.gmra.mrb[60].mxu0 %v2135_v60  ;;  %2304 = vmatmul.mubr.msk.bf16.gmra.mrb[60].mxu1 %vm1067_vm0, %v2137_v61  ;;  %v350_v60 = vmax.bf16 %v2501_v0, %v222_v54  ;;  %v2147_v61 = vcombine.low %v327_v41, %v329_v42  ;;  %v370_v41 = vmax.bf16 %v2501_v0, %v242_v35 }
  0xf2   :  { %1324 = vmatprep.mubr.bf16.mxu0 %v2139_v62  ;;  %2307 = vmatprep.mubr.msk.bf16.mxu1 %vm1067_vm0, %v2140_v63  ;;  %v2161_v62 = vcombine.low %v344_v55, %v346_v56  ;;  %v2151_v63 = vcombine.high %v331_v57, %v333_v58  ;;  %v343_v42 = vmax.bf16 %v2501_v0, %v215_v36 }
  0xf3   :  { %v2164_v1 = vcombine.low %v348_v59, %v350_v60  ;;  %v2185_v55 = vcombine.low %v376_v52, %v378_v53 }
  0xf4   :  { %v2159_v54 = vcombine.low %v343_v42, %v345_v43 }
  0xf9   :  { %1325 = vmatmul.mubr.bf16.gmra.mrb[64].mxu0 %v2138_v13  ;;  %2308 = vmatmul.mubr.msk.bf16.gmra.mrb[64].mxu1 %vm1067_vm0, %v2143_v14  ;;  %v358_v13 = vmax.bf16 %v2501_v0, %v230_v7  ;;  %v2150_v14 = vcombine.low %v331_v57, %v333_v58 }
  0xfa   :  { %1332 = vmatprep.mubr.bf16.mxu0 %v2142_v15  ;;  %2311 = vmatprep.mubr.msk.bf16.mxu1 %vm1067_vm0, %v2146_v16  ;;  %v2167_v15 = vcombine.low %v352_v8, %v354_v9  ;;  %v2154_v16 = vcombine.high %v335_v10, %v337_v11 }
  0xfb   :  { %v2170_v17 = vcombine.low %v356_v12, %v358_v13 }
 0x101   :  { %1333 = vmatmul.mubr.bf16.gmra.mrb[68].mxu0 %v2141_v29  ;;  %2312 = vmatmul.mubr.msk.bf16.gmra.mrb[68].mxu1 %vm1067_vm0, %v2149_v30  ;;  %v366_v29 = vmax.bf16 %v2501_v0, %v238_v23  ;;  %v2153_v30 = vcombine.low %v335_v10, %v337_v11 }
 0x102   :  { %1340 = vmatprep.mubr.bf16.mxu0 %v2145_v31  ;;  %2315 = vmatprep.mubr.msk.bf16.mxu1 %vm1067_vm0, %v2152_v32  ;;  %v2173_v31 = vcombine.low %v360_v24, %v362_v25  ;;  %v2157_v32 = vcombine.high %v339_v26, %v341_v27 }
 0x103   :  { %v2176_v33 = vcombine.low %v364_v28, %v366_v29 }
 0x109   :  { %1341 = vmatmul.mubr.bf16.gmra.mrb[72].mxu0 %v2144_v45  ;;  %2316 = vmatmul.mubr.msk.bf16.gmra.mrb[72].mxu1 %vm1067_vm0, %v2155_v46  ;;  %v374_v45 = vmax.bf16 %v2501_v0, %v246_v39  ;;  %v2156_v46 = vcombine.low %v339_v26, %v341_v27 }
 0x10a   :  { %1348 = vmatprep.mubr.bf16.mxu0 %v2148_v47  ;;  %2319 = vmatprep.mubr.msk.bf16.mxu1 %vm1067_vm0, %v2158_v48  ;;  %v2179_v47 = vcombine.low %v368_v40, %v370_v41  ;;  %v2160_v48 = vcombine.high %v343_v42, %v345_v43 }
 0x10b   :  { %v2182_v49 = vcombine.low %v372_v44, %v374_v45 }
 0x111   :  { %1349 = vmatmul.mubr.bf16.gmra.mrb[76].mxu0 %v2147_v61  ;;  %2320 = vmatmul.mubr.msk.bf16.gmra.mrb[76].mxu1 %vm1067_vm0, %v2161_v62 }
 0x112   :  { %1356 = vmatprep.mubr.bf16.mxu0 %v2151_v63  ;;  %2323 = vmatprep.mubr.msk.bf16.mxu1 %vm1067_vm0, %v2164_v1 }
 0x119   :  { %1357 = vmatmul.mubr.bf16.gmra.mrb[80].mxu0 %v2150_v14  ;;  %2324 = vmatmul.mubr.msk.bf16.gmra.mrb[80].mxu1 %vm1067_vm0, %v2167_v15 }
 0x11a   :  { %1364 = vmatprep.mubr.bf16.mxu0 %v2154_v16  ;;  %2327 = vmatprep.mubr.msk.bf16.mxu1 %vm1067_vm0, %v2170_v17 }
 0x121   :  { %1365 = vmatmul.mubr.bf16.gmra.mrb[84].mxu0 %v2153_v30  ;;  %2328 = vmatmul.mubr.msk.bf16.gmra.mrb[84].mxu1 %vm1067_vm0, %v2173_v31 }
 0x122   :  { %1372 = vmatprep.mubr.bf16.mxu0 %v2157_v32  ;;  %2331 = vmatprep.mubr.msk.bf16.mxu1 %vm1067_vm0, %v2176_v33 }
 0x129   :  { %1373 = vmatmul.mubr.bf16.gmra.mrb[88].mxu0 %v2156_v46  ;;  %2332 = vmatmul.mubr.msk.bf16.gmra.mrb[88].mxu1 %vm1067_vm0, %v2179_v47 }
 0x12a   :  { %1380 = vmatprep.mubr.bf16.mxu0 %v2160_v48  ;;  %2335 = vmatprep.mubr.msk.bf16.mxu1 %vm1067_vm0, %v2182_v49 }
 0x131   :  { %1381 = vmatmul.mubr.bf16.gmra.mrb[92].mxu0 %v2159_v54  ;;  %2336 = vmatmul.mubr.msk.bf16.gmra.mrb[92].mxu1 %vm1067_vm0, %v2185_v55 }
 0x14c   :  { %v2769_v56 = vpop.f32.mrb[0].mxu0  ;;  %v2771_v57 = vpop.f32.mrb[0].mxu1 }
 0x14d   :  { %v1200_v58 = vpop.f32.mrb[1].mxu0  ;;  %v1392_v59 = vpop.f32.mrb[1].mxu1 }
 0x14e   :  { %v2773_v60 = vpop.f32.mrb[2].mxu0  ;;  %v2775_v61 = vpop.f32.mrb[2].mxu1 }
 0x14f   :  { %v1203_v62 = vpop.f32.mrb[3].mxu0  ;;  %v1395_v0 = vpop.f32.mrb[3].mxu1 }
 0x150   :  { %v2831_v62 = vld [vmem:[#allocation8] ss:$0 sm:$0xff] }
 0x154   :  { %v1206_v63 = vpop.f32.mrb[4].mxu0  ;;  %v2777_v1 = vpop.f32.mrb[4].mxu1 }
 0x155   :  { %v1208_v2 = vpop.f32.mrb[5].mxu0  ;;  %v1400_v3 = vpop.f32.mrb[5].mxu1 }
 0x156   :  { %v1209_v4 = vpop.f32.mrb[6].mxu0  ;;  %v2779_v5 = vpop.f32.mrb[6].mxu1 }
 0x157   :  { %v1211_v6 = vpop.f32.mrb[7].mxu0  ;;  %v1403_v7 = vpop.f32.mrb[7].mxu1 }
 0x15c   :  { %v2781_v8 = vpop.f32.mrb[8].mxu0  ;;  %v2783_v9 = vpop.f32.mrb[8].mxu1 }
 0x15d   :  { %v1216_v10 = vpop.f32.mrb[9].mxu0  ;;  %v1408_v11 = vpop.f32.mrb[9].mxu1 }
 0x15e   :  { %v2785_v12 = vpop.f32.mrb[10].mxu0  ;;  %v2787_v13 = vpop.f32.mrb[10].mxu1 }
 0x15f   :  { %v1219_v14 = vpop.f32.mrb[11].mxu0  ;;  %v1411_v15 = vpop.f32.mrb[11].mxu1 }
 0x164   :  { %v2789_v16 = vpop.f32.mrb[12].mxu0  ;;  %v2791_v17 = vpop.f32.mrb[12].mxu1 }
 0x165   :  { %v1224_v18 = vpop.f32.mrb[13].mxu0  ;;  %v1416_v19 = vpop.f32.mrb[13].mxu1 }
 0x166   :  { %v2793_v20 = vpop.f32.mrb[14].mxu0  ;;  %v2795_v21 = vpop.f32.mrb[14].mxu1 }
 0x167   :  { %v1227_v22 = vpop.f32.mrb[15].mxu0  ;;  %v1419_v23 = vpop.f32.mrb[15].mxu1 }
 0x16c   :  { %v2797_v24 = vpop.f32.mrb[16].mxu0  ;;  %v2799_v25 = vpop.f32.mrb[16].mxu1 }
 0x16d   :  { %v1232_v26 = vpop.f32.mrb[17].mxu0  ;;  %v1424_v27 = vpop.f32.mrb[17].mxu1 }
 0x16e   :  { %v2801_v28 = vpop.f32.mrb[18].mxu0  ;;  %v2803_v29 = vpop.f32.mrb[18].mxu1 }
 0x16f   :  { %v1235_v30 = vpop.f32.mrb[19].mxu0  ;;  %v1427_v31 = vpop.f32.mrb[19].mxu1 }
 0x174   :  { %v2805_v32 = vpop.f32.mrb[20].mxu0  ;;  %v2807_v33 = vpop.f32.mrb[20].mxu1 }
 0x175   :  { %v1240_v34 = vpop.f32.mrb[21].mxu0  ;;  %v1432_v35 = vpop.f32.mrb[21].mxu1 }
 0x176   :  { %v2809_v36 = vpop.f32.mrb[22].mxu0  ;;  %v2811_v37 = vpop.f32.mrb[22].mxu1 }
 0x177   :  { %v1243_v38 = vpop.f32.mrb[23].mxu0  ;;  %v1435_v39 = vpop.f32.mrb[23].mxu1 }
 0x17c   :  { %v2813_v40 = vpop.f32.mrb[24].mxu0  ;;  %v2815_v41 = vpop.f32.mrb[24].mxu1 }
 0x17d   :  { %v1248_v42 = vpop.f32.mrb[25].mxu0  ;;  %v1440_v43 = vpop.f32.mrb[25].mxu1 }
 0x17e   :  { %v2817_v44 = vpop.f32.mrb[26].mxu0  ;;  %v2819_v45 = vpop.f32.mrb[26].mxu1 }
 0x17f   :  { %v1251_v46 = vpop.f32.mrb[27].mxu0  ;;  %v1443_v47 = vpop.f32.mrb[27].mxu1 }
 0x184   :  { %v2821_v48 = vpop.f32.mrb[28].mxu0  ;;  %v2823_v49 = vpop.f32.mrb[28].mxu1 }
 0x185   :  { %v1256_v50 = vpop.f32.mrb[29].mxu0  ;;  %v1448_v51 = vpop.f32.mrb[29].mxu1 }
 0x186   :  { %v2825_v52 = vpop.f32.mrb[30].mxu0  ;;  %v2827_v53 = vpop.f32.mrb[30].mxu1 }
 0x187   :  { %v1259_v54 = vpop.f32.mrb[31].mxu0  ;;  %v1451_v55 = vpop.f32.mrb[31].mxu1 }
 0x18c   :  { %v2829_v58 = vpop.f32.mrb[32].mxu0  ;;  %v2277_v59 = vpop.f32.mrb[32].mxu1 }
 0x18d   :  { %v1496_v0 = vadd.f32 %v2277_v59, %v1206_v63  ;;  %v1264_v2 = vpop.f32.mrb[33].mxu0  ;;  %v1487_v3 = vpop.f32.mrb[33].mxu1 }
 0x18e   :  { %v1488_v6 = vadd.f32 %v1487_v3, %v2769_v56  ;;  %v2834_v7 = vpop.f32.mrb[34].mxu0  ;;  %v2278_v10 = vpop.f32.mrb[34].mxu1 }
 0x18f   :  { %v1946_v11 = vadd.f32 %v2831_v62, %v1496_v0  ;;  %v1499_v14 = vadd.f32 %v2278_v10, %v1209_v4  ;;  %v1267_v15 = vpop.f32.mrb[35].mxu0  ;;  %v1490_v18 = vpop.f32.mrb[35].mxu1 }
 0x190   :  { %v1944_v19 = vadd.f32 %v2831_v62, %v1488_v6  ;;  %v1491_v22 = vadd.f32 %v1490_v18, %v2773_v60 }
 0x191   :  { %2010 = vst [vmem:[#allocation9 + $0x10] sm:$0xff] %v1946_v11  ;;  %v1947_v23 = vadd.f32 %v2831_v62, %v1499_v14 }
 0x192   :  { %2008 = vst [vmem:[#allocation9] sm:$0xff] %v1944_v19  ;;  %v1945_v63 = vadd.f32 %v2831_v62, %v1491_v22 }
 0x193   :  { %2011 = vst [vmem:[#allocation9 + $0x18] sm:$0xff] %v1947_v23 }
 0x194   :  { %2009 = vst [vmem:[#allocation9 + $0x8] sm:$0xff] %v1945_v63  ;;  %v1270_v56 = vpop.f32.mrb[36].mxu0  ;;  %v2281_v26 = vpop.f32.mrb[36].mxu1 }
 0x195   :  { %v1512_v27 = vadd.f32 %v2281_v26, %v2789_v16  ;;  %v1272_v30 = vpop.f32.mrb[37].mxu0  ;;  %v1503_v4 = vpop.f32.mrb[37].mxu1 }
 0x196   :  { %v1504_v31 = vadd.f32 %v1503_v4, %v2781_v8  ;;  %v2843_v34 = vpop.f32.mrb[38].mxu0  ;;  %v2282_v35 = vpop.f32.mrb[38].mxu1 }
 0x197   :  { %v1950_v60 = vadd.f32 %v2831_v62, %v1512_v27  ;;  %v1515_v38 = vadd.f32 %v2282_v35, %v2793_v20  ;;  %v1275_v39 = vpop.f32.mrb[39].mxu0  ;;  %v1506_v42 = vpop.f32.mrb[39].mxu1 }
 0x198   :  { %v1948_v43 = vadd.f32 %v2831_v62, %v1504_v31  ;;  %v1507_v46 = vadd.f32 %v1506_v42, %v2785_v12 }
 0x199   :  { %2014 = vst [vmem:[#allocation9 + $0x30] sm:$0xff] %v1950_v60  ;;  %v1951_v16 = vadd.f32 %v2831_v62, %v1515_v38 }
 0x19a   :  { %2012 = vst [vmem:[#allocation9 + $0x20] sm:$0xff] %v1948_v43  ;;  %v1949_v47 = vadd.f32 %v2831_v62, %v1507_v46 }
 0x19b   :  { %2015 = vst [vmem:[#allocation9 + $0x38] sm:$0xff] %v1951_v16 }
 0x19c   :  { %2013 = vst [vmem:[#allocation9 + $0x28] sm:$0xff] %v1949_v47  ;;  %v2851_v8 = vpop.f32.mrb[40].mxu0  ;;  %v2285_v50 = vpop.f32.mrb[40].mxu1 }
 0x19d   :  { %v1528_v51 = vadd.f32 %v2285_v50, %v2805_v32  ;;  %v1280_v20 = vpop.f32.mrb[41].mxu0  ;;  %v1519_v54 = vpop.f32.mrb[41].mxu1 }
 0x19e   :  { %v1520_v55 = vadd.f32 %v1519_v54, %v2797_v24  ;;  %v2855_v59 = vpop.f32.mrb[42].mxu0  ;;  %v2286_v12 = vpop.f32.mrb[42].mxu1 }
 0x19f   :  { %v1954_v0 = vadd.f32 %v2831_v62, %v1528_v51  ;;  %v1531_v2 = vadd.f32 %v2286_v12, %v2809_v36  ;;  %v1283_v3 = vpop.f32.mrb[43].mxu0  ;;  %v1522_v6 = vpop.f32.mrb[43].mxu1 }
 0x1a0   :  { %v1952_v10 = vadd.f32 %v2831_v62, %v1520_v55  ;;  %v1523_v11 = vadd.f32 %v1522_v6, %v2801_v28 }
 0x1a1   :  { %2018 = vst [vmem:[#allocation9 + $0x50] sm:$0xff] %v1954_v0  ;;  %v1955_v32 = vadd.f32 %v2831_v62, %v1531_v2 }
 0x1a2   :  { %2016 = vst [vmem:[#allocation9 + $0x40] sm:$0xff] %v1952_v10  ;;  %v1953_v14 = vadd.f32 %v2831_v62, %v1523_v11 }
 0x1a3   :  { %2019 = vst [vmem:[#allocation9 + $0x58] sm:$0xff] %v1955_v32 }
 0x1a4   :  { %2017 = vst [vmem:[#allocation9 + $0x48] sm:$0xff] %v1953_v14  ;;  %v1286_v24 = vpop.f32.mrb[44].mxu0  ;;  %v2289_v15 = vpop.f32.mrb[44].mxu1 }
 0x1a5   :  { %v1544_v18 = vadd.f32 %v2289_v15, %v2821_v48  ;;  %v1288_v19 = vpop.f32.mrb[45].mxu0  ;;  %v1535_v36 = vpop.f32.mrb[45].mxu1 }
 0x1a6   :  { %v1536_v22 = vadd.f32 %v1535_v36, %v2813_v40  ;;  %v1289_v23 = vpop.f32.mrb[46].mxu0  ;;  %v2290_v63 = vpop.f32.mrb[46].mxu1 }
 0x1a7   :  { %v1958_v28 = vadd.f32 %v2831_v62, %v1544_v18  ;;  %v1547_v26 = vadd.f32 %v2290_v63, %v2825_v52  ;;  %v1291_v27 = vpop.f32.mrb[47].mxu0  ;;  %v1538_v30 = vpop.f32.mrb[47].mxu1 }
 0x1a8   :  { %v1956_v4 = vadd.f32 %v2831_v62, %v1536_v22  ;;  %v1539_v31 = vadd.f32 %v1538_v30, %v2817_v44 }
 0x1a9   :  { %2022 = vst [vmem:[#allocation9 + $0x70] sm:$0xff] %v1958_v28  ;;  %v1959_v35 = vadd.f32 %v2831_v62, %v1547_v26 }
 0x1aa   :  { %2020 = vst [vmem:[#allocation9 + $0x60] sm:$0xff] %v1956_v4  ;;  %v1957_v48 = vadd.f32 %v2831_v62, %v1539_v31 }
 0x1ab   :  { %2023 = vst [vmem:[#allocation9 + $0x78] sm:$0xff] %v1959_v35 }
 0x1ac   :  { %2021 = vst [vmem:[#allocation9 + $0x68] sm:$0xff] %v1957_v48  ;;  %v1294_v40 = vpop.f32.mrb[48].mxu0  ;;  %v2293_v60 = vpop.f32.mrb[48].mxu1 }
 0x1ad   :  { %v1560_v38 = vadd.f32 %v2293_v60, %v1270_v56  ;;  %v1296_v39 = vpop.f32.mrb[49].mxu0  ;;  %v1551_v42 = vpop.f32.mrb[49].mxu1 }
 0x1ae   :  { %v1552_v52 = vadd.f32 %v1551_v42, %v2829_v58  ;;  %v1297_v43 = vpop.f32.mrb[50].mxu0  ;;  %v2294_v46 = vpop.f32.mrb[50].mxu1 }
 0x1af   :  { %v1962_v16 = vadd.f32 %v2831_v62, %v1560_v38  ;;  %v1563_v44 = vadd.f32 %v2294_v46, %v2843_v34  ;;  %v1299_v47 = vpop.f32.mrb[51].mxu0  ;;  %v1554_v50 = vpop.f32.mrb[51].mxu1 }
 0x1b0   :  { %v1960_v51 = vadd.f32 %v2831_v62, %v1552_v52  ;;  %v1555_v20 = vadd.f32 %v1554_v50, %v2834_v7 }
 0x1b1   :  { %2026 = vst [vmem:[#allocation9 + $0x90] sm:$0xff] %v1962_v16  ;;  %v1963_v54 = vadd.f32 %v2831_v62, %v1563_v44 }
 0x1b2   :  { %2024 = vst [vmem:[#allocation9 + $0x80] sm:$0xff] %v1960_v51  ;;  %v1961_v56 = vadd.f32 %v2831_v62, %v1555_v20 }
 0x1b3   :  { %2027 = vst [vmem:[#allocation9 + $0x98] sm:$0xff] %v1963_v54 }
 0x1b4   :  { %2025 = vst [vmem:[#allocation9 + $0x88] sm:$0xff] %v1961_v56  ;;  %v1302_v58 = vpop.f32.mrb[52].mxu0  ;;  %v2297_v55 = vpop.f32.mrb[52].mxu1 }
 0x1b5   :  { %v1576_v12 = vadd.f32 %v2297_v55, %v1286_v24  ;;  %v1304_v0 = vpop.f32.mrb[53].mxu0  ;;  %v1567_v2 = vpop.f32.mrb[53].mxu1 }
 0x1b6   :  { %v1568_v34 = vadd.f32 %v1567_v2, %v2851_v8  ;;  %v1305_v3 = vpop.f32.mrb[54].mxu0  ;;  %v2298_v6 = vpop.f32.mrb[54].mxu1 }
 0x1b7   :  { %v1966_v10 = vadd.f32 %v2831_v62, %v1576_v12  ;;  %v1579_v7 = vadd.f32 %v2298_v6, %v1289_v23  ;;  %v1307_v11 = vpop.f32.mrb[55].mxu0  ;;  %v1570_v32 = vpop.f32.mrb[55].mxu1 }
 0x1b8   :  { %v1964_v14 = vadd.f32 %v2831_v62, %v1568_v34  ;;  %v1571_v15 = vadd.f32 %v1570_v32, %v2855_v59 }
 0x1b9   :  { %2030 = vst [vmem:[#allocation9 + $0xb0] sm:$0xff] %v1966_v10  ;;  %v1967_v18 = vadd.f32 %v2831_v62, %v1579_v7 }
 0x1ba   :  { %2028 = vst [vmem:[#allocation9 + $0xa0] sm:$0xff] %v1964_v14  ;;  %v1965_v24 = vadd.f32 %v2831_v62, %v1571_v15 }
 0x1bb   :  { %2031 = vst [vmem:[#allocation9 + $0xb8] sm:$0xff] %v1967_v18 }
 0x1bc   :  { %2029 = vst [vmem:[#allocation9 + $0xa8] sm:$0xff] %v1965_v24  ;;  %v1310_v8 = vpop.f32.mrb[56].mxu0  ;;  %v2301_v19 = vpop.f32.mrb[56].mxu1 }
 0x1bd   :  { %v1592_v36 = vadd.f32 %v2301_v19, %v1302_v58  ;;  %v1312_v22 = vpop.f32.mrb[57].mxu0  ;;  %v1583_v63 = vpop.f32.mrb[57].mxu1 }
 0x1be   :  { %v1584_v23 = vadd.f32 %v1583_v63, %v1294_v40  ;;  %v1313_v28 = vpop.f32.mrb[58].mxu0  ;;  %v2302_v26 = vpop.f32.mrb[58].mxu1 }
 0x1bf   :  { %v1970_v27 = vadd.f32 %v2831_v62, %v1592_v36  ;;  %v1595_v30 = vadd.f32 %v2302_v26, %v1305_v3  ;;  %v1315_v59 = vpop.f32.mrb[59].mxu0  ;;  %v1586_v4 = vpop.f32.mrb[59].mxu1 }
 0x1c0   :  { %v1968_v31 = vadd.f32 %v2831_v62, %v1584_v23  ;;  %v1587_v35 = vadd.f32 %v1586_v4, %v1297_v43 }
 0x1c1   :  { %2034 = vst [vmem:[#allocation9 + $0xd0] sm:$0xff] %v1970_v27  ;;  %v1971_v48 = vadd.f32 %v2831_v62, %v1595_v30 }
 0x1c2   :  { %2032 = vst [vmem:[#allocation9 + $0xc0] sm:$0xff] %v1968_v31  ;;  %v1969_v60 = vadd.f32 %v2831_v62, %v1587_v35 }
 0x1c3   :  { %2035 = vst [vmem:[#allocation9 + $0xd8] sm:$0xff] %v1971_v48 }
 0x1c4   :  { %2033 = vst [vmem:[#allocation9 + $0xc8] sm:$0xff] %v1969_v60  ;;  %v1318_v38 = vpop.f32.mrb[60].mxu0  ;;  %v2305_v40 = vpop.f32.mrb[60].mxu1 }
 0x1c5   :  { %v1608_v39 = vadd.f32 %v2305_v40, %v1318_v38  ;;  %v1320_v42 = vpop.f32.mrb[61].mxu0  ;;  %v1599_v52 = vpop.f32.mrb[61].mxu1 }
 0x1c6   :  { %v1600_v46 = vadd.f32 %v1599_v52, %v1310_v8  ;;  %v1321_v16 = vpop.f32.mrb[62].mxu0  ;;  %v2306_v44 = vpop.f32.mrb[62].mxu1 }
 0x1c7   :  { %v1974_v47 = vadd.f32 %v2831_v62, %v1608_v39  ;;  %v1611_v50 = vadd.f32 %v2306_v44, %v1321_v16  ;;  %v1323_v43 = vpop.f32.mrb[63].mxu0  ;;  %v1602_v51 = vpop.f32.mrb[63].mxu1 }
 0x1c8   :  { %v1972_v20 = vadd.f32 %v2831_v62, %v1600_v46  ;;  %v1603_v54 = vadd.f32 %v1602_v51, %v1313_v28 }
 0x1c9   :  { %2038 = vst [vmem:[#allocation9 + $0xf0] sm:$0xff] %v1974_v47  ;;  %v1975_v56 = vadd.f32 %v2831_v62, %v1611_v50 }
 0x1ca   :  { %2036 = vst [vmem:[#allocation9 + $0xe0] sm:$0xff] %v1972_v20  ;;  %v1973_v58 = vadd.f32 %v2831_v62, %v1603_v54 }
 0x1cb   :  { %2039 = vst [vmem:[#allocation9 + $0xf8] sm:$0xff] %v1975_v56 }
 0x1cc   :  { %2037 = vst [vmem:[#allocation9 + $0xe8] sm:$0xff] %v1973_v58  ;;  %v1326_v55 = vpop.f32.mrb[64].mxu0  ;;  %v2309_v12 = vpop.f32.mrb[64].mxu1 }
 0x1cd   :  { %v1328_v0 = vpop.f32.mrb[65].mxu0  ;;  %v1615_v2 = vpop.f32.mrb[65].mxu1 }
 0x1ce   :  { %v1616_v34 = vadd.f32 %v1615_v2, %v1326_v55  ;;  %v1329_v3 = vpop.f32.mrb[66].mxu0  ;;  %v2310_v6 = vpop.f32.mrb[66].mxu1 }
 0x1cf   :  { %v1331_v10 = vpop.f32.mrb[67].mxu0  ;;  %v1618_v7 = vpop.f32.mrb[67].mxu1 }
 0x1d0   :  { %v1976_v11 = vadd.f32 %v2831_v62, %v1616_v34  ;;  %v1619_v32 = vadd.f32 %v1618_v7, %v1329_v3 }
 0x1d2   :  { %2040 = vst [vmem:[#allocation9 + $0x100] sm:$0xff] %v1976_v11  ;;  %v1977_v14 = vadd.f32 %v2831_v62, %v1619_v32 }
 0x1d4   :  { %2041 = vst [vmem:[#allocation9 + $0x108] sm:$0xff] %v1977_v14  ;;  %v1334_v15 = vpop.f32.mrb[68].mxu0  ;;  %v2313_v18 = vpop.f32.mrb[68].mxu1 }
 0x1d5   :  { %v1624_v24 = vadd.f32 %v2309_v12, %v1334_v15  ;;  %v1336_v8 = vpop.f32.mrb[69].mxu0  ;;  %v1631_v19 = vpop.f32.mrb[69].mxu1 }
 0x1d6   :  { %v1337_v36 = vpop.f32.mrb[70].mxu0  ;;  %v2314_v22 = vpop.f32.mrb[70].mxu1 }
 0x1d7   :  { %v1978_v63 = vadd.f32 %v2831_v62, %v1624_v24  ;;  %v1627_v23 = vadd.f32 %v2310_v6, %v1337_v36  ;;  %v1339_v28 = vpop.f32.mrb[71].mxu0  ;;  %v1634_v26 = vpop.f32.mrb[71].mxu1 }
 0x1d9   :  { %2042 = vst [vmem:[#allocation9 + $0x110] sm:$0xff] %v1978_v63  ;;  %v1979_v27 = vadd.f32 %v2831_v62, %v1627_v23 }
 0x1db   :  { %2043 = vst [vmem:[#allocation9 + $0x118] sm:$0xff] %v1979_v27 }
 0x1dc   :  { %v1342_v30 = vpop.f32.mrb[72].mxu0  ;;  %v2317_v59 = vpop.f32.mrb[72].mxu1 }
 0x1dd   :  { %v1632_v4 = vadd.f32 %v1631_v19, %v1342_v30  ;;  %v1344_v31 = vpop.f32.mrb[73].mxu0  ;;  %v1647_v35 = vpop.f32.mrb[73].mxu1 }
 0x1de   :  { %v1345_v48 = vpop.f32.mrb[74].mxu0  ;;  %v2318_v60 = vpop.f32.mrb[74].mxu1 }
 0x1df   :  { %v1980_v38 = vadd.f32 %v2831_v62, %v1632_v4  ;;  %v1635_v40 = vadd.f32 %v1634_v26, %v1345_v48  ;;  %v1347_v39 = vpop.f32.mrb[75].mxu0  ;;  %v1650_v42 = vpop.f32.mrb[75].mxu1 }
 0x1e1   :  { %2044 = vst [vmem:[#allocation9 + $0x120] sm:$0xff] %v1980_v38  ;;  %v1981_v52 = vadd.f32 %v2831_v62, %v1635_v40 }
 0x1e3   :  { %2045 = vst [vmem:[#allocation9 + $0x128] sm:$0xff] %v1981_v52 }
 0x1e4   :  { %v1350_v46 = vpop.f32.mrb[76].mxu0  ;;  %v2898_v16 = vpop.f32.mrb[76].mxu1 }
 0x1e5   :  { %v1640_v44 = vadd.f32 %v2313_v18, %v1350_v46  ;;  %v1352_v47 = vpop.f32.mrb[77].mxu0  ;;  %v2900_v50 = vpop.f32.mrb[77].mxu1 }
 0x1e6   :  { %v1353_v43 = vpop.f32.mrb[78].mxu0  ;;  %v2902_v51 = vpop.f32.mrb[78].mxu1 }
 0x1e7   :  { %v1982_v20 = vadd.f32 %v2831_v62, %v1640_v44  ;;  %v1643_v54 = vadd.f32 %v2314_v22, %v1353_v43  ;;  %v1355_v56 = vpop.f32.mrb[79].mxu0  ;;  %v2905_v58 = vpop.f32.mrb[79].mxu1 }
 0x1e9   :  { %2046 = vst [vmem:[#allocation9 + $0x130] sm:$0xff] %v1982_v20  ;;  %v1983_v55 = vadd.f32 %v2831_v62, %v1643_v54 }
 0x1eb   :  { %2047 = vst [vmem:[#allocation9 + $0x138] sm:$0xff] %v1983_v55 }
 0x1ec   :  { %v1358_v12 = vpop.f32.mrb[80].mxu0  ;;  %v2325_v0 = vpop.f32.mrb[80].mxu1 }
 0x1ed   :  { %v1648_v2 = vadd.f32 %v1647_v35, %v1358_v12  ;;  %v1688_v34 = vadd.f32 %v2325_v0, %v2777_v1  ;;  %v1360_v3 = vpop.f32.mrb[81].mxu0  ;;  %v1679_v6 = vpop.f32.mrb[81].mxu1 }
 0x1ee   :  { %v1680_v10 = vadd.f32 %v1679_v6, %v2771_v57  ;;  %v1361_v7 = vpop.f32.mrb[82].mxu0  ;;  %v2326_v11 = vpop.f32.mrb[82].mxu1 }
 0x1ef   :  { %v1984_v32 = vadd.f32 %v2831_v62, %v1648_v2  ;;  %v1994_v14 = vadd.f32 %v2831_v62, %v1688_v34  ;;  %v1651_v15 = vadd.f32 %v1650_v42, %v1361_v7  ;;  %v1691_v18 = vadd.f32 %v2326_v11, %v2779_v5  ;;  %v1363_v24 = vpop.f32.mrb[83].mxu0  ;;  %v1682_v8 = vpop.f32.mrb[83].mxu1 }
 0x1f0   :  { %v1992_v19 = vadd.f32 %v2831_v62, %v1680_v10  ;;  %v1683_v36 = vadd.f32 %v1682_v8, %v2775_v61 }
 0x1f1   :  { %2048 = vst [vmem:[#allocation9 + $0x140] sm:$0xff] %v1984_v32  ;;  %2058 = vst [vmem:[#allocation9 + $0x190] sm:$0xff] %v1994_v14  ;;  %v1985_v1 = vadd.f32 %v2831_v62, %v1651_v15  ;;  %v1995_v57 = vadd.f32 %v2831_v62, %v1691_v18 }
 0x1f2   :  { %2056 = vst [vmem:[#allocation9 + $0x180] sm:$0xff] %v1992_v19  ;;  %v1993_v22 = vadd.f32 %v2831_v62, %v1683_v36 }
 0x1f3   :  { %2049 = vst [vmem:[#allocation9 + $0x148] sm:$0xff] %v1985_v1  ;;  %2059 = vst [vmem:[#allocation9 + $0x198] sm:$0xff] %v1995_v57 }
 0x1f4   :  { %2057 = vst [vmem:[#allocation9 + $0x188] sm:$0xff] %v1993_v22  ;;  %v1366_v63 = vpop.f32.mrb[84].mxu0  ;;  %v2329_v5 = vpop.f32.mrb[84].mxu1 }
 0x1f5   :  { %v1656_v23 = vadd.f32 %v2317_v59, %v1366_v63  ;;  %v1704_v28 = vadd.f32 %v2329_v5, %v2791_v17  ;;  %v1368_v26 = vpop.f32.mrb[85].mxu0  ;;  %v1695_v27 = vpop.f32.mrb[85].mxu1 }
 0x1f6   :  { %v1696_v61 = vadd.f32 %v1695_v27, %v2783_v9  ;;  %v1369_v30 = vpop.f32.mrb[86].mxu0  ;;  %v2330_v4 = vpop.f32.mrb[86].mxu1 }
 0x1f7   :  { %v1986_v31 = vadd.f32 %v2831_v62, %v1656_v23  ;;  %v1998_v35 = vadd.f32 %v2831_v62, %v1704_v28  ;;  %v1659_v48 = vadd.f32 %v2318_v60, %v1369_v30  ;;  %v1707_v38 = vadd.f32 %v2330_v4, %v2795_v21  ;;  %v1371_v40 = vpop.f32.mrb[87].mxu0  ;;  %v1698_v39 = vpop.f32.mrb[87].mxu1 }
 0x1f8   :  { %v1996_v42 = vadd.f32 %v2831_v62, %v1696_v61  ;;  %v1699_v59 = vadd.f32 %v1698_v39, %v2787_v13 }
 0x1f9   :  { %2050 = vst [vmem:[#allocation9 + $0x150] sm:$0xff] %v1986_v31  ;;  %2062 = vst [vmem:[#allocation9 + $0x1b0] sm:$0xff] %v1998_v35  ;;  %v1987_v17 = vadd.f32 %v2831_v62, %v1659_v48  ;;  %v1999_v9 = vadd.f32 %v2831_v62, %v1707_v38 }
 0x1fa   :  { %2060 = vst [vmem:[#allocation9 + $0x1a0] sm:$0xff] %v1996_v42  ;;  %v1997_v52 = vadd.f32 %v2831_v62, %v1699_v59 }
 0x1fb   :  { %2051 = vst [vmem:[#allocation9 + $0x158] sm:$0xff] %v1987_v17  ;;  %2063 = vst [vmem:[#allocation9 + $0x1b8] sm:$0xff] %v1999_v9 }
 0x1fc   :  { %2061 = vst [vmem:[#allocation9 + $0x1a8] sm:$0xff] %v1997_v52  ;;  %v1374_v60 = vpop.f32.mrb[88].mxu0  ;;  %v2333_v21 = vpop.f32.mrb[88].mxu1 }
 0x1fd   :  { %v1664_v46 = vadd.f32 %v2900_v50, %v1374_v60  ;;  %v1720_v44 = vadd.f32 %v2333_v21, %v2807_v33  ;;  %v1376_v47 = vpop.f32.mrb[89].mxu0  ;;  %v1711_v13 = vpop.f32.mrb[89].mxu1 }
 0x1fe   :  { %v1712_v43 = vadd.f32 %v1711_v13, %v2799_v25  ;;  %v1377_v20 = vpop.f32.mrb[90].mxu0  ;;  %v2334_v54 = vpop.f32.mrb[90].mxu1 }
 0x1ff   :  { %v1988_v56 = vadd.f32 %v2831_v62, %v1664_v46  ;;  %v2002_v55 = vadd.f32 %v2831_v62, %v1720_v44  ;;  %v1667_v12 = vadd.f32 %v2905_v58, %v1377_v20  ;;  %v1723_v0 = vadd.f32 %v2334_v54, %v2811_v37  ;;  %v1379_v2 = vpop.f32.mrb[91].mxu0  ;;  %v1714_v34 = vpop.f32.mrb[91].mxu1 }
 0x200   :  { %v2000_v50 = vadd.f32 %v2831_v62, %v1712_v43  ;;  %v1715_v33 = vadd.f32 %v1714_v34, %v2803_v29 }
 0x201   :  { %2052 = vst [vmem:[#allocation9 + $0x160] sm:$0xff] %v1988_v56  ;;  %2066 = vst [vmem:[#allocation9 + $0x1d0] sm:$0xff] %v2002_v55  ;;  %v1989_v25 = vadd.f32 %v2831_v62, %v1667_v12  ;;  %v2003_v3 = vadd.f32 %v2831_v62, %v1723_v0 }
 0x202   :  { %2064 = vst [vmem:[#allocation9 + $0x1c0] sm:$0xff] %v2000_v50  ;;  %v2001_v6 = vadd.f32 %v2831_v62, %v1715_v33 }
 0x203   :  { %2053 = vst [vmem:[#allocation9 + $0x168] sm:$0xff] %v1989_v25  ;;  %2067 = vst [vmem:[#allocation9 + $0x1d8] sm:$0xff] %v2003_v3 }
 0x204   :  { %2065 = vst [vmem:[#allocation9 + $0x1c8] sm:$0xff] %v2001_v6  ;;  %v1382_v58 = vpop.f32.mrb[92].mxu0  ;;  %v2337_v37 = vpop.f32.mrb[92].mxu1 }
 0x205   :  { %v1672_v10 = vadd.f32 %v2898_v16, %v1382_v58  ;;  %v1736_v7 = vadd.f32 %v2337_v37, %v2823_v49  ;;  %v1384_v11 = vpop.f32.mrb[93].mxu0  ;;  %v1727_v29 = vpop.f32.mrb[93].mxu1 }
 0x206   :  { %v1728_v32 = vadd.f32 %v1727_v29, %v2815_v41  ;;  %v1385_v14 = vpop.f32.mrb[94].mxu0  ;;  %v2338_v15 = vpop.f32.mrb[94].mxu1 }
 0x207   :  { %v1990_v18 = vadd.f32 %v2831_v62, %v1672_v10  ;;  %v2006_v24 = vadd.f32 %v2831_v62, %v1736_v7  ;;  %v1675_v8 = vadd.f32 %v2902_v51, %v1385_v14  ;;  %v1739_v19 = vadd.f32 %v2338_v15, %v2827_v53  ;;  %v1387_v36 = vpop.f32.mrb[95].mxu0  ;;  %v1730_v16 = vpop.f32.mrb[95].mxu1 }
 0x208   :  { %v2004_v49 = vadd.f32 %v2831_v62, %v1728_v32  ;;  %v1731_v1 = vadd.f32 %v1730_v16, %v2819_v45 }
 0x209   :  { %2054 = vst [vmem:[#allocation9 + $0x170] sm:$0xff] %v1990_v18  ;;  %2070 = vst [vmem:[#allocation9 + $0x1f0] sm:$0xff] %v2006_v24  ;;  %v1991_v41 = vadd.f32 %v2831_v62, %v1675_v8  ;;  %v2007_v57 = vadd.f32 %v2831_v62, %v1739_v19 }
 0x20a   :  { %2068 = vst [vmem:[#allocation9 + $0x1e0] sm:$0xff] %v2004_v49  ;;  %v2005_v22 = vadd.f32 %v2831_v62, %v1731_v1 }
 0x20b   :  { %2055 = vst [vmem:[#allocation9 + $0x178] sm:$0xff] %v1991_v41  ;;  %2071 = vst [vmem:[#allocation9 + $0x1f8] sm:$0xff] %v2007_v57 }
 0x20c   :  { %2069 = vst [vmem:[#allocation9 + $0x1e8] sm:$0xff] %v2005_v22 }
 0x20d   :  { %2477 = shalt.err (!%p2474_p0)
}
 0x20e   :  { %s2478_s28 = scalar_lea.hbm %s2967_s3, 8192 }
 0x20f   :  { %p2479_p1 = scmp.ne.s32.totalorder %s2967_s3, %s2478_s28  ;;  %p2482_p2 = scmp.lt.u32.totalorder %s2478_s28, %s2967_s3 }
 0x211   :  { %p2484_p3 = pnand %p2482_p2, %p2479_p1 }
 0x213   :  { %2487 = shalt.err (!%p2484_p3)
}
 0x214   :  { %s2503_s6 = smov 128   ;;  %s2504_s7 = smov 8  }
 0x215   :  { %2083 = dma.vmem_to_hbm [thread:$0]  %s2078_s24, 8192, %s2967_s3, [#allocation5], %s2503_s6, %s2503_s6, %s2504_s7  }
 0x216   :  { %2492 = dma.done.wait [#allocation5], 8192  }
 0x217   :  { %2493 = vsyncadd [#allocation5], 4294959104 }
 0x218   :  { %2087 = vsyncpa [#allocation4], 1 }
 0x219   :  { %2088 = vsyncpa [#allocation7], 1 }
 0x21a   :  { %2089 = vsyncpa [#allocation5], 1 }

// kernel: _lambda_.45
= control target key start
LH: loop header
LB: loop body
LE: loop exit
PB: predicated region body
PF: predicated region fallthrough
CT: control target
= control target key end

     0   :  { %v105_v0 = vmov 0.0   ;;  %s187_s1 = inlined_call_operand.vmem [shape: f32[1,128], index: 1, kind: output, shape index: {0}]   ;;  %s188_s2 = inlined_call_operand.vmem [shape: f32[1,128], index: 2, kind: output, shape index: {1}]   ;;  %s189_s0 = inlined_call_operand.vmem [shape: f32[128,128], index: 0, kind: input, shape index: {}]  }
   0x1   :  { %14 = vst [vmem:[%s187_s1] sm:$0x1] %v105_v0  ;;  %15 = vst [vmem:[%s188_s2] sm:$0x1] %v105_v0  ;;  %v16_v1 = vld [vmem:[%s189_s0] sm:$0xff]  ;;  %v17_v2 = vld [vmem:[%s189_s0 + $0x8] sm:$0xff] }
   0x2   :  { %v18_v3 = vld [vmem:[%s189_s0 + $0x10] sm:$0xff]  ;;  %v19_v4 = vld [vmem:[%s189_s0 + $0x18] sm:$0xff]  ;;  %v33_v5 = vadd.f32 %v17_v2, %v16_v1  ;;  %v57_v6 = vmul.f32 %v16_v1, %v16_v1  ;;  %v58_v7 = vmul.f32 %v17_v2, %v17_v2  ;;  %v20_v9 = vld [vmem:[%s189_s0 + $0x20] sm:$0xff] }
   0x3   :  { %v59_v8 = vmul.f32 %v18_v3, %v18_v3  ;;  %v60_v11 = vmul.f32 %v19_v4, %v19_v4  ;;  %v21_v13 = vld [vmem:[%s189_s0 + $0x28] sm:$0xff]  ;;  %v61_v15 = vmul.f32 %v20_v9, %v20_v9  ;;  %v22_v17 = vld [vmem:[%s189_s0 + $0x30] sm:$0xff]  ;;  %v23_v21 = vld [vmem:[%s189_s0 + $0x38] sm:$0xff] }
   0x4   :  { %v34_v10 = vadd.f32 %v33_v5, %v18_v3  ;;  %v73_v12 = vadd.f32 %v58_v7, %v57_v6  ;;  %v62_v19 = vmul.f32 %v21_v13, %v21_v13  ;;  %v63_v23 = vmul.f32 %v22_v17, %v22_v17  ;;  %v24_v25 = vld [vmem:[%s189_s0 + $0x40] sm:$0xff]  ;;  %v25_v29 = vld [vmem:[%s189_s0 + $0x48] sm:$0xff]  ;;  %v26_v33 = vld [vmem:[%s189_s0 + $0x50] sm:$0xff] }
   0x5   :  { %v64_v27 = vmul.f32 %v23_v21, %v23_v21  ;;  %v65_v31 = vmul.f32 %v24_v25, %v24_v25  ;;  %v66_v35 = vmul.f32 %v25_v29, %v25_v29  ;;  %v27_v37 = vld [vmem:[%s189_s0 + $0x58] sm:$0xff]  ;;  %v67_v39 = vmul.f32 %v26_v33, %v26_v33  ;;  %v28_v41 = vld [vmem:[%s189_s0 + $0x60] sm:$0xff]  ;;  %v29_v45 = vld [vmem:[%s189_s0 + $0x68] sm:$0xff] }
   0x6   :  { %v35_v14 = vadd.f32 %v34_v10, %v19_v4  ;;  %v74_v16 = vadd.f32 %v73_v12, %v59_v8  ;;  %v68_v43 = vmul.f32 %v27_v37, %v27_v37  ;;  %v69_v47 = vmul.f32 %v28_v41, %v28_v41  ;;  %v30_v49 = vld [vmem:[%s189_s0 + $0x70] sm:$0xff]  ;;  %v31_v53 = vld [vmem:[%s189_s0 + $0x78] sm:$0xff] }
   0x7   :  { %v70_v51 = vmul.f32 %v29_v45, %v29_v45  ;;  %v71_v55 = vmul.f32 %v30_v49, %v30_v49  ;;  %v72_v58 = vmul.f32 %v31_v53, %v31_v53 }
   0x8   :  { %v36_v18 = vadd.f32 %v35_v14, %v20_v9  ;;  %v75_v20 = vadd.f32 %v74_v16, %v60_v11  ;;  %v32_v7 = vld [vmem:[%s187_s1] sm:$0x1] }
   0x9   :  { %v56_v12 = vld [vmem:[%s188_s2] sm:$0x1] }
   0xa   :  { %v37_v22 = vadd.f32 %v36_v18, %v21_v13  ;;  %v76_v24 = vadd.f32 %v75_v20, %v61_v15 }
   0xc   :  { %v38_v26 = vadd.f32 %v37_v22, %v22_v17  ;;  %v77_v28 = vadd.f32 %v76_v24, %v62_v19 }
   0xe   :  { %v39_v30 = vadd.f32 %v38_v26, %v23_v21  ;;  %v78_v32 = vadd.f32 %v77_v28, %v63_v23 }
  0x10   :  { %v40_v34 = vadd.f32 %v39_v30, %v24_v25  ;;  %v79_v36 = vadd.f32 %v78_v32, %v64_v27 }
  0x12   :  { %v41_v38 = vadd.f32 %v40_v34, %v25_v29  ;;  %v80_v40 = vadd.f32 %v79_v36, %v65_v31 }
  0x14   :  { %v42_v42 = vadd.f32 %v41_v38, %v26_v33  ;;  %v81_v44 = vadd.f32 %v80_v40, %v66_v35 }
  0x16   :  { %v43_v46 = vadd.f32 %v42_v42, %v27_v37  ;;  %v82_v48 = vadd.f32 %v81_v44, %v67_v39 }
  0x18   :  { %v44_v50 = vadd.f32 %v43_v46, %v28_v41  ;;  %v83_v52 = vadd.f32 %v82_v48, %v68_v43 }
  0x1a   :  { %v45_v54 = vadd.f32 %v44_v50, %v29_v45  ;;  %v84_v56 = vadd.f32 %v83_v52, %v69_v47 }
  0x1c   :  { %v46_v57 = vadd.f32 %v45_v54, %v30_v49  ;;  %v85_v59 = vadd.f32 %v84_v56, %v70_v51 }
  0x1e   :  { %v47_v60 = vadd.f32 %v46_v57, %v31_v53  ;;  %v86_v61 = vadd.f32 %v85_v59, %v71_v55 }
  0x20   :  { %v48_v62 = vrot.slane %v47_v60, 4  ;;  %v87_v63 = vadd.f32 %v86_v61, %v72_v58 }
  0x22   :  { %v49_v0 = vadd.f32 %v48_v62, %v47_v60  ;;  %v88_v1 = vrot.slane %v87_v63, 4 }
  0x24   :  { %v50_v2 = vrot.slane %v49_v0, 2  ;;  %v89_v3 = vadd.f32 %v88_v1, %v87_v63 }
  0x26   :  { %v51_v4 = vadd.f32 %v50_v2, %v49_v0  ;;  %v90_v5 = vrot.slane %v89_v3, 2 }
  0x28   :  { %v52_v6 = vrot.slane %v51_v4, 1  ;;  %v91_v8 = vadd.f32 %v90_v5, %v89_v3 }
  0x2a   :  { %v53_v9 = vadd.f32 %v52_v6, %v51_v4  ;;  %v92_v10 = vrot.slane %v91_v8, 1 }
  0x2c   :  { %v54_v11 = vadd.f32 %v53_v9, %v32_v7  ;;  %v93_v13 = vadd.f32 %v92_v10, %v91_v8 }
  0x2e   :  { %55 = vst [vmem:[%s187_s1] sm:$0x1] %v54_v11  ;;  %v94_v14 = vadd.f32 %v93_v13, %v56_v12 }
  0x30   :  { %95 = vst [vmem:[%s188_s2] sm:$0x1] %v94_v14 }

// kernel: _lambda_.46
= control target key start
LH: loop header
LB: loop body
LE: loop exit
PB: predicated region body
PF: predicated region fallthrough
CT: control target
= control target key end

     0   :  { %s220_s0 = inlined_call_operand.vmem [shape: f32[128,128], index: 0, kind: input, shape index: {}]   ;;  %s221_s1 = inlined_call_operand.vmem [shape: f32[1,128], index: 1, kind: input, shape index: {}]   ;;  %s222_s2 = inlined_call_operand.vmem [shape: f32[1,128], index: 2, kind: input, shape index: {}]   ;;  %s223_s3 = inlined_call_operand.vmem [shape: f32[128,128], index: 3, kind: output, shape index: {}]  }
   0x1   :  { %v14_v0 = vld [vmem:[%s220_s0] sm:$0xff]  ;;  %v15_v4 = vld [vmem:[%s220_s0 + $0x8] sm:$0xff]  ;;  %v16_v5 = vld [vmem:[%s220_s0 + $0x10] sm:$0xff] }
   0x2   :  { %v96_v1 = vld [vmem:[%s221_s1] ss:$0 sm:$0xff]  ;;  %v17_v6 = vld [vmem:[%s220_s0 + $0x18] sm:$0xff]  ;;  %v19_v11 = vld [vmem:[%s220_s0 + $0x28] sm:$0xff] }
   0x3   :  { %v97_v2 = vld [vmem:[%s222_s2] ss:$0 sm:$0xff]  ;;  %v37_v3 = vmul.f32 %v96_v1, %v14_v0  ;;  %v38_v7 = vmul.f32 %v96_v1, %v15_v4  ;;  %v39_v8 = vmul.f32 %v96_v1, %v16_v5  ;;  %v40_v9 = vmul.f32 %v96_v1, %v17_v6  ;;  %v20_v12 = vld [vmem:[%s220_s0 + $0x30] sm:$0xff]  ;;  %v21_v17 = vld [vmem:[%s220_s0 + $0x38] sm:$0xff] }
   0x4   :  { %v18_v10 = vld [vmem:[%s220_s0 + $0x20] sm:$0xff]  ;;  %v42_v15 = vmul.f32 %v96_v1, %v19_v11  ;;  %v43_v16 = vmul.f32 %v96_v1, %v20_v12  ;;  %v23_v19 = vld [vmem:[%s220_s0 + $0x48] sm:$0xff]  ;;  %v44_v23 = vmul.f32 %v96_v1, %v21_v17  ;;  %v24_v24 = vld [vmem:[%s220_s0 + $0x50] sm:$0xff] }
   0x5   :  { %v60_v13 = vadd.f32 %v97_v2, %v37_v3  ;;  %v41_v14 = vmul.f32 %v96_v1, %v18_v10  ;;  %v22_v18 = vld [vmem:[%s220_s0 + $0x40] sm:$0xff]  ;;  %v61_v20 = vadd.f32 %v97_v2, %v38_v7  ;;  %v62_v21 = vadd.f32 %v97_v2, %v39_v8  ;;  %v25_v25 = vld [vmem:[%s220_s0 + $0x58] sm:$0xff]  ;;  %v27_v31 = vld [vmem:[%s220_s0 + $0x68] sm:$0xff] }
   0x6   :  { %v63_v22 = vadd.f32 %v97_v2, %v40_v9  ;;  %v26_v26 = vld [vmem:[%s220_s0 + $0x60] sm:$0xff]  ;;  %v65_v28 = vadd.f32 %v97_v2, %v42_v15  ;;  %v66_v29 = vadd.f32 %v97_v2, %v43_v16  ;;  %v45_v30 = vmul.f32 %v96_v1, %v22_v18  ;;  %v28_v32 = vld [vmem:[%s220_s0 + $0x70] sm:$0xff]  ;;  %v29_v33 = vld [vmem:[%s220_s0 + $0x78] sm:$0xff] }
   0x7   :  { %76 = vst [vmem:[%s223_s3] sm:$0xff] %v60_v13  ;;  %v64_v27 = vadd.f32 %v97_v2, %v41_v14  ;;  %77 = vst [vmem:[%s223_s3 + $0x8] sm:$0xff] %v61_v20  ;;  %v67_v34 = vadd.f32 %v97_v2, %v44_v23  ;;  %v46_v35 = vmul.f32 %v96_v1, %v23_v19 }
   0x8   :  { %78 = vst [vmem:[%s223_s3 + $0x10] sm:$0xff] %v62_v21  ;;  %79 = vst [vmem:[%s223_s3 + $0x18] sm:$0xff] %v63_v22  ;;  %v47_v36 = vmul.f32 %v96_v1, %v24_v24  ;;  %v48_v37 = vmul.f32 %v96_v1, %v25_v25  ;;  %v68_v38 = vadd.f32 %v97_v2, %v45_v30 }
   0x9   :  { %80 = vst [vmem:[%s223_s3 + $0x20] sm:$0xff] %v64_v27  ;;  %81 = vst [vmem:[%s223_s3 + $0x28] sm:$0xff] %v65_v28  ;;  %v49_v39 = vmul.f32 %v96_v1, %v26_v26  ;;  %v50_v40 = vmul.f32 %v96_v1, %v27_v31  ;;  %v51_v41 = vmul.f32 %v96_v1, %v28_v32 }
   0xa   :  { %82 = vst [vmem:[%s223_s3 + $0x30] sm:$0xff] %v66_v29  ;;  %83 = vst [vmem:[%s223_s3 + $0x38] sm:$0xff] %v67_v34  ;;  %v69_v42 = vadd.f32 %v97_v2, %v46_v35  ;;  %v70_v43 = vadd.f32 %v97_v2, %v47_v36  ;;  %v71_v44 = vadd.f32 %v97_v2, %v48_v37 }
   0xb   :  { %v52_v45 = vmul.f32 %v96_v1, %v29_v33  ;;  %84 = vst [vmem:[%s223_s3 + $0x40] sm:$0xff] %v68_v38  ;;  %v72_v46 = vadd.f32 %v97_v2, %v49_v39  ;;  %v73_v47 = vadd.f32 %v97_v2, %v50_v40  ;;  %v74_v48 = vadd.f32 %v97_v2, %v51_v41 }
   0xc   :  { %85 = vst [vmem:[%s223_s3 + $0x48] sm:$0xff] %v69_v42  ;;  %86 = vst [vmem:[%s223_s3 + $0x50] sm:$0xff] %v70_v43 }
   0xd   :  { %87 = vst [vmem:[%s223_s3 + $0x58] sm:$0xff] %v71_v44  ;;  %v75_v49 = vadd.f32 %v97_v2, %v52_v45  ;;  %88 = vst [vmem:[%s223_s3 + $0x60] sm:$0xff] %v72_v46 }
   0xe   :  { %89 = vst [vmem:[%s223_s3 + $0x68] sm:$0xff] %v73_v47  ;;  %90 = vst [vmem:[%s223_s3 + $0x70] sm:$0xff] %v74_v48 }
   0xf   :  { %91 = vst [vmem:[%s223_s3 + $0x78] sm:$0xff] %v75_v49 }

// kernel: _lambda_.47
= control target key start
LH: loop header
LB: loop body
LE: loop exit
PB: predicated region body
PF: predicated region fallthrough
CT: control target
= control target key end

     0   :  { %8 = vsyncpa [#allocation4], 0  ;;  %s2908_s0 = inlined_call_operand.hbm [shape: bf16[2048,144], index: 0, kind: input, shape index: {}]   ;;  %s2909_s1 = inlined_call_operand.hbm [shape: bf16[144,128], index: 1, kind: input, shape index: {}]   ;;  %s2910_s2 = inlined_call_operand.hbm [shape: f32[1,128], index: 2, kind: input, shape index: {}]   ;;  %s2911_s3 = inlined_call_operand.hbm [shape: f32[2048,128], index: 3, kind: output, shape index: {}]  }
   0x1   :  { %10 = vsyncpa [#allocation4 + $0x1], 0 }
   0x2   :  { %11 = vsyncpa [#allocation7], 0 }
   0x3   :  { %12 = vsyncpa [#allocation5], 0 }
   0x4   :  { %14 = vsyncpa [#allocation5 + $0x1], 0  ;;  %s2344_s12 = smov 0   ;;  %s2346_s13 = smov 0  }
   0x5   :  { %s2348_s14 = smov 0   ;;  %s2350_s15 = smov 0  }
   0x6   :  { %s2352_s16 = smov 0   ;;  %s2354_s17 = smov 0  }
   0x7 LB: > { %s1765_s18 = sadd.s32 4294967295, %s2311_s17   ;;  %s1766_s19 = sadd.s32 4294967294, %s2311_s17   ;;  %s2311_s17 = sphi %s2354_s17, %s20_s17   ;;  %s2307_s16 = sphi %s2352_s16, %s2933_s16   ;;  %s2303_s15 = sphi %s2350_s15, %s2932_s15   ;;  %s2299_s14 = sphi %s2348_s14, %s2931_s14   ;;  %s2295_s13 = sphi %s2346_s13, %s2930_s13   ;;  %s2291_s12 = sphi %s2344_s12, %s2929_s12  }
   0x8   : > { %p54_p0 = scmp.ne.s32.totalorder %s2295_s13, %s2291_s12  ;;  %p2378_p1 = scmp.eq.s32.totalorder %s1765_s18, 0 }
   0x9   : > { %p2382_p2 = scmp.eq.s32.totalorder %s1765_s18, 3  ;;  %p131_p3 = scmp.eq.s32.totalorder %s1766_s19, 3 }
   0xa   : > { %s2916_s20 = scalar_select %p2378_p1, 1, 0 }
   0xb   : > { %s2917_s21 = scalar_select %p2382_p2, 1, 0 }
   0xc   : > { %p2388_p4 = por %p2378_p1, %p54_p0  ;;  %p1767_p5 = scmp.ge.s32.totalorder %s2311_s17, 1 }
   0xd   : > { %p2393_p6 = por %p131_p3, %p54_p0  ;;  %p138_p7 = scmp.lt.s32.totalorder %s2311_s17, 5 }
   0xe   : > { %s2918_s22 = scalar_select %p2388_p4, 1, 0 }
   0xf   : > { %s2919_s23 = scalar_select %p2393_p6, 1, 0 }
  0x10   : > { %p2398_p8 = pnand %p1767_p5, %p138_p7  ;;  %s2313_s25 = smov [#allocation6]  }
  0x11   : > { %s153_s26 = sshll.u32 %s2313_s25, 4  ;;  %s2314_s28 = smov [#allocation8]   ;;  %s154_s26 = int_to_ptr.vmem [resolvable:$true] %s153_s26 }
  0x12   : > { %s2920_s24 = scalar_select %p2398_p8, 1, 0 }
  0x13   : > { %p1924_p9 = pneg %p2398_p8  ;;  %s167_s29 = sshll.u32 %s2314_s28, 4  ;;  %s2410_s29 = int_to_ptr.vmem [resolvable:$true] %s167_s29 }
  0x14   : > { %s2139_s5 = scalar_lea.hbm %s2909_s1, 1152 }
  0x15   : > { %p2406_p10 = pnand %p1924_p9, %p2378_p1  ;;  %p2140_p11 = scmp.ne.s32.totalorder %s2909_s1, %s2139_s5 }
  0x16   : > { %p2146_p3 = scmp.lt.u32.totalorder %s2139_s5, %s2909_s1 }
  0x17   : > { %p2141_p12 = pneg %p2406_p10 }
  0x19   : > { %p2142_p13 = pnand %p2141_p12, %p2140_p11 }
  0x1b   : > { %p2143_p0 = pneg %p2142_p13 }
  0x1d   : > { %p2148_p5 = pnand %p2146_p3, %p2143_p0 }
  0x1f   : > { %2151 = shalt.err (!%p2148_p5)
}
  0x20   : > { %s2152_s10 = scalar_lea.vmem %s154_s26, 1152  ;;  %p2160_p1 = scmp.lt.s32.totalorder %s154_s26, %s154_s26 }
  0x21   : > { %p2153_p7 = scmp.ne.s32.totalorder %s154_s26, %s2152_s10  ;;  %p2161_p4 = scmp.lt.s32.totalorder %s2152_s10, %s2152_s10 }
  0x23   : > { %p2155_p9 = pnand %p2153_p7, %p2141_p12  ;;  %p2162_p8 = por %p2161_p4, %p2160_p1 }
  0x25   : > { %p2156_p6 = pneg %p2155_p9 }
  0x27   : > { %p2163_p2 = pnand %p2162_p8, %p2156_p6 }
  0x29   : > { %2166 = shalt.err (!%p2163_p2)
}
  0x2a   : > { %s2315_s11 = smov 64   ;;  %s2316_s18 = smov 4  }
  0x2b   : > { %1927 = dma.hbm_to_vmem [thread:$0]  (!%p2406_p10), %s2909_s1, 1152, %s154_s26, [#allocation7], %s2315_s11, %s2315_s11, %s2316_s18  }
  0x2c   : > { %s2167_s4 = scalar_lea.hbm %s2910_s2, 16 }
  0x2d   : > { %p2168_p11 = scmp.ne.s32.totalorder %s2910_s2, %s2167_s4  ;;  %p2174_p4 = scmp.lt.u32.totalorder %s2167_s4, %s2910_s2 }
  0x2f   : > { %p2170_p1 = pnand %p2168_p11, %p2141_p12 }
  0x31   : > { %p2171_p2 = pneg %p2170_p1 }
  0x33   : > { %p2176_p6 = pnand %p2174_p4, %p2171_p2 }
  0x35   : > { %2179 = shalt.err (!%p2176_p6)
}
  0x36   : > { %s2180_s26 = scalar_lea.vmem %s2410_s29, 16  ;;  %s2187_s9 = scalar_lea.vmem %s2410_s29, 32 }
  0x37   : > { %p2181_p8 = scmp.ne.s32.totalorder %s2410_s29, %s2180_s26  ;;  %p2188_p3 = scmp.lt.s32.totalorder %s2410_s29, %s2410_s29 }
  0x38   : > { %p2189_p5 = scmp.lt.s32.totalorder %s2187_s9, %s2180_s26 }
  0x39   : > { %p2183_p13 = pnand %p2181_p8, %p2141_p12 }
  0x3a   : > { %p2190_p7 = por %p2189_p5, %p2188_p3 }
  0x3b   : > { %p2184_p0 = pneg %p2183_p13 }
  0x3d   : > { %p2191_p9 = pnand %p2190_p7, %p2184_p0 }
  0x3f   : > { %2194 = shalt.err (!%p2191_p9)
}
  0x40   : > { %1930 = dma.hbm_to_vmem [thread:$0]  (!%p2406_p10), %s2910_s2, 16, %s2410_s29, [#allocation7]  }
  0x41   : > { %s32_s18 = sadd.s32 1, %s2307_s16  ;;  %s41_s19 = sadd.s32 1, %s2299_s14 }
  0x42   : > { %p34_p12 = scmp.ge.s32.totalorder %s32_s18, 4  ;;  %p48_p11 = scmp.ne.s32.totalorder %s2299_s14, %s2295_s13 }
  0x43   : > { %p49_p1 = scmp.eq.s32.totalorder %s2311_s17, 0  ;;  %p1941_p2 = scmp.lt.s32.totalorder %s2311_s17, 4 }
  0x44   : > { %s2935_s18 = smov (%p34_p12, %s32_s18), 0  ;;  %p2922_p6 = scmp.ne.s32.totalorder %s2917_s21, 0 }
  0x45   : > { %p50_p4 = por %p49_p1, %p48_p11  ;;  %s36_s25 = ssub.s32 %s2307_s16, %s2935_s18 }
  0x46   : > { %p2470_p8 = por %p2922_p6, %p48_p11  ;;  %s178_s28 = sand.u32 1, %s2299_s14  }
  0x47   : > { %p39_p13 = scmp.eq.s32.totalorder %s36_s25, 0  ;;  %s1771_s29 = sshll.u32 %s178_s28, 9 }
  0x48   : > { %s1892_s30 = sshll.u32 %s2307_s16, 13  ;;  %s182_s21 = scalar_lea.vmem [#allocation3], %s1771_s29 }
  0x49   : > { %s2479_s4 = scalar_select %p39_p13, %s2299_s14, %s41_s19  }
  0x4a   : > { %s2484_s7 = scalar_lea.hbm %s2908_s0, %s1892_s30  ;;  %s192_s8 = sshll.u32 %s182_s21, 4  ;;  %s2492_s8 = int_to_ptr.vmem [resolvable:$true] %s192_s8 }
  0x4b   : > { %p2488_p10 = pnand %p1941_p2, %p50_p4  ;;  %s2494_s9 = scalar_lea.sflag [#allocation4], %s178_s28 }
  0x4c   : > { %s2195_s10 = scalar_lea.hbm %s2484_s7, 8192  ;;  %s2200_s25 = scalar_lea.hbm %s2908_s0, 32768 }
  0x4d   : > { %p2196_p0 = scmp.ne.s32.totalorder %s2484_s7, %s2195_s10  ;;  %p2197_p3 = pneg %p2488_p10 }
  0x4e   : > { %p2201_p9 = scmp.lt.u32.totalorder %s2484_s7, %s2908_s0  ;;  %p2202_p12 = scmp.lt.u32.totalorder %s2200_s25, %s2195_s10 }
  0x4f   : > { %p2198_p5 = pnand %p2197_p3, %p2196_p0  ;;  %p2204_p1 = scmp.lt.u32.totalorder %s2195_s10, %s2484_s7 }
  0x50   : > { %p2203_p11 = por %p2202_p12, %p2201_p9 }
  0x51   : > { %p2199_p7 = pneg %p2198_p5 }
  0x52   : > { %p2205_p2 = por %p2204_p1, %p2203_p11 }
  0x54   : > { %p2206_p4 = pnand %p2205_p2, %p2199_p7 }
  0x56   : > { %2209 = shalt.err (!%p2206_p4)
}
  0x57   : > { %s2210_s28 = scalar_lea.vmem %s2492_s8, 8192  ;;  %s2317_s5 = smov [#allocation3]  }
  0x58   : > { %p2211_p6 = scmp.ne.s32.totalorder %s2492_s8, %s2210_s28  ;;  %s2215_s6 = sshll.u32 %s2317_s5, 4  ;;  %s2216_s6 = int_to_ptr.vmem [resolvable:$false] %s2215_s6 }
  0x59   : > { %s2217_s21 = scalar_lea.vmem %s2216_s6, 16384  ;;  %p2218_p5 = scmp.lt.s32.totalorder %s2492_s8, %s2216_s6 }
  0x5a   : > { %p2213_p13 = pnand %p2211_p6, %p2197_p3  ;;  %p2219_p9 = scmp.lt.s32.totalorder %s2217_s21, %s2210_s28 }
  0x5c   : > { %p2214_p0 = pneg %p2213_p13  ;;  %p2220_p12 = por %p2219_p9, %p2218_p5 }
  0x5e   : > { %p2221_p11 = pnand %p2220_p12, %p2214_p0 }
  0x60   : > { %2224 = shalt.err (!%p2221_p11)
}
  0x61   : > { %s2318_s10 = smov 128   ;;  %s2319_s11 = smov 8  }
  0x62   : > { %1934 = dma.hbm_to_vmem [thread:$0]  (!%p2488_p10), %s2484_s7, 8192, %s2492_s8, %s2494_s9, %s2318_s10, %s2318_s10, %s2319_s11  }
  0x63   : > { %p2925_p3 = scmp.ne.s32.totalorder %s2920_s24, 0 }
  0x64   : > { %s2525_s19 = sand.u32 (!%p2925_p3), 1, %s2295_s13   ;;  %p2926_p7 = scmp.ne.s32.totalorder (!%p2925_p3), %s2918_s22, 0 }
  0x65   : > { %204 = sbr.rel (%p2925_p3) target bundleno = 512 (0x200), region = 32  ;;  %s1776_s25 = sshll.u32 (!%p2925_p3), %s2525_s19, 9 }
  0x66   : > { %s207_s29 = scalar_lea.sflag (!%p2925_p3), [#allocation4], %s2525_s19  ;;  %s2531_s30 = scalar_lea.vmem (!%p2925_p3), [#allocation3], %s1776_s25 }
  0x6c   : > { %2278 = dma.done.wait (%p2926_p7), %s207_s29, 8192  }
  0x6d   : > { %2280 = vsyncadd (%p2926_p7), %s207_s29, 4294959104  ;;  %p2927_p10 = scmp.ne.s32.totalorder %s2916_s20, 0 }
  0x6f   : > { %2282 = dma.done.wait (%p2927_p10), [#allocation7], 1168  }
  0x70   : > { %2284 = vsyncadd (%p2927_p10), [#allocation7], 4294966128  ;;  %v2320_v0 = vmov 0   ;;  %v2002_v1 = vld [vmem:[#allocation6] sm:$0xff]   ;;  %v2003_v2 = vld [vmem:[#allocation6 + $0x8] sm:$0xff]   ;;  %vm866_vm0 = vcmask 130048  }
  0x71   : > { %963 = vmatprep.subr.bf16.mxu0 %v2320_v0  ;;  %1894 = vmatprep.subr.bf16.mxu1 %v2320_v0  ;;  %v2004_v3 = vld [vmem:[#allocation6 + $0x10] sm:$0xff]   ;;  %v314_v4 = vld [vmem:[%s2531_s30] sm:$0xff]  ;;  %v315_v5 = vld [vmem:[%s2531_s30 + $0x8] sm:$0xff]  ;;  %s2731_s20 = scalar_lea.vmem [#allocation9], %s1776_s25  ;;  %s1893_s22 = sshll.u32 %s2303_s15, 13 }
  0x72   : > { %964 = vmatpush1.bf16.msra.mxu0 %v2002_v1  ;;  %1903 = vmatpush1.bf16.msra.mxu1 %v2002_v1  ;;  %v346_v6 = vld [vmem:[%s2531_s30 + $0x100] sm:$0xff]  ;;  %v2005_v7 = vld [vmem:[#allocation6 + $0x18] sm:$0xff]   ;;  %v378_v8 = vmax.bf16 %v2320_v0, %v314_v4  ;;  %v379_v9 = vmax.bf16 %v2320_v0, %v315_v5  ;;  %v347_v10 = vld [vmem:[%s2531_s30 + $0x108] sm:$0xff]  ;;  %s1660_s24 = sshll.u32 %s2731_s20, 4  ;;  %s2855_s26 = scalar_lea.hbm %s2911_s3, %s1893_s22  ;;  %s2857_s24 = int_to_ptr.vmem [resolvable:$true] %s1660_s24 }
  0x73   : > { %965 = vmatprep.subr.bf16.mxu0 %v2320_v0  ;;  %1895 = vmatprep.subr.bf16.mxu1 %v2320_v0  ;;  %v410_v11 = vmax.bf16 %v2320_v0, %v346_v6  ;;  %v411_v12 = vmax.bf16 %v2320_v0, %v347_v10  ;;  %v2006_v15 = vld [vmem:[#allocation6 + $0x20] sm:$0xff]   ;;  %v2007_v16 = vld [vmem:[#allocation6 + $0x28] sm:$0xff]   ;;  %v2008_v17 = vld [vmem:[#allocation6 + $0x30] sm:$0xff]   ;;  %s1647_s15 = scalar_lea.sflag [#allocation5], %s2525_s19  ;;  %s2225_s9 = scalar_lea.vmem %s2857_s24, 8192 }
  0x74   : > { %v1781_v13 = vcombine.high %v378_v8, %v379_v9  ;;  %v2009_v18 = vld [vmem:[#allocation6 + $0x38] sm:$0xff]   ;;  %v316_v19 = vld [vmem:[%s2531_s30 + $0x10] sm:$0xff]  ;;  %v2010_v24 = vld [vmem:[#allocation6 + $0x40] sm:$0xff]   ;;  %v1780_v28 = vcombine.low %v378_v8, %v379_v9  ;;  %p2226_p1 = scmp.ne.s32.totalorder %s2857_s24, %s2225_s9  ;;  %s2321_s28 = smov [#allocation9]  }
  0x75   : > { %v1813_v14 = vcombine.high %v410_v11, %v411_v12  ;;  %v317_v20 = vld [vmem:[%s2531_s30 + $0x18] sm:$0xff]  ;;  %v348_v21 = vld [vmem:[%s2531_s30 + $0x110] sm:$0xff]  ;;  %v380_v23 = vmax.bf16 %v2320_v0, %v316_v19  ;;  %v1812_v29 = vcombine.low %v410_v11, %v411_v12  ;;  %v318_v32 = vld [vmem:[%s2531_s30 + $0x20] sm:$0xff]  ;;  %s2229_s5 = sshll.u32 %s2321_s28, 4  ;;  %s2230_s5 = int_to_ptr.vmem [resolvable:$false] %s2229_s5 }
  0x76   : > { %966 = vmatpush1.bf16.msra.mxu0 %v2003_v2  ;;  %1904 = vmatpush1.bf16.msra.mxu1 %v2003_v2  ;;  %v349_v22 = vld [vmem:[%s2531_s30 + $0x118] sm:$0xff]  ;;  %v381_v25 = vmax.bf16 %v2320_v0, %v317_v20  ;;  %v412_v26 = vmax.bf16 %v2320_v0, %v348_v21  ;;  %v319_v33 = vld [vmem:[%s2531_s30 + $0x28] sm:$0xff]  ;;  %v350_v34 = vld [vmem:[%s2531_s30 + $0x120] sm:$0xff]  ;;  %v382_v36 = vmax.bf16 %v2320_v0, %v318_v32  ;;  %p2227_p2 = pnand %p2226_p1, %p2470_p8  ;;  %s2231_s6 = scalar_lea.vmem %s2230_s5, 16384 }
  0x77   : > { %967 = vmatprep.subr.bf16.mxu0 %v2320_v0  ;;  %1896 = vmatprep.subr.bf16.mxu1 %v2320_v0  ;;  %v413_v27 = vmax.bf16 %v2320_v0, %v349_v22  ;;  %v351_v35 = vld [vmem:[%s2531_s30 + $0x128] sm:$0xff]  ;;  %v383_v37 = vmax.bf16 %v2320_v0, %v319_v33  ;;  %v414_v38 = vmax.bf16 %v2320_v0, %v350_v34  ;;  %v320_v44 = vld [vmem:[%s2531_s30 + $0x30] sm:$0xff]  ;;  %v321_v45 = vld [vmem:[%s2531_s30 + $0x38] sm:$0xff]  ;;  %p2232_p6 = scmp.lt.s32.totalorder %s2857_s24, %s2230_s5  ;;  %p2233_p13 = scmp.lt.s32.totalorder %s2231_s6, %s2225_s9 }
  0x78   : > { %1853 = vmatprep.mubr.msk.bf16.mxu0 %vm866_vm0, %v1781_v13  ;;  %1869 = vmatprep.mubr.msk.bf16.mxu1 %vm866_vm0, %v1813_v14  ;;  %v1783_v30 = vcombine.high %v380_v23, %v381_v25  ;;  %v415_v39 = vmax.bf16 %v2320_v0, %v351_v35  ;;  %v1782_v40 = vcombine.low %v380_v23, %v381_v25  ;;  %v352_v46 = vld [vmem:[%s2531_s30 + $0x130] sm:$0xff]  ;;  %v353_v47 = vld [vmem:[%s2531_s30 + $0x138] sm:$0xff]  ;;  %v322_v56 = vld [vmem:[%s2531_s30 + $0x40] sm:$0xff]  ;;  %p2228_p4 = pneg %p2227_p2 }
  0x79   : > { %v1815_v31 = vcombine.high %v412_v26, %v413_v27  ;;  %v1814_v41 = vcombine.low %v412_v26, %v413_v27  ;;  %v1785_v42 = vcombine.high %v382_v36, %v383_v37  ;;  %v384_v48 = vmax.bf16 %v2320_v0, %v320_v44  ;;  %v323_v57 = vld [vmem:[%s2531_s30 + $0x48] sm:$0xff]  ;;  %v354_v58 = vld [vmem:[%s2531_s30 + $0x140] sm:$0xff]  ;;  %v324_v5 = vld [vmem:[%s2531_s30 + $0x50] sm:$0xff]  ;;  %p2234_p0 = por %p2233_p13, %p2232_p6 }
  0x7a   : > { %968 = vmatpush1.bf16.msra.mxu0 %v2004_v3  ;;  %1905 = vmatpush1.bf16.msra.mxu1 %v2004_v3  ;;  %v1817_v43 = vcombine.high %v414_v38, %v415_v39  ;;  %v385_v49 = vmax.bf16 %v2320_v0, %v321_v45  ;;  %v416_v50 = vmax.bf16 %v2320_v0, %v352_v46  ;;  %v355_v59 = vld [vmem:[%s2531_s30 + $0x148] sm:$0xff]  ;;  %v325_v6 = vld [vmem:[%s2531_s30 + $0x58] sm:$0xff]  ;;  %v358_v19 = vld [vmem:[%s2531_s30 + $0x160] sm:$0xff] }
  0x7b   : > { %969 = vmatprep.subr.bf16.mxu0 %v2320_v0  ;;  %1897 = vmatprep.subr.bf16.mxu1 %v2320_v0  ;;  %v417_v51 = vmax.bf16 %v2320_v0, %v353_v47  ;;  %v1784_v52 = vcombine.low %v382_v36, %v383_v37  ;;  %v1816_v53 = vcombine.low %v414_v38, %v415_v39  ;;  %v357_v8 = vld [vmem:[%s2531_s30 + $0x158] sm:$0xff]  ;;  %v359_v20 = vld [vmem:[%s2531_s30 + $0x168] sm:$0xff]  ;;  %p2235_p5 = pnand %p2234_p0, %p2228_p4 }
  0x7c   : > { %v1787_v54 = vcombine.high %v384_v48, %v385_v49  ;;  %v386_v60 = vmax.bf16 %v2320_v0, %v322_v56  ;;  %v387_v61 = vmax.bf16 %v2320_v0, %v323_v57  ;;  %v418_v62 = vmax.bf16 %v2320_v0, %v354_v58  ;;  %v361_v32 = vld [vmem:[%s2531_s30 + $0x178] sm:$0xff]  ;;  %v363_v44 = vld [vmem:[%s2531_s30 + $0x188] sm:$0xff] }
  0x7d   : > { %v1819_v55 = vcombine.high %v416_v50, %v417_v51  ;;  %v419_v63 = vmax.bf16 %v2320_v0, %v355_v59  ;;  %v1786_v1 = vcombine.low %v384_v48, %v385_v49  ;;  %v1818_v2 = vcombine.low %v416_v50, %v417_v51  ;;  %v365_v56 = vld [vmem:[%s2531_s30 + $0x198] sm:$0xff] }
  0x7e   : > { %970 = vmatpush1.bf16.msra.mxu0 %v2005_v7  ;;  %1906 = vmatpush1.bf16.msra.mxu1 %v2005_v7  ;;  %v1789_v3 = vcombine.high %v386_v60, %v387_v61  ;;  %v356_v7 = vld [vmem:[%s2531_s30 + $0x150] sm:$0xff]  ;;  %v388_v9 = vmax.bf16 %v2320_v0, %v324_v5  ;;  %v389_v10 = vmax.bf16 %v2320_v0, %v325_v6  ;;  %v367_v5 = vld [vmem:[%s2531_s30 + $0x1a8] sm:$0xff] }
  0x7f   : > { %971 = vmatprep.subr.bf16.mxu0 %v2320_v0  ;;  %1898 = vmatprep.subr.bf16.mxu1 %v2320_v0  ;;  %v1821_v4 = vcombine.high %v418_v62, %v419_v63  ;;  %v420_v11 = vmax.bf16 %v2320_v0, %v356_v7  ;;  %v421_v12 = vmax.bf16 %v2320_v0, %v357_v8 }
  0x80   : > { %v1788_v13 = vcombine.low %v386_v60, %v387_v61  ;;  %v1820_v14 = vcombine.low %v418_v62, %v419_v63  ;;  %v422_v23 = vmax.bf16 %v2320_v0, %v358_v19  ;;  %v1790_v25 = vcombine.low %v388_v9, %v389_v10 }
  0x81   : > { %v1822_v26 = vcombine.low %v420_v11, %v421_v12  ;;  %v425_v36 = vmax.bf16 %v2320_v0, %v361_v32  ;;  %v427_v48 = vmax.bf16 %v2320_v0, %v363_v44  ;;  %v429_v60 = vmax.bf16 %v2320_v0, %v365_v56 }
  0x82   : > { %972 = vmatpush1.bf16.msra.mxu0 %v2006_v15  ;;  %1907 = vmatpush1.bf16.msra.mxu1 %v2006_v15  ;;  %v1791_v15 = vcombine.high %v388_v9, %v389_v10  ;;  %v431_v9 = vmax.bf16 %v2320_v0, %v367_v5 }
  0x83   : > { %973 = vmatprep.subr.bf16.mxu0 %v2320_v0  ;;  %1899 = vmatprep.subr.bf16.mxu1 %v2320_v0 }
  0x86   : > { %974 = vmatpush1.bf16.msra.mxu0 %v2007_v16  ;;  %1908 = vmatpush1.bf16.msra.mxu1 %v2007_v16  ;;  %v1823_v16 = vcombine.high %v420_v11, %v421_v12 }
  0x87   : > { %975 = vmatprep.subr.bf16.mxu0 %v2320_v0  ;;  %1900 = vmatprep.subr.bf16.mxu1 %v2320_v0 }
  0x8a   : > { %976 = vmatpush1.bf16.msra.mxu0 %v2008_v17  ;;  %1909 = vmatpush1.bf16.msra.mxu1 %v2008_v17  ;;  %v326_v17 = vld [vmem:[%s2531_s30 + $0x60] sm:$0xff] }
  0x8b   : > { %977 = vmatprep.subr.bf16.mxu0 %v2320_v0  ;;  %1901 = vmatprep.subr.bf16.mxu1 %v2320_v0  ;;  %v390_v21 = vmax.bf16 %v2320_v0, %v326_v17  ;;  %v369_v17 = vld [vmem:[%s2531_s30 + $0x1b8] sm:$0xff] }
  0x8e   : > { %978 = vmatpush1.bf16.msra.mxu0 %v2009_v18  ;;  %1910 = vmatpush1.bf16.msra.mxu1 %v2009_v18  ;;  %v327_v18 = vld [vmem:[%s2531_s30 + $0x68] sm:$0xff] }
  0x8f   : > { %979 = vmatprep.subr.bf16.mxu0 %v2320_v0  ;;  %1902 = vmatprep.subr.bf16.mxu1 %v2320_v0  ;;  %v391_v22 = vmax.bf16 %v2320_v0, %v327_v18 }
  0x91   : > { %v1793_v27 = vcombine.high %v390_v21, %v391_v22  ;;  %v1792_v37 = vcombine.low %v390_v21, %v391_v22  ;;  %v433_v21 = vmax.bf16 %v2320_v0, %v369_v17 }
  0x92   : > { %980 = vmatpush1.bf16.msra.mxu0 %v2010_v24  ;;  %1911 = vmatpush1.bf16.msra.mxu1 %v2010_v24  ;;  %v423_v24 = vmax.bf16 %v2320_v0, %v359_v20 }
  0x94   : > { %v1824_v38 = vcombine.low %v422_v23, %v423_v24 }
  0x95   : > { %996 = vmatmul.mubr.bf16.vlgmr.msra.gmra.mrb[0].mxu0 %v1780_v28  ;;  %1124 = vmatmul.mubr.bf16.vlgmr.msra.gmra.mrb[0].mxu1 %v1812_v29  ;;  %v1825_v28 = vcombine.high %v422_v23, %v423_v24  ;;  %v328_v29 = vld [vmem:[%s2531_s30 + $0x70] sm:$0xff] }
  0x96   : > { %1854 = vmatprep.mubr.msk.bf16.mxu0 %vm866_vm0, %v1783_v30  ;;  %1870 = vmatprep.mubr.msk.bf16.mxu1 %vm866_vm0, %v1815_v31  ;;  %v329_v30 = vld [vmem:[%s2531_s30 + $0x78] sm:$0xff]  ;;  %v360_v31 = vld [vmem:[%s2531_s30 + $0x170] sm:$0xff]  ;;  %v392_v33 = vmax.bf16 %v2320_v0, %v328_v29  ;;  %v371_v29 = vld [vmem:[%s2531_s30 + $0x1c8] sm:$0xff] }
  0x97   : > { %v393_v34 = vmax.bf16 %v2320_v0, %v329_v30  ;;  %v424_v35 = vmax.bf16 %v2320_v0, %v360_v31 }
  0x99   : > { %v1795_v39 = vcombine.high %v392_v33, %v393_v34  ;;  %v1794_v49 = vcombine.low %v392_v33, %v393_v34  ;;  %v1826_v50 = vcombine.low %v424_v35, %v425_v36  ;;  %v435_v33 = vmax.bf16 %v2320_v0, %v371_v29 }
  0x9d   : > { %1004 = vmatmul.mubr.bf16.gmra.mrb[4].mxu0 %v1782_v40  ;;  %1132 = vmatmul.mubr.bf16.gmra.mrb[4].mxu1 %v1814_v41  ;;  %v1827_v40 = vcombine.high %v424_v35, %v425_v36  ;;  %v330_v41 = vld [vmem:[%s2531_s30 + $0x80] sm:$0xff] }
  0x9e   : > { %1855 = vmatprep.mubr.msk.bf16.mxu0 %vm866_vm0, %v1785_v42  ;;  %1871 = vmatprep.mubr.msk.bf16.mxu1 %vm866_vm0, %v1817_v43  ;;  %v331_v42 = vld [vmem:[%s2531_s30 + $0x88] sm:$0xff]  ;;  %v362_v43 = vld [vmem:[%s2531_s30 + $0x180] sm:$0xff]  ;;  %v394_v45 = vmax.bf16 %v2320_v0, %v330_v41  ;;  %v373_v41 = vld [vmem:[%s2531_s30 + $0x1d8] sm:$0xff] }
  0x9f   : > { %v395_v46 = vmax.bf16 %v2320_v0, %v331_v42  ;;  %v426_v47 = vmax.bf16 %v2320_v0, %v362_v43 }
  0xa1   : > { %v1797_v51 = vcombine.high %v394_v45, %v395_v46  ;;  %v1796_v61 = vcombine.low %v394_v45, %v395_v46  ;;  %v1828_v62 = vcombine.low %v426_v47, %v427_v48  ;;  %v437_v45 = vmax.bf16 %v2320_v0, %v373_v41 }
  0xa5   : > { %1012 = vmatmul.mubr.bf16.gmra.mrb[8].mxu0 %v1784_v52  ;;  %1140 = vmatmul.mubr.bf16.gmra.mrb[8].mxu1 %v1816_v53  ;;  %v1829_v52 = vcombine.high %v426_v47, %v427_v48  ;;  %v332_v53 = vld [vmem:[%s2531_s30 + $0x90] sm:$0xff] }
  0xa6   : > { %1856 = vmatprep.mubr.msk.bf16.mxu0 %vm866_vm0, %v1787_v54  ;;  %1872 = vmatprep.mubr.msk.bf16.mxu1 %vm866_vm0, %v1819_v55  ;;  %v333_v54 = vld [vmem:[%s2531_s30 + $0x98] sm:$0xff]  ;;  %v364_v55 = vld [vmem:[%s2531_s30 + $0x190] sm:$0xff]  ;;  %v396_v57 = vmax.bf16 %v2320_v0, %v332_v53  ;;  %v375_v53 = vld [vmem:[%s2531_s30 + $0x1e8] sm:$0xff] }
  0xa7   : > { %v397_v58 = vmax.bf16 %v2320_v0, %v333_v54  ;;  %v428_v59 = vmax.bf16 %v2320_v0, %v364_v55 }
  0xa9   : > { %v1799_v63 = vcombine.high %v396_v57, %v397_v58  ;;  %v1798_v10 = vcombine.low %v396_v57, %v397_v58  ;;  %v1830_v11 = vcombine.low %v428_v59, %v429_v60  ;;  %v439_v57 = vmax.bf16 %v2320_v0, %v375_v53 }
  0xad   : > { %1020 = vmatmul.mubr.bf16.gmra.mrb[12].mxu0 %v1786_v1  ;;  %1148 = vmatmul.mubr.bf16.gmra.mrb[12].mxu1 %v1818_v2  ;;  %v1831_v1 = vcombine.high %v428_v59, %v429_v60  ;;  %v334_v2 = vld [vmem:[%s2531_s30 + $0xa0] sm:$0xff] }
  0xae   : > { %1857 = vmatprep.mubr.msk.bf16.mxu0 %vm866_vm0, %v1789_v3  ;;  %1873 = vmatprep.mubr.msk.bf16.mxu1 %vm866_vm0, %v1821_v4  ;;  %v335_v3 = vld [vmem:[%s2531_s30 + $0xa8] sm:$0xff]  ;;  %v366_v4 = vld [vmem:[%s2531_s30 + $0x1a0] sm:$0xff]  ;;  %v398_v6 = vmax.bf16 %v2320_v0, %v334_v2  ;;  %v377_v2 = vld [vmem:[%s2531_s30 + $0x1f8] sm:$0xff] }
  0xaf   : > { %v399_v7 = vmax.bf16 %v2320_v0, %v335_v3  ;;  %v430_v8 = vmax.bf16 %v2320_v0, %v366_v4 }
  0xb1   : > { %v1801_v12 = vcombine.high %v398_v6, %v399_v7  ;;  %v1800_v22 = vcombine.low %v398_v6, %v399_v7  ;;  %v1832_v23 = vcombine.low %v430_v8, %v431_v9  ;;  %v441_v6 = vmax.bf16 %v2320_v0, %v377_v2 }
  0xb5   : > { %1028 = vmatmul.mubr.bf16.gmra.mrb[16].mxu0 %v1788_v13  ;;  %1156 = vmatmul.mubr.bf16.gmra.mrb[16].mxu1 %v1820_v14  ;;  %v1833_v13 = vcombine.high %v430_v8, %v431_v9  ;;  %v336_v14 = vld [vmem:[%s2531_s30 + $0xb0] sm:$0xff] }
  0xb6   : > { %1858 = vmatprep.mubr.msk.bf16.mxu0 %vm866_vm0, %v1791_v15  ;;  %1874 = vmatprep.mubr.msk.bf16.mxu1 %vm866_vm0, %v1823_v16  ;;  %v337_v15 = vld [vmem:[%s2531_s30 + $0xb8] sm:$0xff]  ;;  %v368_v16 = vld [vmem:[%s2531_s30 + $0x1b0] sm:$0xff]  ;;  %v400_v18 = vmax.bf16 %v2320_v0, %v336_v14 }
  0xb7   : > { %v401_v19 = vmax.bf16 %v2320_v0, %v337_v15  ;;  %v432_v20 = vmax.bf16 %v2320_v0, %v368_v16 }
  0xb9   : > { %v1803_v24 = vcombine.high %v400_v18, %v401_v19  ;;  %v1802_v34 = vcombine.low %v400_v18, %v401_v19  ;;  %v1834_v35 = vcombine.low %v432_v20, %v433_v21 }
  0xbd   : > { %1036 = vmatmul.mubr.bf16.gmra.mrb[20].mxu0 %v1790_v25  ;;  %1164 = vmatmul.mubr.bf16.gmra.mrb[20].mxu1 %v1822_v26  ;;  %v1835_v25 = vcombine.high %v432_v20, %v433_v21  ;;  %v338_v26 = vld [vmem:[%s2531_s30 + $0xc0] sm:$0xff] }
  0xbe   : > { %1859 = vmatprep.mubr.msk.bf16.mxu0 %vm866_vm0, %v1793_v27  ;;  %1875 = vmatprep.mubr.msk.bf16.mxu1 %vm866_vm0, %v1825_v28  ;;  %v339_v27 = vld [vmem:[%s2531_s30 + $0xc8] sm:$0xff]  ;;  %v370_v28 = vld [vmem:[%s2531_s30 + $0x1c0] sm:$0xff]  ;;  %v402_v30 = vmax.bf16 %v2320_v0, %v338_v26 }
  0xbf   : > { %v403_v31 = vmax.bf16 %v2320_v0, %v339_v27  ;;  %v434_v32 = vmax.bf16 %v2320_v0, %v370_v28 }
  0xc1   : > { %v1805_v36 = vcombine.high %v402_v30, %v403_v31  ;;  %v1804_v46 = vcombine.low %v402_v30, %v403_v31  ;;  %v1836_v47 = vcombine.low %v434_v32, %v435_v33 }
  0xc5   : > { %1044 = vmatmul.mubr.bf16.gmra.mrb[24].mxu0 %v1792_v37  ;;  %1172 = vmatmul.mubr.bf16.gmra.mrb[24].mxu1 %v1824_v38  ;;  %v1837_v37 = vcombine.high %v434_v32, %v435_v33  ;;  %v340_v38 = vld [vmem:[%s2531_s30 + $0xd0] sm:$0xff] }
  0xc6   : > { %1860 = vmatprep.mubr.msk.bf16.mxu0 %vm866_vm0, %v1795_v39  ;;  %1876 = vmatprep.mubr.msk.bf16.mxu1 %vm866_vm0, %v1827_v40  ;;  %v341_v39 = vld [vmem:[%s2531_s30 + $0xd8] sm:$0xff]  ;;  %v372_v40 = vld [vmem:[%s2531_s30 + $0x1d0] sm:$0xff]  ;;  %v404_v42 = vmax.bf16 %v2320_v0, %v340_v38 }
  0xc7   : > { %v405_v43 = vmax.bf16 %v2320_v0, %v341_v39  ;;  %v436_v44 = vmax.bf16 %v2320_v0, %v372_v40 }
  0xc9   : > { %v1807_v48 = vcombine.high %v404_v42, %v405_v43  ;;  %v1806_v58 = vcombine.low %v404_v42, %v405_v43  ;;  %v1838_v59 = vcombine.low %v436_v44, %v437_v45 }
  0xcd   : > { %1052 = vmatmul.mubr.bf16.gmra.mrb[28].mxu0 %v1794_v49  ;;  %1180 = vmatmul.mubr.bf16.gmra.mrb[28].mxu1 %v1826_v50  ;;  %v1839_v49 = vcombine.high %v436_v44, %v437_v45  ;;  %v342_v50 = vld [vmem:[%s2531_s30 + $0xe0] sm:$0xff] }
  0xce   : > { %1861 = vmatprep.mubr.msk.bf16.mxu0 %vm866_vm0, %v1797_v51  ;;  %1877 = vmatprep.mubr.msk.bf16.mxu1 %vm866_vm0, %v1829_v52  ;;  %v343_v51 = vld [vmem:[%s2531_s30 + $0xe8] sm:$0xff]  ;;  %v374_v52 = vld [vmem:[%s2531_s30 + $0x1e0] sm:$0xff]  ;;  %v406_v54 = vmax.bf16 %v2320_v0, %v342_v50 }
  0xcf   : > { %v407_v55 = vmax.bf16 %v2320_v0, %v343_v51  ;;  %v438_v56 = vmax.bf16 %v2320_v0, %v374_v52 }
  0xd1   : > { %v1809_v60 = vcombine.high %v406_v54, %v407_v55  ;;  %v1808_v7 = vcombine.low %v406_v54, %v407_v55  ;;  %v1840_v8 = vcombine.low %v438_v56, %v439_v57 }
  0xd5   : > { %1060 = vmatmul.mubr.bf16.gmra.mrb[32].mxu0 %v1796_v61  ;;  %1188 = vmatmul.mubr.bf16.gmra.mrb[32].mxu1 %v1828_v62  ;;  %v1841_v61 = vcombine.high %v438_v56, %v439_v57  ;;  %v344_v62 = vld [vmem:[%s2531_s30 + $0xf0] sm:$0xff] }
  0xd6   : > { %1862 = vmatprep.mubr.msk.bf16.mxu0 %vm866_vm0, %v1799_v63  ;;  %1878 = vmatprep.mubr.msk.bf16.mxu1 %vm866_vm0, %v1831_v1  ;;  %v345_v63 = vld [vmem:[%s2531_s30 + $0xf8] sm:$0xff]  ;;  %v376_v1 = vld [vmem:[%s2531_s30 + $0x1f0] sm:$0xff]  ;;  %v408_v3 = vmax.bf16 %v2320_v0, %v344_v62 }
  0xd7   : > { %v409_v4 = vmax.bf16 %v2320_v0, %v345_v63  ;;  %v440_v5 = vmax.bf16 %v2320_v0, %v376_v1 }
  0xd9   : > { %v1811_v9 = vcombine.high %v408_v3, %v409_v4 }
  0xdd   : > { %1068 = vmatmul.mubr.bf16.gmra.mrb[36].mxu0 %v1798_v10  ;;  %1196 = vmatmul.mubr.bf16.gmra.mrb[36].mxu1 %v1830_v11  ;;  %v1843_v10 = vcombine.high %v440_v5, %v441_v6  ;;  %v1810_v11 = vcombine.low %v408_v3, %v409_v4 }
  0xde   : > { %1863 = vmatprep.mubr.msk.bf16.mxu0 %vm866_vm0, %v1801_v12  ;;  %1879 = vmatprep.mubr.msk.bf16.mxu1 %vm866_vm0, %v1833_v13  ;;  %v1842_v12 = vcombine.low %v440_v5, %v441_v6  ;;  %v2719_v13 = vld [vmem:[#allocation8] ss:$0 sm:$0xff] }
  0xe5   : > { %1076 = vmatmul.mubr.bf16.gmra.mrb[40].mxu0 %v1800_v22  ;;  %1204 = vmatmul.mubr.bf16.gmra.mrb[40].mxu1 %v1832_v23 }
  0xe6   : > { %1864 = vmatprep.mubr.msk.bf16.mxu0 %vm866_vm0, %v1803_v24  ;;  %1880 = vmatprep.mubr.msk.bf16.mxu1 %vm866_vm0, %v1835_v25 }
  0xed   : > { %1084 = vmatmul.mubr.bf16.gmra.mrb[44].mxu0 %v1802_v34  ;;  %1212 = vmatmul.mubr.bf16.gmra.mrb[44].mxu1 %v1834_v35 }
  0xee   : > { %1865 = vmatprep.mubr.msk.bf16.mxu0 %vm866_vm0, %v1805_v36  ;;  %1881 = vmatprep.mubr.msk.bf16.mxu1 %vm866_vm0, %v1837_v37 }
  0xf5   : > { %1092 = vmatmul.mubr.bf16.gmra.mrb[48].mxu0 %v1804_v46  ;;  %1220 = vmatmul.mubr.bf16.gmra.mrb[48].mxu1 %v1836_v47 }
  0xf6   : > { %1866 = vmatprep.mubr.msk.bf16.mxu0 %vm866_vm0, %v1807_v48  ;;  %1882 = vmatprep.mubr.msk.bf16.mxu1 %vm866_vm0, %v1839_v49 }
  0xfd   : > { %1100 = vmatmul.mubr.bf16.gmra.mrb[52].mxu0 %v1806_v58  ;;  %1228 = vmatmul.mubr.bf16.gmra.mrb[52].mxu1 %v1838_v59 }
  0xfe   : > { %1867 = vmatprep.mubr.msk.bf16.mxu0 %vm866_vm0, %v1809_v60  ;;  %1883 = vmatprep.mubr.msk.bf16.mxu1 %vm866_vm0, %v1841_v61 }
 0x105   : > { %1108 = vmatmul.mubr.bf16.gmra.mrb[56].mxu0 %v1808_v7  ;;  %1236 = vmatmul.mubr.bf16.gmra.mrb[56].mxu1 %v1840_v8 }
 0x106   : > { %1868 = vmatprep.mubr.msk.bf16.mxu0 %vm866_vm0, %v1811_v9  ;;  %1884 = vmatprep.mubr.msk.bf16.mxu1 %vm866_vm0, %v1843_v10 }
 0x10d   : > { %1116 = vmatmul.mubr.bf16.gmra.mrb[60].mxu0 %v1810_v11  ;;  %1244 = vmatmul.mubr.bf16.gmra.mrb[60].mxu1 %v1842_v12 }
 0x168   : > { %v997_v14 = vpop.f32.mrb[0].mxu0  ;;  %v1125_v15 = vpop.f32.mrb[0].mxu1 }
 0x169   : > { %v1454_v0 = vadd.f32 %v2719_v13, %v997_v14  ;;  %v1486_v16 = vadd.f32 %v2719_v13, %v1125_v15  ;;  %v999_v17 = vpop.f32.mrb[1].mxu0  ;;  %v1127_v18 = vpop.f32.mrb[1].mxu1 }
 0x16a   : > { %v1000_v19 = vpop.f32.mrb[2].mxu0  ;;  %v1128_v20 = vpop.f32.mrb[2].mxu1 }
 0x16b   : > { %2011 = vtanh.f32 %v1454_v0  ;;  %v1455_v21 = vadd.f32 %v2719_v13, %v1000_v19  ;;  %v1487_v22 = vadd.f32 %v2719_v13, %v1128_v20  ;;  %v1002_v23 = vpop.f32.mrb[3].mxu0  ;;  %v1130_v24 = vpop.f32.mrb[3].mxu1 }
 0x16c   : > { %2013 = vtanh.f32 %v1486_v16 }
 0x16d   : > { %2015 = vtanh.f32 %v1455_v21 }
 0x16e   : > { %2017 = vtanh.f32 %v1487_v22 }
 0x170   : > { %v1005_v25 = vpop.f32.mrb[4].mxu0  ;;  %v1133_v26 = vpop.f32.mrb[4].mxu1 }
 0x171   : > { %v1456_v27 = vadd.f32 %v2719_v13, %v1005_v25  ;;  %v1488_v28 = vadd.f32 %v2719_v13, %v1133_v26  ;;  %v1007_v29 = vpop.f32.mrb[5].mxu0  ;;  %v1135_v30 = vpop.f32.mrb[5].mxu1 }
 0x172   : > { %v1008_v31 = vpop.f32.mrb[6].mxu0  ;;  %v1136_v32 = vpop.f32.mrb[6].mxu1 }
 0x173   : > { %2019 = vtanh.f32 %v1456_v27  ;;  %v1457_v33 = vadd.f32 %v2719_v13, %v1008_v31  ;;  %v1489_v34 = vadd.f32 %v2719_v13, %v1136_v32  ;;  %v1010_v35 = vpop.f32.mrb[7].mxu0  ;;  %v1138_v36 = vpop.f32.mrb[7].mxu1 }
 0x174   : > { %2021 = vtanh.f32 %v1488_v28 }
 0x175   : > { %v2012_v37 = vpop.eup %2011  ;;  %2023 = vtanh.f32 %v1457_v33 }
 0x176   : > { %v2014_v38 = vpop.eup %2013  ;;  %1582 = vst [vmem:[%s2731_s20] sm:$0xff] %v2012_v37  ;;  %2025 = vtanh.f32 %v1489_v34 }
 0x177   : > { %v2016_v39 = vpop.eup %2015  ;;  %1614 = vst [vmem:[%s2731_s20 + $0x100] sm:$0xff] %v2014_v38 }
 0x178   : > { %v2018_v40 = vpop.eup %2017  ;;  %1583 = vst [vmem:[%s2731_s20 + $0x8] sm:$0xff] %v2016_v39  ;;  %v1013_v41 = vpop.f32.mrb[8].mxu0 }
 0x179   : > { %v1141_v42 = vpop.f32.mrb[8].mxu1  ;;  %1615 = vst [vmem:[%s2731_s20 + $0x108] sm:$0xff] %v2018_v40  ;;  %v1458_v43 = vadd.f32 %v2719_v13, %v1013_v41  ;;  %v1015_v45 = vpop.f32.mrb[9].mxu0 }
 0x17a   : > { %v1490_v44 = vadd.f32 %v2719_v13, %v1141_v42  ;;  %v1143_v46 = vpop.f32.mrb[9].mxu1  ;;  %v1016_v47 = vpop.f32.mrb[10].mxu0 }
 0x17b   : > { %v1144_v48 = vpop.f32.mrb[10].mxu1  ;;  %2027 = vtanh.f32 %v1458_v43  ;;  %v1459_v49 = vadd.f32 %v2719_v13, %v1016_v47  ;;  %v1018_v51 = vpop.f32.mrb[11].mxu0 }
 0x17c   : > { %v1491_v50 = vadd.f32 %v2719_v13, %v1144_v48  ;;  %v1146_v52 = vpop.f32.mrb[11].mxu1  ;;  %2029 = vtanh.f32 %v1490_v44 }
 0x17d   : > { %v2020_v53 = vpop.eup %2019  ;;  %2031 = vtanh.f32 %v1459_v49 }
 0x17e   : > { %v2022_v54 = vpop.eup %2021  ;;  %1584 = vst [vmem:[%s2731_s20 + $0x10] sm:$0xff] %v2020_v53  ;;  %2033 = vtanh.f32 %v1491_v50 }
 0x17f   : > { %v2024_v55 = vpop.eup %2023  ;;  %1616 = vst [vmem:[%s2731_s20 + $0x110] sm:$0xff] %v2022_v54 }
 0x180   : > { %v2026_v56 = vpop.eup %2025  ;;  %1585 = vst [vmem:[%s2731_s20 + $0x18] sm:$0xff] %v2024_v55  ;;  %v1021_v57 = vpop.f32.mrb[12].mxu0 }
 0x181   : > { %v1149_v58 = vpop.f32.mrb[12].mxu1  ;;  %1617 = vst [vmem:[%s2731_s20 + $0x118] sm:$0xff] %v2026_v56  ;;  %v1460_v59 = vadd.f32 %v2719_v13, %v1021_v57  ;;  %v1023_v61 = vpop.f32.mrb[13].mxu0 }
 0x182   : > { %v1492_v60 = vadd.f32 %v2719_v13, %v1149_v58  ;;  %v1151_v62 = vpop.f32.mrb[13].mxu1  ;;  %v1024_v63 = vpop.f32.mrb[14].mxu0 }
 0x183   : > { %v1152_v1 = vpop.f32.mrb[14].mxu1  ;;  %2035 = vtanh.f32 %v1460_v59  ;;  %v1461_v2 = vadd.f32 %v2719_v13, %v1024_v63  ;;  %v1026_v4 = vpop.f32.mrb[15].mxu0 }
 0x184   : > { %v1493_v3 = vadd.f32 %v2719_v13, %v1152_v1  ;;  %v1154_v5 = vpop.f32.mrb[15].mxu1  ;;  %2037 = vtanh.f32 %v1492_v60 }
 0x185   : > { %v2028_v6 = vpop.eup %2027  ;;  %2039 = vtanh.f32 %v1461_v2 }
 0x186   : > { %v2030_v7 = vpop.eup %2029  ;;  %1586 = vst [vmem:[%s2731_s20 + $0x20] sm:$0xff] %v2028_v6  ;;  %2041 = vtanh.f32 %v1493_v3 }
 0x187   : > { %v2032_v8 = vpop.eup %2031  ;;  %1618 = vst [vmem:[%s2731_s20 + $0x120] sm:$0xff] %v2030_v7 }
 0x188   : > { %v2034_v9 = vpop.eup %2033  ;;  %1587 = vst [vmem:[%s2731_s20 + $0x28] sm:$0xff] %v2032_v8  ;;  %v1029_v10 = vpop.f32.mrb[16].mxu0 }
 0x189   : > { %v1157_v11 = vpop.f32.mrb[16].mxu1  ;;  %1619 = vst [vmem:[%s2731_s20 + $0x128] sm:$0xff] %v2034_v9  ;;  %v1462_v12 = vadd.f32 %v2719_v13, %v1029_v10  ;;  %v1031_v15 = vpop.f32.mrb[17].mxu0 }
 0x18a   : > { %v1494_v14 = vadd.f32 %v2719_v13, %v1157_v11  ;;  %v1159_v0 = vpop.f32.mrb[17].mxu1  ;;  %v1032_v16 = vpop.f32.mrb[18].mxu0 }
 0x18b   : > { %v1160_v17 = vpop.f32.mrb[18].mxu1  ;;  %2043 = vtanh.f32 %v1462_v12  ;;  %v1463_v18 = vadd.f32 %v2719_v13, %v1032_v16  ;;  %v1034_v20 = vpop.f32.mrb[19].mxu0 }
 0x18c   : > { %v1495_v19 = vadd.f32 %v2719_v13, %v1160_v17  ;;  %v1162_v21 = vpop.f32.mrb[19].mxu1  ;;  %2045 = vtanh.f32 %v1494_v14 }
 0x18d   : > { %v2036_v22 = vpop.eup %2035  ;;  %2047 = vtanh.f32 %v1463_v18 }
 0x18e   : > { %v2038_v23 = vpop.eup %2037  ;;  %1588 = vst [vmem:[%s2731_s20 + $0x30] sm:$0xff] %v2036_v22  ;;  %2049 = vtanh.f32 %v1495_v19 }
 0x18f   : > { %v2040_v24 = vpop.eup %2039  ;;  %1620 = vst [vmem:[%s2731_s20 + $0x130] sm:$0xff] %v2038_v23 }
 0x190   : > { %v2042_v25 = vpop.eup %2041  ;;  %1589 = vst [vmem:[%s2731_s20 + $0x38] sm:$0xff] %v2040_v24  ;;  %v1037_v26 = vpop.f32.mrb[20].mxu0 }
 0x191   : > { %v1165_v27 = vpop.f32.mrb[20].mxu1  ;;  %1621 = vst [vmem:[%s2731_s20 + $0x138] sm:$0xff] %v2042_v25  ;;  %v1464_v28 = vadd.f32 %v2719_v13, %v1037_v26  ;;  %v1039_v30 = vpop.f32.mrb[21].mxu0 }
 0x192   : > { %v1496_v29 = vadd.f32 %v2719_v13, %v1165_v27  ;;  %v1167_v31 = vpop.f32.mrb[21].mxu1  ;;  %v1040_v32 = vpop.f32.mrb[22].mxu0 }
 0x193   : > { %v1168_v33 = vpop.f32.mrb[22].mxu1  ;;  %2051 = vtanh.f32 %v1464_v28  ;;  %v1465_v34 = vadd.f32 %v2719_v13, %v1040_v32  ;;  %v1042_v36 = vpop.f32.mrb[23].mxu0 }
 0x194   : > { %v1497_v35 = vadd.f32 %v2719_v13, %v1168_v33  ;;  %v1170_v37 = vpop.f32.mrb[23].mxu1  ;;  %2053 = vtanh.f32 %v1496_v29 }
 0x195   : > { %v2044_v38 = vpop.eup %2043  ;;  %2055 = vtanh.f32 %v1465_v34 }
 0x196   : > { %v2046_v39 = vpop.eup %2045  ;;  %1590 = vst [vmem:[%s2731_s20 + $0x40] sm:$0xff] %v2044_v38  ;;  %2057 = vtanh.f32 %v1497_v35 }
 0x197   : > { %v2048_v40 = vpop.eup %2047  ;;  %1622 = vst [vmem:[%s2731_s20 + $0x140] sm:$0xff] %v2046_v39 }
 0x198   : > { %v2050_v41 = vpop.eup %2049  ;;  %1591 = vst [vmem:[%s2731_s20 + $0x48] sm:$0xff] %v2048_v40  ;;  %v1045_v42 = vpop.f32.mrb[24].mxu0 }
 0x199   : > { %v1173_v43 = vpop.f32.mrb[24].mxu1  ;;  %1623 = vst [vmem:[%s2731_s20 + $0x148] sm:$0xff] %v2050_v41  ;;  %v1466_v44 = vadd.f32 %v2719_v13, %v1045_v42  ;;  %v1047_v46 = vpop.f32.mrb[25].mxu0 }
 0x19a   : > { %v1498_v45 = vadd.f32 %v2719_v13, %v1173_v43  ;;  %v1175_v47 = vpop.f32.mrb[25].mxu1  ;;  %v1048_v48 = vpop.f32.mrb[26].mxu0 }
 0x19b   : > { %v1176_v49 = vpop.f32.mrb[26].mxu1  ;;  %2059 = vtanh.f32 %v1466_v44  ;;  %v1467_v50 = vadd.f32 %v2719_v13, %v1048_v48  ;;  %v1050_v52 = vpop.f32.mrb[27].mxu0 }
 0x19c   : > { %v1499_v51 = vadd.f32 %v2719_v13, %v1176_v49  ;;  %v1178_v53 = vpop.f32.mrb[27].mxu1  ;;  %2061 = vtanh.f32 %v1498_v45 }
 0x19d   : > { %v2052_v54 = vpop.eup %2051  ;;  %2063 = vtanh.f32 %v1467_v50 }
 0x19e   : > { %v2054_v55 = vpop.eup %2053  ;;  %1592 = vst [vmem:[%s2731_s20 + $0x50] sm:$0xff] %v2052_v54  ;;  %2065 = vtanh.f32 %v1499_v51 }
 0x19f   : > { %v2056_v56 = vpop.eup %2055  ;;  %1624 = vst [vmem:[%s2731_s20 + $0x150] sm:$0xff] %v2054_v55 }
 0x1a0   : > { %v2058_v57 = vpop.eup %2057  ;;  %1593 = vst [vmem:[%s2731_s20 + $0x58] sm:$0xff] %v2056_v56  ;;  %v1053_v58 = vpop.f32.mrb[28].mxu0 }
 0x1a1   : > { %v1181_v59 = vpop.f32.mrb[28].mxu1  ;;  %1625 = vst [vmem:[%s2731_s20 + $0x158] sm:$0xff] %v2058_v57  ;;  %v1468_v60 = vadd.f32 %v2719_v13, %v1053_v58  ;;  %v1055_v62 = vpop.f32.mrb[29].mxu0 }
 0x1a2   : > { %v1500_v61 = vadd.f32 %v2719_v13, %v1181_v59  ;;  %v1183_v63 = vpop.f32.mrb[29].mxu1  ;;  %v1056_v1 = vpop.f32.mrb[30].mxu0 }
 0x1a3   : > { %v1184_v2 = vpop.f32.mrb[30].mxu1  ;;  %2067 = vtanh.f32 %v1468_v60  ;;  %v1469_v3 = vadd.f32 %v2719_v13, %v1056_v1  ;;  %v1058_v5 = vpop.f32.mrb[31].mxu0 }
 0x1a4   : > { %v1501_v4 = vadd.f32 %v2719_v13, %v1184_v2  ;;  %v1186_v6 = vpop.f32.mrb[31].mxu1  ;;  %2069 = vtanh.f32 %v1500_v61 }
 0x1a5   : > { %v2060_v7 = vpop.eup %2059  ;;  %2071 = vtanh.f32 %v1469_v3 }
 0x1a6   : > { %v2062_v8 = vpop.eup %2061  ;;  %1594 = vst [vmem:[%s2731_s20 + $0x60] sm:$0xff] %v2060_v7  ;;  %2073 = vtanh.f32 %v1501_v4 }
 0x1a7   : > { %v2064_v9 = vpop.eup %2063  ;;  %1626 = vst [vmem:[%s2731_s20 + $0x160] sm:$0xff] %v2062_v8 }
 0x1a8   : > { %v2066_v10 = vpop.eup %2065  ;;  %1595 = vst [vmem:[%s2731_s20 + $0x68] sm:$0xff] %v2064_v9  ;;  %v1061_v11 = vpop.f32.mrb[32].mxu0 }
 0x1a9   : > { %v1189_v12 = vpop.f32.mrb[32].mxu1  ;;  %1627 = vst [vmem:[%s2731_s20 + $0x168] sm:$0xff] %v2066_v10  ;;  %v1470_v14 = vadd.f32 %v2719_v13, %v1061_v11  ;;  %v1063_v0 = vpop.f32.mrb[33].mxu0 }
 0x1aa   : > { %v1502_v15 = vadd.f32 %v2719_v13, %v1189_v12  ;;  %v1191_v16 = vpop.f32.mrb[33].mxu1  ;;  %v1064_v17 = vpop.f32.mrb[34].mxu0 }
 0x1ab   : > { %v1192_v18 = vpop.f32.mrb[34].mxu1  ;;  %2075 = vtanh.f32 %v1470_v14  ;;  %v1471_v19 = vadd.f32 %v2719_v13, %v1064_v17  ;;  %v1066_v21 = vpop.f32.mrb[35].mxu0 }
 0x1ac   : > { %v1503_v20 = vadd.f32 %v2719_v13, %v1192_v18  ;;  %v1194_v22 = vpop.f32.mrb[35].mxu1  ;;  %2077 = vtanh.f32 %v1502_v15 }
 0x1ad   : > { %v2068_v23 = vpop.eup %2067  ;;  %2079 = vtanh.f32 %v1471_v19 }
 0x1ae   : > { %v2070_v24 = vpop.eup %2069  ;;  %1596 = vst [vmem:[%s2731_s20 + $0x70] sm:$0xff] %v2068_v23  ;;  %2081 = vtanh.f32 %v1503_v20 }
 0x1af   : > { %v2072_v25 = vpop.eup %2071  ;;  %1628 = vst [vmem:[%s2731_s20 + $0x170] sm:$0xff] %v2070_v24 }
 0x1b0   : > { %v2074_v26 = vpop.eup %2073  ;;  %1597 = vst [vmem:[%s2731_s20 + $0x78] sm:$0xff] %v2072_v25  ;;  %v1069_v27 = vpop.f32.mrb[36].mxu0 }
 0x1b1   : > { %v1197_v28 = vpop.f32.mrb[36].mxu1  ;;  %1629 = vst [vmem:[%s2731_s20 + $0x178] sm:$0xff] %v2074_v26  ;;  %v1472_v29 = vadd.f32 %v2719_v13, %v1069_v27  ;;  %v1071_v31 = vpop.f32.mrb[37].mxu0 }
 0x1b2   : > { %v1504_v30 = vadd.f32 %v2719_v13, %v1197_v28  ;;  %v1199_v32 = vpop.f32.mrb[37].mxu1  ;;  %v1072_v33 = vpop.f32.mrb[38].mxu0 }
 0x1b3   : > { %v1200_v34 = vpop.f32.mrb[38].mxu1  ;;  %2083 = vtanh.f32 %v1472_v29  ;;  %v1473_v35 = vadd.f32 %v2719_v13, %v1072_v33  ;;  %v1074_v37 = vpop.f32.mrb[39].mxu0 }
 0x1b4   : > { %v1505_v36 = vadd.f32 %v2719_v13, %v1200_v34  ;;  %v1202_v38 = vpop.f32.mrb[39].mxu1  ;;  %2085 = vtanh.f32 %v1504_v30 }
 0x1b5   : > { %v2076_v39 = vpop.eup %2075  ;;  %2087 = vtanh.f32 %v1473_v35 }
 0x1b6   : > { %v2078_v40 = vpop.eup %2077  ;;  %1598 = vst [vmem:[%s2731_s20 + $0x80] sm:$0xff] %v2076_v39  ;;  %2089 = vtanh.f32 %v1505_v36 }
 0x1b7   : > { %v2080_v41 = vpop.eup %2079  ;;  %1630 = vst [vmem:[%s2731_s20 + $0x180] sm:$0xff] %v2078_v40 }
 0x1b8   : > { %v2082_v42 = vpop.eup %2081  ;;  %1599 = vst [vmem:[%s2731_s20 + $0x88] sm:$0xff] %v2080_v41  ;;  %v1077_v43 = vpop.f32.mrb[40].mxu0 }
 0x1b9   : > { %v1205_v44 = vpop.f32.mrb[40].mxu1  ;;  %1631 = vst [vmem:[%s2731_s20 + $0x188] sm:$0xff] %v2082_v42  ;;  %v1474_v45 = vadd.f32 %v2719_v13, %v1077_v43  ;;  %v1079_v47 = vpop.f32.mrb[41].mxu0 }
 0x1ba   : > { %v1506_v46 = vadd.f32 %v2719_v13, %v1205_v44  ;;  %v1207_v48 = vpop.f32.mrb[41].mxu1  ;;  %v1080_v49 = vpop.f32.mrb[42].mxu0 }
 0x1bb   : > { %v1208_v50 = vpop.f32.mrb[42].mxu1  ;;  %2091 = vtanh.f32 %v1474_v45  ;;  %v1475_v51 = vadd.f32 %v2719_v13, %v1080_v49  ;;  %v1082_v53 = vpop.f32.mrb[43].mxu0 }
 0x1bc   : > { %v1507_v52 = vadd.f32 %v2719_v13, %v1208_v50  ;;  %v1210_v54 = vpop.f32.mrb[43].mxu1  ;;  %2093 = vtanh.f32 %v1506_v46 }
 0x1bd   : > { %v2084_v55 = vpop.eup %2083  ;;  %2095 = vtanh.f32 %v1475_v51 }
 0x1be   : > { %v2086_v56 = vpop.eup %2085  ;;  %1600 = vst [vmem:[%s2731_s20 + $0x90] sm:$0xff] %v2084_v55  ;;  %2097 = vtanh.f32 %v1507_v52 }
 0x1bf   : > { %v2088_v57 = vpop.eup %2087  ;;  %1632 = vst [vmem:[%s2731_s20 + $0x190] sm:$0xff] %v2086_v56 }
 0x1c0   : > { %v2090_v58 = vpop.eup %2089  ;;  %1601 = vst [vmem:[%s2731_s20 + $0x98] sm:$0xff] %v2088_v57  ;;  %v1085_v59 = vpop.f32.mrb[44].mxu0 }
 0x1c1   : > { %v1213_v60 = vpop.f32.mrb[44].mxu1  ;;  %1633 = vst [vmem:[%s2731_s20 + $0x198] sm:$0xff] %v2090_v58  ;;  %v1476_v61 = vadd.f32 %v2719_v13, %v1085_v59  ;;  %v1087_v63 = vpop.f32.mrb[45].mxu0 }
 0x1c2   : > { %v1508_v62 = vadd.f32 %v2719_v13, %v1213_v60  ;;  %v1215_v1 = vpop.f32.mrb[45].mxu1  ;;  %v1088_v2 = vpop.f32.mrb[46].mxu0 }
 0x1c3   : > { %v1216_v3 = vpop.f32.mrb[46].mxu1  ;;  %2099 = vtanh.f32 %v1476_v61  ;;  %v1477_v4 = vadd.f32 %v2719_v13, %v1088_v2  ;;  %v1090_v6 = vpop.f32.mrb[47].mxu0 }
 0x1c4   : > { %v1509_v5 = vadd.f32 %v2719_v13, %v1216_v3  ;;  %v1218_v7 = vpop.f32.mrb[47].mxu1  ;;  %2101 = vtanh.f32 %v1508_v62 }
 0x1c5   : > { %v2092_v8 = vpop.eup %2091  ;;  %2103 = vtanh.f32 %v1477_v4 }
 0x1c6   : > { %v2094_v9 = vpop.eup %2093  ;;  %1602 = vst [vmem:[%s2731_s20 + $0xa0] sm:$0xff] %v2092_v8  ;;  %2105 = vtanh.f32 %v1509_v5 }
 0x1c7   : > { %v2096_v10 = vpop.eup %2095  ;;  %1634 = vst [vmem:[%s2731_s20 + $0x1a0] sm:$0xff] %v2094_v9 }
 0x1c8   : > { %v2098_v11 = vpop.eup %2097  ;;  %1603 = vst [vmem:[%s2731_s20 + $0xa8] sm:$0xff] %v2096_v10  ;;  %v1093_v12 = vpop.f32.mrb[48].mxu0 }
 0x1c9   : > { %v1221_v14 = vpop.f32.mrb[48].mxu1  ;;  %1635 = vst [vmem:[%s2731_s20 + $0x1a8] sm:$0xff] %v2098_v11  ;;  %v1478_v15 = vadd.f32 %v2719_v13, %v1093_v12  ;;  %v1095_v16 = vpop.f32.mrb[49].mxu0 }
 0x1ca   : > { %v1510_v0 = vadd.f32 %v2719_v13, %v1221_v14  ;;  %v1223_v17 = vpop.f32.mrb[49].mxu1  ;;  %v1096_v18 = vpop.f32.mrb[50].mxu0 }
 0x1cb   : > { %v1224_v19 = vpop.f32.mrb[50].mxu1  ;;  %2107 = vtanh.f32 %v1478_v15  ;;  %v1479_v20 = vadd.f32 %v2719_v13, %v1096_v18  ;;  %v1098_v22 = vpop.f32.mrb[51].mxu0 }
 0x1cc   : > { %v1511_v21 = vadd.f32 %v2719_v13, %v1224_v19  ;;  %v1226_v23 = vpop.f32.mrb[51].mxu1  ;;  %2109 = vtanh.f32 %v1510_v0 }
 0x1cd   : > { %v2100_v24 = vpop.eup %2099  ;;  %2111 = vtanh.f32 %v1479_v20 }
 0x1ce   : > { %v2102_v25 = vpop.eup %2101  ;;  %1604 = vst [vmem:[%s2731_s20 + $0xb0] sm:$0xff] %v2100_v24  ;;  %2113 = vtanh.f32 %v1511_v21 }
 0x1cf   : > { %v2104_v26 = vpop.eup %2103  ;;  %1636 = vst [vmem:[%s2731_s20 + $0x1b0] sm:$0xff] %v2102_v25 }
 0x1d0   : > { %v2106_v27 = vpop.eup %2105  ;;  %1605 = vst [vmem:[%s2731_s20 + $0xb8] sm:$0xff] %v2104_v26  ;;  %v1101_v28 = vpop.f32.mrb[52].mxu0 }
 0x1d1   : > { %v1229_v29 = vpop.f32.mrb[52].mxu1  ;;  %1637 = vst [vmem:[%s2731_s20 + $0x1b8] sm:$0xff] %v2106_v27  ;;  %v1480_v30 = vadd.f32 %v2719_v13, %v1101_v28  ;;  %v1103_v32 = vpop.f32.mrb[53].mxu0 }
 0x1d2   : > { %v1512_v31 = vadd.f32 %v2719_v13, %v1229_v29  ;;  %v1231_v33 = vpop.f32.mrb[53].mxu1  ;;  %v1104_v34 = vpop.f32.mrb[54].mxu0 }
 0x1d3   : > { %v1232_v35 = vpop.f32.mrb[54].mxu1  ;;  %2115 = vtanh.f32 %v1480_v30  ;;  %v1481_v36 = vadd.f32 %v2719_v13, %v1104_v34  ;;  %v1106_v38 = vpop.f32.mrb[55].mxu0 }
 0x1d4   : > { %v1513_v37 = vadd.f32 %v2719_v13, %v1232_v35  ;;  %v1234_v39 = vpop.f32.mrb[55].mxu1  ;;  %2117 = vtanh.f32 %v1512_v31 }
 0x1d5   : > { %v2108_v40 = vpop.eup %2107  ;;  %2119 = vtanh.f32 %v1481_v36 }
 0x1d6   : > { %v2110_v41 = vpop.eup %2109  ;;  %1606 = vst [vmem:[%s2731_s20 + $0xc0] sm:$0xff] %v2108_v40  ;;  %2121 = vtanh.f32 %v1513_v37 }
 0x1d7   : > { %v2112_v42 = vpop.eup %2111  ;;  %1638 = vst [vmem:[%s2731_s20 + $0x1c0] sm:$0xff] %v2110_v41 }
 0x1d8   : > { %v2114_v43 = vpop.eup %2113  ;;  %1607 = vst [vmem:[%s2731_s20 + $0xc8] sm:$0xff] %v2112_v42  ;;  %v1109_v44 = vpop.f32.mrb[56].mxu0 }
 0x1d9   : > { %v1237_v45 = vpop.f32.mrb[56].mxu1  ;;  %1639 = vst [vmem:[%s2731_s20 + $0x1c8] sm:$0xff] %v2114_v43  ;;  %v1482_v46 = vadd.f32 %v2719_v13, %v1109_v44  ;;  %v1111_v48 = vpop.f32.mrb[57].mxu0 }
 0x1da   : > { %v1514_v47 = vadd.f32 %v2719_v13, %v1237_v45  ;;  %v1239_v49 = vpop.f32.mrb[57].mxu1  ;;  %v1112_v50 = vpop.f32.mrb[58].mxu0 }
 0x1db   : > { %v1240_v51 = vpop.f32.mrb[58].mxu1  ;;  %2123 = vtanh.f32 %v1482_v46  ;;  %v1483_v52 = vadd.f32 %v2719_v13, %v1112_v50  ;;  %v1114_v54 = vpop.f32.mrb[59].mxu0 }
 0x1dc   : > { %v1515_v53 = vadd.f32 %v2719_v13, %v1240_v51  ;;  %v1242_v55 = vpop.f32.mrb[59].mxu1  ;;  %2125 = vtanh.f32 %v1514_v47 }
 0x1dd   : > { %v2116_v56 = vpop.eup %2115  ;;  %2127 = vtanh.f32 %v1483_v52 }
 0x1de   : > { %v2118_v57 = vpop.eup %2117  ;;  %1608 = vst [vmem:[%s2731_s20 + $0xd0] sm:$0xff] %v2116_v56  ;;  %2129 = vtanh.f32 %v1515_v53 }
 0x1df   : > { %v2120_v58 = vpop.eup %2119  ;;  %1640 = vst [vmem:[%s2731_s20 + $0x1d0] sm:$0xff] %v2118_v57 }
 0x1e0   : > { %v2122_v59 = vpop.eup %2121  ;;  %1609 = vst [vmem:[%s2731_s20 + $0xd8] sm:$0xff] %v2120_v58  ;;  %v1117_v60 = vpop.f32.mrb[60].mxu0 }
 0x1e1   : > { %v1245_v61 = vpop.f32.mrb[60].mxu1  ;;  %1641 = vst [vmem:[%s2731_s20 + $0x1d8] sm:$0xff] %v2122_v59  ;;  %v1484_v62 = vadd.f32 %v2719_v13, %v1117_v60  ;;  %v1119_v1 = vpop.f32.mrb[61].mxu0 }
 0x1e2   : > { %v1516_v63 = vadd.f32 %v2719_v13, %v1245_v61  ;;  %v1247_v2 = vpop.f32.mrb[61].mxu1  ;;  %v1120_v3 = vpop.f32.mrb[62].mxu0 }
 0x1e3   : > { %v1248_v4 = vpop.f32.mrb[62].mxu1  ;;  %2131 = vtanh.f32 %v1484_v62  ;;  %v1485_v5 = vadd.f32 %v2719_v13, %v1120_v3  ;;  %v1122_v7 = vpop.f32.mrb[63].mxu0 }
 0x1e4   : > { %v1517_v6 = vadd.f32 %v2719_v13, %v1248_v4  ;;  %v1250_v8 = vpop.f32.mrb[63].mxu1  ;;  %2133 = vtanh.f32 %v1516_v63 }
 0x1e5   : > { %v2124_v9 = vpop.eup %2123  ;;  %2135 = vtanh.f32 %v1485_v5 }
 0x1e6   : > { %v2126_v10 = vpop.eup %2125  ;;  %1610 = vst [vmem:[%s2731_s20 + $0xe0] sm:$0xff] %v2124_v9  ;;  %2137 = vtanh.f32 %v1517_v6 }
 0x1e7   : > { %v2128_v11 = vpop.eup %2127  ;;  %1642 = vst [vmem:[%s2731_s20 + $0x1e0] sm:$0xff] %v2126_v10 }
 0x1e8   : > { %v2130_v12 = vpop.eup %2129  ;;  %1611 = vst [vmem:[%s2731_s20 + $0xe8] sm:$0xff] %v2128_v11 }
 0x1e9   : > { %1643 = vst [vmem:[%s2731_s20 + $0x1e8] sm:$0xff] %v2130_v12 }
 0x1ed   : > { %v2132_v13 = vpop.eup %2131 }
 0x1ee   : > { %v2134_v14 = vpop.eup %2133  ;;  %1612 = vst [vmem:[%s2731_s20 + $0xf0] sm:$0xff] %v2132_v13 }
 0x1ef   : > { %v2136_v15 = vpop.eup %2135  ;;  %1644 = vst [vmem:[%s2731_s20 + $0x1f0] sm:$0xff] %v2134_v14 }
 0x1f0   : > { %v2138_v0 = vpop.eup %2137  ;;  %1613 = vst [vmem:[%s2731_s20 + $0xf8] sm:$0xff] %v2136_v15 }
 0x1f1   : > { %1645 = vst [vmem:[%s2731_s20 + $0x1f8] sm:$0xff] %v2138_v0 }
 0x1f2   : > { %2238 = shalt.err (!%p2235_p5)
}
 0x1f3   : > { %s2239_s21 = scalar_lea.hbm %s2855_s26, 8192  ;;  %s2243_s25 = scalar_lea.hbm %s2911_s3, 32768 }
 0x1f4   : > { %p2240_p9 = scmp.ne.s32.totalorder %s2855_s26, %s2239_s21  ;;  %p2244_p3 = scmp.lt.u32.totalorder %s2855_s26, %s2911_s3 }
 0x1f5   : > { %p2245_p7 = scmp.lt.u32.totalorder %s2243_s25, %s2239_s21  ;;  %p2247_p1 = scmp.lt.u32.totalorder %s2239_s21, %s2855_s26 }
 0x1f6   : > { %p2241_p12 = pnand %p2240_p9, %p2470_p8 }
 0x1f7   : > { %p2246_p10 = por %p2245_p7, %p2244_p3 }
 0x1f8   : > { %p2242_p11 = pneg %p2241_p12 }
 0x1f9   : > { %p2248_p2 = por %p2247_p1, %p2246_p10 }
 0x1fb   : > { %p2249_p4 = pnand %p2248_p2, %p2242_p11 }
 0x1fd   : > { %2252 = shalt.err (!%p2249_p4)
}
 0x1fe   : > { %s2322_s20 = smov 128   ;;  %s2323_s22 = smov 8  }
 0x1ff   : > { %1922 = dma.vmem_to_hbm [thread:$0]  (%p2470_p8), %s2857_s24, 8192, %s2855_s26, %s1647_s15, %s2322_s20, %s2322_s20, %s2323_s22  }
 0x200 PF: > { %p1944_p6 = scmp.ge.s32.totalorder %s2311_s17, 2  ;;  %s1675_s7 = sand.u32 1, %s2291_s12  }
 0x201   : > { %p2928_p13 = scmp.ne.s32.totalorder %s2919_s23, 0  ;;  %s1676_s8 = scalar_lea.sflag [#allocation5], %s1675_s7 }
 0x203   : > { %p1936_p0 = pnand %p1944_p6, %p2928_p13 }
 0x205   : > { %2286 = dma.done.wait (!%p1936_p0), %s1676_s8, 8192  }
 0x206   : > { %2288 = vsyncadd (!%p1936_p0), %s1676_s8, 4294959104  ;;  %s20_s17 = sadd.s32 1, %s2311_s17   ;;  %s2929_s12 = smov %s2295_s13 }
 0x207   : > { %p17_p5 = scmp.ge.s32.totalorder %s20_s17, 6   ;;  %s2930_s13 = smov %s2299_s14 }
 0x208   : > { %s2931_s14 = smov %s2479_s4  ;;  %s2932_s15 = smov %s2307_s16 }
 0x209   : > { %s2933_s16 = smov %s2935_s18  ;;  %19 = sbr.rel (!%p17_p5) target bundleno = 7 (0x7), region = 94 }
 0x210   :  { %1681 = vsyncpa [#allocation4], 1 }
 0x211   :  { %1683 = vsyncpa [#allocation4 + $0x1], 1 }
 0x212   :  { %1684 = vsyncpa [#allocation7], 1 }
 0x213   :  { %1685 = vsyncpa [#allocation5], 1 }
 0x214   :  { %1687 = vsyncpa [#allocation5 + $0x1], 1 }

</bundles_post_ra>
